<compile_context>
chip_gen: v5e
topology: v5e:2x2
jax: 0.10.0
libtpu: 0.0.40
codegen_flags: <defaults>
</compile_context>

<pallas_src>
import jax
import jax.numpy as jnp
from jax import lax
from jax.experimental import pallas as pl
from jax.experimental.pallas import tpu as pltpu


# ----------------------------------------------------------------------------
# Kernel
# ----------------------------------------------------------------------------
def lstm_kernel(xg_ref,      # (1, Tt*Bt, 4*Hp)  precomputed layer-0 gate pre-activations
                whh0_ref,    # (Hp, 4*Hp)        layer-0 recurrent weights
                w1_ref,      # (2*Hp, 4*Hp)      layer-1 fused [W_ih1^T ; W_hh1^T]
                b1_ref,      # (1, 4*Hp)         layer-1 fused bias
                out_ref,     # (Bt, Hp)          last hidden state of layer 1
                h0_s, c0_s, h1_s, c1_s):   # VMEM scratch (Bt, Hp) f32, persist over grid
    Bt, Hp = h0_s.shape
    Tt = xg_ref.shape[1] // Bt

    # Zero-initialize the recurrent state at the first time chunk of each batch tile.
    @pl.when(pl.program_id(1) == 0)
    def _():
        z = jnp.zeros((Bt, Hp), jnp.float32)
        h0_s[...] = z
        c0_s[...] = z
        h1_s[...] = z
        c1_s[...] = z

    whh0 = whh0_ref[...]
    w1 = w1_ref[...]
    b1 = jnp.broadcast_to(b1_ref[...], (Bt, 4 * Hp))   # hoisted broadcast

    def split_gates(g):
        # Gate column order [i | f | o | g]: one sigmoid over 3*Hp, one tanh over Hp.
        s = jax.nn.sigmoid(g[:, :3 * Hp])
        return (s[:, 0:Hp], s[:, Hp:2 * Hp], s[:, 2 * Hp:3 * Hp],
                jnp.tanh(g[:, 3 * Hp:4 * Hp]))

    def step(xg_t):
        # Layer 0: input projection precomputed in XLA; only the recurrent matmul remains.
        h0 = h0_s[...]
        g0 = xg_t + jnp.dot(h0, whh0, preferred_element_type=jnp.float32)
        i0, f0, o0, gg0 = split_gates(g0)
        c0 = f0 * c0_s[...] + i0 * gg0
        h0 = o0 * jnp.tanh(c0)
        h0_s[...] = h0
        c0_s[...] = c0

        # Layer 1: fused single matmul over [h0, h1] (doubles K, halves MXU pushes).
        g1 = jnp.dot(jnp.concatenate([h0, h1_s[...]], axis=-1), w1,
                     preferred_element_type=jnp.float32) + b1
        i1, f1, o1, gg1 = split_gates(g1)
        c1 = f1 * c1_s[...] + i1 * gg1
        h1 = o1 * jnp.tanh(c1)
        h1_s[...] = h1
        c1_s[...] = c1

    if Tt <= 32:
        # Fully-unrolled recurrence (static trip count) so the scheduler can overlap
        # layer-1(t) gate math with layer-0(t+1) MXU pushes.
        for t in range(Tt):
            step(xg_ref[0, t * Bt:(t + 1) * Bt, :])
    else:
        # Long-sequence fallback: rolled loop, state already lives in VMEM refs.
        @pl.loop(0, Tt)
        def _(t):
            row = pl.multiple_of(t * Bt, Bt)
            step(xg_ref[0, pl.ds(row, Bt), :])

    # Only the final time chunk needs to write the (Bt, Hp) output tile.
    @pl.when(pl.program_id(1) == pl.num_programs(1) - 1)
    def _():
        out_ref[...] = h1_s[...]


# ----------------------------------------------------------------------------
# Wrapper
# ----------------------------------------------------------------------------
def lstm_model_forward(x_btf, kp, *, block_b=None, max_block_t=32):
    """x_btf: (B, T, I) float32, batch_first like the PyTorch module."""
    B, T, I = x_btf.shape
    Hp = kp["whh0"].shape[0]
    H = kp["fcw_t"].shape[0]

    # Batch tile: feed as many MXU rows as the batch allows (up to 128), padded to
    # the f32 sublane width (8).  State is kept in VMEM scratch, so large tiles
    # do not spill the vreg file.
    if block_b is None:
        block_b = min(128, pl.cdiv(B, 8) * 8)
    Bt = block_b
    Bp = pl.cdiv(B, Bt) * Bt
    num_b = Bp // Bt

    # Time chunk: largest divisor of T not exceeding max_block_t (Tt == T for modest
    # T, i.e. a single grid step per batch tile).  No time padding is allowed —
    # extra zero-input steps would change the recurrence.
    Tt = 1
    for cand in range(min(max_block_t, T), 0, -1):
        if T % cand == 0:
            Tt = cand
            break
    num_t = T // Tt

    # Layer-0 input projection hoisted to XLA: one full-MXU-efficiency
    # (B*T, I) x (I, 4*Hp) matmul; the kernel streams lane-dense pre-activations.
    xg = jnp.einsum("bti,ig->btg", x_btf.astype(jnp.float32), kp["wih0"],
                    precision=lax.Precision.HIGHEST) + kp["b0"]
    xg = jnp.pad(xg, ((0, Bp - B), (0, 0), (0, 0)))
    # Rows within a batch tile ordered [time within chunk, batch within step].
    xg_blk = (xg.reshape(num_b, Bt, T, 4 * Hp)
                .transpose(0, 2, 1, 3)
                .reshape(num_b, T * Bt, 4 * Hp))

    # Derive the VMEM limit from actual buffer sizes (double-buffered inputs/outputs
    # + persistent scratch), clamped under v7x's 64 MiB physical VMEM.
    f32b = 4
    vmem_need = (2 * (Tt * Bt * 4 * Hp          # xg stream block
                      + Hp * 4 * Hp             # whh0
                      + 2 * Hp * 4 * Hp         # w1
                      + 4 * Hp                  # b1
                      + Bt * Hp)                # out tile
                 + 4 * Bt * Hp) * f32b          # h/c scratch
    vmem_limit = max(16 << 20, min(int(vmem_need * 1.5) + (4 << 20), 56 << 20))
    # TODO(synk): for very large Hp on v7x, additionally single-buffer the
    # grid-invariant weight BlockSpecs (pipeline_mode=pl.Buffered(1)).

    flops = 2 * T * Bp * 4 * Hp * 3 * Hp                 # recurrent + fused layer-1 matmuls
    transcendentals = 10 * T * Bp * Hp                   # sigmoid(3Hp) + 2*tanh(Hp) per layer/step
    bytes_accessed = (num_b * T * Bt * 4 * Hp
                      + num_b * (3 * Hp * 4 * Hp + 4 * Hp)
                      + Bp * Hp) * f32b

    h_last_pad = pl.pallas_call(
        lstm_kernel,
        out_shape=jax.ShapeDtypeStruct((Bp, Hp), jnp.float32),
        grid_spec=pltpu.PrefetchScalarGridSpec(
            num_scalar_prefetch=0,
            grid=(num_b, num_t),
            in_specs=[
                pl.BlockSpec((1, Tt * Bt, 4 * Hp), lambda b, t: (b, t, 0)),   # xg stream
                pl.BlockSpec((Hp, 4 * Hp), lambda b, t: (0, 0)),              # W_hh0^T
                pl.BlockSpec((2 * Hp, 4 * Hp), lambda b, t: (0, 0)),          # [W_ih1^T; W_hh1^T]
                pl.BlockSpec((1, 4 * Hp), lambda b, t: (0, 0)),               # b1
            ],
            out_specs=pl.BlockSpec((Bt, Hp), lambda b, t: (b, 0)),
            scratch_shapes=[pltpu.VMEM((Bt, Hp), jnp.float32)] * 4,           # h0,c0,h1,c1
        ),
        compiler_params=pltpu.CompilerParams(
            dimension_semantics=("parallel", "arbitrary"),
            vmem_limit_bytes=vmem_limit,
        ),
        cost_estimate=pl.CostEstimate(
            flops=flops,
            transcendentals=transcendentals,
            bytes_accessed=bytes_accessed,
        ),
    )(xg_blk, kp["whh0"], kp["w1"], kp["b1"])

    # Drop batch / hidden padding; trivial (H,1) FC matvec + bias in XLA.
    h_last = h_last_pad[:B, :H]
    return h_last @ kp["fcw_t"] + kp["fcb"]


# ----------------------------------------------------------------------------
# Parameters
# ----------------------------------------------------------------------------
def init_raw_params(key, input_size, hidden_size):
    """PyTorch-shaped parameters mirroring nn.LSTM(num_layers=2) + nn.Linear(H, 1)."""
    H = hidden_size
    k = 1.0 / jnp.sqrt(jnp.float32(H))
    keys = jax.random.split(key, 10)

    def u(kk, shape):
        return jax.random.uniform(kk, shape, jnp.float32, -k, k)

    return {
        "w_ih0": u(keys[0], (4 * H, input_size)),
        "w_hh0": u(keys[1], (4 * H, H)),
        "b_ih0": u(keys[2], (4 * H,)),
        "b_hh0": u(keys[3], (4 * H,)),
        "w_ih1": u(keys[4], (4 * H, H)),
        "w_hh1": u(keys[5], (4 * H, H)),
        "b_ih1": u(keys[6], (4 * H,)),
        "b_hh1": u(keys[7], (4 * H,)),
        "fc_w": u(keys[8], (1, H)),
        "fc_b": u(keys[9], (1,)),
    }


# PyTorch gate order in weight rows is (i, f, g, o); we re-pack the padded gate
# columns to [i | f | o | g] so the kernel applies one sigmoid over 3*Hp lanes.
_GATE_DST = (0, 1, 3, 2)


def prepare_kernel_params(raw, hidden_size):
    """Transpose, fuse biases, fuse layer-1 weights, reorder gates, pad hidden to a lane multiple."""
    H = hidden_size
    Hp = max(128, ((H + 127) // 128) * 128)

    def pad_gate_cols(w_t):
        # (K, 4H) -> (K, 4Hp): gate block src_k placed at column offset _GATE_DST[src_k]*Hp.
        K = w_t.shape[0]
        out = jnp.zeros((K, 4 * Hp), jnp.float32)
        for src, dst in enumerate(_GATE_DST):
            out = out.at[:, dst * Hp:dst * Hp + H].set(w_t[:, src * H:(src + 1) * H])
        return out

    def pad_rows(w):
        # (H, N) -> (Hp, N): zero rows appended so padded h-lanes contribute nothing.
        return jnp.zeros((Hp, w.shape[1]), jnp.float32).at[:w.shape[0], :].set(w)

    wih0 = pad_gate_cols(raw["w_ih0"].T)                                      # (I,  4Hp)
    whh0 = pad_rows(pad_gate_cols(raw["w_hh0"].T))                            # (Hp, 4Hp)
    b0 = pad_gate_cols((raw["b_ih0"] + raw["b_hh0"]).reshape(1, 4 * H))       # (1,  4Hp)
    wih1 = pad_rows(pad_gate_cols(raw["w_ih1"].T))                            # (Hp, 4Hp)
    whh1 = pad_rows(pad_gate_cols(raw["w_hh1"].T))                            # (Hp, 4Hp)
    b1 = pad_gate_cols((raw["b_ih1"] + raw["b_hh1"]).reshape(1, 4 * H))       # (1,  4Hp)

    return {
        "wih0": wih0,
        "whh0": whh0,
        "b0": b0,
        "w1": jnp.concatenate([wih1, whh1], axis=0),          # (2Hp, 4Hp), matches [h0, h1]
        "b1": b1,
        "fcw_t": raw["fc_w"].T,                               # (H, 1)
        "fcb": raw["fc_b"].reshape(1, 1),                     # (1, 1)
    }


# ----------------------------------------------------------------------------
# Pure-JAX reference (PyTorch semantics, unpadded) for correctness checking
# ----------------------------------------------------------------------------
def lstm_model_reference(x_btf, raw):
    B, T, _ = x_btf.shape
    H = raw["w_hh0"].shape[1]
    hi = lax.Precision.HIGHEST

    def cell(x_t, h, c, w_ih, w_hh, b_ih, b_hh):
        g = (jnp.dot(x_t, w_ih.T, precision=hi)
             + jnp.dot(h, w_hh.T, precision=hi) + b_ih + b_hh)
        i = jax.nn.sigmoid(g[:, 0 * H:1 * H])
        f = jax.nn.sigmoid(g[:, 1 * H:2 * H])
        gg = jnp.tanh(g[:, 2 * H:3 * H])
        o = jax.nn.sigmoid(g[:, 3 * H:4 * H])
        c_new = f * c + i * gg
        return o * jnp.tanh(c_new), c_new

    h0 = c0 = h1 = c1 = jnp.zeros((B, H), jnp.float32)
    for t in range(T):
        h0, c0 = cell(x_btf[:, t, :], h0, c0,
                      raw["w_ih0"], raw["w_hh0"], raw["b_ih0"], raw["b_hh0"])
        h1, c1 = cell(h0, h1, c1,
                      raw["w_ih1"], raw["w_hh1"], raw["b_ih1"], raw["b_hh1"])
    return h1 @ raw["fc_w"].T + raw["fc_b"]


# ----------------------------------------------------------------------------
if __name__ == "__main__":
    B, T, I, H = 2, 8, 4, 64   # batch=2, seq=8, input_size=4, hidden_size=64 (module default)

    key = jax.random.PRNGKey(0)
    kx, kp_key = jax.random.split(key)
    x = jax.random.normal(kx, (B, T, I), jnp.float32)

    raw = init_raw_params(kp_key, I, H)
    kparams = prepare_kernel_params(raw, H)

    fwd = jax.jit(lstm_model_forward)
    out = jax.block_until_ready(fwd(x, kparams))

    ref = lstm_model_reference(x, raw)
    assert out.shape == (B, 1)
    assert jnp.allclose(out, ref, atol=1e-4, rtol=1e-4), (out, ref)

    print("KERNEL_OK")
</pallas_src>

<mosaic_0001>
module attributes {stable_mosaic.version = 11 : i64} {
  func.func @lstm_kernel(%arg0: i32, %arg1: i32, %arg2: memref<1x64x512xf32, #tpu.memory_space<vmem>>, %arg3: memref<128x512xf32, #tpu.memory_space<vmem>>, %arg4: memref<256x512xf32, #tpu.memory_space<vmem>>, %arg5: memref<1x512xf32, #tpu.memory_space<vmem>>, %arg6: memref<8x128xf32, #tpu.memory_space<vmem>>, %arg7: memref<8x128xf32, #tpu.memory_space<vmem>>, %arg8: memref<8x128xf32, #tpu.memory_space<vmem>>, %arg9: memref<8x128xf32, #tpu.memory_space<vmem>>, %arg10: memref<8x128xf32, #tpu.memory_space<vmem>>) attributes {dimension_semantics = [#tpu.dimension_semantics<parallel>, #tpu.dimension_semantics<arbitrary>], iteration_bounds = array<i64: 1, 1>, scalar_prefetch = 0 : i64, scratch_operands = 4 : i64, tpu.core_type = #tpu.core_type<tc>, window_params = [{transform_indices = @transform_0, window_bounds = array<i64: 1, 64, 512>}, {pipeline_mode = #tpu.pipeline_mode<synchronous>, transform_indices = @transform_1, window_bounds = array<i64: 128, 512>}, {pipeline_mode = #tpu.pipeline_mode<synchronous>, transform_indices = @transform_2, window_bounds = array<i64: 256, 512>}, {pipeline_mode = #tpu.pipeline_mode<synchronous>, transform_indices = @transform_3, window_bounds = array<i64: 1, 512>}, {transform_indices = @transform_4, window_bounds = array<i64: 8, 128>}]} {
    %c0_i32 = arith.constant 0 : i32
    %0 = arith.cmpi eq, %arg1, %c0_i32 : i32
    %1 = arith.extui %0 : i1 to i32
    %c0_i32_0 = arith.constant 0 : i32
    %2 = arith.cmpi ne, %1, %c0_i32_0 : i32
    scf.if %2 {
      %cst_184 = arith.constant 0.000000e+00 : f32
      %387 = vector.broadcast %cst_184 : f32 to vector<8x128xf32>
      %c0_185 = arith.constant 0 : index
      %c0_186 = arith.constant 0 : index
      %388 = vector.load %arg7[%c0_185, %c0_186] : memref<8x128xf32, #tpu.memory_space<vmem>>, vector<8x128xf32>
      tpu.vector_store %arg7[%c0_185, %c0_186], %387 {strides = array<i32>} : memref<8x128xf32, #tpu.memory_space<vmem>>, vector<8x128xf32>,
      %c0_187 = arith.constant 0 : index
      %c0_188 = arith.constant 0 : index
      %389 = vector.load %arg8[%c0_187, %c0_188] : memref<8x128xf32, #tpu.memory_space<vmem>>, vector<8x128xf32>
      tpu.vector_store %arg8[%c0_187, %c0_188], %387 {strides = array<i32>} : memref<8x128xf32, #tpu.memory_space<vmem>>, vector<8x128xf32>,
      %c0_189 = arith.constant 0 : index
      %c0_190 = arith.constant 0 : index
      %390 = vector.load %arg9[%c0_189, %c0_190] : memref<8x128xf32, #tpu.memory_space<vmem>>, vector<8x128xf32>
      tpu.vector_store %arg9[%c0_189, %c0_190], %387 {strides = array<i32>} : memref<8x128xf32, #tpu.memory_space<vmem>>, vector<8x128xf32>,
      %c0_191 = arith.constant 0 : index
      %c0_192 = arith.constant 0 : index
      %391 = vector.load %arg10[%c0_191, %c0_192] : memref<8x128xf32, #tpu.memory_space<vmem>>, vector<8x128xf32>
      tpu.vector_store %arg10[%c0_191, %c0_192], %387 {strides = array<i32>} : memref<8x128xf32, #tpu.memory_space<vmem>>, vector<8x128xf32>,
    } else {
    }
    %c0 = arith.constant 0 : index
    %c0_1 = arith.constant 0 : index
    %3 = vector.load %arg3[%c0, %c0_1] : memref<128x512xf32, #tpu.memory_space<vmem>>, vector<128x512xf32>
    %c0_2 = arith.constant 0 : index
    %c0_3 = arith.constant 0 : index
    %4 = vector.load %arg4[%c0_2, %c0_3] : memref<256x512xf32, #tpu.memory_space<vmem>>, vector<256x512xf32>
    %c0_4 = arith.constant 0 : index
    %c0_5 = arith.constant 0 : index
    %5 = vector.load %arg5[%c0_4, %c0_5] : memref<1x512xf32, #tpu.memory_space<vmem>>, vector<1x512xf32>
    %6 = vector.shape_cast %5 : vector<1x512xf32> to vector<1x512xf32>
    %7 = vector.broadcast %6 : vector<1x512xf32> to vector<8x512xf32>
    %c0_6 = arith.constant 0 : index
    %c0_7 = arith.constant 0 : index
    %c0_8 = arith.constant 0 : index
    %8 = vector.load %arg2[%c0_6, %c0_7, %c0_8] : memref<1x64x512xf32, #tpu.memory_space<vmem>>, vector<1x8x512xf32>
    %9 = vector.shape_cast %8 : vector<1x8x512xf32> to vector<8x512xf32>
    %c0_9 = arith.constant 0 : index
    %c0_10 = arith.constant 0 : index
    %10 = vector.load %arg7[%c0_9, %c0_10] : memref<8x128xf32, #tpu.memory_space<vmem>>, vector<8x128xf32>
    %cst = arith.constant dense<0.000000e+00> : vector<8x512xf32>
    %11 = tpu.matmul %10, %3, %cst {dimension_numbers = #tpu.dot_dimension_numbers<[1], [0], [0], [1], [0, 0, 1, 1], [], []>} : vector<8x128xf32>, vector<128x512xf32>, vector<8x512xf32> -> vector<8x512xf32>
    %12 = arith.addf %9, %11 : vector<8x512xf32>
    %13 = vector.extract_strided_slice %12 {offsets = [0, 0], sizes = [8, 384], strides = [1, 1]} : vector<8x512xf32> to vector<8x384xf32>
    %14 = arith.negf %13 : vector<8x384xf32>
    %15 = math.exp %14 : vector<8x384xf32>
    %cst_11 = arith.constant 1.000000e+00 : f32
    %16 = vector.broadcast %cst_11 : f32 to vector<8x384xf32>
    %17 = arith.addf %16, %15 : vector<8x384xf32>
    %18 = arith.divf %16, %17 : vector<8x384xf32>
    %19 = vector.extract_strided_slice %18 {offsets = [0, 0], sizes = [8, 128], strides = [1, 1]} : vector<8x384xf32> to vector<8x128xf32>
    %20 = vector.extract_strided_slice %18 {offsets = [0, 128], sizes = [8, 128], strides = [1, 1]} : vector<8x384xf32> to vector<8x128xf32>
    %21 = vector.extract_strided_slice %18 {offsets = [0, 256], sizes = [8, 128], strides = [1, 1]} : vector<8x384xf32> to vector<8x128xf32>
    %22 = vector.extract_strided_slice %12 {offsets = [0, 384], sizes = [8, 128], strides = [1, 1]} : vector<8x512xf32> to vector<8x128xf32>
    %23 = math.tanh %22 : vector<8x128xf32>
    %c0_12 = arith.constant 0 : index
    %c0_13 = arith.constant 0 : index
    %24 = vector.load %arg8[%c0_12, %c0_13] : memref<8x128xf32, #tpu.memory_space<vmem>>, vector<8x128xf32>
    %25 = arith.mulf %20, %24 : vector<8x128xf32>
    %26 = arith.mulf %19, %23 : vector<8x128xf32>
    %27 = arith.addf %25, %26 : vector<8x128xf32>
    %28 = math.tanh %27 : vector<8x128xf32>
    %29 = arith.mulf %21, %28 : vector<8x128xf32>
    %c0_14 = arith.constant 0 : index
    %c0_15 = arith.constant 0 : index
    %30 = vector.load %arg7[%c0_14, %c0_15] : memref<8x128xf32, #tpu.memory_space<vmem>>, vector<8x128xf32>
    tpu.vector_store %arg7[%c0_14, %c0_15], %29 {strides = array<i32>} : memref<8x128xf32, #tpu.memory_space<vmem>>, vector<8x128xf32>,
    %c0_16 = arith.constant 0 : index
    %c0_17 = arith.constant 0 : index
    %31 = vector.load %arg8[%c0_16, %c0_17] : memref<8x128xf32, #tpu.memory_space<vmem>>, vector<8x128xf32>
    tpu.vector_store %arg8[%c0_16, %c0_17], %27 {strides = array<i32>} : memref<8x128xf32, #tpu.memory_space<vmem>>, vector<8x128xf32>,
    %c0_18 = arith.constant 0 : index
    %c0_19 = arith.constant 0 : index
    %32 = vector.load %arg9[%c0_18, %c0_19] : memref<8x128xf32, #tpu.memory_space<vmem>>, vector<8x128xf32>
    %33 = tpu.concatenate %29, %32 in 1 : vector<8x128xf32>, vector<8x128xf32> -> vector<8x256xf32>
    %cst_20 = arith.constant dense<0.000000e+00> : vector<8x512xf32>
    %34 = tpu.matmul %33, %4, %cst_20 {dimension_numbers = #tpu.dot_dimension_numbers<[1], [0], [0], [1], [0, 0, 1, 1], [], []>} : vector<8x256xf32>, vector<256x512xf32>, vector<8x512xf32> -> vector<8x512xf32>
    %35 = arith.addf %34, %7 : vector<8x512xf32>
    %36 = vector.extract_strided_slice %35 {offsets = [0, 0], sizes = [8, 384], strides = [1, 1]} : vector<8x512xf32> to vector<8x384xf32>
    %37 = arith.negf %36 : vector<8x384xf32>
    %38 = math.exp %37 : vector<8x384xf32>
    %cst_21 = arith.constant 1.000000e+00 : f32
    %39 = vector.broadcast %cst_21 : f32 to vector<8x384xf32>
    %40 = arith.addf %39, %38 : vector<8x384xf32>
    %41 = arith.divf %39, %40 : vector<8x384xf32>
    %42 = vector.extract_strided_slice %41 {offsets = [0, 0], sizes = [8, 128], strides = [1, 1]} : vector<8x384xf32> to vector<8x128xf32>
    %43 = vector.extract_strided_slice %41 {offsets = [0, 128], sizes = [8, 128], strides = [1, 1]} : vector<8x384xf32> to vector<8x128xf32>
    %44 = vector.extract_strided_slice %41 {offsets = [0, 256], sizes = [8, 128], strides = [1, 1]} : vector<8x384xf32> to vector<8x128xf32>
    %45 = vector.extract_strided_slice %35 {offsets = [0, 384], sizes = [8, 128], strides = [1, 1]} : vector<8x512xf32> to vector<8x128xf32>
    %46 = math.tanh %45 : vector<8x128xf32>
    %c0_22 = arith.constant 0 : index
    %c0_23 = arith.constant 0 : index
    %47 = vector.load %arg10[%c0_22, %c0_23] : memref<8x128xf32, #tpu.memory_space<vmem>>, vector<8x128xf32>
    %48 = arith.mulf %43, %47 : vector<8x128xf32>
    %49 = arith.mulf %42, %46 : vector<8x128xf32>
    %50 = arith.addf %48, %49 : vector<8x128xf32>
    %51 = math.tanh %50 : vector<8x128xf32>
    %52 = arith.mulf %44, %51 : vector<8x128xf32>
    %c0_24 = arith.constant 0 : index
    %c0_25 = arith.constant 0 : index
    %53 = vector.load %arg9[%c0_24, %c0_25] : memref<8x128xf32, #tpu.memory_space<vmem>>, vector<8x128xf32>
    tpu.vector_store %arg9[%c0_24, %c0_25], %52 {strides = array<i32>} : memref<8x128xf32, #tpu.memory_space<vmem>>, vector<8x128xf32>,
    %c0_26 = arith.constant 0 : index
    %c0_27 = arith.constant 0 : index
    %54 = vector.load %arg10[%c0_26, %c0_27] : memref<8x128xf32, #tpu.memory_space<vmem>>, vector<8x128xf32>
    tpu.vector_store %arg10[%c0_26, %c0_27], %50 {strides = array<i32>} : memref<8x128xf32, #tpu.memory_space<vmem>>, vector<8x128xf32>,
    %c0_28 = arith.constant 0 : index
    %c8 = arith.constant 8 : index
    %c0_29 = arith.constant 0 : index
    %55 = vector.load %arg2[%c0_28, %c8, %c0_29] : memref<1x64x512xf32, #tpu.memory_space<vmem>>, vector<1x8x512xf32>
    %56 = vector.shape_cast %55 : vector<1x8x512xf32> to vector<8x512xf32>
    %c0_30 = arith.constant 0 : index
    %c0_31 = arith.constant 0 : index
    %57 = vector.load %arg7[%c0_30, %c0_31] : memref<8x128xf32, #tpu.memory_space<vmem>>, vector<8x128xf32>
    %cst_32 = arith.constant dense<0.000000e+00> : vector<8x512xf32>
    %58 = tpu.matmul %57, %3, %cst_32 {dimension_numbers = #tpu.dot_dimension_numbers<[1], [0], [0], [1], [0, 0, 1, 1], [], []>} : vector<8x128xf32>, vector<128x512xf32>, vector<8x512xf32> -> vector<8x512xf32>
    %59 = arith.addf %56, %58 : vector<8x512xf32>
    %60 = vector.extract_strided_slice %59 {offsets = [0, 0], sizes = [8, 384], strides = [1, 1]} : vector<8x512xf32> to vector<8x384xf32>
    %61 = arith.negf %60 : vector<8x384xf32>
    %62 = math.exp %61 : vector<8x384xf32>
    %cst_33 = arith.constant 1.000000e+00 : f32
    %63 = vector.broadcast %cst_33 : f32 to vector<8x384xf32>
    %64 = arith.addf %63, %62 : vector<8x384xf32>
    %65 = arith.divf %63, %64 : vector<8x384xf32>
    %66 = vector.extract_strided_slice %65 {offsets = [0, 0], sizes = [8, 128], strides = [1, 1]} : vector<8x384xf32> to vector<8x128xf32>
    %67 = vector.extract_strided_slice %65 {offsets = [0, 128], sizes = [8, 128], strides = [1, 1]} : vector<8x384xf32> to vector<8x128xf32>
    %68 = vector.extract_strided_slice %65 {offsets = [0, 256], sizes = [8, 128], strides = [1, 1]} : vector<8x384xf32> to vector<8x128xf32>
    %69 = vector.extract_strided_slice %59 {offsets = [0, 384], sizes = [8, 128], strides = [1, 1]} : vector<8x512xf32> to vector<8x128xf32>
    %70 = math.tanh %69 : vector<8x128xf32>
    %c0_34 = arith.constant 0 : index
    %c0_35 = arith.constant 0 : index
    %71 = vector.load %arg8[%c0_34, %c0_35] : memref<8x128xf32, #tpu.memory_space<vmem>>, vector<8x128xf32>
    %72 = arith.mulf %67, %71 : vector<8x128xf32>
    %73 = arith.mulf %66, %70 : vector<8x128xf32>
    %74 = arith.addf %72, %73 : vector<8x128xf32>
    %75 = math.tanh %74 : vector<8x128xf32>
    %76 = arith.mulf %68, %75 : vector<8x128xf32>
    %c0_36 = arith.constant 0 : index
    %c0_37 = arith.constant 0 : index
    %77 = vector.load %arg7[%c0_36, %c0_37] : memref<8x128xf32, #tpu.memory_space<vmem>>, vector<8x128xf32>
    tpu.vector_store %arg7[%c0_36, %c0_37], %76 {strides = array<i32>} : memref<8x128xf32, #tpu.memory_space<vmem>>, vector<8x128xf32>,
    %c0_38 = arith.constant 0 : index
    %c0_39 = arith.constant 0 : index
    %78 = vector.load %arg8[%c0_38, %c0_39] : memref<8x128xf32, #tpu.memory_space<vmem>>, vector<8x128xf32>
    tpu.vector_store %arg8[%c0_38, %c0_39], %74 {strides = array<i32>} : memref<8x128xf32, #tpu.memory_space<vmem>>, vector<8x128xf32>,
    %c0_40 = arith.constant 0 : index
    %c0_41 = arith.constant 0 : index
    %79 = vector.load %arg9[%c0_40, %c0_41] : memref<8x128xf32, #tpu.memory_space<vmem>>, vector<8x128xf32>
    %80 = tpu.concatenate %76, %79 in 1 : vector<8x128xf32>, vector<8x128xf32> -> vector<8x256xf32>
    %cst_42 = arith.constant dense<0.000000e+00> : vector<8x512xf32>
    %81 = tpu.matmul %80, %4, %cst_42 {dimension_numbers = #tpu.dot_dimension_numbers<[1], [0], [0], [1], [0, 0, 1, 1], [], []>} : vector<8x256xf32>, vector<256x512xf32>, vector<8x512xf32> -> vector<8x512xf32>
    %82 = arith.addf %81, %7 : vector<8x512xf32>
    %83 = vector.extract_strided_slice %82 {offsets = [0, 0], sizes = [8, 384], strides = [1, 1]} : vector<8x512xf32> to vector<8x384xf32>
    %84 = arith.negf %83 : vector<8x384xf32>
    %85 = math.exp %84 : vector<8x384xf32>
    %cst_43 = arith.constant 1.000000e+00 : f32
    %86 = vector.broadcast %cst_43 : f32 to vector<8x384xf32>
    %87 = arith.addf %86, %85 : vector<8x384xf32>
    %88 = arith.divf %86, %87 : vector<8x384xf32>
    %89 = vector.extract_strided_slice %88 {offsets = [0, 0], sizes = [8, 128], strides = [1, 1]} : vector<8x384xf32> to vector<8x128xf32>
    %90 = vector.extract_strided_slice %88 {offsets = [0, 128], sizes = [8, 128], strides = [1, 1]} : vector<8x384xf32> to vector<8x128xf32>
    %91 = vector.extract_strided_slice %88 {offsets = [0, 256], sizes = [8, 128], strides = [1, 1]} : vector<8x384xf32> to vector<8x128xf32>
    %92 = vector.extract_strided_slice %82 {offsets = [0, 384], sizes = [8, 128], strides = [1, 1]} : vector<8x512xf32> to vector<8x128xf32>
    %93 = math.tanh %92 : vector<8x128xf32>
    %c0_44 = arith.constant 0 : index
    %c0_45 = arith.constant 0 : index
    %94 = vector.load %arg10[%c0_44, %c0_45] : memref<8x128xf32, #tpu.memory_space<vmem>>, vector<8x128xf32>
    %95 = arith.mulf %90, %94 : vector<8x128xf32>
    %96 = arith.mulf %89, %93 : vector<8x128xf32>
    %97 = arith.addf %95, %96 : vector<8x128xf32>
    %98 = math.tanh %97 : vector<8x128xf32>
    %99 = arith.mulf %91, %98 : vector<8x128xf32>
    %c0_46 = arith.constant 0 : index
    %c0_47 = arith.constant 0 : index
    %100 = vector.load %arg9[%c0_46, %c0_47] : memref<8x128xf32, #tpu.memory_space<vmem>>, vector<8x128xf32>
    tpu.vector_store %arg9[%c0_46, %c0_47], %99 {strides = array<i32>} : memref<8x128xf32, #tpu.memory_space<vmem>>, vector<8x128xf32>,
    %c0_48 = arith.constant 0 : index
    %c0_49 = arith.constant 0 : index
    %101 = vector.load %arg10[%c0_48, %c0_49] : memref<8x128xf32, #tpu.memory_space<vmem>>, vector<8x128xf32>
    tpu.vector_store %arg10[%c0_48, %c0_49], %97 {strides = array<i32>} : memref<8x128xf32, #tpu.memory_space<vmem>>, vector<8x128xf32>,
    %c0_50 = arith.constant 0 : index
    %c16 = arith.constant 16 : index
    %c0_51 = arith.constant 0 : index
    %102 = vector.load %arg2[%c0_50, %c16, %c0_51] : memref<1x64x512xf32, #tpu.memory_space<vmem>>, vector<1x8x512xf32>
    %103 = vector.shape_cast %102 : vector<1x8x512xf32> to vector<8x512xf32>
    %c0_52 = arith.constant 0 : index
    %c0_53 = arith.constant 0 : index
    %104 = vector.load %arg7[%c0_52, %c0_53] : memref<8x128xf32, #tpu.memory_space<vmem>>, vector<8x128xf32>
    %cst_54 = arith.constant dense<0.000000e+00> : vector<8x512xf32>
    %105 = tpu.matmul %104, %3, %cst_54 {dimension_numbers = #tpu.dot_dimension_numbers<[1], [0], [0], [1], [0, 0, 1, 1], [], []>} : vector<8x128xf32>, vector<128x512xf32>, vector<8x512xf32> -> vector<8x512xf32>
    %106 = arith.addf %103, %105 : vector<8x512xf32>
    %107 = vector.extract_strided_slice %106 {offsets = [0, 0], sizes = [8, 384], strides = [1, 1]} : vector<8x512xf32> to vector<8x384xf32>
    %108 = arith.negf %107 : vector<8x384xf32>
    %109 = math.exp %108 : vector<8x384xf32>
    %cst_55 = arith.constant 1.000000e+00 : f32
    %110 = vector.broadcast %cst_55 : f32 to vector<8x384xf32>
    %111 = arith.addf %110, %109 : vector<8x384xf32>
    %112 = arith.divf %110, %111 : vector<8x384xf32>
    %113 = vector.extract_strided_slice %112 {offsets = [0, 0], sizes = [8, 128], strides = [1, 1]} : vector<8x384xf32> to vector<8x128xf32>
    %114 = vector.extract_strided_slice %112 {offsets = [0, 128], sizes = [8, 128], strides = [1, 1]} : vector<8x384xf32> to vector<8x128xf32>
    %115 = vector.extract_strided_slice %112 {offsets = [0, 256], sizes = [8, 128], strides = [1, 1]} : vector<8x384xf32> to vector<8x128xf32>
    %116 = vector.extract_strided_slice %106 {offsets = [0, 384], sizes = [8, 128], strides = [1, 1]} : vector<8x512xf32> to vector<8x128xf32>
    %117 = math.tanh %116 : vector<8x128xf32>
    %c0_56 = arith.constant 0 : index
    %c0_57 = arith.constant 0 : index
    %118 = vector.load %arg8[%c0_56, %c0_57] : memref<8x128xf32, #tpu.memory_space<vmem>>, vector<8x128xf32>
    %119 = arith.mulf %114, %118 : vector<8x128xf32>
    %120 = arith.mulf %113, %117 : vector<8x128xf32>
    %121 = arith.addf %119, %120 : vector<8x128xf32>
    %122 = math.tanh %121 : vector<8x128xf32>
    %123 = arith.mulf %115, %122 : vector<8x128xf32>
    %c0_58 = arith.constant 0 : index
    %c0_59 = arith.constant 0 : index
    %124 = vector.load %arg7[%c0_58, %c0_59] : memref<8x128xf32, #tpu.memory_space<vmem>>, vector<8x128xf32>
    tpu.vector_store %arg7[%c0_58, %c0_59], %123 {strides = array<i32>} : memref<8x128xf32, #tpu.memory_space<vmem>>, vector<8x128xf32>,
    %c0_60 = arith.constant 0 : index
    %c0_61 = arith.constant 0 : index
    %125 = vector.load %arg8[%c0_60, %c0_61] : memref<8x128xf32, #tpu.memory_space<vmem>>, vector<8x128xf32>
    tpu.vector_store %arg8[%c0_60, %c0_61], %121 {strides = array<i32>} : memref<8x128xf32, #tpu.memory_space<vmem>>, vector<8x128xf32>,
    %c0_62 = arith.constant 0 : index
    %c0_63 = arith.constant 0 : index
    %126 = vector.load %arg9[%c0_62, %c0_63] : memref<8x128xf32, #tpu.memory_space<vmem>>, vector<8x128xf32>
    %127 = tpu.concatenate %123, %126 in 1 : vector<8x128xf32>, vector<8x128xf32> -> vector<8x256xf32>
    %cst_64 = arith.constant dense<0.000000e+00> : vector<8x512xf32>
    %128 = tpu.matmul %127, %4, %cst_64 {dimension_numbers = #tpu.dot_dimension_numbers<[1], [0], [0], [1], [0, 0, 1, 1], [], []>} : vector<8x256xf32>, vector<256x512xf32>, vector<8x512xf32> -> vector<8x512xf32>
    %129 = arith.addf %128, %7 : vector<8x512xf32>
    %130 = vector.extract_strided_slice %129 {offsets = [0, 0], sizes = [8, 384], strides = [1, 1]} : vector<8x512xf32> to vector<8x384xf32>
    %131 = arith.negf %130 : vector<8x384xf32>
    %132 = math.exp %131 : vector<8x384xf32>
    %cst_65 = arith.constant 1.000000e+00 : f32
    %133 = vector.broadcast %cst_65 : f32 to vector<8x384xf32>
    %134 = arith.addf %133, %132 : vector<8x384xf32>
    %135 = arith.divf %133, %134 : vector<8x384xf32>
    %136 = vector.extract_strided_slice %135 {offsets = [0, 0], sizes = [8, 128], strides = [1, 1]} : vector<8x384xf32> to vector<8x128xf32>
    %137 = vector.extract_strided_slice %135 {offsets = [0, 128], sizes = [8, 128], strides = [1, 1]} : vector<8x384xf32> to vector<8x128xf32>
    %138 = vector.extract_strided_slice %135 {offsets = [0, 256], sizes = [8, 128], strides = [1, 1]} : vector<8x384xf32> to vector<8x128xf32>
    %139 = vector.extract_strided_slice %129 {offsets = [0, 384], sizes = [8, 128], strides = [1, 1]} : vector<8x512xf32> to vector<8x128xf32>
    %140 = math.tanh %139 : vector<8x128xf32>
    %c0_66 = arith.constant 0 : index
    %c0_67 = arith.constant 0 : index
    %141 = vector.load %arg10[%c0_66, %c0_67] : memref<8x128xf32, #tpu.memory_space<vmem>>, vector<8x128xf32>
    %142 = arith.mulf %137, %141 : vector<8x128xf32>
    %143 = arith.mulf %136, %140 : vector<8x128xf32>
    %144 = arith.addf %142, %143 : vector<8x128xf32>
    %145 = math.tanh %144 : vector<8x128xf32>
    %146 = arith.mulf %138, %145 : vector<8x128xf32>
    %c0_68 = arith.constant 0 : index
    %c0_69 = arith.constant 0 : index
    %147 = vector.load %arg9[%c0_68, %c0_69] : memref<8x128xf32, #tpu.memory_space<vmem>>, vector<8x128xf32>
    tpu.vector_store %arg9[%c0_68, %c0_69], %146 {strides = array<i32>} : memref<8x128xf32, #tpu.memory_space<vmem>>, vector<8x128xf32>,
    %c0_70 = arith.constant 0 : index
    %c0_71 = arith.constant 0 : index
    %148 = vector.load %arg10[%c0_70, %c0_71] : memref<8x128xf32, #tpu.memory_space<vmem>>, vector<8x128xf32>
    tpu.vector_store %arg10[%c0_70, %c0_71], %144 {strides = array<i32>} : memref<8x128xf32, #tpu.memory_space<vmem>>, vector<8x128xf32>,
    %c0_72 = arith.constant 0 : index
    %c24 = arith.constant 24 : index
    %c0_73 = arith.constant 0 : index
    %149 = vector.load %arg2[%c0_72, %c24, %c0_73] : memref<1x64x512xf32, #tpu.memory_space<vmem>>, vector<1x8x512xf32>
    %150 = vector.shape_cast %149 : vector<1x8x512xf32> to vector<8x512xf32>
    %c0_74 = arith.constant 0 : index
    %c0_75 = arith.constant 0 : index
    %151 = vector.load %arg7[%c0_74, %c0_75] : memref<8x128xf32, #tpu.memory_space<vmem>>, vector<8x128xf32>
    %cst_76 = arith.constant dense<0.000000e+00> : vector<8x512xf32>
    %152 = tpu.matmul %151, %3, %cst_76 {dimension_numbers = #tpu.dot_dimension_numbers<[1], [0], [0], [1], [0, 0, 1, 1], [], []>} : vector<8x128xf32>, vector<128x512xf32>, vector<8x512xf32> -> vector<8x512xf32>
    %153 = arith.addf %150, %152 : vector<8x512xf32>
    %154 = vector.extract_strided_slice %153 {offsets = [0, 0], sizes = [8, 384], strides = [1, 1]} : vector<8x512xf32> to vector<8x384xf32>
    %155 = arith.negf %154 : vector<8x384xf32>
    %156 = math.exp %155 : vector<8x384xf32>
    %cst_77 = arith.constant 1.000000e+00 : f32
    %157 = vector.broadcast %cst_77 : f32 to vector<8x384xf32>
    %158 = arith.addf %157, %156 : vector<8x384xf32>
    %159 = arith.divf %157, %158 : vector<8x384xf32>
    %160 = vector.extract_strided_slice %159 {offsets = [0, 0], sizes = [8, 128], strides = [1, 1]} : vector<8x384xf32> to vector<8x128xf32>
    %161 = vector.extract_strided_slice %159 {offsets = [0, 128], sizes = [8, 128], strides = [1, 1]} : vector<8x384xf32> to vector<8x128xf32>
    %162 = vector.extract_strided_slice %159 {offsets = [0, 256], sizes = [8, 128], strides = [1, 1]} : vector<8x384xf32> to vector<8x128xf32>
    %163 = vector.extract_strided_slice %153 {offsets = [0, 384], sizes = [8, 128], strides = [1, 1]} : vector<8x512xf32> to vector<8x128xf32>
    %164 = math.tanh %163 : vector<8x128xf32>
    %c0_78 = arith.constant 0 : index
    %c0_79 = arith.constant 0 : index
    %165 = vector.load %arg8[%c0_78, %c0_79] : memref<8x128xf32, #tpu.memory_space<vmem>>, vector<8x128xf32>
    %166 = arith.mulf %161, %165 : vector<8x128xf32>
    %167 = arith.mulf %160, %164 : vector<8x128xf32>
    %168 = arith.addf %166, %167 : vector<8x128xf32>
    %169 = math.tanh %168 : vector<8x128xf32>
    %170 = arith.mulf %162, %169 : vector<8x128xf32>
    %c0_80 = arith.constant 0 : index
    %c0_81 = arith.constant 0 : index
    %171 = vector.load %arg7[%c0_80, %c0_81] : memref<8x128xf32, #tpu.memory_space<vmem>>, vector<8x128xf32>
    tpu.vector_store %arg7[%c0_80, %c0_81], %170 {strides = array<i32>} : memref<8x128xf32, #tpu.memory_space<vmem>>, vector<8x128xf32>,
    %c0_82 = arith.constant 0 : index
    %c0_83 = arith.constant 0 : index
    %172 = vector.load %arg8[%c0_82, %c0_83] : memref<8x128xf32, #tpu.memory_space<vmem>>, vector<8x128xf32>
    tpu.vector_store %arg8[%c0_82, %c0_83], %168 {strides = array<i32>} : memref<8x128xf32, #tpu.memory_space<vmem>>, vector<8x128xf32>,
    %c0_84 = arith.constant 0 : index
    %c0_85 = arith.constant 0 : index
    %173 = vector.load %arg9[%c0_84, %c0_85] : memref<8x128xf32, #tpu.memory_space<vmem>>, vector<8x128xf32>
    %174 = tpu.concatenate %170, %173 in 1 : vector<8x128xf32>, vector<8x128xf32> -> vector<8x256xf32>
    %cst_86 = arith.constant dense<0.000000e+00> : vector<8x512xf32>
    %175 = tpu.matmul %174, %4, %cst_86 {dimension_numbers = #tpu.dot_dimension_numbers<[1], [0], [0], [1], [0, 0, 1, 1], [], []>} : vector<8x256xf32>, vector<256x512xf32>, vector<8x512xf32> -> vector<8x512xf32>
    %176 = arith.addf %175, %7 : vector<8x512xf32>
    %177 = vector.extract_strided_slice %176 {offsets = [0, 0], sizes = [8, 384], strides = [1, 1]} : vector<8x512xf32> to vector<8x384xf32>
    %178 = arith.negf %177 : vector<8x384xf32>
    %179 = math.exp %178 : vector<8x384xf32>
    %cst_87 = arith.constant 1.000000e+00 : f32
    %180 = vector.broadcast %cst_87 : f32 to vector<8x384xf32>
    %181 = arith.addf %180, %179 : vector<8x384xf32>
    %182 = arith.divf %180, %181 : vector<8x384xf32>
    %183 = vector.extract_strided_slice %182 {offsets = [0, 0], sizes = [8, 128], strides = [1, 1]} : vector<8x384xf32> to vector<8x128xf32>
    %184 = vector.extract_strided_slice %182 {offsets = [0, 128], sizes = [8, 128], strides = [1, 1]} : vector<8x384xf32> to vector<8x128xf32>
    %185 = vector.extract_strided_slice %182 {offsets = [0, 256], sizes = [8, 128], strides = [1, 1]} : vector<8x384xf32> to vector<8x128xf32>
    %186 = vector.extract_strided_slice %176 {offsets = [0, 384], sizes = [8, 128], strides = [1, 1]} : vector<8x512xf32> to vector<8x128xf32>
    %187 = math.tanh %186 : vector<8x128xf32>
    %c0_88 = arith.constant 0 : index
    %c0_89 = arith.constant 0 : index
    %188 = vector.load %arg10[%c0_88, %c0_89] : memref<8x128xf32, #tpu.memory_space<vmem>>, vector<8x128xf32>
    %189 = arith.mulf %184, %188 : vector<8x128xf32>
    %190 = arith.mulf %183, %187 : vector<8x128xf32>
    %191 = arith.addf %189, %190 : vector<8x128xf32>
    %192 = math.tanh %191 : vector<8x128xf32>
    %193 = arith.mulf %185, %192 : vector<8x128xf32>
    %c0_90 = arith.constant 0 : index
    %c0_91 = arith.constant 0 : index
    %194 = vector.load %arg9[%c0_90, %c0_91] : memref<8x128xf32, #tpu.memory_space<vmem>>, vector<8x128xf32>
    tpu.vector_store %arg9[%c0_90, %c0_91], %193 {strides = array<i32>} : memref<8x128xf32, #tpu.memory_space<vmem>>, vector<8x128xf32>,
    %c0_92 = arith.constant 0 : index
    %c0_93 = arith.constant 0 : index
    %195 = vector.load %arg10[%c0_92, %c0_93] : memref<8x128xf32, #tpu.memory_space<vmem>>, vector<8x128xf32>
    tpu.vector_store %arg10[%c0_92, %c0_93], %191 {strides = array<i32>} : memref<8x128xf32, #tpu.memory_space<vmem>>, vector<8x128xf32>,
    %c0_94 = arith.constant 0 : index
    %c32 = arith.constant 32 : index
    %c0_95 = arith.constant 0 : index
    %196 = vector.load %arg2[%c0_94, %c32, %c0_95] : memref<1x64x512xf32, #tpu.memory_space<vmem>>, vector<1x8x512xf32>
    %197 = vector.shape_cast %196 : vector<1x8x512xf32> to vector<8x512xf32>
    %c0_96 = arith.constant 0 : index
    %c0_97 = arith.constant 0 : index
    %198 = vector.load %arg7[%c0_96, %c0_97] : memref<8x128xf32, #tpu.memory_space<vmem>>, vector<8x128xf32>
    %cst_98 = arith.constant dense<0.000000e+00> : vector<8x512xf32>
    %199 = tpu.matmul %198, %3, %cst_98 {dimension_numbers = #tpu.dot_dimension_numbers<[1], [0], [0], [1], [0, 0, 1, 1], [], []>} : vector<8x128xf32>, vector<128x512xf32>, vector<8x512xf32> -> vector<8x512xf32>
    %200 = arith.addf %197, %199 : vector<8x512xf32>
    %201 = vector.extract_strided_slice %200 {offsets = [0, 0], sizes = [8, 384], strides = [1, 1]} : vector<8x512xf32> to vector<8x384xf32>
    %202 = arith.negf %201 : vector<8x384xf32>
    %203 = math.exp %202 : vector<8x384xf32>
    %cst_99 = arith.constant 1.000000e+00 : f32
    %204 = vector.broadcast %cst_99 : f32 to vector<8x384xf32>
    %205 = arith.addf %204, %203 : vector<8x384xf32>
    %206 = arith.divf %204, %205 : vector<8x384xf32>
    %207 = vector.extract_strided_slice %206 {offsets = [0, 0], sizes = [8, 128], strides = [1, 1]} : vector<8x384xf32> to vector<8x128xf32>
    %208 = vector.extract_strided_slice %206 {offsets = [0, 128], sizes = [8, 128], strides = [1, 1]} : vector<8x384xf32> to vector<8x128xf32>
    %209 = vector.extract_strided_slice %206 {offsets = [0, 256], sizes = [8, 128], strides = [1, 1]} : vector<8x384xf32> to vector<8x128xf32>
    %210 = vector.extract_strided_slice %200 {offsets = [0, 384], sizes = [8, 128], strides = [1, 1]} : vector<8x512xf32> to vector<8x128xf32>
    %211 = math.tanh %210 : vector<8x128xf32>
    %c0_100 = arith.constant 0 : index
    %c0_101 = arith.constant 0 : index
    %212 = vector.load %arg8[%c0_100, %c0_101] : memref<8x128xf32, #tpu.memory_space<vmem>>, vector<8x128xf32>
    %213 = arith.mulf %208, %212 : vector<8x128xf32>
    %214 = arith.mulf %207, %211 : vector<8x128xf32>
    %215 = arith.addf %213, %214 : vector<8x128xf32>
    %216 = math.tanh %215 : vector<8x128xf32>
    %217 = arith.mulf %209, %216 : vector<8x128xf32>
    %c0_102 = arith.constant 0 : index
    %c0_103 = arith.constant 0 : index
    %218 = vector.load %arg7[%c0_102, %c0_103] : memref<8x128xf32, #tpu.memory_space<vmem>>, vector<8x128xf32>
    tpu.vector_store %arg7[%c0_102, %c0_103], %217 {strides = array<i32>} : memref<8x128xf32, #tpu.memory_space<vmem>>, vector<8x128xf32>,
    %c0_104 = arith.constant 0 : index
    %c0_105 = arith.constant 0 : index
    %219 = vector.load %arg8[%c0_104, %c0_105] : memref<8x128xf32, #tpu.memory_space<vmem>>, vector<8x128xf32>
    tpu.vector_store %arg8[%c0_104, %c0_105], %215 {strides = array<i32>} : memref<8x128xf32, #tpu.memory_space<vmem>>, vector<8x128xf32>,
    %c0_106 = arith.constant 0 : index
    %c0_107 = arith.constant 0 : index
    %220 = vector.load %arg9[%c0_106, %c0_107] : memref<8x128xf32, #tpu.memory_space<vmem>>, vector<8x128xf32>
    %221 = tpu.concatenate %217, %220 in 1 : vector<8x128xf32>, vector<8x128xf32> -> vector<8x256xf32>
    %cst_108 = arith.constant dense<0.000000e+00> : vector<8x512xf32>
    %222 = tpu.matmul %221, %4, %cst_108 {dimension_numbers = #tpu.dot_dimension_numbers<[1], [0], [0], [1], [0, 0, 1, 1], [], []>} : vector<8x256xf32>, vector<256x512xf32>, vector<8x512xf32> -> vector<8x512xf32>
    %223 = arith.addf %222, %7 : vector<8x512xf32>
    %224 = vector.extract_strided_slice %223 {offsets = [0, 0], sizes = [8, 384], strides = [1, 1]} : vector<8x512xf32> to vector<8x384xf32>
    %225 = arith.negf %224 : vector<8x384xf32>
    %226 = math.exp %225 : vector<8x384xf32>
    %cst_109 = arith.constant 1.000000e+00 : f32
    %227 = vector.broadcast %cst_109 : f32 to vector<8x384xf32>
    %228 = arith.addf %227, %226 : vector<8x384xf32>
    %229 = arith.divf %227, %228 : vector<8x384xf32>
    %230 = vector.extract_strided_slice %229 {offsets = [0, 0], sizes = [8, 128], strides = [1, 1]} : vector<8x384xf32> to vector<8x128xf32>
    %231 = vector.extract_strided_slice %229 {offsets = [0, 128], sizes = [8, 128], strides = [1, 1]} : vector<8x384xf32> to vector<8x128xf32>
    %232 = vector.extract_strided_slice %229 {offsets = [0, 256], sizes = [8, 128], strides = [1, 1]} : vector<8x384xf32> to vector<8x128xf32>
    %233 = vector.extract_strided_slice %223 {offsets = [0, 384], sizes = [8, 128], strides = [1, 1]} : vector<8x512xf32> to vector<8x128xf32>
    %234 = math.tanh %233 : vector<8x128xf32>
    %c0_110 = arith.constant 0 : index
    %c0_111 = arith.constant 0 : index
    %235 = vector.load %arg10[%c0_110, %c0_111] : memref<8x128xf32, #tpu.memory_space<vmem>>, vector<8x128xf32>
    %236 = arith.mulf %231, %235 : vector<8x128xf32>
    %237 = arith.mulf %230, %234 : vector<8x128xf32>
    %238 = arith.addf %236, %237 : vector<8x128xf32>
    %239 = math.tanh %238 : vector<8x128xf32>
    %240 = arith.mulf %232, %239 : vector<8x128xf32>
    %c0_112 = arith.constant 0 : index
    %c0_113 = arith.constant 0 : index
    %241 = vector.load %arg9[%c0_112, %c0_113] : memref<8x128xf32, #tpu.memory_space<vmem>>, vector<8x128xf32>
    tpu.vector_store %arg9[%c0_112, %c0_113], %240 {strides = array<i32>} : memref<8x128xf32, #tpu.memory_space<vmem>>, vector<8x128xf32>,
    %c0_114 = arith.constant 0 : index
    %c0_115 = arith.constant 0 : index
    %242 = vector.load %arg10[%c0_114, %c0_115] : memref<8x128xf32, #tpu.memory_space<vmem>>, vector<8x128xf32>
    tpu.vector_store %arg10[%c0_114, %c0_115], %238 {strides = array<i32>} : memref<8x128xf32, #tpu.memory_space<vmem>>, vector<8x128xf32>,
    %c0_116 = arith.constant 0 : index
    %c40 = arith.constant 40 : index
    %c0_117 = arith.constant 0 : index
    %243 = vector.load %arg2[%c0_116, %c40, %c0_117] : memref<1x64x512xf32, #tpu.memory_space<vmem>>, vector<1x8x512xf32>
    %244 = vector.shape_cast %243 : vector<1x8x512xf32> to vector<8x512xf32>
    %c0_118 = arith.constant 0 : index
    %c0_119 = arith.constant 0 : index
    %245 = vector.load %arg7[%c0_118, %c0_119] : memref<8x128xf32, #tpu.memory_space<vmem>>, vector<8x128xf32>
    %cst_120 = arith.constant dense<0.000000e+00> : vector<8x512xf32>
    %246 = tpu.matmul %245, %3, %cst_120 {dimension_numbers = #tpu.dot_dimension_numbers<[1], [0], [0], [1], [0, 0, 1, 1], [], []>} : vector<8x128xf32>, vector<128x512xf32>, vector<8x512xf32> -> vector<8x512xf32>
    %247 = arith.addf %244, %246 : vector<8x512xf32>
    %248 = vector.extract_strided_slice %247 {offsets = [0, 0], sizes = [8, 384], strides = [1, 1]} : vector<8x512xf32> to vector<8x384xf32>
    %249 = arith.negf %248 : vector<8x384xf32>
    %250 = math.exp %249 : vector<8x384xf32>
    %cst_121 = arith.constant 1.000000e+00 : f32
    %251 = vector.broadcast %cst_121 : f32 to vector<8x384xf32>
    %252 = arith.addf %251, %250 : vector<8x384xf32>
    %253 = arith.divf %251, %252 : vector<8x384xf32>
    %254 = vector.extract_strided_slice %253 {offsets = [0, 0], sizes = [8, 128], strides = [1, 1]} : vector<8x384xf32> to vector<8x128xf32>
    %255 = vector.extract_strided_slice %253 {offsets = [0, 128], sizes = [8, 128], strides = [1, 1]} : vector<8x384xf32> to vector<8x128xf32>
    %256 = vector.extract_strided_slice %253 {offsets = [0, 256], sizes = [8, 128], strides = [1, 1]} : vector<8x384xf32> to vector<8x128xf32>
    %257 = vector.extract_strided_slice %247 {offsets = [0, 384], sizes = [8, 128], strides = [1, 1]} : vector<8x512xf32> to vector<8x128xf32>
    %258 = math.tanh %257 : vector<8x128xf32>
    %c0_122 = arith.constant 0 : index
    %c0_123 = arith.constant 0 : index
    %259 = vector.load %arg8[%c0_122, %c0_123] : memref<8x128xf32, #tpu.memory_space<vmem>>, vector<8x128xf32>
    %260 = arith.mulf %255, %259 : vector<8x128xf32>
    %261 = arith.mulf %254, %258 : vector<8x128xf32>
    %262 = arith.addf %260, %261 : vector<8x128xf32>
    %263 = math.tanh %262 : vector<8x128xf32>
    %264 = arith.mulf %256, %263 : vector<8x128xf32>
    %c0_124 = arith.constant 0 : index
    %c0_125 = arith.constant 0 : index
    %265 = vector.load %arg7[%c0_124, %c0_125] : memref<8x128xf32, #tpu.memory_space<vmem>>, vector<8x128xf32>
    tpu.vector_store %arg7[%c0_124, %c0_125], %264 {strides = array<i32>} : memref<8x128xf32, #tpu.memory_space<vmem>>, vector<8x128xf32>,
    %c0_126 = arith.constant 0 : index
    %c0_127 = arith.constant 0 : index
    %266 = vector.load %arg8[%c0_126, %c0_127] : memref<8x128xf32, #tpu.memory_space<vmem>>, vector<8x128xf32>
    tpu.vector_store %arg8[%c0_126, %c0_127], %262 {strides = array<i32>} : memref<8x128xf32, #tpu.memory_space<vmem>>, vector<8x128xf32>,
    %c0_128 = arith.constant 0 : index
    %c0_129 = arith.constant 0 : index
    %267 = vector.load %arg9[%c0_128, %c0_129] : memref<8x128xf32, #tpu.memory_space<vmem>>, vector<8x128xf32>
    %268 = tpu.concatenate %264, %267 in 1 : vector<8x128xf32>, vector<8x128xf32> -> vector<8x256xf32>
    %cst_130 = arith.constant dense<0.000000e+00> : vector<8x512xf32>
    %269 = tpu.matmul %268, %4, %cst_130 {dimension_numbers = #tpu.dot_dimension_numbers<[1], [0], [0], [1], [0, 0, 1, 1], [], []>} : vector<8x256xf32>, vector<256x512xf32>, vector<8x512xf32> -> vector<8x512xf32>
    %270 = arith.addf %269, %7 : vector<8x512xf32>
    %271 = vector.extract_strided_slice %270 {offsets = [0, 0], sizes = [8, 384], strides = [1, 1]} : vector<8x512xf32> to vector<8x384xf32>
    %272 = arith.negf %271 : vector<8x384xf32>
    %273 = math.exp %272 : vector<8x384xf32>
    %cst_131 = arith.constant 1.000000e+00 : f32
    %274 = vector.broadcast %cst_131 : f32 to vector<8x384xf32>
    %275 = arith.addf %274, %273 : vector<8x384xf32>
    %276 = arith.divf %274, %275 : vector<8x384xf32>
    %277 = vector.extract_strided_slice %276 {offsets = [0, 0], sizes = [8, 128], strides = [1, 1]} : vector<8x384xf32> to vector<8x128xf32>
    %278 = vector.extract_strided_slice %276 {offsets = [0, 128], sizes = [8, 128], strides = [1, 1]} : vector<8x384xf32> to vector<8x128xf32>
    %279 = vector.extract_strided_slice %276 {offsets = [0, 256], sizes = [8, 128], strides = [1, 1]} : vector<8x384xf32> to vector<8x128xf32>
    %280 = vector.extract_strided_slice %270 {offsets = [0, 384], sizes = [8, 128], strides = [1, 1]} : vector<8x512xf32> to vector<8x128xf32>
    %281 = math.tanh %280 : vector<8x128xf32>
    %c0_132 = arith.constant 0 : index
    %c0_133 = arith.constant 0 : index
    %282 = vector.load %arg10[%c0_132, %c0_133] : memref<8x128xf32, #tpu.memory_space<vmem>>, vector<8x128xf32>
    %283 = arith.mulf %278, %282 : vector<8x128xf32>
    %284 = arith.mulf %277, %281 : vector<8x128xf32>
    %285 = arith.addf %283, %284 : vector<8x128xf32>
    %286 = math.tanh %285 : vector<8x128xf32>
    %287 = arith.mulf %279, %286 : vector<8x128xf32>
    %c0_134 = arith.constant 0 : index
    %c0_135 = arith.constant 0 : index
    %288 = vector.load %arg9[%c0_134, %c0_135] : memref<8x128xf32, #tpu.memory_space<vmem>>, vector<8x128xf32>
    tpu.vector_store %arg9[%c0_134, %c0_135], %287 {strides = array<i32>} : memref<8x128xf32, #tpu.memory_space<vmem>>, vector<8x128xf32>,
    %c0_136 = arith.constant 0 : index
    %c0_137 = arith.constant 0 : index
    %289 = vector.load %arg10[%c0_136, %c0_137] : memref<8x128xf32, #tpu.memory_space<vmem>>, vector<8x128xf32>
    tpu.vector_store %arg10[%c0_136, %c0_137], %285 {strides = array<i32>} : memref<8x128xf32, #tpu.memory_space<vmem>>, vector<8x128xf32>,
    %c0_138 = arith.constant 0 : index
    %c48 = arith.constant 48 : index
    %c0_139 = arith.constant 0 : index
    %290 = vector.load %arg2[%c0_138, %c48, %c0_139] : memref<1x64x512xf32, #tpu.memory_space<vmem>>, vector<1x8x512xf32>
    %291 = vector.shape_cast %290 : vector<1x8x512xf32> to vector<8x512xf32>
    %c0_140 = arith.constant 0 : index
    %c0_141 = arith.constant 0 : index
    %292 = vector.load %arg7[%c0_140, %c0_141] : memref<8x128xf32, #tpu.memory_space<vmem>>, vector<8x128xf32>
    %cst_142 = arith.constant dense<0.000000e+00> : vector<8x512xf32>
    %293 = tpu.matmul %292, %3, %cst_142 {dimension_numbers = #tpu.dot_dimension_numbers<[1], [0], [0], [1], [0, 0, 1, 1], [], []>} : vector<8x128xf32>, vector<128x512xf32>, vector<8x512xf32> -> vector<8x512xf32>
    %294 = arith.addf %291, %293 : vector<8x512xf32>
    %295 = vector.extract_strided_slice %294 {offsets = [0, 0], sizes = [8, 384], strides = [1, 1]} : vector<8x512xf32> to vector<8x384xf32>
    %296 = arith.negf %295 : vector<8x384xf32>
    %297 = math.exp %296 : vector<8x384xf32>
    %cst_143 = arith.constant 1.000000e+00 : f32
    %298 = vector.broadcast %cst_143 : f32 to vector<8x384xf32>
    %299 = arith.addf %298, %297 : vector<8x384xf32>
    %300 = arith.divf %298, %299 : vector<8x384xf32>
    %301 = vector.extract_strided_slice %300 {offsets = [0, 0], sizes = [8, 128], strides = [1, 1]} : vector<8x384xf32> to vector<8x128xf32>
    %302 = vector.extract_strided_slice %300 {offsets = [0, 128], sizes = [8, 128], strides = [1, 1]} : vector<8x384xf32> to vector<8x128xf32>
    %303 = vector.extract_strided_slice %300 {offsets = [0, 256], sizes = [8, 128], strides = [1, 1]} : vector<8x384xf32> to vector<8x128xf32>
    %304 = vector.extract_strided_slice %294 {offsets = [0, 384], sizes = [8, 128], strides = [1, 1]} : vector<8x512xf32> to vector<8x128xf32>
    %305 = math.tanh %304 : vector<8x128xf32>
    %c0_144 = arith.constant 0 : index
    %c0_145 = arith.constant 0 : index
    %306 = vector.load %arg8[%c0_144, %c0_145] : memref<8x128xf32, #tpu.memory_space<vmem>>, vector<8x128xf32>
    %307 = arith.mulf %302, %306 : vector<8x128xf32>
    %308 = arith.mulf %301, %305 : vector<8x128xf32>
    %309 = arith.addf %307, %308 : vector<8x128xf32>
    %310 = math.tanh %309 : vector<8x128xf32>
    %311 = arith.mulf %303, %310 : vector<8x128xf32>
    %c0_146 = arith.constant 0 : index
    %c0_147 = arith.constant 0 : index
    %312 = vector.load %arg7[%c0_146, %c0_147] : memref<8x128xf32, #tpu.memory_space<vmem>>, vector<8x128xf32>
    tpu.vector_store %arg7[%c0_146, %c0_147], %311 {strides = array<i32>} : memref<8x128xf32, #tpu.memory_space<vmem>>, vector<8x128xf32>,
    %c0_148 = arith.constant 0 : index
    %c0_149 = arith.constant 0 : index
    %313 = vector.load %arg8[%c0_148, %c0_149] : memref<8x128xf32, #tpu.memory_space<vmem>>, vector<8x128xf32>
    tpu.vector_store %arg8[%c0_148, %c0_149], %309 {strides = array<i32>} : memref<8x128xf32, #tpu.memory_space<vmem>>, vector<8x128xf32>,
    %c0_150 = arith.constant 0 : index
    %c0_151 = arith.constant 0 : index
    %314 = vector.load %arg9[%c0_150, %c0_151] : memref<8x128xf32, #tpu.memory_space<vmem>>, vector<8x128xf32>
    %315 = tpu.concatenate %311, %314 in 1 : vector<8x128xf32>, vector<8x128xf32> -> vector<8x256xf32>
    %cst_152 = arith.constant dense<0.000000e+00> : vector<8x512xf32>
    %316 = tpu.matmul %315, %4, %cst_152 {dimension_numbers = #tpu.dot_dimension_numbers<[1], [0], [0], [1], [0, 0, 1, 1], [], []>} : vector<8x256xf32>, vector<256x512xf32>, vector<8x512xf32> -> vector<8x512xf32>
    %317 = arith.addf %316, %7 : vector<8x512xf32>
    %318 = vector.extract_strided_slice %317 {offsets = [0, 0], sizes = [8, 384], strides = [1, 1]} : vector<8x512xf32> to vector<8x384xf32>
    %319 = arith.negf %318 : vector<8x384xf32>
    %320 = math.exp %319 : vector<8x384xf32>
    %cst_153 = arith.constant 1.000000e+00 : f32
    %321 = vector.broadcast %cst_153 : f32 to vector<8x384xf32>
    %322 = arith.addf %321, %320 : vector<8x384xf32>
    %323 = arith.divf %321, %322 : vector<8x384xf32>
    %324 = vector.extract_strided_slice %323 {offsets = [0, 0], sizes = [8, 128], strides = [1, 1]} : vector<8x384xf32> to vector<8x128xf32>
    %325 = vector.extract_strided_slice %323 {offsets = [0, 128], sizes = [8, 128], strides = [1, 1]} : vector<8x384xf32> to vector<8x128xf32>
    %326 = vector.extract_strided_slice %323 {offsets = [0, 256], sizes = [8, 128], strides = [1, 1]} : vector<8x384xf32> to vector<8x128xf32>
    %327 = vector.extract_strided_slice %317 {offsets = [0, 384], sizes = [8, 128], strides = [1, 1]} : vector<8x512xf32> to vector<8x128xf32>
    %328 = math.tanh %327 : vector<8x128xf32>
    %c0_154 = arith.constant 0 : index
    %c0_155 = arith.constant 0 : index
    %329 = vector.load %arg10[%c0_154, %c0_155] : memref<8x128xf32, #tpu.memory_space<vmem>>, vector<8x128xf32>
    %330 = arith.mulf %325, %329 : vector<8x128xf32>
    %331 = arith.mulf %324, %328 : vector<8x128xf32>
    %332 = arith.addf %330, %331 : vector<8x128xf32>
    %333 = math.tanh %332 : vector<8x128xf32>
    %334 = arith.mulf %326, %333 : vector<8x128xf32>
    %c0_156 = arith.constant 0 : index
    %c0_157 = arith.constant 0 : index
    %335 = vector.load %arg9[%c0_156, %c0_157] : memref<8x128xf32, #tpu.memory_space<vmem>>, vector<8x128xf32>
    tpu.vector_store %arg9[%c0_156, %c0_157], %334 {strides = array<i32>} : memref<8x128xf32, #tpu.memory_space<vmem>>, vector<8x128xf32>,
    %c0_158 = arith.constant 0 : index
    %c0_159 = arith.constant 0 : index
    %336 = vector.load %arg10[%c0_158, %c0_159] : memref<8x128xf32, #tpu.memory_space<vmem>>, vector<8x128xf32>
    tpu.vector_store %arg10[%c0_158, %c0_159], %332 {strides = array<i32>} : memref<8x128xf32, #tpu.memory_space<vmem>>, vector<8x128xf32>,
    %c0_160 = arith.constant 0 : index
    %c56 = arith.constant 56 : index
    %c0_161 = arith.constant 0 : index
    %337 = vector.load %arg2[%c0_160, %c56, %c0_161] : memref<1x64x512xf32, #tpu.memory_space<vmem>>, vector<1x8x512xf32>
    %338 = vector.shape_cast %337 : vector<1x8x512xf32> to vector<8x512xf32>
    %c0_162 = arith.constant 0 : index
    %c0_163 = arith.constant 0 : index
    %339 = vector.load %arg7[%c0_162, %c0_163] : memref<8x128xf32, #tpu.memory_space<vmem>>, vector<8x128xf32>
    %cst_164 = arith.constant dense<0.000000e+00> : vector<8x512xf32>
    %340 = tpu.matmul %339, %3, %cst_164 {dimension_numbers = #tpu.dot_dimension_numbers<[1], [0], [0], [1], [0, 0, 1, 1], [], []>} : vector<8x128xf32>, vector<128x512xf32>, vector<8x512xf32> -> vector<8x512xf32>
    %341 = arith.addf %338, %340 : vector<8x512xf32>
    %342 = vector.extract_strided_slice %341 {offsets = [0, 0], sizes = [8, 384], strides = [1, 1]} : vector<8x512xf32> to vector<8x384xf32>
    %343 = arith.negf %342 : vector<8x384xf32>
    %344 = math.exp %343 : vector<8x384xf32>
    %cst_165 = arith.constant 1.000000e+00 : f32
    %345 = vector.broadcast %cst_165 : f32 to vector<8x384xf32>
    %346 = arith.addf %345, %344 : vector<8x384xf32>
    %347 = arith.divf %345, %346 : vector<8x384xf32>
    %348 = vector.extract_strided_slice %347 {offsets = [0, 0], sizes = [8, 128], strides = [1, 1]} : vector<8x384xf32> to vector<8x128xf32>
    %349 = vector.extract_strided_slice %347 {offsets = [0, 128], sizes = [8, 128], strides = [1, 1]} : vector<8x384xf32> to vector<8x128xf32>
    %350 = vector.extract_strided_slice %347 {offsets = [0, 256], sizes = [8, 128], strides = [1, 1]} : vector<8x384xf32> to vector<8x128xf32>
    %351 = vector.extract_strided_slice %341 {offsets = [0, 384], sizes = [8, 128], strides = [1, 1]} : vector<8x512xf32> to vector<8x128xf32>
    %352 = math.tanh %351 : vector<8x128xf32>
    %c0_166 = arith.constant 0 : index
    %c0_167 = arith.constant 0 : index
    %353 = vector.load %arg8[%c0_166, %c0_167] : memref<8x128xf32, #tpu.memory_space<vmem>>, vector<8x128xf32>
    %354 = arith.mulf %349, %353 : vector<8x128xf32>
    %355 = arith.mulf %348, %352 : vector<8x128xf32>
    %356 = arith.addf %354, %355 : vector<8x128xf32>
    %357 = math.tanh %356 : vector<8x128xf32>
    %358 = arith.mulf %350, %357 : vector<8x128xf32>
    %c0_168 = arith.constant 0 : index
    %c0_169 = arith.constant 0 : index
    %359 = vector.load %arg7[%c0_168, %c0_169] : memref<8x128xf32, #tpu.memory_space<vmem>>, vector<8x128xf32>
    tpu.vector_store %arg7[%c0_168, %c0_169], %358 {strides = array<i32>} : memref<8x128xf32, #tpu.memory_space<vmem>>, vector<8x128xf32>,
    %c0_170 = arith.constant 0 : index
    %c0_171 = arith.constant 0 : index
    %360 = vector.load %arg8[%c0_170, %c0_171] : memref<8x128xf32, #tpu.memory_space<vmem>>, vector<8x128xf32>
    tpu.vector_store %arg8[%c0_170, %c0_171], %356 {strides = array<i32>} : memref<8x128xf32, #tpu.memory_space<vmem>>, vector<8x128xf32>,
    %c0_172 = arith.constant 0 : index
    %c0_173 = arith.constant 0 : index
    %361 = vector.load %arg9[%c0_172, %c0_173] : memref<8x128xf32, #tpu.memory_space<vmem>>, vector<8x128xf32>
    %362 = tpu.concatenate %358, %361 in 1 : vector<8x128xf32>, vector<8x128xf32> -> vector<8x256xf32>
    %cst_174 = arith.constant dense<0.000000e+00> : vector<8x512xf32>
    %363 = tpu.matmul %362, %4, %cst_174 {dimension_numbers = #tpu.dot_dimension_numbers<[1], [0], [0], [1], [0, 0, 1, 1], [], []>} : vector<8x256xf32>, vector<256x512xf32>, vector<8x512xf32> -> vector<8x512xf32>
    %364 = arith.addf %363, %7 : vector<8x512xf32>
    %365 = vector.extract_strided_slice %364 {offsets = [0, 0], sizes = [8, 384], strides = [1, 1]} : vector<8x512xf32> to vector<8x384xf32>
    %366 = arith.negf %365 : vector<8x384xf32>
    %367 = math.exp %366 : vector<8x384xf32>
    %cst_175 = arith.constant 1.000000e+00 : f32
    %368 = vector.broadcast %cst_175 : f32 to vector<8x384xf32>
    %369 = arith.addf %368, %367 : vector<8x384xf32>
    %370 = arith.divf %368, %369 : vector<8x384xf32>
    %371 = vector.extract_strided_slice %370 {offsets = [0, 0], sizes = [8, 128], strides = [1, 1]} : vector<8x384xf32> to vector<8x128xf32>
    %372 = vector.extract_strided_slice %370 {offsets = [0, 128], sizes = [8, 128], strides = [1, 1]} : vector<8x384xf32> to vector<8x128xf32>
    %373 = vector.extract_strided_slice %370 {offsets = [0, 256], sizes = [8, 128], strides = [1, 1]} : vector<8x384xf32> to vector<8x128xf32>
    %374 = vector.extract_strided_slice %364 {offsets = [0, 384], sizes = [8, 128], strides = [1, 1]} : vector<8x512xf32> to vector<8x128xf32>
    %375 = math.tanh %374 : vector<8x128xf32>
    %c0_176 = arith.constant 0 : index
    %c0_177 = arith.constant 0 : index
    %376 = vector.load %arg10[%c0_176, %c0_177] : memref<8x128xf32, #tpu.memory_space<vmem>>, vector<8x128xf32>
    %377 = arith.mulf %372, %376 : vector<8x128xf32>
    %378 = arith.mulf %371, %375 : vector<8x128xf32>
    %379 = arith.addf %377, %378 : vector<8x128xf32>
    %380 = math.tanh %379 : vector<8x128xf32>
    %381 = arith.mulf %373, %380 : vector<8x128xf32>
    %c0_178 = arith.constant 0 : index
    %c0_179 = arith.constant 0 : index
    %382 = vector.load %arg9[%c0_178, %c0_179] : memref<8x128xf32, #tpu.memory_space<vmem>>, vector<8x128xf32>
    tpu.vector_store %arg9[%c0_178, %c0_179], %381 {strides = array<i32>} : memref<8x128xf32, #tpu.memory_space<vmem>>, vector<8x128xf32>,
    %c0_180 = arith.constant 0 : index
    %c0_181 = arith.constant 0 : index
    %383 = vector.load %arg10[%c0_180, %c0_181] : memref<8x128xf32, #tpu.memory_space<vmem>>, vector<8x128xf32>
    tpu.vector_store %arg10[%c0_180, %c0_181], %379 {strides = array<i32>} : memref<8x128xf32, #tpu.memory_space<vmem>>, vector<8x128xf32>,
    %c0_i32_182 = arith.constant 0 : i32
    %384 = arith.cmpi eq, %arg1, %c0_i32_182 : i32
    %385 = arith.extui %384 : i1 to i32
    %c0_i32_183 = arith.constant 0 : i32
    %386 = arith.cmpi ne, %385, %c0_i32_183 : i32
    scf.if %386 {
      %c0_184 = arith.constant 0 : index
      %c0_185 = arith.constant 0 : index
      %387 = vector.load %arg9[%c0_184, %c0_185] : memref<8x128xf32, #tpu.memory_space<vmem>>, vector<8x128xf32>
      %c0_186 = arith.constant 0 : index
      %c0_187 = arith.constant 0 : index
      %388 = vector.load %arg6[%c0_186, %c0_187] : memref<8x128xf32, #tpu.memory_space<vmem>>, vector<8x128xf32>
      tpu.vector_store %arg6[%c0_186, %c0_187], %387 {strides = array<i32>} : memref<8x128xf32, #tpu.memory_space<vmem>>, vector<8x128xf32>,
    } else {
    }
    return
  }
  func.func @transform_0(%arg0: i32, %arg1: i32) -> (i32, i32, i32) {
    %c0_i32 = arith.constant 0 : i32
    %c0_i32_0 = arith.constant 0 : i32
    return %arg0, %arg1, %c0_i32 : i32, i32, i32
  }
  func.func @transform_1(%arg0: i32, %arg1: i32) -> (i32, i32) {
    %c0_i32 = arith.constant 0 : i32
    %c0_i32_0 = arith.constant 0 : i32
    %c0_i32_1 = arith.constant 0 : i32
    return %c0_i32, %c0_i32_0 : i32, i32
  }
  func.func @transform_2(%arg0: i32, %arg1: i32) -> (i32, i32) {
    %c0_i32 = arith.constant 0 : i32
    %c0_i32_0 = arith.constant 0 : i32
    %c0_i32_1 = arith.constant 0 : i32
    return %c0_i32, %c0_i32_0 : i32, i32
  }
  func.func @transform_3(%arg0: i32, %arg1: i32) -> (i32, i32) {
    %c0_i32 = arith.constant 0 : i32
    %c0_i32_0 = arith.constant 0 : i32
    %c0_i32_1 = arith.constant 0 : i32
    return %c0_i32, %c0_i32_0 : i32, i32
  }
  func.func @transform_4(%arg0: i32, %arg1: i32) -> (i32, i32) {
    %c0_i32 = arith.constant 0 : i32
    %c0_i32_0 = arith.constant 0 : i32
    return %arg0, %c0_i32 : i32, i32
  }
}

</mosaic_0001>

<bundles_post_ra>
// kernel: lstm_model_forward.1
= control target key start
LH: loop header
LB: loop body
LE: loop exit
PB: predicated region body
PF: predicated region fallthrough
CT: control target
= control target key end

     0   :  { %9 = vsyncpa [#allocation7], 0  ;;  %s4237_s18 = smov [#allocation6]   ;;  %s4238_s20 = smov 512   ;;  %s8673_s0 = inlined_call_operand.vmem [shape: f32[1,64,512], index: 0, kind: input, shape index: {}]   ;;  %s8674_s1 = inlined_call_operand.vmem [shape: f32[128,512], index: 1, kind: input, shape index: {}]   ;;  %s8675_s2 = inlined_call_operand.hbm [shape: f32[256,512], index: 2, kind: input, shape index: {}]   ;;  %s8676_s3 = inlined_call_operand.vmem [shape: f32[1,512], index: 3, kind: input, shape index: {}]   ;;  %s8677_s4 = inlined_call_operand.vmem [shape: f32[8,128], index: 4, kind: output, shape index: {}]  }
   0x1   :  { %s18_s17 = sshll.u32 %s8675_s2, 4  ;;  %s20_s19 = sshll.u32 %s4237_s18, 4  ;;  %s19_s17 = int_to_ptr.hbm [resolvable:$true] %s18_s17  ;;  %s21_s19 = int_to_ptr.vmem [resolvable:$true] %s20_s19 }
   0x2   :  { %s4239_s21 = smov 32  }
   0x3   :  { %26 = dma.hbm_to_vmem [thread:$0]  %s19_s17, 16384, %s21_s19, [#allocation7], %s4238_s20, %s4238_s20, %s4239_s21  }
   0x4   :  { %4235 = dma.done.wait [#allocation7], 16384  }
   0x5   :  { %4236 = vsyncadd [#allocation7], 4294950912  ;;  %v101_v0 = vld [vmem:[%s8674_s1 + $0x1e0] sm:$0xff]  ;;  %v4275_v1 = vld [vmem:[%s8674_s1 + $0x1e8] sm:$0xff]  ;;  %v8678_v61 = vmov 0.0  }
   0x6   :  { %v103_v2 = vld [vmem:[%s8674_s1 + $0x1f0] sm:$0xff]  ;;  %248 = vmatpush.msra.mxu0 %v101_v0  ;;  %268 = vmatpush.msra.mxu1 %v4275_v1  ;;  %v97_v3 = vld [vmem:[%s8674_s1 + $0x1c0] sm:$0xff]  ;;  %v4287_v4 = vld [vmem:[%s8674_s1 + $0x1c8] sm:$0xff] }
   0x7   :  { %v99_v5 = vld [vmem:[%s8674_s1 + $0x1d0] sm:$0xff]  ;;  %288 = vmatpush.msra.mxu2 %v103_v2  ;;  %v93_v6 = vld [vmem:[%s8674_s1 + $0x1a0] sm:$0xff]  ;;  %v4298_v7 = vld [vmem:[%s8674_s1 + $0x1a8] sm:$0xff] }
   0x8   :  { %249 = vmatpush.msra.mxu0 %v97_v3  ;;  %269 = vmatpush.msra.mxu1 %v4287_v4  ;;  %v95_v8 = vld [vmem:[%s8674_s1 + $0x1b0] sm:$0xff]  ;;  %v89_v9 = vld [vmem:[%s8674_s1 + $0x180] sm:$0xff]  ;;  %v4310_v10 = vld [vmem:[%s8674_s1 + $0x188] sm:$0xff] }
   0x9   :  { %289 = vmatpush.msra.mxu2 %v99_v5  ;;  %v91_v11 = vld [vmem:[%s8674_s1 + $0x190] sm:$0xff]  ;;  %v85_v12 = vld [vmem:[%s8674_s1 + $0x160] sm:$0xff]  ;;  %v4322_v13 = vld [vmem:[%s8674_s1 + $0x168] sm:$0xff] }
   0xa   :  { %250 = vmatpush.msra.mxu0 %v93_v6  ;;  %270 = vmatpush.msra.mxu1 %v4298_v7  ;;  %v87_v14 = vld [vmem:[%s8674_s1 + $0x170] sm:$0xff]  ;;  %v81_v15 = vld [vmem:[%s8674_s1 + $0x140] sm:$0xff]  ;;  %v4334_v16 = vld [vmem:[%s8674_s1 + $0x148] sm:$0xff] }
   0xb   :  { %290 = vmatpush.msra.mxu2 %v95_v8  ;;  %v4339_v17 = vld [vmem:[%s8674_s1 + $0x1f8] sm:$0xff]  ;;  %v83_v18 = vld [vmem:[%s8674_s1 + $0x150] sm:$0xff]  ;;  %v77_v20 = vld [vmem:[%s8674_s1 + $0x120] sm:$0xff] }
   0xc   :  { %251 = vmatpush.msra.mxu0 %v89_v9  ;;  %271 = vmatpush.msra.mxu1 %v4310_v10  ;;  %v4348_v19 = vld [vmem:[%s8674_s1 + $0x1d8] sm:$0xff]  ;;  %v4356_v21 = vld [vmem:[%s8674_s1 + $0x128] sm:$0xff]  ;;  %v79_v22 = vld [vmem:[%s8674_s1 + $0x130] sm:$0xff] }
   0xd   :  { %291 = vmatpush.msra.mxu2 %v91_v11  ;;  %308 = vmatpush.msra.mxu3 %v4339_v17  ;;  %v4366_v23 = vld [vmem:[%s8674_s1 + $0x1b8] sm:$0xff]  ;;  %v73_v24 = vld [vmem:[%s8674_s1 + $0x100] sm:$0xff]  ;;  %v4374_v25 = vld [vmem:[%s8674_s1 + $0x108] sm:$0xff] }
   0xe   :  { %252 = vmatpush.msra.mxu0 %v85_v12  ;;  %272 = vmatpush.msra.mxu1 %v4322_v13  ;;  %v75_v26 = vld [vmem:[%s8674_s1 + $0x110] sm:$0xff]  ;;  %v4384_v27 = vld [vmem:[%s8674_s1 + $0x198] sm:$0xff]  ;;  %v69_v28 = vld [vmem:[%s8674_s1 + $0xe0] sm:$0xff] }
   0xf   :  { %292 = vmatpush.msra.mxu2 %v87_v14  ;;  %309 = vmatpush.msra.mxu3 %v4348_v19  ;;  %v4392_v29 = vld [vmem:[%s8674_s1 + $0xe8] sm:$0xff]  ;;  %v71_v30 = vld [vmem:[%s8674_s1 + $0xf0] sm:$0xff]  ;;  %v4402_v31 = vld [vmem:[%s8674_s1 + $0x178] sm:$0xff] }
  0x10   :  { %253 = vmatpush.msra.mxu0 %v81_v15  ;;  %273 = vmatpush.msra.mxu1 %v4334_v16  ;;  %v4407_v32 = vld [vmem:[%s8674_s1 + $0xc0] sm:$0xff]  ;;  %v4412_v33 = vld [vmem:[%s8674_s1 + $0xc8] sm:$0xff]  ;;  %v4419_v34 = vld [vmem:[%s8674_s1 + $0xd0] sm:$0xff] }
  0x11   :  { %293 = vmatpush.msra.mxu2 %v83_v18  ;;  %310 = vmatpush.msra.mxu3 %v4366_v23  ;;  %9206 = vst [vmem:[#allocation9_spill] sm:$0xff] %v4407_v32  ;;  %v4424_v35 = vld [vmem:[%s8674_s1 + $0x158] sm:$0xff]  ;;  %v4429_v36 = vld [vmem:[%s8674_s1 + $0xa0] sm:$0xff]  ;;  %v4434_v37 = vld [vmem:[%s8674_s1 + $0xa8] sm:$0xff] }
  0x12   :  { %254 = vmatpush.msra.mxu0 %v77_v20  ;;  %274 = vmatpush.msra.mxu1 %v4356_v21  ;;  %9207 = vst [vmem:[#allocation10_spill] sm:$0xff] %v4419_v34  ;;  %v4442_v38 = vld [vmem:[%s8674_s1 + $0xb0] sm:$0xff]  ;;  %v4447_v39 = vld [vmem:[%s8674_s1 + $0x138] sm:$0xff]  ;;  %v4453_v40 = vld [vmem:[%s8674_s1 + $0x80] sm:$0xff] }
  0x13   :  { %294 = vmatpush.msra.mxu2 %v79_v22  ;;  %311 = vmatpush.msra.mxu3 %v4384_v27  ;;  %9208 = vst [vmem:[#allocation11_spill] sm:$0xff] %v4429_v36  ;;  %v4458_v41 = vld [vmem:[%s8674_s1 + $0x88] sm:$0xff]  ;;  %v4466_v42 = vld [vmem:[%s8674_s1 + $0x90] sm:$0xff]  ;;  %v4471_v43 = vld [vmem:[%s8674_s1 + $0x118] sm:$0xff] }
  0x14   :  { %255 = vmatpush.msra.mxu0 %v73_v24  ;;  %275 = vmatpush.msra.mxu1 %v4374_v25  ;;  %9209 = vst [vmem:[#allocation12_spill] sm:$0xff] %v4442_v38  ;;  %v4477_v44 = vld [vmem:[%s8674_s1 + $0x60] sm:$0xff]  ;;  %v4482_v45 = vld [vmem:[%s8674_s1 + $0x68] sm:$0xff]  ;;  %v4490_v46 = vld [vmem:[%s8674_s1 + $0x70] sm:$0xff] }
  0x15   :  { %295 = vmatpush.msra.mxu2 %v75_v26  ;;  %312 = vmatpush.msra.mxu3 %v4402_v31  ;;  %9210 = vst [vmem:[#allocation13_spill] sm:$0xff] %v4453_v40  ;;  %v4495_v47 = vld [vmem:[%s8674_s1 + $0xf8] sm:$0xff]  ;;  %v4501_v48 = vld [vmem:[%s8674_s1 + $0x40] sm:$0xff]  ;;  %v4506_v49 = vld [vmem:[%s8674_s1 + $0x48] sm:$0xff] }
  0x16   :  { %256 = vmatpush.msra.mxu0 %v69_v28  ;;  %276 = vmatpush.msra.mxu1 %v4392_v29  ;;  %9211 = vst [vmem:[#allocation14_spill] sm:$0xff] %v4466_v42  ;;  %v4514_v50 = vld [vmem:[%s8674_s1 + $0x50] sm:$0xff]  ;;  %v4519_v51 = vld [vmem:[%s8674_s1 + $0xd8] sm:$0xff]  ;;  %v4525_v52 = vld [vmem:[%s8674_s1 + $0x20] sm:$0xff] }
  0x17   :  { %296 = vmatpush.msra.mxu2 %v71_v30  ;;  %313 = vmatpush.msra.mxu3 %v4424_v35  ;;  %9212 = vst [vmem:[#allocation15_spill] sm:$0xff] %v4477_v44  ;;  %v4530_v53 = vld [vmem:[%s8674_s1 + $0x28] sm:$0xff]  ;;  %v4538_v54 = vld [vmem:[%s8674_s1 + $0x30] sm:$0xff]  ;;  %v4543_v55 = vld [vmem:[%s8674_s1 + $0xb8] sm:$0xff] }
  0x18   :  { %257 = vmatpush.msra.mxu0 %v4407_v32  ;;  %277 = vmatpush.msra.mxu1 %v4412_v33  ;;  %9213 = vst [vmem:[#allocation16_spill] sm:$0xff] %v4490_v46  ;;  %v4549_v56 = vld [vmem:[%s8674_s1] sm:$0xff]  ;;  %v4554_v57 = vld [vmem:[%s8674_s1 + $0x8] sm:$0xff]  ;;  %v4562_v58 = vld [vmem:[%s8674_s1 + $0x10] sm:$0xff] }
  0x19   :  { %297 = vmatpush.msra.mxu2 %v4419_v34  ;;  %314 = vmatpush.msra.mxu3 %v4447_v39  ;;  %9214 = vst [vmem:[#allocation17_spill] sm:$0xff] %v4501_v48  ;;  %v4571_v59 = vld [vmem:[%s8674_s1 + $0x98] sm:$0xff]  ;;  %v4573_v60 = vld [vmem:[#allocation6 + $0x3e0] sm:$0xff]  ;;  %v4615_v9 = vld [vmem:[#allocation6 + $0x3e8] sm:$0xff] }
  0x1a   :  { %258 = vmatpush.msra.mxu0 %v4429_v36  ;;  %278 = vmatpush.msra.mxu1 %v4434_v37  ;;  %9215 = vst [vmem:[#allocation18_spill] sm:$0xff] %v4514_v50  ;;  %v4582_v62 = vld [vmem:[%s8674_s1 + $0x78] sm:$0xff]  ;;  %v4584_v63 = vld [vmem:[#allocation6 + $0x3c0] sm:$0xff]  ;;  %v4623_v14 = vld [vmem:[#allocation6 + $0x1e8] sm:$0xff] }
  0x1b   :  { %298 = vmatpush.msra.mxu2 %v4442_v38  ;;  %315 = vmatpush.msra.mxu3 %v4471_v43  ;;  %9216 = vst [vmem:[#allocation19_spill] sm:$0xff] %v4525_v52  ;;  %v4591_v0 = vld [vmem:[%s8674_s1 + $0x58] sm:$0xff]  ;;  %v4593_v2 = vld [vmem:[#allocation6 + $0x3a0] sm:$0xff]  ;;  %v4626_v15 = vld [vmem:[#allocation6 + $0x3c8] sm:$0xff] }
  0x1c   :  { %259 = vmatpush.msra.mxu0 %v4453_v40  ;;  %279 = vmatpush.msra.mxu1 %v4458_v41  ;;  %9217 = vst [vmem:[#allocation20_spill] sm:$0xff] %v4538_v54  ;;  %v4600_v3 = vld [vmem:[%s8674_s1 + $0x38] sm:$0xff]  ;;  %v4602_v5 = vld [vmem:[#allocation6 + $0x380] sm:$0xff]  ;;  %v4635_v22 = vld [vmem:[#allocation6 + $0x1c8] sm:$0xff] }
  0x1d   :  { %299 = vmatpush.msra.mxu2 %v4466_v42  ;;  %316 = vmatpush.msra.mxu3 %v4495_v47  ;;  %9218 = vst [vmem:[#allocation21_spill] sm:$0xff] %v4549_v56  ;;  %v4609_v6 = vld [vmem:[%s8674_s1 + $0x18] sm:$0xff]  ;;  %v4611_v8 = vld [vmem:[#allocation6 + $0x360] sm:$0xff]  ;;  %v4637_v24 = vld [vmem:[#allocation6 + $0x3a8] sm:$0xff] }
  0x1e   :  { %260 = vmatpush.msra.mxu0 %v4477_v44  ;;  %280 = vmatpush.msra.mxu1 %v4482_v45  ;;  %9219 = vst [vmem:[#allocation22_spill] sm:$0xff] %v4562_v58  ;;  %v4617_v11 = vld [vmem:[#allocation6 + $0x340] sm:$0xff]  ;;  %v4647_v30 = vld [vmem:[#allocation6 + $0x1a8] sm:$0xff]  ;;  %v4736_v34 = vld [vmem:[#allocation6 + $0x3f0] sm:$0xff] }
  0x1f   :  { %300 = vmatpush.msra.mxu2 %v4490_v46  ;;  %317 = vmatpush.msra.mxu3 %v4519_v51  ;;  %v4621_v12 = vld [vmem:[#allocation6 + $0x1e0] sm:$0xff]  ;;  %9221 = vst [vmem:[#allocation24_spill] sm:$0xff] %v4623_v14  ;;  %v4738_v32 = vld [vmem:[#allocation6 + $0x288] sm:$0xff] }
  0x20   :  { %261 = vmatpush.msra.mxu0 %v4501_v48  ;;  %281 = vmatpush.msra.mxu1 %v4506_v49  ;;  %9220 = vst [vmem:[#allocation23_spill] sm:$0xff] %v4621_v12  ;;  %v4628_v18 = vld [vmem:[#allocation6 + $0x320] sm:$0xff] }
  0x21   :  { %301 = vmatpush.msra.mxu2 %v4514_v50  ;;  %318 = vmatpush.msra.mxu3 %v4543_v55  ;;  %v4631_v20 = vld [vmem:[#allocation6 + $0x1c0] sm:$0xff]  ;;  %9223 = vst [vmem:[#allocation26_spill] sm:$0xff] %v4635_v22 }
  0x22   :  { %262 = vmatpush.msra.mxu0 %v4525_v52  ;;  %282 = vmatpush.msra.mxu1 %v4530_v53  ;;  %9222 = vst [vmem:[#allocation25_spill] sm:$0xff] %v4631_v20  ;;  %v4639_v26 = vld [vmem:[#allocation6 + $0x300] sm:$0xff] }
  0x23   :  { %302 = vmatpush.msra.mxu2 %v4538_v54  ;;  %319 = vmatpush.msra.mxu3 %v4571_v59  ;;  %v4643_v28 = vld [vmem:[#allocation6 + $0x1a0] sm:$0xff]  ;;  %9225 = vst [vmem:[#allocation28_spill] sm:$0xff] %v4647_v30 }
  0x24   :  { %263 = vmatpush.msra.mxu0 %v4549_v56  ;;  %283 = vmatpush.msra.mxu1 %v4554_v57  ;;  %9224 = vst [vmem:[#allocation27_spill] sm:$0xff] %v4643_v28  ;;  %v4663_v56 = vld [vmem:[#allocation6 + $0x2c0] sm:$0xff] }
  0x25   :  { %303 = vmatpush.msra.mxu2 %v4562_v58  ;;  %264 = vmatmul.f32.vlgmr.msra.gmra.mxu0 %v8678_v61  ;;  %v4655_v58 = vld [vmem:[#allocation6 + $0x180] sm:$0xff]  ;;  %9243 = vst [vmem:[#allocation46_spill] sm:$0xff] %v4736_v34 }
  0x26   :  { %284 = vmatmul.f32.vlgmr.msra.gmra.mxu1 %v8678_v61  ;;  %304 = vmatmul.f32.vlgmr.msra.gmra.mxu2 %v8678_v61  ;;  %9226 = vst [vmem:[#allocation29_spill] sm:$0xff] %v4655_v58  ;;  %v4667_v54 = vld [vmem:[#allocation6 + $0x160] sm:$0xff] }
  0x27   :  { %419 = vmatpush.msrb.mxu1 %v4573_v60  ;;  %320 = vmatpush.msra.mxu3 %v4582_v62  ;;  %9228 = vst [vmem:[#allocation31_spill] sm:$0xff] %v4667_v54  ;;  %v4675_v52 = vld [vmem:[#allocation6 + $0x2a0] sm:$0xff] }
  0x28   :  { %399 = vmatpush.msrb.mxu0 %v4621_v12  ;;  %439 = vmatpush.msrb.mxu2 %v4623_v14  ;;  %v4651_v12 = vld [vmem:[#allocation6 + $0x2e0] sm:$0xff]  ;;  %v4661_v14 = vld [vmem:[#allocation6 + $0x368] sm:$0xff]  ;;  %9244 = vst [vmem:[#allocation47_spill] sm:$0xff] %v4738_v32 }
  0x29   :  { %420 = vmatpush.msrb.mxu1 %v4584_v63  ;;  %321 = vmatpush.msra.mxu3 %v4591_v0  ;;  %v4679_v50 = vld [vmem:[#allocation6 + $0x140] sm:$0xff] }
  0x2a   :  { %400 = vmatpush.msrb.mxu0 %v4631_v20  ;;  %440 = vmatpush.msrb.mxu2 %v4635_v22  ;;  %v4659_v20 = vld [vmem:[#allocation6 + $0x188] sm:$0xff]  ;;  %9230 = vst [vmem:[#allocation33_spill] sm:$0xff] %v4679_v50  ;;  %v4687_v48 = vld [vmem:[#allocation6 + $0x280] sm:$0xff] }
  0x2b   :  { %421 = vmatpush.msrb.mxu1 %v4593_v2  ;;  %322 = vmatpush.msra.mxu3 %v4600_v3  ;;  %9227 = vst [vmem:[#allocation30_spill] sm:$0xff] %v4659_v20  ;;  %v4673_v22 = vld [vmem:[#allocation6 + $0x348] sm:$0xff]  ;;  %v4691_v46 = vld [vmem:[#allocation6 + $0x120] sm:$0xff] }
  0x2c   :  { %401 = vmatpush.msrb.mxu0 %v4643_v28  ;;  %441 = vmatpush.msrb.mxu2 %v4647_v30  ;;  %v4671_v28 = vld [vmem:[#allocation6 + $0x168] sm:$0xff]  ;;  %9232 = vst [vmem:[#allocation35_spill] sm:$0xff] %v4687_v48  ;;  %v4699_v44 = vld [vmem:[#allocation6 + $0x260] sm:$0xff] }
  0x2d   :  { %422 = vmatpush.msrb.mxu1 %v4602_v5  ;;  %323 = vmatpush.msra.mxu3 %v4609_v6  ;;  %9229 = vst [vmem:[#allocation32_spill] sm:$0xff] %v4671_v28  ;;  %v4685_v30 = vld [vmem:[#allocation6 + $0x328] sm:$0xff]  ;;  %v4703_v42 = vld [vmem:[#allocation6 + $0x100] sm:$0xff] }
  0x2e   :  { %324 = vmatmul.f32.vlgmr.msra.gmra.mxu3 %v8678_v61  ;;  %v4649_v61 = vld [vmem:[#allocation6 + $0x388] sm:$0xff]  ;;  %402 = vmatpush.msrb.mxu0 %v4655_v58  ;;  %9233 = vst [vmem:[#allocation36_spill] sm:$0xff] %v4691_v46  ;;  %v4711_v40 = vld [vmem:[#allocation6 + $0x240] sm:$0xff] }
  0x2f   :  { %423 = vmatpush.msrb.mxu1 %v4611_v8  ;;  %459 = vmatpush.msrb.mxu3 %v4615_v9  ;;  %v4683_v58 = vld [vmem:[#allocation6 + $0x148] sm:$0xff]  ;;  %9235 = vst [vmem:[#allocation38_spill] sm:$0xff] %v4699_v44  ;;  %v4715_v38 = vld [vmem:[#allocation6 + $0xe0] sm:$0xff] }
  0x30   :  { %442 = vmatpush.msrb.mxu2 %v4659_v20  ;;  %403 = vmatpush.msrb.mxu0 %v4667_v54  ;;  %9231 = vst [vmem:[#allocation34_spill] sm:$0xff] %v4683_v58  ;;  %v4695_v54 = vld [vmem:[#allocation6 + $0x128] sm:$0xff]  ;;  %v4723_v36 = vld [vmem:[#allocation6 + $0x220] sm:$0xff] }
  0x31   :  { %424 = vmatpush.msrb.mxu1 %v4617_v11  ;;  %460 = vmatpush.msrb.mxu3 %v4626_v15  ;;  %9234 = vst [vmem:[#allocation37_spill] sm:$0xff] %v4695_v54  ;;  %v4697_v20 = vld [vmem:[#allocation6 + $0x308] sm:$0xff] }
  0x32   :  { %443 = vmatpush.msrb.mxu2 %v4671_v28  ;;  %404 = vmatpush.msrb.mxu0 %v4679_v50  ;;  %9236 = vst [vmem:[#allocation39_spill] sm:$0xff] %v4703_v42  ;;  %v4707_v50 = vld [vmem:[#allocation6 + $0x108] sm:$0xff] }
  0x33   :  { %425 = vmatpush.msrb.mxu1 %v4628_v18  ;;  %461 = vmatpush.msrb.mxu3 %v4637_v24  ;;  %9237 = vst [vmem:[#allocation40_spill] sm:$0xff] %v4707_v50  ;;  %v4709_v28 = vld [vmem:[#allocation6 + $0x2e8] sm:$0xff] }
  0x34   :  { %444 = vmatpush.msrb.mxu2 %v4683_v58  ;;  %405 = vmatpush.msrb.mxu0 %v4691_v46  ;;  %9238 = vst [vmem:[#allocation41_spill] sm:$0xff] %v4711_v40  ;;  %v4719_v46 = vld [vmem:[#allocation6 + $0xe8] sm:$0xff] }
  0x35   :  { %426 = vmatpush.msrb.mxu1 %v4639_v26  ;;  %462 = vmatpush.msrb.mxu3 %v4649_v61  ;;  %9239 = vst [vmem:[#allocation42_spill] sm:$0xff] %v4715_v38  ;;  %v4721_v58 = vld [vmem:[#allocation6 + $0x2c8] sm:$0xff] }
  0x36   :  { %445 = vmatpush.msrb.mxu2 %v4695_v54  ;;  %406 = vmatpush.msrb.mxu0 %v4703_v42  ;;  %9240 = vst [vmem:[#allocation43_spill] sm:$0xff] %v4719_v46  ;;  %v4729_v42 = vld [vmem:[#allocation6 + $0x2a8] sm:$0xff]  ;;  %v4731_v54 = vld [vmem:[#allocation6 + $0x200] sm:$0xff] }
  0x37   :  { %427 = vmatpush.msrb.mxu1 %v4651_v12  ;;  %463 = vmatpush.msrb.mxu3 %v4661_v14  ;;  %9241 = vst [vmem:[#allocation44_spill] sm:$0xff] %v4723_v36 }
  0x38   :  { %446 = vmatpush.msrb.mxu2 %v4707_v50  ;;  %407 = vmatpush.msrb.mxu0 %v4715_v38  ;;  %9242 = vst [vmem:[#allocation45_spill] sm:$0xff] %v4731_v54  ;;  %v4742_v38 = vld [vmem:[#allocation6 + $0x3d0] sm:$0xff]  ;;  %v4744_v50 = vld [vmem:[#allocation6 + $0x268] sm:$0xff] }
  0x39   :  { %428 = vmatpush.msrb.mxu1 %v4663_v56  ;;  %464 = vmatpush.msrb.mxu3 %v4673_v22  ;;  %9245 = vst [vmem:[#allocation48_spill] sm:$0xff] %v4742_v38 }
  0x3a   :  { %447 = vmatpush.msrb.mxu2 %v4719_v46  ;;  %9246 = vst [vmem:[#allocation49_spill] sm:$0xff] %v4744_v50  ;;  %v4748_v46 = vld [vmem:[#allocation6 + $0x3b0] sm:$0xff] }
  0x3b   :  { %429 = vmatpush.msrb.mxu1 %v4675_v52  ;;  %465 = vmatpush.msrb.mxu3 %v4685_v30  ;;  %9247 = vst [vmem:[#allocation50_spill] sm:$0xff] %v4748_v46 }
  0x3d   :  { %430 = vmatpush.msrb.mxu1 %v4687_v48  ;;  %466 = vmatpush.msrb.mxu3 %v4697_v20  ;;  %v4767_v48 = vld [vmem:[#allocation6 + $0x3f8] sm:$0xff] }
  0x3e   :  { %9253 = vst [vmem:[#allocation55_spill] sm:$0xff] %v4767_v48 }
  0x3f   :  { %431 = vmatpush.msrb.mxu1 %v4699_v44  ;;  %467 = vmatpush.msrb.mxu3 %v4709_v28  ;;  %v4755_v44 = vld [vmem:[#allocation6 + $0x390] sm:$0xff] }
  0x40   :  { %9250 = vst [vmem:[#allocation52_spill] sm:$0xff] %v4755_v44 }
  0x41   :  { %432 = vmatpush.msrb.mxu1 %v4711_v40  ;;  %468 = vmatpush.msrb.mxu3 %v4721_v58  ;;  %v9248_v40 = vmov 0.0  }
  0x43   :  { %433 = vmatpush.msrb.mxu1 %v4723_v36  ;;  %469 = vmatpush.msrb.mxu3 %v4729_v42  ;;  %v4751_v36 = vld [vmem:[#allocation6 + $0x248] sm:$0xff] }
  0x44   :  { %9249 = vst [vmem:[#allocation51_spill] sm:$0xff] %v4751_v36 }
  0x45   :  { %434 = vmatpush.msrb.mxu1 %v4731_v54  ;;  %470 = vmatpush.msrb.mxu3 %v4738_v32  ;;  %v4757_v54 = vld [vmem:[#allocation6 + $0x228] sm:$0xff] }
  0x46   :  { %435 = vmatmul.f32.vlgmr.msrb.gmra.mxu1 %v9248_v40  ;;  %v4763_v32 = vld [vmem:[#allocation6 + $0x208] sm:$0xff] }
  0x47   :  { %499 = vmatpush.msra.mxu1 %v4736_v34  ;;  %471 = vmatpush.msrb.mxu3 %v4744_v50  ;;  %v4761_v34 = vld [vmem:[#allocation6 + $0x370] sm:$0xff]  ;;  %9252 = vst [vmem:[#allocation54_spill] sm:$0xff] %v4763_v32  ;;  %v4773_v50 = vld [vmem:[#allocation6 + $0x3d8] sm:$0xff] }
  0x48   :  { %9251 = vst [vmem:[#allocation53_spill] sm:$0xff] %v4761_v34 }
  0x49   :  { %500 = vmatpush.msra.mxu1 %v4742_v38  ;;  %472 = vmatpush.msrb.mxu3 %v4751_v36  ;;  %v4769_v38 = vld [vmem:[#allocation6 + $0x350] sm:$0xff]  ;;  %9255 = vst [vmem:[#allocation57_spill] sm:$0xff] %v4773_v50  ;;  %v4779_v36 = vld [vmem:[#allocation6 + $0x3b8] sm:$0xff] }
  0x4a   :  { %9254 = vst [vmem:[#allocation56_spill] sm:$0xff] %v4769_v38 }
  0x4b   :  { %501 = vmatpush.msra.mxu1 %v4748_v46  ;;  %473 = vmatpush.msrb.mxu3 %v4757_v54  ;;  %v4775_v46 = vld [vmem:[#allocation6 + $0x330] sm:$0xff]  ;;  %9257 = vst [vmem:[#allocation59_spill] sm:$0xff] %v4779_v36 }
  0x4c   :  { %9256 = vst [vmem:[#allocation58_spill] sm:$0xff] %v4775_v46 }
  0x4d   :  { %502 = vmatpush.msra.mxu1 %v4755_v44  ;;  %474 = vmatpush.msrb.mxu3 %v4763_v32  ;;  %v4781_v44 = vld [vmem:[#allocation6 + $0x310] sm:$0xff] }
  0x4e   :  { %9258 = vst [vmem:[#allocation60_spill] sm:$0xff] %v4781_v44  ;;  %475 = vmatmul.f32.vlgmr.msrb.gmra.mxu3 %v9248_v40  ;;  %v4788_v32 = vld [vmem:[#allocation6 + $0x2f0] sm:$0xff] }
  0x4f   :  { %503 = vmatpush.msra.mxu1 %v4761_v34  ;;  %539 = vmatpush.msra.mxu3 %v4767_v48  ;;  %v4786_v34 = vld [vmem:[#allocation6 + $0x398] sm:$0xff]  ;;  %9260 = vst [vmem:[#allocation62_spill] sm:$0xff] %v4788_v32 }
  0x50   :  { %9259 = vst [vmem:[#allocation61_spill] sm:$0xff] %v4786_v34  ;;  %v4792_v48 = vld [vmem:[#allocation6 + $0x378] sm:$0xff] }
  0x51   :  { %504 = vmatpush.msra.mxu1 %v4769_v38  ;;  %540 = vmatpush.msra.mxu3 %v4773_v50  ;;  %9261 = vst [vmem:[#allocation63_spill] sm:$0xff] %v4792_v48  ;;  %v4796_v38 = vld [vmem:[#allocation6 + $0x358] sm:$0xff] }
  0x52   :  { %9262 = vst [vmem:[#allocation64_spill] sm:$0xff] %v4796_v38  ;;  %v4799_v50 = vld [vmem:[#allocation6 + $0x338] sm:$0xff] }
  0x53   :  { %505 = vmatpush.msra.mxu1 %v4775_v46  ;;  %541 = vmatpush.msra.mxu3 %v4779_v36  ;;  %9263 = vst [vmem:[#allocation65_spill] sm:$0xff] %v4799_v50  ;;  %v4802_v46 = vld [vmem:[#allocation6 + $0x318] sm:$0xff] }
  0x54   :  { %9264 = vst [vmem:[#allocation66_spill] sm:$0xff] %v4802_v46  ;;  %v4805_v36 = vld [vmem:[#allocation6 + $0x2f8] sm:$0xff] }
  0x55   :  { %506 = vmatpush.msra.mxu1 %v4781_v44  ;;  %542 = vmatpush.msra.mxu3 %v4786_v34  ;;  %9265 = vst [vmem:[#allocation67_spill] sm:$0xff] %v4805_v36  ;;  %v4809_v44 = vld [vmem:[#allocation6 + $0xc0] sm:$0xff]  ;;  %v4813_v34 = vld [vmem:[#allocation6 + $0x2d0] sm:$0xff] }
  0x56   :  { %9266 = vst [vmem:[#allocation68_spill] sm:$0xff] %v4809_v44  ;;  %408 = vmatpush.msrb.mxu0 %v4809_v44  ;;  %v4835_v44 = vld [vmem:[#allocation6 + $0x88] sm:$0xff] }
  0x57   :  { %507 = vmatpush.msra.mxu1 %v4788_v32  ;;  %543 = vmatpush.msra.mxu3 %v4792_v48  ;;  %v4811_v32 = vld [vmem:[#allocation6 + $0xc8] sm:$0xff]  ;;  %9268 = vst [vmem:[#allocation70_spill] sm:$0xff] %v4813_v34  ;;  %v4829_v48 = vld [vmem:[#allocation6 + $0x2b8] sm:$0xff] }
  0x58   :  { %9267 = vst [vmem:[#allocation69_spill] sm:$0xff] %v4811_v32  ;;  %448 = vmatpush.msrb.mxu2 %v4811_v32  ;;  %v4833_v32 = vld [vmem:[#allocation6 + $0x80] sm:$0xff] }
  0x59   :  { %544 = vmatpush.msra.mxu3 %v4796_v38  ;;  %v4817_v38 = vld [vmem:[#allocation6 + $0x2d8] sm:$0xff]  ;;  %508 = vmatpush.msra.mxu1 %v4813_v34  ;;  %9273 = vst [vmem:[#allocation75_spill] sm:$0xff] %v4829_v48 }
  0x5a   :  { %9269 = vst [vmem:[#allocation71_spill] sm:$0xff] %v4817_v38  ;;  %v4841_v34 = vld [vmem:[#allocation6 + $0x298] sm:$0xff] }
  0x5b   :  { %545 = vmatpush.msra.mxu3 %v4799_v50  ;;  %v4821_v50 = vld [vmem:[#allocation6 + $0xa0] sm:$0xff]  ;;  %9274 = vst [vmem:[#allocation76_spill] sm:$0xff] %v4833_v32 }
  0x5c   :  { %9270 = vst [vmem:[#allocation72_spill] sm:$0xff] %v4821_v50  ;;  %409 = vmatpush.msrb.mxu0 %v4821_v50  ;;  %v4847_v50 = vld [vmem:[#allocation6 + $0x68] sm:$0xff] }
  0x5d   :  { %546 = vmatpush.msra.mxu3 %v4802_v46  ;;  %v4823_v46 = vld [vmem:[#allocation6 + $0xa8] sm:$0xff]  ;;  %9275 = vst [vmem:[#allocation77_spill] sm:$0xff] %v4835_v44 }
  0x5e   :  { %9271 = vst [vmem:[#allocation73_spill] sm:$0xff] %v4823_v46  ;;  %449 = vmatpush.msrb.mxu2 %v4823_v46  ;;  %410 = vmatpush.msrb.mxu0 %v4833_v32  ;;  %v4845_v46 = vld [vmem:[#allocation6 + $0x60] sm:$0xff]  ;;  %v4859_v32 = vld [vmem:[#allocation6 + $0x48] sm:$0xff] }
  0x5f   :  { %547 = vmatpush.msra.mxu3 %v4805_v36  ;;  %v4825_v36 = vld [vmem:[#allocation6 + $0x2b0] sm:$0xff]  ;;  %9277 = vst [vmem:[#allocation79_spill] sm:$0xff] %v4841_v34 }
  0x60   :  { %9272 = vst [vmem:[#allocation74_spill] sm:$0xff] %v4825_v36  ;;  %509 = vmatpush.msra.mxu1 %v4825_v36  ;;  %450 = vmatpush.msrb.mxu2 %v4835_v44  ;;  %v4853_v36 = vld [vmem:[#allocation6 + $0x278] sm:$0xff]  ;;  %v4857_v44 = vld [vmem:[#allocation6 + $0x40] sm:$0xff] }
  0x61   :  { %548 = vmatpush.msra.mxu3 %v4817_v38  ;;  %v4837_v38 = vld [vmem:[#allocation6 + $0x290] sm:$0xff]  ;;  %9278 = vst [vmem:[#allocation80_spill] sm:$0xff] %v4845_v46  ;;  %411 = vmatpush.msrb.mxu0 %v4845_v46  ;;  %v4871_v46 = vld [vmem:[#allocation6 + $0x28] sm:$0xff] }
  0x62   :  { %9276 = vst [vmem:[#allocation78_spill] sm:$0xff] %v4837_v38  ;;  %510 = vmatpush.msra.mxu1 %v4837_v38  ;;  %451 = vmatpush.msrb.mxu2 %v4847_v50  ;;  %v4865_v38 = vld [vmem:[#allocation6 + $0x258] sm:$0xff] }
  0x63   :  { %549 = vmatpush.msra.mxu3 %v4829_v48  ;;  %9279 = vst [vmem:[#allocation81_spill] sm:$0xff] %v4847_v50  ;;  %v4849_v48 = vld [vmem:[#allocation6 + $0x270] sm:$0xff]  ;;  %412 = vmatpush.msrb.mxu0 %v4857_v44  ;;  %v4869_v50 = vld [vmem:[#allocation6 + $0x20] sm:$0xff] }
  0x64   :  { %9280 = vst [vmem:[#allocation82_spill] sm:$0xff] %v4849_v48  ;;  %511 = vmatpush.msra.mxu1 %v4849_v48  ;;  %452 = vmatpush.msrb.mxu2 %v4859_v32  ;;  %v4877_v48 = vld [vmem:[#allocation6 + $0x238] sm:$0xff] }
  0x65   :  { %550 = vmatpush.msra.mxu3 %v4841_v34  ;;  %9281 = vst [vmem:[#allocation83_spill] sm:$0xff] %v4853_v36  ;;  %v4861_v34 = vld [vmem:[#allocation6 + $0x250] sm:$0xff]  ;;  %413 = vmatpush.msrb.mxu0 %v4869_v50 }
  0x66   :  { %9282 = vst [vmem:[#allocation84_spill] sm:$0xff] %v4857_v44  ;;  %512 = vmatpush.msra.mxu1 %v4861_v34  ;;  %453 = vmatpush.msrb.mxu2 %v4871_v46  ;;  %v4883_v44 = vld [vmem:[#allocation6 + $0x8] sm:$0xff] }
  0x67   :  { %551 = vmatpush.msra.mxu3 %v4853_v36  ;;  %9283 = vst [vmem:[#allocation85_spill] sm:$0xff] %v4859_v32  ;;  %v4873_v36 = vld [vmem:[#allocation6 + $0x230] sm:$0xff]  ;;  %v4881_v32 = vld [vmem:[#allocation6] sm:$0xff] }
  0x68   :  { %9284 = vst [vmem:[#allocation86_spill] sm:$0xff] %v4861_v34  ;;  %513 = vmatpush.msra.mxu1 %v4873_v36  ;;  %414 = vmatpush.msrb.mxu0 %v4881_v32  ;;  %v4889_v34 = vld [vmem:[#allocation6 + $0x218] sm:$0xff] }
  0x69   :  { %9285 = vst [vmem:[#allocation87_spill] sm:$0xff] %v4865_v38  ;;  %552 = vmatpush.msra.mxu3 %v4865_v38  ;;  %v4885_v38 = vld [vmem:[#allocation6 + $0x210] sm:$0xff]  ;;  %454 = vmatpush.msrb.mxu2 %v4883_v44 }
  0x6a   :  { %9286 = vst [vmem:[#allocation88_spill] sm:$0xff] %v4869_v50  ;;  %v4891_v50 = vld [vmem:[#allocation6 + $0x1f0] sm:$0xff]  ;;  %514 = vmatpush.msra.mxu1 %v4885_v38 }
  0x6b   :  { %9287 = vst [vmem:[#allocation89_spill] sm:$0xff] %v4871_v46  ;;  %553 = vmatpush.msra.mxu3 %v4877_v48  ;;  %v4893_v46 = vld [vmem:[#allocation6 + $0x1f8] sm:$0xff]  ;;  %479 = vmatpush.msra.mxu0 %v4891_v50 }
  0x6c   :  { %9288 = vst [vmem:[#allocation90_spill] sm:$0xff] %v4873_v36  ;;  %519 = vmatpush.msra.mxu2 %v4893_v46  ;;  %v4901_v36 = vld [vmem:[#allocation6 + $0x1d8] sm:$0xff]  ;;  %650 = vmatpush.msrb.mxu1 %v4275_v1 }
  0x6d   :  { %9289 = vst [vmem:[#allocation91_spill] sm:$0xff] %v4877_v48  ;;  %554 = vmatpush.msra.mxu3 %v4889_v34  ;;  %v4899_v48 = vld [vmem:[#allocation6 + $0x1d0] sm:$0xff]  ;;  %v4917_v1 = vld [vmem:[#allocation6 + $0x198] sm:$0xff]  ;;  %515 = vmatmul.f32.vlgmr.msra.gmra.mxu1 %v9248_v40 }
  0x6e   :  { %9290 = vst [vmem:[#allocation92_spill] sm:$0xff] %v4881_v32  ;;  %480 = vmatpush.msra.mxu0 %v4899_v48  ;;  %520 = vmatpush.msra.mxu2 %v4901_v36  ;;  %v4909_v32 = vld [vmem:[#allocation6 + $0x1b8] sm:$0xff] }
  0x6f   :  { %9291 = vst [vmem:[#allocation93_spill] sm:$0xff] %v4883_v44  ;;  %690 = vmatpush.msrb.mxu3 %v4339_v17  ;;  %v4907_v44 = vld [vmem:[#allocation6 + $0x1b0] sm:$0xff]  ;;  %651 = vmatpush.msrb.mxu1 %v4287_v4  ;;  %v4927_v17 = vld [vmem:[#allocation6 + $0x178] sm:$0xff] }
  0x70   :  { %9292 = vst [vmem:[#allocation94_spill] sm:$0xff] %v4893_v46  ;;  %481 = vmatpush.msra.mxu0 %v4907_v44  ;;  %521 = vmatpush.msra.mxu2 %v4909_v32  ;;  %v4915_v46 = vld [vmem:[#allocation6 + $0x190] sm:$0xff] }
  0x71   :  { %691 = vmatpush.msrb.mxu3 %v4348_v19  ;;  %652 = vmatpush.msrb.mxu1 %v4298_v7  ;;  %v4925_v4 = vld [vmem:[#allocation6 + $0x170] sm:$0xff]  ;;  %v4935_v19 = vld [vmem:[#allocation6 + $0x158] sm:$0xff] }
  0x72   :  { %482 = vmatpush.msra.mxu0 %v4915_v46  ;;  %522 = vmatpush.msra.mxu2 %v4917_v1  ;;  %v4933_v7 = vld [vmem:[#allocation6 + $0x150] sm:$0xff] }
  0x73   :  { %692 = vmatpush.msrb.mxu3 %v4366_v23  ;;  %653 = vmatpush.msrb.mxu1 %v4310_v10  ;;  %v4941_v10 = vld [vmem:[#allocation6 + $0x130] sm:$0xff]  ;;  %v4943_v23 = vld [vmem:[#allocation6 + $0x138] sm:$0xff] }
  0x74   :  { %483 = vmatpush.msra.mxu0 %v4925_v4  ;;  %523 = vmatpush.msra.mxu2 %v4927_v17  ;;  %9293 = vst [vmem:[#allocation95_spill] sm:$0xff] %v4943_v23 }
  0x75   :  { %693 = vmatpush.msrb.mxu3 %v4384_v27  ;;  %654 = vmatpush.msrb.mxu1 %v4322_v13  ;;  %v4949_v13 = vld [vmem:[#allocation6 + $0x110] sm:$0xff]  ;;  %v4951_v27 = vld [vmem:[#allocation6 + $0x118] sm:$0xff] }
  0x76   :  { %484 = vmatpush.msra.mxu0 %v4933_v7  ;;  %524 = vmatpush.msra.mxu2 %v4935_v19  ;;  %9294 = vst [vmem:[#allocation96_spill] sm:$0xff] %v4949_v13 }
  0x77   :  { %694 = vmatpush.msrb.mxu3 %v4402_v31  ;;  %655 = vmatpush.msrb.mxu1 %v4334_v16  ;;  %9295 = vst [vmem:[#allocation97_spill] sm:$0xff] %v4951_v27  ;;  %v243_v16 = vld [vmem:[%s8673_s0] sm:$0xff]  ;;  %v4960_v31 = vld [vmem:[#allocation6 + $0xf0] sm:$0xff] }
  0x78   :  { %485 = vmatpush.msra.mxu0 %v4941_v10  ;;  %525 = vmatpush.msra.mxu2 %v4943_v23 }
  0x79   :  { %695 = vmatpush.msrb.mxu3 %v4424_v35  ;;  %656 = vmatpush.msrb.mxu1 %v4356_v21  ;;  %v4962_v21 = vld [vmem:[#allocation6 + $0xf8] sm:$0xff]  ;;  %v244_v35 = vld [vmem:[%s8673_s0 + $0x8] sm:$0xff] }
  0x7a   :  { %486 = vmatpush.msra.mxu0 %v4949_v13  ;;  %526 = vmatpush.msra.mxu2 %v4951_v27  ;;  %9296 = vst [vmem:[#allocation98_spill] sm:$0xff] %v4962_v21 }
  0x7b   :  { %696 = vmatpush.msrb.mxu3 %v4447_v39  ;;  %657 = vmatpush.msrb.mxu1 %v4374_v25  ;;  %v4971_v25 = vld [vmem:[#allocation6 + $0xd0] sm:$0xff] }
  0x7c   :  { %487 = vmatpush.msra.mxu0 %v4960_v31  ;;  %527 = vmatpush.msra.mxu2 %v4962_v21  ;;  %v4979_v21 = vld [vmem:[#allocation6 + $0xb0] sm:$0xff] }
  0x7d   :  { %697 = vmatpush.msrb.mxu3 %v4471_v43  ;;  %658 = vmatpush.msrb.mxu1 %v4392_v29  ;;  %v4973_v43 = vld [vmem:[#allocation6 + $0xd8] sm:$0xff] }
  0x7e   :  { %488 = vmatpush.msra.mxu0 %v4971_v25  ;;  %528 = vmatpush.msra.mxu2 %v4973_v43  ;;  %v4981_v29 = vld [vmem:[#allocation6 + $0xb8] sm:$0xff] }
  0x7f   :  { %698 = vmatpush.msrb.mxu3 %v4495_v47  ;;  %659 = vmatpush.msrb.mxu1 %v4412_v33  ;;  %v245_v33 = vld [vmem:[%s8673_s0 + $0x10] sm:$0xff] }
  0x80   :  { %489 = vmatpush.msra.mxu0 %v4979_v21  ;;  %529 = vmatpush.msra.mxu2 %v4981_v29 }
  0x81   :  { %699 = vmatpush.msrb.mxu3 %v4519_v51  ;;  %660 = vmatpush.msrb.mxu1 %v4434_v37  ;;  %v4998_v37 = vld [vmem:[#allocation6 + $0x70] sm:$0xff]  ;;  %v5000_v51 = vld [vmem:[#allocation6 + $0x78] sm:$0xff] }
  0x82   :  { %555 = vmatmul.f32.vlgmr.msra.gmra.mxu3 %v9248_v40  ;;  %v5016_v40 = vld [vmem:[#allocation6 + $0x38] sm:$0xff] }
  0x83   :  { %700 = vmatpush.msrb.mxu3 %v4543_v55  ;;  %661 = vmatpush.msrb.mxu1 %v4458_v41 }
  0x85   :  { %701 = vmatpush.msrb.mxu3 %v4571_v59  ;;  %662 = vmatpush.msrb.mxu1 %v4482_v45  ;;  %v5014_v59 = vld [vmem:[#allocation6 + $0x30] sm:$0xff] }
  0x87   :  { %702 = vmatpush.msrb.mxu3 %v4582_v62  ;;  %663 = vmatpush.msrb.mxu1 %v4506_v49  ;;  %v246_v49 = vld [vmem:[%s8673_s0 + $0x18] sm:$0xff] }
  0x89   :  { %703 = vmatpush.msrb.mxu3 %v4591_v0  ;;  %664 = vmatpush.msrb.mxu1 %v4530_v53 }
  0x8b   :  { %704 = vmatpush.msrb.mxu3 %v4600_v3  ;;  %665 = vmatpush.msrb.mxu1 %v4554_v57 }
  0x8d   :  { %705 = vmatpush.msrb.mxu3 %v4609_v6  ;;  %801 = vmatpush.msra.mxu1 %v4573_v60 }
  0x8f   :  { %841 = vmatpush.msra.mxu3 %v4615_v9  ;;  %802 = vmatpush.msra.mxu1 %v4584_v63 }
  0x91   :  { %842 = vmatpush.msra.mxu3 %v4626_v15  ;;  %803 = vmatpush.msra.mxu1 %v4593_v2 }
  0x93   :  { %843 = vmatpush.msra.mxu3 %v4637_v24  ;;  %804 = vmatpush.msra.mxu1 %v4602_v5 }
  0x95   :  { %844 = vmatpush.msra.mxu3 %v4649_v61  ;;  %805 = vmatpush.msra.mxu1 %v4611_v8 }
  0x97   :  { %845 = vmatpush.msra.mxu3 %v4661_v14  ;;  %806 = vmatpush.msra.mxu1 %v4617_v11 }
  0x99   :  { %846 = vmatpush.msra.mxu3 %v4673_v22  ;;  %807 = vmatpush.msra.mxu1 %v4628_v18 }
  0x9b   :  { %847 = vmatpush.msra.mxu3 %v4685_v30  ;;  %808 = vmatpush.msra.mxu1 %v4639_v26 }
  0x9d   :  { %848 = vmatpush.msra.mxu3 %v4697_v20  ;;  %809 = vmatpush.msra.mxu1 %v4651_v12  ;;  %v9297_v20 = vld [vmem:[#allocation35_spill] sm:$0xff] }
  0x9f   :  { %849 = vmatpush.msra.mxu3 %v4709_v28  ;;  %810 = vmatpush.msra.mxu1 %v4663_v56  ;;  %v9298_v56 = vld [vmem:[#allocation47_spill] sm:$0xff] }
  0xa1   :  { %850 = vmatpush.msra.mxu3 %v4721_v58  ;;  %811 = vmatpush.msra.mxu1 %v4675_v52 }
  0xa2   :  { %v265_v39 = vpop.f32.mrf.mxu0 }
  0xa3   :  { %v328_v27 = vadd.f32 %v265_v39, %v243_v16  ;;  %v285_v13 = vpop.f32.mrf.mxu1  ;;  %v4987_v39 = vld [vmem:[#allocation6 + $0x90] sm:$0xff]  ;;  %851 = vmatpush.msra.mxu3 %v4729_v42  ;;  %812 = vmatpush.msra.mxu1 %v9297_v20 }
  0xa4   :  { %v329_v23 = vadd.f32 %v285_v13, %v244_v35  ;;  %v4989_v13 = vld [vmem:[#allocation6 + $0x98] sm:$0xff]  ;;  %490 = vmatpush.msra.mxu0 %v4987_v39  ;;  %v9302_v42 = vld [vmem:[#allocation51_spill] sm:$0xff] }
  0xa5   :  { %v3309_v47 = vmul.f32 -1.442695, %v328_v27  ;;  %530 = vmatpush.msra.mxu2 %v4989_v13  ;;  %v5006_v27 = vld [vmem:[#allocation6 + $0x50] sm:$0xff]  ;;  %v5008_v35 = vld [vmem:[#allocation6 + $0x58] sm:$0xff]  ;;  %852 = vmatpush.msra.mxu3 %v9298_v56  ;;  %v9313_v56 = vld [vmem:[#allocation61_spill] sm:$0xff] }
  0xa6   :  { %v3310_v16 = vmul.f32 -1.442695, %v329_v23  ;;  %491 = vmatpush.msra.mxu0 %v4998_v37  ;;  %v5174_v20 = vld [vmem:[%s8674_s1 + $0x130] sm:$0xff] }
  0xa7   :  { %3361 = vpow2.f32 %v3309_v47  ;;  %531 = vmatpush.msra.mxu2 %v5000_v51 }
  0xa8   :  { %3363 = vpow2.f32 %v3310_v16  ;;  %492 = vmatpush.msra.mxu0 %v5006_v27  ;;  %v5020_v16 = vld [vmem:[#allocation6 + $0x10] sm:$0xff] }
  0xa9   :  { %v305_v55 = vpop.f32.mrf.mxu2  ;;  %532 = vmatpush.msra.mxu2 %v5008_v35 }
  0xaa   :  { %v330_v23 = vadd.f32 %v305_v55, %v245_v33  ;;  %v5022_v33 = vld [vmem:[#allocation6 + $0x18] sm:$0xff]  ;;  %493 = vmatpush.msra.mxu0 %v5014_v59 }
  0xab   :  { %533 = vmatpush.msra.mxu2 %v5016_v40 }
  0xac   :  { %v3311_v41 = vmul.f32 -1.442695, %v330_v23  ;;  %494 = vmatpush.msra.mxu0 %v5020_v16 }
  0xad   :  { %v3362_v47 = vpop.eup %3361  ;;  %534 = vmatpush.msra.mxu2 %v5022_v33 }
  0xae   :  { %v3364_v45 = vpop.eup %3363  ;;  %v341_v62 = vadd.f32 1.0, %v3362_v47  ;;  %3365 = vpow2.f32 %v3311_v41 }
  0xaf   :  { %v342_v55 = vadd.f32 1.0, %v3364_v45 }
  0xb0   :  { %3367 = vrcp.f32 %v341_v62  ;;  %v355_v15 = vand.u32 2147483648, %v341_v62  ;;  %v353_v24 = vand.u32 2147483647, %v341_v62  ;;  %vm349_vm2 = vweird.f32 %v341_v62 }
  0xb1   :  { %3369 = vrcp.f32 %v342_v55  ;;  %v325_v53 = vpop.f32.mrf.mxu3  ;;  %v370_v2 = vand.u32 2147483648, %v342_v55  ;;  %vm364_vm3 = vweird.f32 %v342_v55 }
  0xb2   :  { %v331_v3 = vadd.f32 %v325_v53, %v246_v49  ;;  %v368_v49 = vand.u32 2147483647, %v342_v55  ;;  %v356_v14 = vor.u32 1.1754944e-38, %v355_v15  ;;  %vm354_vm5 = vcmp.eq.f32.partialorder %v353_v24, 8.507059e+37  ;;  %v5083_v24 = vld [vmem:[%s8674_s1 + $0x1e0] sm:$0xff] }
  0xb4   :  { %v3366_v0 = vpop.eup %3365  ;;  %vm369_vm7 = vcmp.eq.f32.partialorder %v368_v49, 8.507059e+37  ;;  %v9304_v49 = vld [vmem:[#allocation45_spill] sm:$0xff] }
  0xb5   :  { %v5039_v23 = vadd.f32 1.0, %v3366_v0 }
  0xb6   :  { %v3368_v41 = vpop.eup %3367 }
  0xb7   :  { %v3370_v57 = vpop.eup %3369  ;;  %v345_v6 = vmul.f32 %v3368_v41, %v341_v62  ;;  %3371 = vrcp.f32 %v5039_v23  ;;  %vm350_vm0 = vweird.f32 %v3368_v41  ;;  %v385_v26 = vand.u32 2147483648, %v5039_v23 }
  0xb8   :  { %v360_v60 = vmul.f32 %v3370_v57, %v342_v55  ;;  %3373 = vtanh.f32 %v331_v3  ;;  %vm365_vm1 = vweird.f32 %v3370_v57  ;;  %vm351_vm4 = vmor %vm349_vm2, %vm350_vm0  ;;  %v371_v3 = vor.u32 1.1754944e-38, %v370_v2  ;;  %v9301_v2 = vld [vmem:[#allocation41_spill] sm:$0xff] }
  0xb9   :  { %v346_v63 = vsub.f32 1.0, %v345_v6  ;;  %vm366_vm6 = vmor %vm364_vm3, %vm365_vm1  ;;  %vm379_vm9 = vweird.f32 %v5039_v23  ;;  %v383_v12 = vand.u32 2147483647, %v5039_v23  ;;  %v386_v28 = vor.u32 1.1754944e-38, %v385_v26  ;;  %v5167_v26 = vld [vmem:[%s8674_s1 + $0x120] sm:$0xff] }
  0xba   :  { %v361_v9 = vsub.f32 1.0, %v360_v60 }
  0xbb   :  { %v347_v47 = vmul.f32 %v3368_v41, %v346_v63  ;;  %vm384_vm11 = vcmp.eq.f32.partialorder %v383_v12, 8.507059e+37  ;;  %v9312_v12 = vld [vmem:[#allocation52_spill] sm:$0xff] }
  0xbc   :  { %v362_v45 = vmul.f32 %v3370_v57, %v361_v9 }
  0xbd   :  { %v3372_v5 = vpop.eup %3371  ;;  %v348_v61 = vadd.f32 %v3368_v41, %v347_v47 }
  0xbe   :  { %v3374_v53 = vpop.eup %3373  ;;  %v375_v8 = vmul.f32 %v3372_v5, %v5039_v23  ;;  %v363_v0 = vadd.f32 %v3370_v57, %v362_v45  ;;  %vm380_vm8 = vweird.f32 %v3372_v5  ;;  %v9303_v23 = vld [vmem:[#allocation44_spill] sm:$0xff]  ;;  %v5090_v45 = vld [vmem:[%s8674_s1 + $0x1f0] sm:$0xff] }
  0xbf   :  { %v352_v6 = vsel %vm351_vm4, %v3368_v41, %v348_v61  ;;  %vm381_vm10 = vmor %vm379_vm9, %vm380_vm8  ;;  %v9299_v41 = vld [vmem:[#allocation38_spill] sm:$0xff] }
  0xc0   :  { %v376_v11 = vsub.f32 1.0, %v375_v8  ;;  %v357_v22 = vsel %vm354_vm5, %v356_v14, %v352_v6  ;;  %v367_v60 = vsel %vm366_vm6, %v3370_v57, %v363_v0  ;;  %813 = vmatpush.msra.mxu1 %v9299_v41  ;;  %v9300_v57 = vld [vmem:[#allocation49_spill] sm:$0xff]  ;;  %v9305_v61 = vld [vmem:[#allocation54_spill] sm:$0xff]  ;;  %v5118_v14 = vld [vmem:[%s8674_s1 + $0x1b0] sm:$0xff] }
  0xc1   :  { %v372_v62 = vsel %vm369_vm7, %v371_v3, %v367_v60  ;;  %v392_v55 = vmul.f32 %v3374_v53, %v357_v22  ;;  %853 = vmatpush.msra.mxu3 %v9300_v57  ;;  %v5111_v53 = vld [vmem:[%s8674_s1 + $0x1a0] sm:$0xff]  ;;  %v9306_v8 = vld [vmem:[#allocation46_spill] sm:$0xff]  ;;  %v9307_v0 = vld [vmem:[#allocation55_spill] sm:$0xff] }
  0xc2   :  { %v377_v63 = vmul.f32 %v3372_v5, %v376_v11  ;;  %v391_v9 = vmul.f32 0.0, %v372_v62  ;;  %814 = vmatpush.msra.mxu1 %v9301_v2  ;;  %v5125_v3 = vld [vmem:[%s8674_s1 + $0x180] sm:$0xff]  ;;  %v9308_v6 = vld [vmem:[#allocation48_spill] sm:$0xff]  ;;  %v5132_v11 = vld [vmem:[%s8674_s1 + $0x190] sm:$0xff] }
  0xc3   :  { %854 = vmatpush.msra.mxu3 %v9302_v42  ;;  %v5140_v22 = vld [vmem:[%s8674_s1 + $0x160] sm:$0xff]  ;;  %v5146_v60 = vld [vmem:[%s8674_s1 + $0x170] sm:$0xff]  ;;  %v9317_v42 = vld [vmem:[#allocation64_spill] sm:$0xff] }
  0xc4   :  { %v5058_v18 = vadd.f32 %v392_v55, %v391_v9  ;;  %v378_v30 = vadd.f32 %v3372_v5, %v377_v63  ;;  %815 = vmatpush.msra.mxu1 %v9303_v23  ;;  %v9309_v62 = vld [vmem:[#allocation57_spill] sm:$0xff]  ;;  %v9310_v63 = vld [vmem:[#allocation50_spill] sm:$0xff]  ;;  %v5160_v9 = vld [vmem:[%s8674_s1 + $0x150] sm:$0xff] }
  0xc5   :  { %855 = vmatpush.msra.mxu3 %v4757_v54  ;;  %v5097_v54 = vld [vmem:[%s8674_s1 + $0x1c0] sm:$0xff]  ;;  %v5188_v41 = vld [vmem:[%s8674_s1 + $0x110] sm:$0xff] }
  0xc6   :  { %3375 = vtanh.f32 %v5058_v18  ;;  %v382_v58 = vsel %vm381_vm10, %v3372_v5, %v378_v30  ;;  %816 = vmatpush.msra.mxu1 %v9304_v49  ;;  %v5104_v5 = vld [vmem:[%s8674_s1 + $0x1d0] sm:$0xff]  ;;  %v5153_v55 = vld [vmem:[%s8674_s1 + $0x140] sm:$0xff]  ;;  %v9319_v49 = vld [vmem:[#allocation58_spill] sm:$0xff] }
  0xc7   :  { %v387_v52 = vsel %vm384_vm11, %v386_v28, %v382_v58  ;;  %856 = vmatpush.msra.mxu3 %v9305_v61  ;;  %v9311_v30 = vld [vmem:[#allocation59_spill] sm:$0xff]  ;;  %v5181_v58 = vld [vmem:[%s8674_s1 + $0x100] sm:$0xff]  ;;  %v9320_v61 = vld [vmem:[#allocation10_spill] sm:$0xff] }
  0xc8   :  { %v9314_v28 = vld [vmem:[#allocation53_spill] sm:$0xff]  ;;  %v9315_v57 = vld [vmem:[#allocation63_spill] sm:$0xff] }
  0xc9   :  { %v5202_v2 = vld [vmem:[%s8674_s1 + $0xf0] sm:$0xff]  ;;  %v9318_v23 = vld [vmem:[#allocation9_spill] sm:$0xff] }
  0xcc   :  { %v3376_v15 = vpop.eup %3375 }
  0xcd   :  { %v5074_v47 = vmul.f32 %v3376_v15, %v387_v52  ;;  %v5195_v15 = vld [vmem:[%s8674_s1 + $0xe0] sm:$0xff]  ;;  %v9316_v52 = vld [vmem:[#allocation56_spill] sm:$0xff] }
  0xcf   :  { %415 = vmatmul.f32.vlgmr.msrb.gmra.mxu0 %v5074_v47  ;;  %455 = vmatmul.f32.vlgmr.msrb.gmra.mxu2 %v5074_v47 }
  0xd0   :  { %630 = vmatpush.msrb.mxu0 %v5083_v24  ;;  %666 = vmatmul.f32.vlgmr.msrb.gmra.mxu1 %v5074_v47 }
  0xd1   :  { %670 = vmatpush.msrb.mxu2 %v5090_v45  ;;  %706 = vmatmul.f32.vlgmr.msrb.gmra.mxu3 %v5074_v47 }
  0xd2   :  { %631 = vmatpush.msrb.mxu0 %v5097_v54  ;;  %881 = vmatpush.msrb.mxu1 %v9306_v8  ;;  %v9321_v8 = vld [vmem:[#allocation65_spill] sm:$0xff] }
  0xd3   :  { %671 = vmatpush.msrb.mxu2 %v5104_v5  ;;  %921 = vmatpush.msrb.mxu3 %v9307_v0  ;;  %v9322_v0 = vld [vmem:[#allocation11_spill] sm:$0xff] }
  0xd4   :  { %632 = vmatpush.msrb.mxu0 %v5111_v53  ;;  %882 = vmatpush.msrb.mxu1 %v9308_v6  ;;  %v9323_v6 = vld [vmem:[#allocation60_spill] sm:$0xff] }
  0xd5   :  { %672 = vmatpush.msrb.mxu2 %v5118_v14  ;;  %922 = vmatpush.msrb.mxu3 %v9309_v62  ;;  %v9324_v62 = vld [vmem:[#allocation12_spill] sm:$0xff] }
  0xd6   :  { %633 = vmatpush.msrb.mxu0 %v5125_v3  ;;  %883 = vmatpush.msrb.mxu1 %v9310_v63  ;;  %v9325_v63 = vld [vmem:[#allocation66_spill] sm:$0xff] }
  0xd7   :  { %673 = vmatpush.msrb.mxu2 %v5132_v11  ;;  %495 = vmatmul.f32.vlgmr.msra.gmra.mxu0 %v5074_v47 }
  0xd8   :  { %535 = vmatmul.f32.vlgmr.msra.gmra.mxu2 %v5074_v47  ;;  %634 = vmatpush.msrb.mxu0 %v5140_v22 }
  0xd9   :  { %674 = vmatpush.msrb.mxu2 %v5146_v60  ;;  %923 = vmatpush.msrb.mxu3 %v9311_v30  ;;  %v9326_v30 = vld [vmem:[#allocation13_spill] sm:$0xff] }
  0xda   :  { %635 = vmatpush.msrb.mxu0 %v5153_v55  ;;  %884 = vmatpush.msrb.mxu1 %v9312_v12  ;;  %v9327_v12 = vld [vmem:[#allocation62_spill] sm:$0xff] }
  0xdb   :  { %675 = vmatpush.msrb.mxu2 %v5160_v9  ;;  %924 = vmatpush.msrb.mxu3 %v9313_v56  ;;  %v9328_v56 = vld [vmem:[#allocation14_spill] sm:$0xff] }
  0xdc   :  { %636 = vmatpush.msrb.mxu0 %v5167_v26  ;;  %885 = vmatpush.msrb.mxu1 %v9314_v28  ;;  %v9329_v28 = vld [vmem:[#allocation67_spill] sm:$0xff] }
  0xdd   :  { %676 = vmatpush.msrb.mxu2 %v5174_v20  ;;  %925 = vmatpush.msrb.mxu3 %v9315_v57  ;;  %v9330_v57 = vld [vmem:[#allocation15_spill] sm:$0xff] }
  0xde   :  { %637 = vmatpush.msrb.mxu0 %v5181_v58  ;;  %886 = vmatpush.msrb.mxu1 %v9316_v52  ;;  %v9331_v52 = vld [vmem:[#allocation70_spill] sm:$0xff] }
  0xdf   :  { %677 = vmatpush.msrb.mxu2 %v5188_v41  ;;  %926 = vmatpush.msrb.mxu3 %v9317_v42  ;;  %v9332_v42 = vld [vmem:[#allocation16_spill] sm:$0xff] }
  0xe0   :  { %638 = vmatpush.msrb.mxu0 %v5195_v15  ;;  %887 = vmatpush.msrb.mxu1 %v9319_v49  ;;  %v9334_v49 = vld [vmem:[#allocation17_spill] sm:$0xff] }
  0xe1   :  { %678 = vmatpush.msrb.mxu2 %v5202_v2  ;;  %927 = vmatpush.msrb.mxu3 %v9321_v8  ;;  %v9336_v8 = vld [vmem:[#allocation18_spill] sm:$0xff] }
  0xe2   :  { %639 = vmatpush.msrb.mxu0 %v9318_v23  ;;  %888 = vmatpush.msrb.mxu1 %v9323_v6  ;;  %v9333_v23 = vld [vmem:[#allocation71_spill] sm:$0xff] }
  0xe3   :  { %679 = vmatpush.msrb.mxu2 %v9320_v61  ;;  %928 = vmatpush.msrb.mxu3 %v9325_v63  ;;  %v9335_v61 = vld [vmem:[#allocation74_spill] sm:$0xff]  ;;  %v9338_v6 = vld [vmem:[#allocation19_spill] sm:$0xff]  ;;  %v9340_v63 = vld [vmem:[#allocation20_spill] sm:$0xff] }
  0xe4   :  { %640 = vmatpush.msrb.mxu0 %v9322_v0  ;;  %889 = vmatpush.msrb.mxu1 %v9327_v12  ;;  %v9337_v0 = vld [vmem:[#allocation75_spill] sm:$0xff]  ;;  %v9342_v12 = vld [vmem:[#allocation21_spill] sm:$0xff] }
  0xe5   :  { %680 = vmatpush.msrb.mxu2 %v9324_v62  ;;  %929 = vmatpush.msrb.mxu3 %v9329_v28  ;;  %v9339_v62 = vld [vmem:[#allocation78_spill] sm:$0xff] }
  0xe6   :  { %641 = vmatpush.msrb.mxu0 %v9326_v30  ;;  %890 = vmatpush.msrb.mxu1 %v9331_v52  ;;  %v9341_v30 = vld [vmem:[#allocation79_spill] sm:$0xff]  ;;  %v9344_v28 = vld [vmem:[#allocation22_spill] sm:$0xff]  ;;  %v9346_v52 = vld [vmem:[#allocation24_spill] sm:$0xff] }
  0xe7   :  { %681 = vmatpush.msrb.mxu2 %v9328_v56  ;;  %930 = vmatpush.msrb.mxu3 %v9333_v23  ;;  %v9343_v56 = vld [vmem:[#allocation82_spill] sm:$0xff]  ;;  %v9348_v23 = vld [vmem:[#allocation25_spill] sm:$0xff] }
  0xe8   :  { %642 = vmatpush.msrb.mxu0 %v9330_v57  ;;  %891 = vmatpush.msrb.mxu1 %v9335_v61  ;;  %v9345_v57 = vld [vmem:[#allocation23_spill] sm:$0xff]  ;;  %v9350_v61 = vld [vmem:[#allocation26_spill] sm:$0xff] }
  0xe9   :  { %682 = vmatpush.msrb.mxu2 %v9332_v42  ;;  %931 = vmatpush.msrb.mxu3 %v9337_v0  ;;  %v9347_v42 = vld [vmem:[#allocation83_spill] sm:$0xff] }
  0xea   :  { %643 = vmatpush.msrb.mxu0 %v9334_v49  ;;  %892 = vmatpush.msrb.mxu1 %v9339_v62  ;;  %v9349_v49 = vld [vmem:[#allocation86_spill] sm:$0xff]  ;;  %v9352_v0 = vld [vmem:[#allocation27_spill] sm:$0xff]  ;;  %v9354_v62 = vld [vmem:[#allocation28_spill] sm:$0xff] }
  0xeb   :  { %683 = vmatpush.msrb.mxu2 %v9336_v8  ;;  %932 = vmatpush.msrb.mxu3 %v9341_v30  ;;  %v9351_v8 = vld [vmem:[#allocation87_spill] sm:$0xff]  ;;  %v9357_v30 = vld [vmem:[#allocation30_spill] sm:$0xff] }
  0xec   :  { %644 = vmatpush.msrb.mxu0 %v9338_v6  ;;  %893 = vmatpush.msrb.mxu1 %v9343_v56  ;;  %v9353_v6 = vld [vmem:[#allocation90_spill] sm:$0xff]  ;;  %v9359_v56 = vld [vmem:[#allocation32_spill] sm:$0xff] }
  0xed   :  { %684 = vmatpush.msrb.mxu2 %v9340_v63  ;;  %933 = vmatpush.msrb.mxu3 %v9347_v42  ;;  %v9356_v63 = vld [vmem:[#allocation29_spill] sm:$0xff] }
  0xee   :  { %645 = vmatpush.msrb.mxu0 %v9342_v12  ;;  %894 = vmatpush.msrb.mxu1 %v9349_v49  ;;  %v9358_v12 = vld [vmem:[#allocation31_spill] sm:$0xff]  ;;  %v9363_v42 = vld [vmem:[#allocation37_spill] sm:$0xff]  ;;  %v9365_v49 = vld [vmem:[#allocation40_spill] sm:$0xff] }
  0xef   :  { %685 = vmatpush.msrb.mxu2 %v9344_v28  ;;  %646 = vmatmul.f32.vlgmr.msrb.gmra.mxu0 %v5074_v47  ;;  %v9360_v28 = vld [vmem:[#allocation33_spill] sm:$0xff] }
  0xf0   :  { %686 = vmatmul.f32.vlgmr.msrb.gmra.mxu2 %v5074_v47  ;;  %781 = vmatpush.msra.mxu0 %v9345_v57  ;;  %v9355_v47 = vld [vmem:[#allocation91_spill] sm:$0xff]  ;;  %v9361_v57 = vld [vmem:[#allocation34_spill] sm:$0xff] }
  0xf1   :  { %821 = vmatpush.msra.mxu2 %v9346_v52  ;;  %934 = vmatpush.msrb.mxu3 %v9351_v8  ;;  %v9362_v52 = vld [vmem:[#allocation36_spill] sm:$0xff]  ;;  %v9369_v8 = vld [vmem:[#allocation69_spill] sm:$0xff] }
  0xf2   :  { %782 = vmatpush.msra.mxu0 %v9348_v23  ;;  %895 = vmatpush.msrb.mxu1 %v9353_v6  ;;  %v9364_v23 = vld [vmem:[#allocation39_spill] sm:$0xff]  ;;  %v9371_v6 = vld [vmem:[#allocation73_spill] sm:$0xff] }
  0xf3   :  { %822 = vmatpush.msra.mxu2 %v9350_v61  ;;  %935 = vmatpush.msrb.mxu3 %v9355_v47  ;;  %v9367_v61 = vld [vmem:[#allocation43_spill] sm:$0xff]  ;;  %v9373_v47 = vld [vmem:[#allocation77_spill] sm:$0xff] }
  0xf4   :  { %783 = vmatpush.msra.mxu0 %v9352_v0  ;;  %896 = vmatpush.msrb.mxu1 %v4885_v38  ;;  %v9366_v38 = vld [vmem:[#allocation42_spill] sm:$0xff]  ;;  %v9370_v0 = vld [vmem:[#allocation72_spill] sm:$0xff] }
  0xf5   :  { %823 = vmatpush.msra.mxu2 %v9354_v62  ;;  %936 = vmatpush.msrb.mxu3 %v4889_v34  ;;  %v9368_v34 = vld [vmem:[#allocation68_spill] sm:$0xff] }
  0xf6   :  { %784 = vmatpush.msra.mxu0 %v9356_v63  ;;  %v9372_v62 = vld [vmem:[#allocation76_spill] sm:$0xff] }
  0xf7   :  { %824 = vmatpush.msra.mxu2 %v9357_v30  ;;  %v9374_v63 = vld [vmem:[#allocation80_spill] sm:$0xff]  ;;  %v9375_v30 = vld [vmem:[#allocation81_spill] sm:$0xff] }
  0xf8   :  { %785 = vmatpush.msra.mxu0 %v9358_v12  ;;  %v9376_v12 = vld [vmem:[#allocation84_spill] sm:$0xff] }
  0xf9   :  { %825 = vmatpush.msra.mxu2 %v9359_v56  ;;  %v9377_v56 = vld [vmem:[#allocation85_spill] sm:$0xff] }
  0xfa   :  { %786 = vmatpush.msra.mxu0 %v9360_v28  ;;  %v9378_v28 = vld [vmem:[#allocation88_spill] sm:$0xff] }
  0xfb   :  { %826 = vmatpush.msra.mxu2 %v9361_v57  ;;  %v9379_v57 = vld [vmem:[#allocation89_spill] sm:$0xff] }
  0xfc   :  { %787 = vmatpush.msra.mxu0 %v9362_v52  ;;  %v9380_v52 = vld [vmem:[#allocation92_spill] sm:$0xff] }
  0xfd   :  { %827 = vmatpush.msra.mxu2 %v9363_v42  ;;  %v9381_v42 = vld [vmem:[#allocation93_spill] sm:$0xff] }
  0xfe   :  { %788 = vmatpush.msra.mxu0 %v9364_v23  ;;  %v9382_v23 = vld [vmem:[#allocation94_spill] sm:$0xff] }
  0xff   :  { %828 = vmatpush.msra.mxu2 %v9365_v49 }
 0x100   :  { %789 = vmatpush.msra.mxu0 %v9366_v38 }
 0x101   :  { %829 = vmatpush.msra.mxu2 %v9367_v61 }
 0x102   :  { %790 = vmatpush.msra.mxu0 %v9368_v34 }
 0x103   :  { %830 = vmatpush.msra.mxu2 %v9369_v8 }
 0x104   :  { %791 = vmatpush.msra.mxu0 %v9370_v0 }
 0x105   :  { %831 = vmatpush.msra.mxu2 %v9371_v6 }
 0x106   :  { %792 = vmatpush.msra.mxu0 %v9372_v62 }
 0x107   :  { %832 = vmatpush.msra.mxu2 %v9373_v47 }
 0x108   :  { %793 = vmatpush.msra.mxu0 %v9374_v63 }
 0x109   :  { %833 = vmatpush.msra.mxu2 %v9375_v30 }
 0x10a   :  { %794 = vmatpush.msra.mxu0 %v9376_v12 }
 0x10b   :  { %834 = vmatpush.msra.mxu2 %v9377_v56 }
 0x10c   :  { %795 = vmatpush.msra.mxu0 %v9378_v28 }
 0x10d   :  { %835 = vmatpush.msra.mxu2 %v9379_v57 }
 0x10e   :  { %796 = vmatpush.msra.mxu0 %v9380_v52 }
 0x10f   :  { %836 = vmatpush.msra.mxu2 %v9381_v42 }
 0x110   :  { %861 = vmatpush.msrb.mxu0 %v4891_v50  ;;  %v233_v50 = vld [vmem:[%s8676_s3] sm:$0xf] }
 0x111   :  { %901 = vmatpush.msrb.mxu2 %v9382_v23  ;;  %v5321_v8 = vperm.slane %v233_v50, 3 }
 0x112   :  { %862 = vmatpush.msrb.mxu0 %v4899_v48  ;;  %v9383_v48 = vld [vmem:[#allocation95_spill] sm:$0xff] }
 0x113   :  { %902 = vmatpush.msrb.mxu2 %v4901_v36  ;;  %v9384_v36 = vld [vmem:[#allocation96_spill] sm:$0xff]  ;;  %9390 = vst [vmem:[#allocation49_spill] sm:$0xff] %v5321_v8 }
 0x114   :  { %863 = vmatpush.msrb.mxu0 %v4907_v44  ;;  %v9385_v44 = vld [vmem:[#allocation97_spill] sm:$0xff] }
 0x115   :  { %903 = vmatpush.msrb.mxu2 %v4909_v32  ;;  %v9386_v32 = vld [vmem:[#allocation98_spill] sm:$0xff] }
 0x116   :  { %864 = vmatpush.msrb.mxu0 %v4915_v46  ;;  %v436_v46 = vpop.f32.mrf.mxu1 }
 0x117   :  { %904 = vmatpush.msrb.mxu2 %v4917_v1 }
 0x118   :  { %865 = vmatpush.msrb.mxu0 %v4925_v4  ;;  %v5309_v4 = vperm.slane %v233_v50, 0 }
 0x119   :  { %905 = vmatpush.msrb.mxu2 %v4927_v17 }
 0x11a   :  { %866 = vmatpush.msrb.mxu0 %v4933_v7  ;;  %9387 = vst [vmem:[#allocation35_spill] sm:$0xff] %v5309_v4 }
 0x11b   :  { %906 = vmatpush.msrb.mxu2 %v4935_v19 }
 0x11c   :  { %867 = vmatpush.msrb.mxu0 %v4941_v10  ;;  %v5312_v10 = vperm.slane %v233_v50, 1 }
 0x11d   :  { %907 = vmatpush.msrb.mxu2 %v9383_v48 }
 0x11e   :  { %868 = vmatpush.msrb.mxu0 %v9384_v36  ;;  %v516_v1 = vpop.f32.mrf.mxu1  ;;  %9388 = vst [vmem:[#allocation47_spill] sm:$0xff] %v5312_v10 }
 0x11f   :  { %908 = vmatpush.msrb.mxu2 %v9385_v44 }
 0x120   :  { %869 = vmatpush.msrb.mxu0 %v4960_v31 }
 0x121   :  { %909 = vmatpush.msrb.mxu2 %v9386_v32 }
 0x122   :  { %870 = vmatpush.msrb.mxu0 %v4971_v25 }
 0x123   :  { %910 = vmatpush.msrb.mxu2 %v4973_v43  ;;  %v626_v43 = vld [vmem:[%s8673_s0 + $0x28] sm:$0xff] }
 0x124   :  { %871 = vmatpush.msrb.mxu0 %v4979_v21  ;;  %v5314_v21 = vperm.slane %v233_v50, 2 }
 0x125   :  { %911 = vmatpush.msrb.mxu2 %v4981_v29 }
 0x126   :  { %872 = vmatpush.msrb.mxu0 %v4987_v39  ;;  %9389 = vst [vmem:[#allocation38_spill] sm:$0xff] %v5314_v21 }
 0x127   :  { %912 = vmatpush.msrb.mxu2 %v4989_v13  ;;  %v476_v13 = vpop.f32.mrf.mxu3 }
 0x128   :  { %873 = vmatpush.msrb.mxu0 %v4998_v37 }
 0x129   :  { %913 = vmatpush.msrb.mxu2 %v5000_v51 }
 0x12a   :  { %874 = vmatpush.msrb.mxu0 %v5006_v27 }
 0x12b   :  { %914 = vmatpush.msrb.mxu2 %v5008_v35 }
 0x12c   :  { %875 = vmatpush.msrb.mxu0 %v5014_v59 }
 0x12d   :  { %915 = vmatpush.msrb.mxu2 %v5016_v40 }
 0x12e   :  { %876 = vmatpush.msrb.mxu0 %v5020_v16 }
 0x12f   :  { %916 = vmatpush.msrb.mxu2 %v5022_v33  ;;  %v556_v28 = vpop.f32.mrf.mxu3 }
 0x14c   :  { %v416_v17 = vpop.f32.mrf.mxu0 }
 0x14d   :  { %v417_v7 = vadd.f32 %v416_v17, %v5309_v4  ;;  %v667_v29 = vpop.f32.mrf.mxu1 }
 0x14e   :  { %v711_v35 = vadd.f32 %v667_v29, %v626_v43 }
 0x14f   :  { %v437_v19 = vadd.f32 %v436_v46, %v417_v7  ;;  %v625_v46 = vld [vmem:[%s8673_s0 + $0x20] sm:$0xff] }
 0x150   :  { %v3316_v38 = vmul.f32 -1.442695, %v711_v35 }
 0x151   :  { %v3312_v31 = vmul.f32 -1.442695, %v437_v19 }
 0x152   :  { %v456_v25 = vpop.f32.mrf.mxu2 }
 0x153   :  { %3377 = vpow2.f32 %v3312_v31  ;;  %v457_v39 = vadd.f32 %v456_v25, %v5312_v10 }
 0x154   :  { %v496_v37 = vpop.f32.mrf.mxu0 }
 0x155   :  { %v477_v51 = vadd.f32 %v476_v13, %v457_v39  ;;  %v497_v27 = vadd.f32 %v496_v37, %v5314_v21 }
 0x157   :  { %v3313_v59 = vmul.f32 -1.442695, %v477_v51  ;;  %v517_v40 = vadd.f32 %v516_v1, %v497_v27 }
 0x159   :  { %v3378_v16 = vpop.eup %3377  ;;  %3379 = vpow2.f32 %v3313_v59  ;;  %v3314_v33 = vmul.f32 -1.442695, %v517_v40 }
 0x15a   :  { %v568_v49 = vadd.f32 1.0, %v3378_v16 }
 0x15b   :  { %v536_v0 = vpop.f32.mrf.mxu2 }
 0x15c   :  { %3381 = vrcp.f32 %v568_v49  ;;  %v537_v12 = vadd.f32 %v536_v0, %v5321_v8  ;;  %v580_v44 = vand.u32 2147483647, %v568_v49  ;;  %v582_v32 = vand.u32 2147483648, %v568_v49 }
 0x15d   :  { %3383 = vpow2.f32 %v3314_v33  ;;  %vm576_vm13 = vweird.f32 %v568_v49  ;;  %v627_v33 = vld [vmem:[%s8673_s0 + $0x30] sm:$0xff] }
 0x15e   :  { %3385 = vpow2.f32 %v3316_v38  ;;  %v557_v23 = vadd.f32 %v556_v28, %v537_v12  ;;  %vm581_vm0 = vcmp.eq.f32.partialorder %v580_v44, 8.507059e+37  ;;  %v583_v13 = vor.u32 1.1754944e-38, %v582_v32 }
 0x15f   :  { %v3380_v61 = vpop.eup %3379 }
 0x160   :  { %v569_v34 = vadd.f32 1.0, %v3380_v61 }
 0x162   :  { %v3382_v6 = vpop.eup %3381  ;;  %3387 = vrcp.f32 %v569_v34  ;;  %v597_v17 = vand.u32 2147483648, %v569_v34  ;;  %v595_v19 = vand.u32 2147483647, %v569_v34  ;;  %vm591_vm1 = vweird.f32 %v569_v34 }
 0x163   :  { %v3384_v62 = vpop.eup %3383  ;;  %v572_v47 = vmul.f32 %v3382_v6, %v568_v49  ;;  %vm577_vm12 = vweird.f32 %v3382_v6 }
 0x164   :  { %v3386_v63 = vpop.eup %3385  ;;  %v5323_v30 = vadd.f32 1.0, %v3384_v62  ;;  %vm5333_vm14 = vmor %vm576_vm13, %vm577_vm12  ;;  %v598_v35 = vor.u32 1.1754944e-38, %v597_v17  ;;  %vm596_vm3 = vcmp.eq.f32.partialorder %v595_v19, 8.507059e+37  ;;  %v707_v17 = vpop.f32.mrf.mxu3 }
 0x165   :  { %v573_v56 = vsub.f32 1.0, %v572_v47  ;;  %v5327_v57 = vadd.f32 1.0, %v3386_v63 }
 0x166   :  { %3389 = vrcp.f32 %v5323_v30  ;;  %vm606_vm5 = vweird.f32 %v5323_v30 }
 0x167   :  { %v574_v52 = vmul.f32 %v3382_v6, %v573_v56  ;;  %3391 = vrcp.f32 %v5327_v57  ;;  %vm746_vm9 = vweird.f32 %v5327_v57 }
 0x168   :  { %v3388_v42 = vpop.eup %3387  ;;  %3393 = vtanh.f32 %v557_v23  ;;  %v610_v23 = vand.u32 2147483647, %v5323_v30 }
 0x169   :  { %v587_v48 = vmul.f32 %v3388_v42, %v569_v34  ;;  %v575_v36 = vadd.f32 %v3382_v6, %v574_v52  ;;  %vm592_vm15 = vweird.f32 %v3388_v42  ;;  %v612_v52 = vand.u32 2147483648, %v5323_v30 }
 0x16a   :  { %vm593_vm2 = vmor %vm591_vm1, %vm592_vm15  ;;  %vm611_vm7 = vcmp.eq.f32.partialorder %v610_v23, 8.507059e+37  ;;  %v5441_v23 = vld [vmem:[%s8674_s1 + $0x178] sm:$0xff] }
 0x16b   :  { %v588_v50 = vsub.f32 1.0, %v587_v48  ;;  %v579_v29 = vsel %vm5333_vm14, %v3382_v6, %v575_v36  ;;  %v613_v44 = vor.u32 1.1754944e-38, %v612_v52 }
 0x16c   :  { %v3390_v1 = vpop.eup %3389  ;;  %v647_v31 = vpop.f32.mrf.mxu0  ;;  %v584_v59 = vsel %vm581_vm0, %v583_v13, %v579_v29  ;;  %v5376_v13 = vld [vmem:[%s8674_s1 + $0x1f8] sm:$0xff] }
 0x16d   :  { %v589_v25 = vmul.f32 %v3388_v42, %v588_v50  ;;  %v602_v43 = vmul.f32 %v3390_v1, %v5323_v30  ;;  %v710_v39 = vadd.f32 %v647_v31, %v625_v46  ;;  %v5341_v40 = vpop.eup %3391  ;;  %vm607_vm4 = vweird.f32 %v3390_v1  ;;  %v628_v50 = vld [vmem:[%s8673_s0 + $0x38] sm:$0xff] }
 0x16e   :  { %v3394_v49 = vpop.eup %3393  ;;  %v742_v47 = vmul.f32 %v5341_v40, %v5327_v57  ;;  %vm608_vm6 = vmor %vm606_vm5, %vm607_vm4  ;;  %vm747_vm8 = vweird.f32 %v5341_v40 }
 0x16f   :  { %v603_v37 = vsub.f32 1.0, %v602_v43  ;;  %v590_v51 = vadd.f32 %v3388_v42, %v589_v25  ;;  %v3315_v27 = vmul.f32 -1.442695, %v710_v39  ;;  %v619_v0 = vmul.f32 %v3394_v49, %v584_v59  ;;  %v5370_v39 = vld [vmem:[%s8674_s1 + $0x1e8] sm:$0xff]  ;;  %v5391_v59 = vld [vmem:[%s8674_s1 + $0x1d8] sm:$0xff]  ;;  %vm5396_vm10 = vmor %vm746_vm9, %vm747_vm8 }
 0x170   :  { %v743_v48 = vsub.f32 1.0, %v742_v47  ;;  %v713_v43 = vadd.f32 %v707_v17, %v628_v50  ;;  %v5427_v47 = vld [vmem:[%s8674_s1 + $0x198] sm:$0xff]  ;;  %v5448_v50 = vld [vmem:[%s8674_s1 + $0x148] sm:$0xff] }
 0x171   :  { %v594_v16 = vsel %vm593_vm2, %v3388_v42, %v590_v51  ;;  %3395 = vpow2.f32 %v3315_v27  ;;  %v604_v61 = vmul.f32 %v3390_v1, %v603_v37  ;;  %v752_v37 = vand.u32 2147483648, %v5327_v57  ;;  %v5454_v17 = vld [vmem:[%s8674_s1 + $0x158] sm:$0xff] }
 0x172   :  { %v599_v38 = vsel %vm596_vm3, %v598_v35, %v594_v16  ;;  %v744_v46 = vmul.f32 %v5341_v40, %v743_v48  ;;  %v750_v51 = vand.u32 2147483647, %v5327_v57  ;;  %v5385_v35 = vld [vmem:[%s8674_s1 + $0x1c8] sm:$0xff] }
 0x173   :  { %v618_v34 = vmul.f32 0.0, %v599_v38  ;;  %v687_v6 = vpop.f32.mrf.mxu2  ;;  %v605_v56 = vadd.f32 %v3390_v1, %v604_v61  ;;  %v5408_v61 = vld [vmem:[%s8674_s1 + $0x1a8] sm:$0xff] }
 0x174   :  { %v712_v62 = vadd.f32 %v687_v6, %v627_v33  ;;  %vm751_vm12 = vcmp.eq.f32.partialorder %v750_v51, 8.507059e+37  ;;  %v5490_v51 = vld [vmem:[%s8674_s1 + $0xe8] sm:$0xff] }
 0x175   :  { %v5348_v63 = vadd.f32 %v619_v0, %v618_v34  ;;  %v609_v36 = vsel %vm608_vm6, %v3390_v1, %v605_v56  ;;  %v745_v1 = vadd.f32 %v5341_v40, %v744_v46  ;;  %v5414_v34 = vld [vmem:[%s8674_s1 + $0x1b8] sm:$0xff]  ;;  %v753_v0 = vor.u32 1.1754944e-38, %v752_v37 }
 0x176   :  { %v3317_v12 = vmul.f32 -1.442695, %v712_v62  ;;  %v614_v7 = vsel %vm611_vm7, %v613_v44, %v609_v36  ;;  %v5421_v62 = vld [vmem:[%s8674_s1 + $0x188] sm:$0xff] }
 0x177   :  { %v3396_v28 = vpop.eup %3395  ;;  %3397 = vtanh.f32 %v5348_v63  ;;  %v749_v33 = vsel %vm5396_vm10, %v5341_v40, %v745_v1  ;;  %v5476_v1 = vld [vmem:[%s8674_s1 + $0x108] sm:$0xff] }
 0x178   :  { %v5352_v42 = vadd.f32 1.0, %v3396_v28  ;;  %3399 = vpow2.f32 %v3317_v12  ;;  %v754_v12 = vsel %vm751_vm12, %v753_v0, %v749_v33  ;;  %v5508_v33 = vld [vmem:[%s8674_s1 + $0xd8] sm:$0xff]  ;;  %v5514_v0 = vld [vmem:[%s8674_s1 + $0xa8] sm:$0xff] }
 0x17a   :  { %3401 = vrcp.f32 %v5352_v42  ;;  %v737_v57 = vand.u32 2147483648, %v5352_v42  ;;  %v735_v38 = vand.u32 2147483647, %v5352_v42  ;;  %vm731_vm13 = vweird.f32 %v5352_v42 }
 0x17c   :  { %v738_v56 = vor.u32 1.1754944e-38, %v737_v57  ;;  %vm736_vm15 = vcmp.eq.f32.partialorder %v735_v38, 8.507059e+37 }
 0x17d   :  { %v3398_v32 = vpop.eup %3397 }
 0x17e   :  { %v3400_v19 = vpop.eup %3399  ;;  %v622_v31 = vmul.f32 %v3398_v32, %v614_v7  ;;  %v773_v32 = vmul.f32 %v754_v12, %v5058_v18  ;;  %v5462_v18 = vld [vmem:[%s8674_s1 + $0x128] sm:$0xff] }
 0x17f   :  { %v5361_v25 = vadd.f32 1.0, %v3400_v19  ;;  %v5528_v12 = vld [vmem:[%s8674_s1 + $0x88] sm:$0xff] }
 0x180   :  { %v3402_v30 = vpop.eup %3401  ;;  %817 = vmatmul.f32.vlgmr.msra.gmra.mxu1 %v622_v31  ;;  %857 = vmatmul.f32.vlgmr.msra.gmra.mxu3 %v622_v31 }
 0x181   :  { %v727_v29 = vmul.f32 %v3402_v30, %v5352_v42  ;;  %3403 = vrcp.f32 %v5361_v25  ;;  %1032 = vmatpush.msra.mxu1 %v5370_v39  ;;  %1072 = vmatpush.msra.mxu3 %v5376_v13  ;;  %vm732_vm11 = vweird.f32 %v3402_v30  ;;  %v5435_v42 = vld [vmem:[%s8674_s1 + $0x168] sm:$0xff]  ;;  %vm761_vm1 = vweird.f32 %v5361_v25 }
 0x182   :  { %3405 = vtanh.f32 %v713_v43  ;;  %vm733_vm14 = vmor %vm731_vm13, %vm732_vm11  ;;  %v767_v43 = vand.u32 2147483648, %v5361_v25  ;;  %v765_v37 = vand.u32 2147483647, %v5361_v25 }
 0x183   :  { %v728_v27 = vsub.f32 1.0, %v727_v29  ;;  %1033 = vmatpush.msra.mxu1 %v5385_v35  ;;  %1073 = vmatpush.msra.mxu3 %v5391_v59  ;;  %v5482_v29 = vld [vmem:[%s8674_s1 + $0x118] sm:$0xff] }
 0x184   :  { %v768_v57 = vor.u32 1.1754944e-38, %v767_v43  ;;  %vm766_vm3 = vcmp.eq.f32.partialorder %v765_v37, 8.507059e+37  ;;  %v5684_v43 = vld [vmem:[#allocation6 + $0x328] sm:$0xff]  ;;  %v5690_v37 = vld [vmem:[%s8674_s1 + $0x60] sm:$0xff] }
 0x185   :  { %v729_v49 = vmul.f32 %v3402_v30, %v728_v27  ;;  %1034 = vmatpush.msra.mxu1 %v5408_v61  ;;  %1074 = vmatpush.msra.mxu3 %v5414_v34  ;;  %v5496_v27 = vld [vmem:[%s8674_s1 + $0xf8] sm:$0xff]  ;;  %9412 = vst [vmem:[#allocation9_spill] sm:$0xff] %v5684_v43 }
 0x186   :  { %9413 = vst [vmem:[#allocation58_spill] sm:$0xff] %v5690_v37 }
 0x187   :  { %v3404_v40 = vpop.eup %3403  ;;  %v730_v6 = vadd.f32 %v3402_v30, %v729_v49  ;;  %1035 = vmatpush.msra.mxu1 %v5421_v62  ;;  %1075 = vmatpush.msra.mxu3 %v5427_v47 }
 0x188   :  { %v757_v28 = vmul.f32 %v3404_v40, %v5361_v25  ;;  %897 = vmatmul.f32.vlgmr.msrb.gmra.mxu1 %v622_v31  ;;  %937 = vmatmul.f32.vlgmr.msrb.gmra.mxu3 %v622_v31  ;;  %v3406_v48 = vpop.eup %3405  ;;  %v5468_v31 = vld [vmem:[%s8674_s1 + $0x138] sm:$0xff]  ;;  %vm762_vm0 = vweird.f32 %v3404_v40  ;;  %v5502_v25 = vld [vmem:[%s8674_s1 + $0xc8] sm:$0xff] }
 0x189   :  { %v734_v52 = vsel %vm733_vm14, %v3402_v30, %v730_v6  ;;  %1036 = vmatpush.msra.mxu1 %v5435_v42  ;;  %1076 = vmatpush.msra.mxu3 %v5441_v23  ;;  %vm763_vm2 = vmor %vm761_vm1, %vm762_vm0 }
 0x18a   :  { %v739_v36 = vsel %vm736_vm15, %v738_v56, %v734_v52  ;;  %v758_v44 = vsub.f32 1.0, %v757_v28  ;;  %v5534_v56 = vld [vmem:[%s8674_s1 + $0x98] sm:$0xff]  ;;  %v5544_v28 = vld [vmem:[%s8674_s1 + $0x68] sm:$0xff] }
 0x18b   :  { %v774_v46 = vmul.f32 %v3406_v48, %v739_v36  ;;  %1037 = vmatpush.msra.mxu1 %v5448_v50  ;;  %1077 = vmatpush.msra.mxu3 %v5454_v17  ;;  %v5550_v52 = vld [vmem:[%s8674_s1 + $0x78] sm:$0xff]  ;;  %v5654_v48 = vld [vmem:[%s8674_s1 + $0xa0] sm:$0xff] }
 0x18c   :  { %v759_v7 = vmul.f32 %v3404_v40, %v758_v44  ;;  %9405 = vst [vmem:[#allocation59_spill] sm:$0xff] %v5654_v48  ;;  %v5657_v36 = vld [vmem:[#allocation6 + $0x340] sm:$0xff]  ;;  %v5663_v44 = vld [vmem:[%s8674_s1 + $0xb0] sm:$0xff] }
 0x18d   :  { %v5457_v19 = vadd.f32 %v774_v46, %v773_v32  ;;  %1038 = vmatpush.msra.mxu1 %v5462_v18  ;;  %1078 = vmatpush.msra.mxu3 %v5468_v31  ;;  %9406 = vst [vmem:[#allocation52_spill] sm:$0xff] %v5657_v36  ;;  %v5666_v32 = vld [vmem:[#allocation6 + $0x348] sm:$0xff]  ;;  %v5672_v46 = vld [vmem:[%s8674_s1 + $0x80] sm:$0xff] }
 0x18e   :  { %v760_v30 = vadd.f32 %v3404_v40, %v759_v7  ;;  %9407 = vst [vmem:[#allocation61_spill] sm:$0xff] %v5663_v44  ;;  %v5675_v7 = vld [vmem:[#allocation6 + $0x320] sm:$0xff] }
 0x18f   :  { %3407 = vtanh.f32 %v5457_v19  ;;  %1039 = vmatpush.msra.mxu1 %v5476_v1  ;;  %1079 = vmatpush.msra.mxu3 %v5482_v29  ;;  %9408 = vst [vmem:[#allocation53_spill] sm:$0xff] %v5666_v32 }
 0x190   :  { %v764_v16 = vsel %vm763_vm2, %v3404_v40, %v760_v30  ;;  %v5520_v40 = vld [vmem:[%s8674_s1 + $0xb8] sm:$0xff]  ;;  %9409 = vst [vmem:[#allocation63_spill] sm:$0xff] %v5672_v46  ;;  %v5681_v30 = vld [vmem:[%s8674_s1 + $0x90] sm:$0xff] }
 0x191   :  { %1040 = vmatpush.msra.mxu1 %v5490_v51  ;;  %1080 = vmatpush.msra.mxu3 %v5496_v27  ;;  %v769_v38 = vsel %vm766_vm3, %v768_v57, %v764_v16  ;;  %9410 = vst [vmem:[#allocation56_spill] sm:$0xff] %v5675_v7  ;;  %v5693_v16 = vld [vmem:[#allocation6 + $0x300] sm:$0xff]  ;;  %v5699_v57 = vld [vmem:[%s8674_s1 + $0x70] sm:$0xff] }
 0x192   :  { %9411 = vst [vmem:[#allocation64_spill] sm:$0xff] %v5681_v30 }
 0x193   :  { %1041 = vmatpush.msra.mxu1 %v5502_v25  ;;  %1081 = vmatpush.msra.mxu3 %v5508_v33  ;;  %9414 = vst [vmem:[#allocation10_spill] sm:$0xff] %v5693_v16 }
 0x194   :  { %9415 = vst [vmem:[#allocation65_spill] sm:$0xff] %v5699_v57 }
 0x195   :  { %v3408_v49 = vpop.eup %3407  ;;  %1042 = vmatpush.msra.mxu1 %v5514_v0  ;;  %1082 = vmatpush.msra.mxu3 %v5520_v40 }
 0x196   :  { %v5523_v6 = vmul.f32 %v3408_v49, %v769_v38  ;;  %v5702_v49 = vld [vmem:[#allocation6 + $0x308] sm:$0xff]  ;;  %v5708_v38 = vld [vmem:[%s8674_s1 + $0x40] sm:$0xff] }
 0x197   :  { %1043 = vmatpush.msra.mxu1 %v5528_v12  ;;  %1083 = vmatpush.msra.mxu3 %v5534_v56  ;;  %9416 = vst [vmem:[#allocation11_spill] sm:$0xff] %v5702_v49 }
 0x198   :  { %797 = vmatmul.f32.vlgmr.msra.gmra.mxu0 %v5523_v6  ;;  %837 = vmatmul.f32.vlgmr.msra.gmra.mxu2 %v5523_v6  ;;  %9417 = vst [vmem:[#allocation60_spill] sm:$0xff] %v5708_v38 }
 0x199   :  { %1012 = vmatpush.msra.mxu0 %v5083_v24  ;;  %1052 = vmatpush.msra.mxu2 %v5090_v45  ;;  %v5558_v24 = vld [vmem:[%s8674_s1 + $0x48] sm:$0xff]  ;;  %v5564_v45 = vld [vmem:[%s8674_s1 + $0x58] sm:$0xff] }
 0x19a   :  { %1044 = vmatpush.msra.mxu1 %v5544_v28  ;;  %1084 = vmatpush.msra.mxu3 %v5550_v52 }
 0x19b   :  { %1013 = vmatpush.msra.mxu0 %v5097_v54  ;;  %1053 = vmatpush.msra.mxu2 %v5104_v5  ;;  %v5572_v54 = vld [vmem:[%s8674_s1 + $0x28] sm:$0xff]  ;;  %v5578_v5 = vld [vmem:[%s8674_s1 + $0x38] sm:$0xff] }
 0x19c   :  { %1045 = vmatpush.msra.mxu1 %v5558_v24  ;;  %1085 = vmatpush.msra.mxu3 %v5564_v45 }
 0x19d   :  { %1014 = vmatpush.msra.mxu0 %v5111_v53  ;;  %1054 = vmatpush.msra.mxu2 %v5118_v14  ;;  %v5586_v53 = vld [vmem:[%s8674_s1 + $0x8] sm:$0xff]  ;;  %v5592_v14 = vld [vmem:[%s8674_s1 + $0x18] sm:$0xff] }
 0x19e   :  { %1046 = vmatpush.msra.mxu1 %v5572_v54  ;;  %1086 = vmatpush.msra.mxu3 %v5578_v5 }
 0x19f   :  { %1015 = vmatpush.msra.mxu0 %v5125_v3  ;;  %1055 = vmatpush.msra.mxu2 %v5132_v11  ;;  %v5602_v3 = vld [vmem:[#allocation6 + $0x3e0] sm:$0xff]  ;;  %v5606_v11 = vld [vmem:[#allocation6 + $0x3e8] sm:$0xff] }
 0x1a0   :  { %1047 = vmatpush.msra.mxu1 %v5586_v53  ;;  %1087 = vmatpush.msra.mxu3 %v5592_v14 }
 0x1a1   :  { %877 = vmatmul.f32.vlgmr.msrb.gmra.mxu0 %v5523_v6  ;;  %917 = vmatmul.f32.vlgmr.msrb.gmra.mxu2 %v5523_v6 }
 0x1a2   :  { %1016 = vmatpush.msra.mxu0 %v5140_v22  ;;  %1048 = vmatmul.f32.vlgmr.msra.gmra.mxu1 %v5523_v6  ;;  %v5610_v22 = vld [vmem:[#allocation6 + $0x3c0] sm:$0xff] }
 0x1a3   :  { %1056 = vmatpush.msra.mxu2 %v5146_v60  ;;  %1088 = vmatmul.f32.vlgmr.msra.gmra.mxu3 %v5523_v6  ;;  %9395 = vst [vmem:[#allocation41_spill] sm:$0xff] %v5610_v22  ;;  %v5614_v60 = vld [vmem:[#allocation6 + $0x3c8] sm:$0xff] }
 0x1a4   :  { %1017 = vmatpush.msra.mxu0 %v5153_v55  ;;  %1183 = vmatpush.msrb.mxu1 %v5602_v3  ;;  %9396 = vst [vmem:[#allocation51_spill] sm:$0xff] %v5614_v60  ;;  %v5618_v55 = vld [vmem:[#allocation6 + $0x3a0] sm:$0xff] }
 0x1a5   :  { %1057 = vmatpush.msra.mxu2 %v5160_v9  ;;  %1223 = vmatpush.msrb.mxu3 %v5606_v11  ;;  %9397 = vst [vmem:[#allocation44_spill] sm:$0xff] %v5618_v55  ;;  %v5622_v9 = vld [vmem:[#allocation6 + $0x3a8] sm:$0xff] }
 0x1a6   :  { %1018 = vmatpush.msra.mxu0 %v5167_v26  ;;  %1184 = vmatpush.msrb.mxu1 %v5610_v22  ;;  %9398 = vst [vmem:[#allocation45_spill] sm:$0xff] %v5622_v9  ;;  %v5626_v26 = vld [vmem:[#allocation6 + $0x380] sm:$0xff] }
 0x1a7   :  { %1058 = vmatpush.msra.mxu2 %v5174_v20  ;;  %1224 = vmatpush.msrb.mxu3 %v5614_v60  ;;  %9399 = vst [vmem:[#allocation54_spill] sm:$0xff] %v5626_v26  ;;  %v5630_v20 = vld [vmem:[#allocation6 + $0x388] sm:$0xff] }
 0x1a8   :  { %1019 = vmatpush.msra.mxu0 %v5181_v58  ;;  %1185 = vmatpush.msrb.mxu1 %v5618_v55  ;;  %9400 = vst [vmem:[#allocation46_spill] sm:$0xff] %v5630_v20  ;;  %v5636_v58 = vld [vmem:[%s8674_s1 + $0xc0] sm:$0xff] }
 0x1a9   :  { %1059 = vmatpush.msra.mxu2 %v5188_v41  ;;  %1225 = vmatpush.msrb.mxu3 %v5622_v9  ;;  %9401 = vst [vmem:[#allocation55_spill] sm:$0xff] %v5636_v58  ;;  %v5639_v41 = vld [vmem:[#allocation6 + $0x360] sm:$0xff] }
 0x1aa   :  { %1020 = vmatpush.msra.mxu0 %v5195_v15  ;;  %1186 = vmatpush.msrb.mxu1 %v5626_v26  ;;  %9402 = vst [vmem:[#allocation48_spill] sm:$0xff] %v5639_v41  ;;  %v5645_v15 = vld [vmem:[%s8674_s1 + $0xd0] sm:$0xff] }
 0x1ab   :  { %1060 = vmatpush.msra.mxu2 %v5202_v2  ;;  %1226 = vmatpush.msrb.mxu3 %v5630_v20  ;;  %9403 = vst [vmem:[#allocation57_spill] sm:$0xff] %v5645_v15  ;;  %v5648_v2 = vld [vmem:[#allocation6 + $0x368] sm:$0xff] }
 0x1ac   :  { %1021 = vmatpush.msra.mxu0 %v5636_v58  ;;  %1187 = vmatpush.msrb.mxu1 %v5639_v41  ;;  %9404 = vst [vmem:[#allocation50_spill] sm:$0xff] %v5648_v2 }
 0x1ad   :  { %1061 = vmatpush.msra.mxu2 %v5645_v15  ;;  %1227 = vmatpush.msrb.mxu3 %v5648_v2 }
 0x1ae   :  { %1022 = vmatpush.msra.mxu0 %v5654_v48  ;;  %1188 = vmatpush.msrb.mxu1 %v5657_v36 }
 0x1af   :  { %1062 = vmatpush.msra.mxu2 %v5663_v44  ;;  %1228 = vmatpush.msrb.mxu3 %v5666_v32 }
 0x1b0   :  { %1023 = vmatpush.msra.mxu0 %v5672_v46  ;;  %1189 = vmatpush.msrb.mxu1 %v5675_v7 }
 0x1b1   :  { %1063 = vmatpush.msra.mxu2 %v5681_v30  ;;  %1229 = vmatpush.msrb.mxu3 %v5684_v43 }
 0x1b2   :  { %1024 = vmatpush.msra.mxu0 %v5690_v37  ;;  %1190 = vmatpush.msrb.mxu1 %v5693_v16  ;;  %v5711_v37 = vld [vmem:[#allocation6 + $0x2e0] sm:$0xff]  ;;  %v5717_v16 = vld [vmem:[%s8674_s1 + $0x50] sm:$0xff] }
 0x1b3   :  { %1064 = vmatpush.msra.mxu2 %v5699_v57  ;;  %1230 = vmatpush.msrb.mxu3 %v5702_v49  ;;  %9418 = vst [vmem:[#allocation12_spill] sm:$0xff] %v5711_v37  ;;  %v5720_v57 = vld [vmem:[#allocation6 + $0x2e8] sm:$0xff]  ;;  %v5726_v49 = vld [vmem:[%s8674_s1 + $0x20] sm:$0xff] }
 0x1b4   :  { %1025 = vmatpush.msra.mxu0 %v5708_v38  ;;  %1191 = vmatpush.msrb.mxu1 %v5711_v37  ;;  %9419 = vst [vmem:[#allocation66_spill] sm:$0xff] %v5717_v16  ;;  %v5729_v38 = vld [vmem:[#allocation6 + $0x2c0] sm:$0xff]  ;;  %v5735_v37 = vld [vmem:[%s8674_s1 + $0x30] sm:$0xff] }
 0x1b5   :  { %1065 = vmatpush.msra.mxu2 %v5717_v16  ;;  %9420 = vst [vmem:[#allocation13_spill] sm:$0xff] %v5720_v57  ;;  %1231 = vmatpush.msrb.mxu3 %v5720_v57  ;;  %v5738_v16 = vld [vmem:[#allocation6 + $0x2c8] sm:$0xff]  ;;  %v5744_v57 = vld [vmem:[%s8674_s1] sm:$0xff] }
 0x1b6   :  { %9421 = vst [vmem:[#allocation62_spill] sm:$0xff] %v5726_v49  ;;  %1026 = vmatpush.msra.mxu0 %v5726_v49  ;;  %1192 = vmatpush.msrb.mxu1 %v5729_v38  ;;  %v5747_v49 = vld [vmem:[#allocation6 + $0x2a0] sm:$0xff] }
 0x1b7   :  { %9422 = vst [vmem:[#allocation14_spill] sm:$0xff] %v5729_v38  ;;  %1066 = vmatpush.msra.mxu2 %v5735_v37  ;;  %1232 = vmatpush.msrb.mxu3 %v5738_v16  ;;  %v5753_v38 = vld [vmem:[%s8674_s1 + $0x10] sm:$0xff] }
 0x1b8   :  { %9423 = vst [vmem:[#allocation67_spill] sm:$0xff] %v5735_v37  ;;  %1027 = vmatpush.msra.mxu0 %v5744_v57  ;;  %1193 = vmatpush.msrb.mxu1 %v5747_v49  ;;  %v5767_v37 = vld [vmem:[#allocation6 + $0x288] sm:$0xff] }
 0x1b9   :  { %9424 = vst [vmem:[#allocation15_spill] sm:$0xff] %v5738_v16  ;;  %1067 = vmatpush.msra.mxu2 %v5753_v38  ;;  %1028 = vmatmul.f32.vlgmr.msra.gmra.mxu0 %v5523_v6  ;;  %v5758_v16 = vld [vmem:[#allocation6 + $0x2a8] sm:$0xff] }
 0x1ba   :  { %9425 = vst [vmem:[#allocation70_spill] sm:$0xff] %v5744_v57  ;;  %1068 = vmatmul.f32.vlgmr.msra.gmra.mxu2 %v5523_v6  ;;  %1233 = vmatpush.msrb.mxu3 %v5758_v16  ;;  %v5761_v57 = vld [vmem:[#allocation6 + $0x280] sm:$0xff] }
 0x1bb   :  { %9426 = vst [vmem:[#allocation16_spill] sm:$0xff] %v5747_v49  ;;  %1194 = vmatpush.msrb.mxu1 %v5761_v57  ;;  %v5764_v49 = vld [vmem:[#allocation6 + $0x1e0] sm:$0xff] }
 0x1bc   :  { %9427 = vst [vmem:[#allocation71_spill] sm:$0xff] %v5753_v38  ;;  %1163 = vmatpush.msrb.mxu0 %v5764_v49  ;;  %1234 = vmatpush.msrb.mxu3 %v5767_v37  ;;  %v5770_v38 = vld [vmem:[#allocation6 + $0x1e8] sm:$0xff]  ;;  %v5773_v6 = vld [vmem:[#allocation6 + $0x260] sm:$0xff] }
 0x1bd   :  { %9428 = vst [vmem:[#allocation17_spill] sm:$0xff] %v5758_v16  ;;  %1203 = vmatpush.msrb.mxu2 %v5770_v38  ;;  %1195 = vmatpush.msrb.mxu1 %v5773_v6  ;;  %v5776_v16 = vld [vmem:[#allocation6 + $0x1c0] sm:$0xff] }
 0x1be   :  { %9429 = vst [vmem:[#allocation74_spill] sm:$0xff] %v5761_v57  ;;  %1164 = vmatpush.msrb.mxu0 %v5776_v16  ;;  %v5779_v57 = vld [vmem:[#allocation6 + $0x268] sm:$0xff] }
 0x1bf   :  { %9430 = vst [vmem:[#allocation18_spill] sm:$0xff] %v5764_v49  ;;  %1235 = vmatpush.msrb.mxu3 %v5779_v57  ;;  %v5782_v49 = vld [vmem:[#allocation6 + $0x1c8] sm:$0xff] }
 0x1c0   :  { %9431 = vst [vmem:[#allocation75_spill] sm:$0xff] %v5767_v37  ;;  %1204 = vmatpush.msrb.mxu2 %v5782_v49  ;;  %v5785_v37 = vld [vmem:[#allocation6 + $0x240] sm:$0xff] }
 0x1c1   :  { %9432 = vst [vmem:[#allocation19_spill] sm:$0xff] %v5770_v38  ;;  %1196 = vmatpush.msrb.mxu1 %v5785_v37  ;;  %v5788_v38 = vld [vmem:[#allocation6 + $0x1a0] sm:$0xff] }
 0x1c2   :  { %9433 = vst [vmem:[#allocation78_spill] sm:$0xff] %v5773_v6  ;;  %1165 = vmatpush.msrb.mxu0 %v5788_v38  ;;  %v5791_v6 = vld [vmem:[#allocation6 + $0x248] sm:$0xff] }
 0x1c3   :  { %9434 = vst [vmem:[#allocation20_spill] sm:$0xff] %v5776_v16  ;;  %1236 = vmatpush.msrb.mxu3 %v5791_v6  ;;  %v5794_v16 = vld [vmem:[#allocation6 + $0x1a8] sm:$0xff] }
 0x1c4   :  { %9435 = vst [vmem:[#allocation79_spill] sm:$0xff] %v5779_v57  ;;  %1205 = vmatpush.msrb.mxu2 %v5794_v16  ;;  %v5797_v57 = vld [vmem:[#allocation6 + $0x220] sm:$0xff] }
 0x1c5   :  { %9436 = vst [vmem:[#allocation21_spill] sm:$0xff] %v5782_v49  ;;  %1197 = vmatpush.msrb.mxu1 %v5797_v57  ;;  %v5800_v49 = vld [vmem:[#allocation6 + $0x180] sm:$0xff] }
 0x1c6   :  { %9437 = vst [vmem:[#allocation82_spill] sm:$0xff] %v5785_v37  ;;  %1166 = vmatpush.msrb.mxu0 %v5800_v49  ;;  %v5803_v37 = vld [vmem:[#allocation6 + $0x228] sm:$0xff] }
 0x1c7   :  { %9438 = vst [vmem:[#allocation22_spill] sm:$0xff] %v5788_v38  ;;  %1237 = vmatpush.msrb.mxu3 %v5803_v37  ;;  %v5806_v38 = vld [vmem:[#allocation6 + $0x188] sm:$0xff] }
 0x1c8   :  { %9439 = vst [vmem:[#allocation23_spill] sm:$0xff] %v5791_v6  ;;  %1206 = vmatpush.msrb.mxu2 %v5806_v38  ;;  %v5809_v6 = vld [vmem:[#allocation6 + $0x200] sm:$0xff] }
 0x1c9   :  { %9440 = vst [vmem:[#allocation24_spill] sm:$0xff] %v5794_v16  ;;  %1198 = vmatpush.msrb.mxu1 %v5809_v6  ;;  %v5812_v16 = vld [vmem:[#allocation6 + $0x160] sm:$0xff] }
 0x1ca   :  { %9441 = vst [vmem:[#allocation83_spill] sm:$0xff] %v5797_v57  ;;  %1167 = vmatpush.msrb.mxu0 %v5812_v16  ;;  %v5815_v57 = vld [vmem:[#allocation6 + $0x208] sm:$0xff] }
 0x1cb   :  { %9442 = vst [vmem:[#allocation25_spill] sm:$0xff] %v5800_v49  ;;  %1238 = vmatpush.msrb.mxu3 %v5815_v57  ;;  %v5818_v49 = vld [vmem:[#allocation6 + $0x168] sm:$0xff] }
 0x1cc   :  { %9443 = vst [vmem:[#allocation86_spill] sm:$0xff] %v5803_v37  ;;  %1207 = vmatpush.msrb.mxu2 %v5818_v49  ;;  %v5821_v37 = vld [vmem:[#allocation6 + $0x3f0] sm:$0xff] }
 0x1cd   :  { %9444 = vst [vmem:[#allocation26_spill] sm:$0xff] %v5806_v38  ;;  %1263 = vmatpush.msra.mxu1 %v5821_v37  ;;  %v5824_v38 = vld [vmem:[#allocation6 + $0x3f8] sm:$0xff] }
 0x1ce   :  { %9445 = vst [vmem:[#allocation87_spill] sm:$0xff] %v5809_v6  ;;  %1303 = vmatpush.msra.mxu3 %v5824_v38  ;;  %v5827_v6 = vld [vmem:[#allocation6 + $0x140] sm:$0xff] }
 0x1cf   :  { %9446 = vst [vmem:[#allocation27_spill] sm:$0xff] %v5812_v16  ;;  %1168 = vmatpush.msrb.mxu0 %v5827_v6  ;;  %v5830_v16 = vld [vmem:[#allocation6 + $0x148] sm:$0xff] }
 0x1d0   :  { %9447 = vst [vmem:[#allocation90_spill] sm:$0xff] %v5815_v57  ;;  %1208 = vmatpush.msrb.mxu2 %v5830_v16  ;;  %v5833_v57 = vld [vmem:[#allocation6 + $0x3d0] sm:$0xff] }
 0x1d1   :  { %9448 = vst [vmem:[#allocation28_spill] sm:$0xff] %v5818_v49  ;;  %1264 = vmatpush.msra.mxu1 %v5833_v57  ;;  %v5836_v49 = vld [vmem:[#allocation6 + $0x3d8] sm:$0xff] }
 0x1d2   :  { %9449 = vst [vmem:[#allocation91_spill] sm:$0xff] %v5821_v37  ;;  %1304 = vmatpush.msra.mxu3 %v5836_v49  ;;  %v5839_v37 = vld [vmem:[#allocation6 + $0x120] sm:$0xff] }
 0x1d3   :  { %9450 = vst [vmem:[#allocation29_spill] sm:$0xff] %v5824_v38  ;;  %1169 = vmatpush.msrb.mxu0 %v5839_v37  ;;  %v5842_v38 = vld [vmem:[#allocation6 + $0x128] sm:$0xff] }
 0x1d4   :  { %9451 = vst [vmem:[#allocation30_spill] sm:$0xff] %v5827_v6  ;;  %1209 = vmatpush.msrb.mxu2 %v5842_v38  ;;  %v5845_v6 = vld [vmem:[#allocation6 + $0x3b0] sm:$0xff] }
 0x1d5   :  { %9452 = vst [vmem:[#allocation31_spill] sm:$0xff] %v5830_v16  ;;  %1265 = vmatpush.msra.mxu1 %v5845_v6  ;;  %v5848_v16 = vld [vmem:[#allocation6 + $0x3b8] sm:$0xff] }
 0x1d6   :  { %9453 = vst [vmem:[#allocation32_spill] sm:$0xff] %v5833_v57  ;;  %1305 = vmatpush.msra.mxu3 %v5848_v16  ;;  %v5851_v57 = vld [vmem:[#allocation6 + $0x100] sm:$0xff] }
 0x1d7   :  { %9454 = vst [vmem:[#allocation33_spill] sm:$0xff] %v5836_v49  ;;  %1170 = vmatpush.msrb.mxu0 %v5851_v57  ;;  %v5854_v49 = vld [vmem:[#allocation6 + $0x108] sm:$0xff] }
 0x1d8   :  { %9455 = vst [vmem:[#allocation34_spill] sm:$0xff] %v5839_v37  ;;  %1210 = vmatpush.msrb.mxu2 %v5854_v49  ;;  %v5857_v37 = vld [vmem:[#allocation6 + $0x390] sm:$0xff] }
 0x1d9   :  { %9456 = vst [vmem:[#allocation36_spill] sm:$0xff] %v5842_v38  ;;  %1266 = vmatpush.msra.mxu1 %v5857_v37  ;;  %v5860_v38 = vld [vmem:[#allocation6 + $0x398] sm:$0xff] }
 0x1da   :  { %9457 = vst [vmem:[#allocation37_spill] sm:$0xff] %v5845_v6  ;;  %1306 = vmatpush.msra.mxu3 %v5860_v38  ;;  %v5863_v6 = vld [vmem:[#allocation6 + $0xe0] sm:$0xff] }
 0x1db   :  { %9458 = vst [vmem:[#allocation39_spill] sm:$0xff] %v5848_v16  ;;  %1171 = vmatpush.msrb.mxu0 %v5863_v6  ;;  %v5866_v16 = vld [vmem:[#allocation6 + $0xe8] sm:$0xff] }
 0x1dc   :  { %9459 = vst [vmem:[#allocation40_spill] sm:$0xff] %v5851_v57  ;;  %1211 = vmatpush.msrb.mxu2 %v5866_v16  ;;  %v5869_v57 = vld [vmem:[#allocation6 + $0x370] sm:$0xff] }
 0x1dd   :  { %9460 = vst [vmem:[#allocation42_spill] sm:$0xff] %v5854_v49  ;;  %1267 = vmatpush.msra.mxu1 %v5869_v57  ;;  %v5872_v49 = vld [vmem:[#allocation6 + $0x378] sm:$0xff] }
 0x1de   :  { %9461 = vst [vmem:[#allocation43_spill] sm:$0xff] %v5857_v37  ;;  %1307 = vmatpush.msra.mxu3 %v5872_v49  ;;  %v5875_v37 = vld [vmem:[#allocation6 + $0xc0] sm:$0xff] }
 0x1df   :  { %9462 = vst [vmem:[#allocation68_spill] sm:$0xff] %v5860_v38  ;;  %1172 = vmatpush.msrb.mxu0 %v5875_v37  ;;  %v5878_v38 = vld [vmem:[#allocation6 + $0xc8] sm:$0xff] }
 0x1e0   :  { %9463 = vst [vmem:[#allocation69_spill] sm:$0xff] %v5863_v6  ;;  %1212 = vmatpush.msrb.mxu2 %v5878_v38  ;;  %v5881_v6 = vld [vmem:[#allocation6 + $0x350] sm:$0xff] }
 0x1e1   :  { %9464 = vst [vmem:[#allocation72_spill] sm:$0xff] %v5866_v16  ;;  %1268 = vmatpush.msra.mxu1 %v5881_v6  ;;  %v5884_v16 = vld [vmem:[#allocation6 + $0x358] sm:$0xff] }
 0x1e2   :  { %9465 = vst [vmem:[#allocation73_spill] sm:$0xff] %v5869_v57  ;;  %1308 = vmatpush.msra.mxu3 %v5884_v16  ;;  %v5887_v57 = vld [vmem:[#allocation6 + $0xa0] sm:$0xff] }
 0x1e3   :  { %9466 = vst [vmem:[#allocation76_spill] sm:$0xff] %v5872_v49  ;;  %1173 = vmatpush.msrb.mxu0 %v5887_v57  ;;  %v5890_v49 = vld [vmem:[#allocation6 + $0xa8] sm:$0xff] }
 0x1e4   :  { %9467 = vst [vmem:[#allocation77_spill] sm:$0xff] %v5875_v37  ;;  %1213 = vmatpush.msrb.mxu2 %v5890_v49  ;;  %v5893_v37 = vld [vmem:[#allocation6 + $0x330] sm:$0xff] }
 0x1e5   :  { %9468 = vst [vmem:[#allocation80_spill] sm:$0xff] %v5878_v38  ;;  %1269 = vmatpush.msra.mxu1 %v5893_v37  ;;  %v5896_v38 = vld [vmem:[#allocation6 + $0x338] sm:$0xff] }
 0x1e6   :  { %9469 = vst [vmem:[#allocation81_spill] sm:$0xff] %v5881_v6  ;;  %1309 = vmatpush.msra.mxu3 %v5896_v38  ;;  %v5899_v6 = vld [vmem:[#allocation6 + $0x80] sm:$0xff] }
 0x1e7   :  { %9470 = vst [vmem:[#allocation84_spill] sm:$0xff] %v5884_v16  ;;  %1174 = vmatpush.msrb.mxu0 %v5899_v6  ;;  %v5902_v16 = vld [vmem:[#allocation6 + $0x88] sm:$0xff] }
 0x1e8   :  { %9471 = vst [vmem:[#allocation85_spill] sm:$0xff] %v5887_v57  ;;  %1214 = vmatpush.msrb.mxu2 %v5902_v16  ;;  %v5905_v57 = vld [vmem:[#allocation6 + $0x310] sm:$0xff] }
 0x1e9   :  { %9472 = vst [vmem:[#allocation88_spill] sm:$0xff] %v5890_v49  ;;  %1270 = vmatpush.msra.mxu1 %v5905_v57  ;;  %v5908_v49 = vld [vmem:[#allocation6 + $0x318] sm:$0xff] }
 0x1ea   :  { %9473 = vst [vmem:[#allocation89_spill] sm:$0xff] %v5893_v37  ;;  %1310 = vmatpush.msra.mxu3 %v5908_v49  ;;  %v5911_v37 = vld [vmem:[#allocation6 + $0x60] sm:$0xff] }
 0x1eb   :  { %9474 = vst [vmem:[#allocation92_spill] sm:$0xff] %v5896_v38  ;;  %1175 = vmatpush.msrb.mxu0 %v5911_v37  ;;  %v5914_v38 = vld [vmem:[#allocation6 + $0x68] sm:$0xff] }
 0x1ec   :  { %9475 = vst [vmem:[#allocation93_spill] sm:$0xff] %v5899_v6  ;;  %1215 = vmatpush.msrb.mxu2 %v5914_v38  ;;  %v5917_v6 = vld [vmem:[#allocation6 + $0x2f0] sm:$0xff] }
 0x1ed   :  { %9476 = vst [vmem:[#allocation94_spill] sm:$0xff] %v5902_v16  ;;  %1271 = vmatpush.msra.mxu1 %v5917_v6  ;;  %v5920_v16 = vld [vmem:[#allocation6 + $0x2f8] sm:$0xff] }
 0x1ee   :  { %9477 = vst [vmem:[#allocation95_spill] sm:$0xff] %v5905_v57  ;;  %1311 = vmatpush.msra.mxu3 %v5920_v16  ;;  %v5923_v57 = vld [vmem:[#allocation6 + $0x40] sm:$0xff] }
 0x1ef   :  { %9478 = vst [vmem:[#allocation96_spill] sm:$0xff] %v5908_v49  ;;  %1176 = vmatpush.msrb.mxu0 %v5923_v57  ;;  %v5926_v49 = vld [vmem:[#allocation6 + $0x48] sm:$0xff] }
 0x1f0   :  { %9479 = vst [vmem:[#allocation97_spill] sm:$0xff] %v5911_v37  ;;  %1216 = vmatpush.msrb.mxu2 %v5926_v49  ;;  %v5929_v37 = vld [vmem:[#allocation6 + $0x2d0] sm:$0xff] }
 0x1f1   :  { %9480 = vst [vmem:[#allocation98_spill] sm:$0xff] %v5914_v38  ;;  %1272 = vmatpush.msra.mxu1 %v5929_v37  ;;  %v5932_v38 = vld [vmem:[#allocation6 + $0x2d8] sm:$0xff] }
 0x1f2   :  { %9481 = vst [vmem:[#allocation99_spill] sm:$0xff] %v5917_v6  ;;  %1312 = vmatpush.msra.mxu3 %v5932_v38  ;;  %v5935_v6 = vld [vmem:[#allocation6 + $0x20] sm:$0xff] }
 0x1f3   :  { %9482 = vst [vmem:[#allocation100_spill] sm:$0xff] %v5920_v16  ;;  %1177 = vmatpush.msrb.mxu0 %v5935_v6  ;;  %v5938_v16 = vld [vmem:[#allocation6 + $0x28] sm:$0xff] }
 0x1f4   :  { %9483 = vst [vmem:[#allocation101_spill] sm:$0xff] %v5923_v57  ;;  %1217 = vmatpush.msrb.mxu2 %v5938_v16  ;;  %v5941_v57 = vld [vmem:[#allocation6 + $0x2b0] sm:$0xff] }
 0x1f5   :  { %9484 = vst [vmem:[#allocation102_spill] sm:$0xff] %v5926_v49  ;;  %1273 = vmatpush.msra.mxu1 %v5941_v57  ;;  %v5944_v49 = vld [vmem:[#allocation6 + $0x2b8] sm:$0xff] }
 0x1f6   :  { %9485 = vst [vmem:[#allocation103_spill] sm:$0xff] %v5929_v37  ;;  %1313 = vmatpush.msra.mxu3 %v5944_v49  ;;  %v5947_v37 = vld [vmem:[#allocation6] sm:$0xff] }
 0x1f7   :  { %9486 = vst [vmem:[#allocation104_spill] sm:$0xff] %v5932_v38  ;;  %1178 = vmatpush.msrb.mxu0 %v5947_v37  ;;  %v5950_v38 = vld [vmem:[#allocation6 + $0x8] sm:$0xff] }
 0x1f8   :  { %9487 = vst [vmem:[#allocation105_spill] sm:$0xff] %v5935_v6  ;;  %1218 = vmatpush.msrb.mxu2 %v5950_v38  ;;  %v5953_v6 = vld [vmem:[#allocation6 + $0x290] sm:$0xff] }
 0x1f9   :  { %9488 = vst [vmem:[#allocation106_spill] sm:$0xff] %v5938_v16  ;;  %1274 = vmatpush.msra.mxu1 %v5953_v6  ;;  %v5956_v16 = vld [vmem:[#allocation6 + $0x298] sm:$0xff] }
 0x1fa   :  { %9489 = vst [vmem:[#allocation107_spill] sm:$0xff] %v5941_v57  ;;  %1314 = vmatpush.msra.mxu3 %v5956_v16  ;;  %v5959_v57 = vld [vmem:[#allocation6 + $0x1f0] sm:$0xff] }
 0x1fb   :  { %9490 = vst [vmem:[#allocation108_spill] sm:$0xff] %v5944_v49  ;;  %1243 = vmatpush.msra.mxu0 %v5959_v57  ;;  %v5962_v49 = vld [vmem:[#allocation6 + $0x1f8] sm:$0xff] }
 0x1fc   :  { %9491 = vst [vmem:[#allocation109_spill] sm:$0xff] %v5947_v37  ;;  %1283 = vmatpush.msra.mxu2 %v5962_v49  ;;  %v5965_v37 = vld [vmem:[#allocation6 + $0x270] sm:$0xff] }
 0x1fd   :  { %9492 = vst [vmem:[#allocation110_spill] sm:$0xff] %v5950_v38  ;;  %1275 = vmatpush.msra.mxu1 %v5965_v37  ;;  %v5968_v38 = vld [vmem:[#allocation6 + $0x278] sm:$0xff] }
 0x1fe   :  { %9493 = vst [vmem:[#allocation111_spill] sm:$0xff] %v5953_v6  ;;  %1315 = vmatpush.msra.mxu3 %v5968_v38  ;;  %v5971_v6 = vld [vmem:[#allocation6 + $0x1d0] sm:$0xff] }
 0x1ff   :  { %9494 = vst [vmem:[#allocation112_spill] sm:$0xff] %v5956_v16  ;;  %1244 = vmatpush.msra.mxu0 %v5971_v6  ;;  %v5974_v16 = vld [vmem:[#allocation6 + $0x1d8] sm:$0xff] }
 0x200   :  { %9495 = vst [vmem:[#allocation113_spill] sm:$0xff] %v5959_v57  ;;  %1284 = vmatpush.msra.mxu2 %v5974_v16  ;;  %v5977_v57 = vld [vmem:[#allocation6 + $0x250] sm:$0xff] }
 0x201   :  { %9496 = vst [vmem:[#allocation114_spill] sm:$0xff] %v5962_v49  ;;  %1276 = vmatpush.msra.mxu1 %v5977_v57  ;;  %v5980_v49 = vld [vmem:[#allocation6 + $0x258] sm:$0xff] }
 0x202   :  { %9497 = vst [vmem:[#allocation115_spill] sm:$0xff] %v5965_v37  ;;  %1316 = vmatpush.msra.mxu3 %v5980_v49  ;;  %v5983_v37 = vld [vmem:[#allocation6 + $0x1b0] sm:$0xff] }
 0x203   :  { %9498 = vst [vmem:[#allocation116_spill] sm:$0xff] %v5968_v38  ;;  %1245 = vmatpush.msra.mxu0 %v5983_v37  ;;  %v5986_v38 = vld [vmem:[#allocation6 + $0x1b8] sm:$0xff] }
 0x204   :  { %9499 = vst [vmem:[#allocation117_spill] sm:$0xff] %v5971_v6  ;;  %1285 = vmatpush.msra.mxu2 %v5986_v38  ;;  %v5989_v6 = vld [vmem:[#allocation6 + $0x230] sm:$0xff] }
 0x205   :  { %9500 = vst [vmem:[#allocation118_spill] sm:$0xff] %v5974_v16  ;;  %1277 = vmatpush.msra.mxu1 %v5989_v6  ;;  %v5992_v16 = vld [vmem:[#allocation6 + $0x238] sm:$0xff] }
 0x206   :  { %9501 = vst [vmem:[#allocation119_spill] sm:$0xff] %v5977_v57  ;;  %1317 = vmatpush.msra.mxu3 %v5992_v16  ;;  %v5995_v57 = vld [vmem:[#allocation6 + $0x190] sm:$0xff] }
 0x207   :  { %9502 = vst [vmem:[#allocation120_spill] sm:$0xff] %v5980_v49  ;;  %1246 = vmatpush.msra.mxu0 %v5995_v57  ;;  %v5998_v49 = vld [vmem:[#allocation6 + $0x198] sm:$0xff] }
 0x208   :  { %9503 = vst [vmem:[#allocation121_spill] sm:$0xff] %v5983_v37  ;;  %1286 = vmatpush.msra.mxu2 %v5998_v49  ;;  %v6001_v37 = vld [vmem:[#allocation6 + $0x210] sm:$0xff] }
 0x209   :  { %9504 = vst [vmem:[#allocation122_spill] sm:$0xff] %v5986_v38  ;;  %1278 = vmatpush.msra.mxu1 %v6001_v37  ;;  %v6004_v38 = vld [vmem:[#allocation6 + $0x218] sm:$0xff] }
 0x20a   :  { %9505 = vst [vmem:[#allocation123_spill] sm:$0xff] %v5989_v6  ;;  %1318 = vmatpush.msra.mxu3 %v6004_v38  ;;  %v6007_v6 = vld [vmem:[#allocation6 + $0x170] sm:$0xff] }
 0x20b   :  { %9506 = vst [vmem:[#allocation124_spill] sm:$0xff] %v5992_v16  ;;  %1247 = vmatpush.msra.mxu0 %v6007_v6  ;;  %v6010_v16 = vld [vmem:[#allocation6 + $0x178] sm:$0xff] }
 0x20c   :  { %9507 = vst [vmem:[#allocation125_spill] sm:$0xff] %v5995_v57  ;;  %1287 = vmatpush.msra.mxu2 %v6010_v16  ;;  %v6013_v57 = vld [vmem:[#allocation6 + $0x150] sm:$0xff] }
 0x20d   :  { %9508 = vst [vmem:[#allocation126_spill] sm:$0xff] %v5998_v49  ;;  %1248 = vmatpush.msra.mxu0 %v6013_v57  ;;  %v6016_v49 = vld [vmem:[#allocation6 + $0x158] sm:$0xff] }
 0x20e   :  { %9509 = vst [vmem:[#allocation127_spill] sm:$0xff] %v6001_v37  ;;  %1288 = vmatpush.msra.mxu2 %v6016_v49  ;;  %v6019_v37 = vld [vmem:[#allocation6 + $0x130] sm:$0xff] }
 0x20f   :  { %9510 = vst [vmem:[#allocation128_spill] sm:$0xff] %v6004_v38  ;;  %1249 = vmatpush.msra.mxu0 %v6019_v37  ;;  %v6022_v38 = vld [vmem:[#allocation6 + $0x138] sm:$0xff] }
 0x210   :  { %9511 = vst [vmem:[#allocation129_spill] sm:$0xff] %v6007_v6  ;;  %1289 = vmatpush.msra.mxu2 %v6022_v38  ;;  %v6025_v6 = vld [vmem:[#allocation6 + $0x110] sm:$0xff] }
 0x211   :  { %9512 = vst [vmem:[#allocation130_spill] sm:$0xff] %v6010_v16  ;;  %1250 = vmatpush.msra.mxu0 %v6025_v6  ;;  %v6028_v16 = vld [vmem:[#allocation6 + $0x118] sm:$0xff] }
 0x212   :  { %9513 = vst [vmem:[#allocation131_spill] sm:$0xff] %v6013_v57  ;;  %1290 = vmatpush.msra.mxu2 %v6028_v16  ;;  %v6031_v57 = vld [vmem:[#allocation6 + $0xf0] sm:$0xff] }
 0x213   :  { %9514 = vst [vmem:[#allocation132_spill] sm:$0xff] %v6016_v49  ;;  %1251 = vmatpush.msra.mxu0 %v6031_v57  ;;  %v6034_v49 = vld [vmem:[#allocation6 + $0xf8] sm:$0xff] }
 0x214   :  { %9515 = vst [vmem:[#allocation133_spill] sm:$0xff] %v6019_v37  ;;  %1291 = vmatpush.msra.mxu2 %v6034_v49  ;;  %v6037_v37 = vld [vmem:[#allocation6 + $0xd0] sm:$0xff] }
 0x215   :  { %9516 = vst [vmem:[#allocation134_spill] sm:$0xff] %v6022_v38  ;;  %1252 = vmatpush.msra.mxu0 %v6037_v37  ;;  %v6040_v38 = vld [vmem:[#allocation6 + $0xd8] sm:$0xff]  ;;  %v798_v43 = vpop.f32.mrf.mxu0 }
 0x216   :  { %9517 = vst [vmem:[#allocation135_spill] sm:$0xff] %v6025_v6  ;;  %1292 = vmatpush.msra.mxu2 %v6040_v38  ;;  %v6043_v6 = vld [vmem:[#allocation6 + $0xb0] sm:$0xff] }
 0x217   :  { %9518 = vst [vmem:[#allocation136_spill] sm:$0xff] %v6028_v16  ;;  %1253 = vmatpush.msra.mxu0 %v6043_v6  ;;  %v6046_v16 = vld [vmem:[#allocation6 + $0xb8] sm:$0xff] }
 0x218   :  { %9519 = vst [vmem:[#allocation137_spill] sm:$0xff] %v6031_v57  ;;  %1293 = vmatpush.msra.mxu2 %v6046_v16  ;;  %v6049_v57 = vld [vmem:[#allocation6 + $0x90] sm:$0xff] }
 0x219   :  { %9520 = vst [vmem:[#allocation138_spill] sm:$0xff] %v6034_v49  ;;  %1254 = vmatpush.msra.mxu0 %v6049_v57  ;;  %v6052_v49 = vld [vmem:[#allocation6 + $0x98] sm:$0xff] }
 0x21a   :  { %9521 = vst [vmem:[#allocation139_spill] sm:$0xff] %v6037_v37  ;;  %1294 = vmatpush.msra.mxu2 %v6052_v49  ;;  %v6055_v37 = vld [vmem:[#allocation6 + $0x70] sm:$0xff] }
 0x21b   :  { %9522 = vst [vmem:[#allocation140_spill] sm:$0xff] %v6040_v38  ;;  %1255 = vmatpush.msra.mxu0 %v6055_v37  ;;  %v6058_v38 = vld [vmem:[#allocation6 + $0x78] sm:$0xff] }
 0x21c   :  { %9523 = vst [vmem:[#allocation141_spill] sm:$0xff] %v6043_v6  ;;  %1295 = vmatpush.msra.mxu2 %v6058_v38  ;;  %v6061_v6 = vld [vmem:[#allocation6 + $0x50] sm:$0xff] }
 0x21d   :  { %9524 = vst [vmem:[#allocation142_spill] sm:$0xff] %v6046_v16  ;;  %1256 = vmatpush.msra.mxu0 %v6061_v6  ;;  %v6064_v16 = vld [vmem:[#allocation6 + $0x58] sm:$0xff] }
 0x21e   :  { %9525 = vst [vmem:[#allocation143_spill] sm:$0xff] %v6049_v57  ;;  %1296 = vmatpush.msra.mxu2 %v6064_v16  ;;  %v6067_v57 = vld [vmem:[#allocation6 + $0x30] sm:$0xff]  ;;  %v878_v36 = vpop.f32.mrf.mxu0 }
 0x21f   :  { %9526 = vst [vmem:[#allocation144_spill] sm:$0xff] %v6052_v49  ;;  %1257 = vmatpush.msra.mxu0 %v6067_v57  ;;  %v6070_v49 = vld [vmem:[#allocation6 + $0x38] sm:$0xff] }
 0x220   :  { %9527 = vst [vmem:[#allocation145_spill] sm:$0xff] %v6055_v37  ;;  %1297 = vmatpush.msra.mxu2 %v6070_v49  ;;  %v6073_v37 = vld [vmem:[#allocation6 + $0x10] sm:$0xff] }
 0x221   :  { %9528 = vst [vmem:[#allocation146_spill] sm:$0xff] %v6058_v38  ;;  %1258 = vmatpush.msra.mxu0 %v6073_v37  ;;  %v6076_v38 = vld [vmem:[#allocation6 + $0x18] sm:$0xff] }
 0x222   :  { %9529 = vst [vmem:[#allocation147_spill] sm:$0xff] %v6061_v6  ;;  %1298 = vmatpush.msra.mxu2 %v6076_v38  ;;  %v818_v6 = vpop.f32.mrf.mxu1 }
 0x223   :  { %9530 = vst [vmem:[#allocation148_spill] sm:$0xff] %v6064_v16  ;;  %v799_v16 = vadd.f32 %v798_v43, %v5309_v4 }
 0x224   :  { %9531 = vst [vmem:[#allocation149_spill] sm:$0xff] %v6067_v57  ;;  %v838_v57 = vpop.f32.mrf.mxu2 }
 0x225   :  { %9532 = vst [vmem:[#allocation150_spill] sm:$0xff] %v6070_v49  ;;  %v819_v7 = vadd.f32 %v818_v6, %v799_v16  ;;  %v839_v32 = vadd.f32 %v838_v57, %v5312_v10  ;;  %v858_v49 = vpop.f32.mrf.mxu3 }
 0x226   :  { %9533 = vst [vmem:[#allocation151_spill] sm:$0xff] %v6073_v37  ;;  %v1008_v37 = vld [vmem:[%s8673_s0 + $0x48] sm:$0xff] }
 0x227   :  { %9534 = vst [vmem:[#allocation152_spill] sm:$0xff] %v6076_v38  ;;  %v3318_v46 = vmul.f32 -1.442695, %v819_v7  ;;  %v859_v44 = vadd.f32 %v858_v49, %v839_v32  ;;  %v879_v38 = vadd.f32 %v878_v36, %v5314_v21 }
 0x229   :  { %3409 = vpow2.f32 %v3318_v46  ;;  %v3319_v2 = vmul.f32 -1.442695, %v859_v44 }
 0x22a   :  { %v898_v30 = vpop.f32.mrf.mxu1 }
 0x22b   :  { %v899_v43 = vadd.f32 %v898_v30, %v879_v38  ;;  %3411 = vpow2.f32 %v3319_v2 }
 0x22c   :  { %v918_v10 = vpop.f32.mrf.mxu2 }
 0x22d   :  { %v3320_v16 = vmul.f32 -1.442695, %v899_v43  ;;  %v919_v36 = vadd.f32 %v918_v10, %v5321_v8  ;;  %v938_v2 = vpop.f32.mrf.mxu3  ;;  %v1007_v10 = vld [vmem:[%s8673_s0 + $0x40] sm:$0xff] }
 0x22f   :  { %v3410_v4 = vpop.eup %3409 }
 0x230   :  { %v950_v7 = vadd.f32 1.0, %v3410_v4  ;;  %v939_v4 = vadd.f32 %v938_v2, %v919_v36 }
 0x231   :  { %v3412_v57 = vpop.eup %3411 }
 0x232   :  { %v1049_v48 = vpop.f32.mrf.mxu1  ;;  %3413 = vrcp.f32 %v950_v7  ;;  %v951_v6 = vadd.f32 1.0, %v3412_v57  ;;  %vm958_vm5 = vweird.f32 %v950_v7  ;;  %v962_v21 = vand.u32 2147483647, %v950_v7 }
 0x233   :  { %v1093_v15 = vadd.f32 %v1049_v48, %v1008_v37  ;;  %3415 = vpow2.f32 %v3320_v16 }
 0x234   :  { %vm973_vm8 = vweird.f32 %v951_v6  ;;  %vm963_vm9 = vcmp.eq.f32.partialorder %v962_v21, 8.507059e+37 }
 0x235   :  { %v3322_v46 = vmul.f32 -1.442695, %v1093_v15 }
 0x237   :  { %3417 = vpow2.f32 %v3322_v46  ;;  %v964_v46 = vand.u32 2147483648, %v950_v7 }
 0x238   :  { %v3414_v41 = vpop.eup %3413  ;;  %3419 = vrcp.f32 %v951_v6 }
 0x239   :  { %v3416_v32 = vpop.eup %3415  ;;  %v954_v49 = vmul.f32 %v3414_v41, %v950_v7  ;;  %vm959_vm4 = vweird.f32 %v3414_v41 }
 0x23a   :  { %v6086_v44 = vadd.f32 1.0, %v3416_v32  ;;  %vm6095_vm6 = vmor %vm958_vm5, %vm959_vm4 }
 0x23b   :  { %v955_v30 = vsub.f32 1.0, %v954_v49  ;;  %v979_v49 = vand.u32 2147483648, %v951_v6 }
 0x23c   :  { %3421 = vrcp.f32 %v6086_v44  ;;  %vm988_vm13 = vweird.f32 %v6086_v44 }
 0x23d   :  { %v3418_v48 = vpop.eup %3417  ;;  %v956_v15 = vmul.f32 %v3414_v41, %v955_v30  ;;  %3423 = vtanh.f32 %v939_v4  ;;  %v1029_v4 = vpop.f32.mrf.mxu0  ;;  %v980_v20 = vor.u32 1.1754944e-38, %v979_v49 }
 0x23e   :  { %v3420_v37 = vpop.eup %3419  ;;  %v6089_v38 = vadd.f32 1.0, %v3418_v48  ;;  %v977_v48 = vand.u32 2147483647, %v951_v6 }
 0x23f   :  { %v969_v43 = vmul.f32 %v3420_v37, %v951_v6  ;;  %v957_v16 = vadd.f32 %v3414_v41, %v956_v15  ;;  %vm974_vm7 = vweird.f32 %v3420_v37  ;;  %v965_v15 = vor.u32 1.1754944e-38, %v964_v46  ;;  %v1069_v46 = vpop.f32.mrf.mxu2 }
 0x240   :  { %3425 = vrcp.f32 %v6089_v38  ;;  %vm975_vm10 = vmor %vm973_vm8, %vm974_vm7  ;;  %vm978_vm11 = vcmp.eq.f32.partialorder %v977_v48, 8.507059e+37  ;;  %vm1128_vm1 = vweird.f32 %v6089_v38 }
 0x241   :  { %v970_v57 = vsub.f32 1.0, %v969_v43  ;;  %v961_v7 = vsel %vm6095_vm6, %v3414_v41, %v957_v16  ;;  %v1092_v43 = vadd.f32 %v1029_v4, %v1007_v10  ;;  %v1009_v41 = vld [vmem:[%s8673_s0 + $0x50] sm:$0xff] }
 0x242   :  { %v3422_v32 = vpop.eup %3421  ;;  %v966_v26 = vsel %vm963_vm9, %v965_v15, %v961_v7  ;;  %v1094_v49 = vadd.f32 %v1069_v46, %v1009_v41  ;;  %v1089_v7 = vpop.f32.mrf.mxu3 }
 0x243   :  { %v971_v30 = vmul.f32 %v3420_v37, %v970_v57  ;;  %v984_v2 = vmul.f32 %v3422_v32, %v6086_v44  ;;  %v3321_v9 = vmul.f32 -1.442695, %v1092_v43  ;;  %v3424_v55 = vpop.eup %3423  ;;  %vm989_vm12 = vweird.f32 %v3422_v32 }
 0x244   :  { %v1001_v21 = vmul.f32 %v3424_v55, %v966_v26  ;;  %vm990_vm14 = vmor %vm988_vm13, %vm989_vm12 }
 0x245   :  { %v985_v8 = vsub.f32 1.0, %v984_v2  ;;  %v972_v58 = vadd.f32 %v3420_v37, %v971_v30  ;;  %3427 = vpow2.f32 %v3321_v9  ;;  %v994_v9 = vand.u32 2147483648, %v6086_v44  ;;  %v1010_v2 = vld [vmem:[%s8673_s0 + $0x58] sm:$0xff] }
 0x246   :  { %v6102_v57 = vpop.eup %3425 }
 0x247   :  { %v976_v60 = vsel %vm975_vm10, %v3420_v37, %v972_v58  ;;  %v986_v16 = vmul.f32 %v3422_v32, %v985_v8  ;;  %v1124_v58 = vmul.f32 %v6102_v57, %v6089_v38  ;;  %v992_v8 = vand.u32 2147483647, %v6086_v44 }
 0x248   :  { %v981_v22 = vsel %vm978_vm11, %v980_v20, %v976_v60  ;;  %v3323_v60 = vmul.f32 -1.442695, %v1094_v49  ;;  %v995_v26 = vor.u32 1.1754944e-38, %v994_v9  ;;  %vm1129_vm0 = vweird.f32 %v6102_v57 }
 0x249   :  { %v1000_v6 = vmul.f32 %v981_v22, %v5348_v63  ;;  %v987_v37 = vadd.f32 %v3422_v32, %v986_v16  ;;  %v1125_v22 = vsub.f32 1.0, %v1124_v58  ;;  %vm993_vm15 = vcmp.eq.f32.partialorder %v992_v8, 8.507059e+37  ;;  %vm6132_vm2 = vmor %vm1128_vm1, %vm1129_vm0 }
 0x24b   :  { %v6108_v10 = vadd.f32 %v1001_v21, %v1000_v6  ;;  %v3428_v20 = vpop.eup %3427  ;;  %v991_v55 = vsel %vm990_vm14, %v3422_v32, %v987_v37  ;;  %v1126_v30 = vmul.f32 %v6102_v57, %v1125_v22  ;;  %v1095_v32 = vadd.f32 %v1089_v7, %v1010_v2  ;;  %v6281_v22 = vld [vmem:[%s8674_s1 + $0x110] sm:$0xff]  ;;  %v9546_v7 = vld [vmem:[#allocation48_spill] sm:$0xff] }
 0x24c   :  { %v1105_v63 = vadd.f32 1.0, %v3428_v20  ;;  %v996_v48 = vsel %vm993_vm15, %v995_v26, %v991_v55  ;;  %v1134_v6 = vand.u32 2147483648, %v6089_v38  ;;  %v1132_v21 = vand.u32 2147483647, %v6089_v38  ;;  %v9542_v55 = vld [vmem:[#allocation45_spill] sm:$0xff]  ;;  %v9545_v2 = vld [vmem:[#allocation55_spill] sm:$0xff] }
 0x24d   :  { %3429 = vtanh.f32 %v6108_v10  ;;  %v1127_v41 = vadd.f32 %v6102_v57, %v1126_v30  ;;  %v6288_v26 = vld [vmem:[%s8674_s1 + $0xe0] sm:$0xff]  ;;  %v9544_v30 = vld [vmem:[#allocation46_spill] sm:$0xff] }
 0x24e   :  { %3431 = vpow2.f32 %v3323_v60  ;;  %v1119_v46 = vand.u32 2147483648, %v1105_v63  ;;  %v1117_v49 = vand.u32 2147483647, %v1105_v63  ;;  %v1135_v58 = vor.u32 1.1754944e-38, %v1134_v6  ;;  %v9554_v6 = vld [vmem:[#allocation56_spill] sm:$0xff] }
 0x24f   :  { %3433 = vrcp.f32 %v1105_v63  ;;  %vm1133_vm4 = vcmp.eq.f32.partialorder %v1132_v21, 8.507059e+37  ;;  %vm1113_vm5 = vweird.f32 %v1105_v63  ;;  %v9555_v21 = vld [vmem:[#allocation64_spill] sm:$0xff] }
 0x250   :  { %vm1118_vm7 = vcmp.eq.f32.partialorder %v1117_v49, 8.507059e+37  ;;  %v9561_v49 = vld [vmem:[#allocation60_spill] sm:$0xff] }
 0x253   :  { %v3430_v36 = vpop.eup %3429 }
 0x254   :  { %v1004_v4 = vmul.f32 %v3430_v36, %v996_v48  ;;  %v3432_v15 = vpop.eup %3431  ;;  %v9543_v36 = vld [vmem:[#allocation54_spill] sm:$0xff]  ;;  %v6295_v48 = vld [vmem:[%s8674_s1 + $0xf0] sm:$0xff] }
 0x255   :  { %v6120_v44 = vadd.f32 1.0, %v3432_v15  ;;  %v3434_v43 = vpop.eup %3433  ;;  %v9548_v15 = vld [vmem:[#allocation50_spill] sm:$0xff] }
 0x256   :  { %1199 = vmatmul.f32.vlgmr.msrb.gmra.mxu1 %v1004_v4  ;;  %1239 = vmatmul.f32.vlgmr.msrb.gmra.mxu3 %v1004_v4  ;;  %v1109_v16 = vmul.f32 %v3434_v43, %v1105_v63  ;;  %vm1114_vm3 = vweird.f32 %v3434_v43 }
 0x257   :  { %1414 = vmatpush.msrb.mxu1 %v5370_v39  ;;  %1454 = vmatpush.msrb.mxu3 %v5376_v13  ;;  %3435 = vrcp.f32 %v6120_v44  ;;  %vm1115_vm6 = vmor %vm1113_vm5, %vm1114_vm3  ;;  %vm1143_vm9 = vweird.f32 %v6120_v44  ;;  %v9557_v13 = vld [vmem:[#allocation58_spill] sm:$0xff] }
 0x258   :  { %v1110_v39 = vsub.f32 1.0, %v1109_v16  ;;  %3437 = vtanh.f32 %v1095_v32  ;;  %v9551_v32 = vld [vmem:[#allocation61_spill] sm:$0xff]  ;;  %v9553_v16 = vld [vmem:[#allocation63_spill] sm:$0xff] }
 0x259   :  { %1415 = vmatpush.msrb.mxu1 %v5385_v35  ;;  %1455 = vmatpush.msrb.mxu3 %v5391_v59  ;;  %v1131_v35 = vsel %vm6132_vm2, %v6102_v57, %v1127_v41  ;;  %v9552_v41 = vld [vmem:[#allocation53_spill] sm:$0xff] }
 0x25a   :  { %v1111_v59 = vmul.f32 %v3434_v43, %v1110_v39  ;;  %v9556_v39 = vld [vmem:[#allocation9_spill] sm:$0xff] }
 0x25b   :  { %1416 = vmatpush.msrb.mxu1 %v5408_v61  ;;  %1456 = vmatpush.msrb.mxu3 %v5414_v34  ;;  %v1136_v61 = vsel %vm1133_vm4, %v1135_v58, %v1131_v35  ;;  %v1120_v34 = vor.u32 1.1754944e-38, %v1119_v46  ;;  %v9558_v46 = vld [vmem:[#allocation10_spill] sm:$0xff]  ;;  %v9559_v35 = vld [vmem:[#allocation65_spill] sm:$0xff]  ;;  %v9562_v58 = vld [vmem:[#allocation12_spill] sm:$0xff] }
 0x25c   :  { %v1112_v37 = vadd.f32 %v3434_v43, %v1111_v59  ;;  %v1155_v20 = vmul.f32 %v1136_v61, %v5457_v19  ;;  %v9560_v59 = vld [vmem:[#allocation11_spill] sm:$0xff]  ;;  %v9565_v61 = vld [vmem:[#allocation62_spill] sm:$0xff] }
 0x25d   :  { %1417 = vmatpush.msrb.mxu1 %v5421_v62  ;;  %1457 = vmatpush.msrb.mxu3 %v5427_v47  ;;  %v3436_v38 = vpop.eup %3435 }
 0x25e   :  { %1279 = vmatmul.f32.vlgmr.msra.gmra.mxu1 %v1004_v4  ;;  %1319 = vmatmul.f32.vlgmr.msra.gmra.mxu3 %v1004_v4  ;;  %v1139_v60 = vmul.f32 %v3436_v38, %v6120_v44  ;;  %v1116_v57 = vsel %vm1115_vm6, %v3434_v43, %v1112_v37  ;;  %v3438_v62 = vpop.eup %3437  ;;  %vm1144_vm8 = vweird.f32 %v3436_v38  ;;  %v9547_v4 = vld [vmem:[#allocation57_spill] sm:$0xff]  ;;  %v9550_v43 = vld [vmem:[#allocation52_spill] sm:$0xff] }
 0x25f   :  { %1418 = vmatpush.msrb.mxu1 %v5435_v42  ;;  %1458 = vmatpush.msrb.mxu3 %v5441_v23  ;;  %v1121_v9 = vsel %vm1118_vm7, %v1120_v34, %v1116_v57  ;;  %vm1145_vm10 = vmor %vm1143_vm9, %vm1144_vm8  ;;  %v9564_v37 = vld [vmem:[#allocation13_spill] sm:$0xff]  ;;  %v9566_v34 = vld [vmem:[#allocation14_spill] sm:$0xff] }
 0x260   :  { %v1140_v47 = vsub.f32 1.0, %v1139_v60  ;;  %v1156_v8 = vmul.f32 %v3438_v62, %v1121_v9  ;;  %v9567_v60 = vld [vmem:[#allocation67_spill] sm:$0xff]  ;;  %v9569_v62 = vld [vmem:[#allocation70_spill] sm:$0xff]  ;;  %v9570_v9 = vld [vmem:[#allocation16_spill] sm:$0xff] }
 0x261   :  { %1419 = vmatpush.msrb.mxu1 %v5448_v50  ;;  %1459 = vmatpush.msrb.mxu3 %v5454_v17  ;;  %v1149_v50 = vand.u32 2147483648, %v6120_v44  ;;  %v1147_v17 = vand.u32 2147483647, %v6120_v44  ;;  %v9549_v44 = vld [vmem:[#allocation59_spill] sm:$0xff] }
 0x262   :  { %v1141_v63 = vmul.f32 %v3436_v38, %v1140_v47  ;;  %v6151_v42 = vadd.f32 %v1156_v8, %v1155_v20  ;;  %v9568_v57 = vld [vmem:[#allocation15_spill] sm:$0xff]  ;;  %v9572_v20 = vld [vmem:[#allocation17_spill] sm:$0xff]  ;;  %v9573_v8 = vld [vmem:[#allocation74_spill] sm:$0xff] }
 0x263   :  { %1420 = vmatpush.msrb.mxu1 %v5462_v18  ;;  %1460 = vmatpush.msrb.mxu3 %v5468_v31  ;;  %v1150_v18 = vor.u32 1.1754944e-38, %v1149_v50  ;;  %vm1148_vm11 = vcmp.eq.f32.partialorder %v1147_v17, 8.507059e+37  ;;  %v9571_v47 = vld [vmem:[#allocation71_spill] sm:$0xff]  ;;  %v9577_v17 = vld [vmem:[#allocation78_spill] sm:$0xff] }
 0x264   :  { %v1142_v23 = vadd.f32 %v3436_v38, %v1141_v63  ;;  %3439 = vtanh.f32 %v6151_v42  ;;  %v9574_v63 = vld [vmem:[#allocation18_spill] sm:$0xff]  ;;  %v9576_v50 = vld [vmem:[#allocation19_spill] sm:$0xff] }
 0x265   :  { %1421 = vmatpush.msrb.mxu1 %v5476_v1  ;;  %1461 = vmatpush.msrb.mxu3 %v5482_v29 }
 0x266   :  { %v1146_v19 = vsel %vm1145_vm10, %v3436_v38, %v1142_v23  ;;  %v9563_v38 = vld [vmem:[#allocation66_spill] sm:$0xff]  ;;  %v9575_v23 = vld [vmem:[#allocation75_spill] sm:$0xff] }
 0x267   :  { %1422 = vmatpush.msrb.mxu1 %v5490_v51  ;;  %1462 = vmatpush.msrb.mxu3 %v5496_v27  ;;  %v1151_v1 = vsel %vm1148_vm11, %v1150_v18, %v1146_v19  ;;  %v6174_v51 = vld [vmem:[%s8674_s1 + $0x1e0] sm:$0xff]  ;;  %v6180_v27 = vld [vmem:[%s8674_s1 + $0x1f0] sm:$0xff]  ;;  %v9578_v19 = vld [vmem:[#allocation20_spill] sm:$0xff] }
 0x268   :  { %v9579_v18 = vld [vmem:[#allocation79_spill] sm:$0xff] }
 0x269   :  { %1423 = vmatpush.msrb.mxu1 %v5502_v25  ;;  %1463 = vmatpush.msrb.mxu3 %v5508_v33  ;;  %v6188_v25 = vld [vmem:[%s8674_s1 + $0x1c0] sm:$0xff]  ;;  %v6194_v33 = vld [vmem:[%s8674_s1 + $0x1d0] sm:$0xff] }
 0x26a   :  { %v3440_v31 = vpop.eup %3439 }
 0x26b   :  { %1424 = vmatpush.msrb.mxu1 %v5514_v0  ;;  %1464 = vmatpush.msrb.mxu3 %v5520_v40  ;;  %v6165_v29 = vmul.f32 %v3440_v31, %v1151_v1  ;;  %v6202_v0 = vld [vmem:[%s8674_s1 + $0x1a0] sm:$0xff]  ;;  %v6208_v40 = vld [vmem:[%s8674_s1 + $0x1b0] sm:$0xff]  ;;  %v9581_v1 = vld [vmem:[#allocation82_spill] sm:$0xff] }
 0x26c   :  { %v9580_v31 = vld [vmem:[#allocation21_spill] sm:$0xff] }
 0x26d   :  { %1425 = vmatpush.msrb.mxu1 %v5528_v12  ;;  %1465 = vmatpush.msrb.mxu3 %v5534_v56  ;;  %v6216_v12 = vld [vmem:[%s8674_s1 + $0x180] sm:$0xff]  ;;  %v6222_v56 = vld [vmem:[%s8674_s1 + $0x190] sm:$0xff] }
 0x26e   :  { %1179 = vmatmul.f32.vlgmr.msrb.gmra.mxu0 %v6165_v29  ;;  %1219 = vmatmul.f32.vlgmr.msrb.gmra.mxu2 %v6165_v29 }
 0x26f   :  { %1394 = vmatpush.msrb.mxu0 %v6174_v51  ;;  %1434 = vmatpush.msrb.mxu2 %v6180_v27 }
 0x270   :  { %1426 = vmatpush.msrb.mxu1 %v5544_v28  ;;  %1466 = vmatpush.msrb.mxu3 %v5550_v52  ;;  %v6232_v28 = vld [vmem:[%s8674_s1 + $0x160] sm:$0xff]  ;;  %v6239_v52 = vld [vmem:[%s8674_s1 + $0x170] sm:$0xff] }
 0x271   :  { %1395 = vmatpush.msrb.mxu0 %v6188_v25  ;;  %1435 = vmatpush.msrb.mxu2 %v6194_v33 }
 0x272   :  { %1427 = vmatpush.msrb.mxu1 %v5558_v24  ;;  %1467 = vmatpush.msrb.mxu3 %v5564_v45  ;;  %v6246_v24 = vld [vmem:[%s8674_s1 + $0x140] sm:$0xff]  ;;  %v6253_v45 = vld [vmem:[%s8674_s1 + $0x150] sm:$0xff] }
 0x273   :  { %1396 = vmatpush.msrb.mxu0 %v6202_v0  ;;  %1436 = vmatpush.msrb.mxu2 %v6208_v40 }
 0x274   :  { %1428 = vmatpush.msrb.mxu1 %v5572_v54  ;;  %1468 = vmatpush.msrb.mxu3 %v5578_v5  ;;  %v6260_v54 = vld [vmem:[%s8674_s1 + $0x120] sm:$0xff] }
 0x275   :  { %1397 = vmatpush.msrb.mxu0 %v6216_v12  ;;  %1437 = vmatpush.msrb.mxu2 %v6222_v56  ;;  %v9539_v5 = vld [vmem:[#allocation41_spill] sm:$0xff] }
 0x276   :  { %1429 = vmatpush.msrb.mxu1 %v5586_v53  ;;  %1469 = vmatpush.msrb.mxu3 %v5592_v14  ;;  %v6267_v53 = vld [vmem:[%s8674_s1 + $0x130] sm:$0xff] }
 0x277   :  { %1259 = vmatmul.f32.vlgmr.msra.gmra.mxu0 %v6165_v29  ;;  %1299 = vmatmul.f32.vlgmr.msra.gmra.mxu2 %v6165_v29  ;;  %v9540_v14 = vld [vmem:[#allocation51_spill] sm:$0xff] }
 0x278   :  { %1398 = vmatpush.msrb.mxu0 %v6232_v28  ;;  %1430 = vmatmul.f32.vlgmr.msrb.gmra.mxu1 %v6165_v29 }
 0x279   :  { %1438 = vmatpush.msrb.mxu2 %v6239_v52  ;;  %1470 = vmatmul.f32.vlgmr.msrb.gmra.mxu3 %v6165_v29 }
 0x27a   :  { %1399 = vmatpush.msrb.mxu0 %v6246_v24  ;;  %1565 = vmatpush.msra.mxu1 %v5602_v3  ;;  %v6274_v3 = vld [vmem:[%s8674_s1 + $0x100] sm:$0xff] }
 0x27b   :  { %1439 = vmatpush.msrb.mxu2 %v6253_v45  ;;  %1605 = vmatpush.msra.mxu3 %v5606_v11  ;;  %v9541_v11 = vld [vmem:[#allocation44_spill] sm:$0xff] }
 0x27c   :  { %1400 = vmatpush.msrb.mxu0 %v6260_v54  ;;  %1566 = vmatpush.msra.mxu1 %v9539_v5  ;;  %v9583_v5 = vld [vmem:[#allocation23_spill] sm:$0xff] }
 0x27d   :  { %1440 = vmatpush.msrb.mxu2 %v6267_v53  ;;  %1606 = vmatpush.msra.mxu3 %v9540_v14  ;;  %v9584_v14 = vld [vmem:[#allocation24_spill] sm:$0xff] }
 0x27e   :  { %1401 = vmatpush.msrb.mxu0 %v6274_v3  ;;  %1567 = vmatpush.msra.mxu1 %v9541_v11  ;;  %v9585_v11 = vld [vmem:[#allocation83_spill] sm:$0xff] }
 0x27f   :  { %1441 = vmatpush.msrb.mxu2 %v6281_v22  ;;  %1607 = vmatpush.msra.mxu3 %v9542_v55  ;;  %v9586_v55 = vld [vmem:[#allocation25_spill] sm:$0xff] }
 0x280   :  { %1402 = vmatpush.msrb.mxu0 %v6288_v26  ;;  %1568 = vmatpush.msra.mxu1 %v9543_v36  ;;  %v9587_v36 = vld [vmem:[#allocation86_spill] sm:$0xff] }
 0x281   :  { %1442 = vmatpush.msrb.mxu2 %v6295_v48  ;;  %1608 = vmatpush.msra.mxu3 %v9544_v30  ;;  %v9588_v30 = vld [vmem:[#allocation26_spill] sm:$0xff] }
 0x282   :  { %1403 = vmatpush.msrb.mxu0 %v9545_v2  ;;  %1569 = vmatpush.msra.mxu1 %v9546_v7  ;;  %v9589_v2 = vld [vmem:[#allocation87_spill] sm:$0xff] }
 0x283   :  { %1443 = vmatpush.msrb.mxu2 %v9547_v4  ;;  %1609 = vmatpush.msra.mxu3 %v9548_v15  ;;  %v9590_v7 = vld [vmem:[#allocation27_spill] sm:$0xff]  ;;  %v9591_v4 = vld [vmem:[#allocation90_spill] sm:$0xff]  ;;  %v9592_v15 = vld [vmem:[#allocation28_spill] sm:$0xff] }
 0x284   :  { %1404 = vmatpush.msrb.mxu0 %v9549_v44  ;;  %1570 = vmatpush.msra.mxu1 %v9550_v43  ;;  %v9593_v44 = vld [vmem:[#allocation91_spill] sm:$0xff]  ;;  %v9594_v43 = vld [vmem:[#allocation29_spill] sm:$0xff] }
 0x285   :  { %1444 = vmatpush.msrb.mxu2 %v9551_v32  ;;  %1610 = vmatpush.msra.mxu3 %v9552_v41  ;;  %v9595_v32 = vld [vmem:[#allocation30_spill] sm:$0xff]  ;;  %v9596_v41 = vld [vmem:[#allocation31_spill] sm:$0xff] }
 0x286   :  { %1405 = vmatpush.msrb.mxu0 %v9553_v16  ;;  %1571 = vmatpush.msra.mxu1 %v9554_v6  ;;  %v9597_v16 = vld [vmem:[#allocation32_spill] sm:$0xff]  ;;  %v9598_v6 = vld [vmem:[#allocation33_spill] sm:$0xff] }
 0x287   :  { %1445 = vmatpush.msrb.mxu2 %v9555_v21  ;;  %1611 = vmatpush.msra.mxu3 %v9556_v39  ;;  %v9599_v21 = vld [vmem:[#allocation34_spill] sm:$0xff]  ;;  %v9600_v39 = vld [vmem:[#allocation36_spill] sm:$0xff] }
 0x288   :  { %1406 = vmatpush.msrb.mxu0 %v9557_v13  ;;  %1572 = vmatpush.msra.mxu1 %v9558_v46  ;;  %v9601_v13 = vld [vmem:[#allocation37_spill] sm:$0xff]  ;;  %v9602_v46 = vld [vmem:[#allocation39_spill] sm:$0xff] }
 0x289   :  { %1446 = vmatpush.msrb.mxu2 %v9559_v35  ;;  %1612 = vmatpush.msra.mxu3 %v9560_v59  ;;  %v9603_v35 = vld [vmem:[#allocation40_spill] sm:$0xff]  ;;  %v9604_v59 = vld [vmem:[#allocation42_spill] sm:$0xff] }
 0x28a   :  { %1407 = vmatpush.msrb.mxu0 %v9561_v49  ;;  %1573 = vmatpush.msra.mxu1 %v9562_v58  ;;  %v9605_v49 = vld [vmem:[#allocation43_spill] sm:$0xff]  ;;  %v9606_v58 = vld [vmem:[#allocation68_spill] sm:$0xff] }
 0x28b   :  { %1447 = vmatpush.msrb.mxu2 %v9563_v38  ;;  %1613 = vmatpush.msra.mxu3 %v9564_v37  ;;  %v9607_v38 = vld [vmem:[#allocation69_spill] sm:$0xff]  ;;  %v9608_v37 = vld [vmem:[#allocation72_spill] sm:$0xff] }
 0x28c   :  { %1408 = vmatpush.msrb.mxu0 %v9565_v61  ;;  %1574 = vmatpush.msra.mxu1 %v9566_v34  ;;  %v9609_v61 = vld [vmem:[#allocation73_spill] sm:$0xff]  ;;  %v9610_v34 = vld [vmem:[#allocation76_spill] sm:$0xff] }
 0x28d   :  { %1448 = vmatpush.msrb.mxu2 %v9567_v60  ;;  %1614 = vmatpush.msra.mxu3 %v9568_v57  ;;  %v9611_v60 = vld [vmem:[#allocation77_spill] sm:$0xff]  ;;  %v9612_v57 = vld [vmem:[#allocation80_spill] sm:$0xff] }
 0x28e   :  { %1409 = vmatpush.msrb.mxu0 %v9569_v62  ;;  %1575 = vmatpush.msra.mxu1 %v9570_v9  ;;  %v9613_v62 = vld [vmem:[#allocation81_spill] sm:$0xff]  ;;  %v9614_v9 = vld [vmem:[#allocation84_spill] sm:$0xff] }
 0x28f   :  { %1449 = vmatpush.msrb.mxu2 %v9571_v47  ;;  %1410 = vmatmul.f32.vlgmr.msrb.gmra.mxu0 %v6165_v29  ;;  %v9615_v47 = vld [vmem:[#allocation85_spill] sm:$0xff] }
 0x290   :  { %1450 = vmatmul.f32.vlgmr.msrb.gmra.mxu2 %v6165_v29  ;;  %1615 = vmatpush.msra.mxu3 %v9572_v20  ;;  %v9582_v29 = vld [vmem:[#allocation22_spill] sm:$0xff]  ;;  %v9616_v20 = vld [vmem:[#allocation88_spill] sm:$0xff] }
 0x291   :  { %1576 = vmatpush.msra.mxu1 %v9573_v8  ;;  %1545 = vmatpush.msra.mxu0 %v9574_v63  ;;  %v9617_v8 = vld [vmem:[#allocation89_spill] sm:$0xff]  ;;  %v9618_v63 = vld [vmem:[#allocation92_spill] sm:$0xff] }
 0x292   :  { %1616 = vmatpush.msra.mxu3 %v9575_v23  ;;  %1585 = vmatpush.msra.mxu2 %v9576_v50  ;;  %v9619_v23 = vld [vmem:[#allocation93_spill] sm:$0xff]  ;;  %v9620_v50 = vld [vmem:[#allocation94_spill] sm:$0xff] }
 0x293   :  { %1577 = vmatpush.msra.mxu1 %v9577_v17  ;;  %1546 = vmatpush.msra.mxu0 %v9578_v19  ;;  %v9621_v17 = vld [vmem:[#allocation95_spill] sm:$0xff]  ;;  %v9622_v19 = vld [vmem:[#allocation96_spill] sm:$0xff] }
 0x294   :  { %1617 = vmatpush.msra.mxu3 %v9579_v18  ;;  %1586 = vmatpush.msra.mxu2 %v9580_v31  ;;  %v9623_v18 = vld [vmem:[#allocation97_spill] sm:$0xff]  ;;  %v9624_v31 = vld [vmem:[#allocation98_spill] sm:$0xff] }
 0x295   :  { %1578 = vmatpush.msra.mxu1 %v9581_v1  ;;  %1547 = vmatpush.msra.mxu0 %v9582_v29  ;;  %v9625_v1 = vld [vmem:[#allocation99_spill] sm:$0xff]  ;;  %v9626_v29 = vld [vmem:[#allocation100_spill] sm:$0xff] }
 0x296   :  { %1618 = vmatpush.msra.mxu3 %v9583_v5  ;;  %1587 = vmatpush.msra.mxu2 %v9584_v14  ;;  %v9627_v5 = vld [vmem:[#allocation101_spill] sm:$0xff]  ;;  %v9628_v14 = vld [vmem:[#allocation102_spill] sm:$0xff] }
 0x297   :  { %1579 = vmatpush.msra.mxu1 %v9585_v11  ;;  %1548 = vmatpush.msra.mxu0 %v9586_v55  ;;  %v9629_v11 = vld [vmem:[#allocation103_spill] sm:$0xff]  ;;  %v9630_v55 = vld [vmem:[#allocation104_spill] sm:$0xff] }
 0x298   :  { %1619 = vmatpush.msra.mxu3 %v9587_v36  ;;  %1588 = vmatpush.msra.mxu2 %v9588_v30  ;;  %v9631_v36 = vld [vmem:[#allocation105_spill] sm:$0xff]  ;;  %v9632_v30 = vld [vmem:[#allocation106_spill] sm:$0xff] }
 0x299   :  { %1580 = vmatpush.msra.mxu1 %v9589_v2  ;;  %1549 = vmatpush.msra.mxu0 %v9590_v7  ;;  %v9633_v2 = vld [vmem:[#allocation107_spill] sm:$0xff]  ;;  %v9634_v7 = vld [vmem:[#allocation108_spill] sm:$0xff] }
 0x29a   :  { %1620 = vmatpush.msra.mxu3 %v9591_v4  ;;  %1589 = vmatpush.msra.mxu2 %v9592_v15  ;;  %v9635_v4 = vld [vmem:[#allocation109_spill] sm:$0xff]  ;;  %v9636_v15 = vld [vmem:[#allocation110_spill] sm:$0xff] }
 0x29b   :  { %1645 = vmatpush.msrb.mxu1 %v9593_v44  ;;  %1550 = vmatpush.msra.mxu0 %v9595_v32  ;;  %v9637_v44 = vld [vmem:[#allocation111_spill] sm:$0xff]  ;;  %v9639_v32 = vld [vmem:[#allocation113_spill] sm:$0xff] }
 0x29c   :  { %1685 = vmatpush.msrb.mxu3 %v9594_v43  ;;  %1590 = vmatpush.msra.mxu2 %v9596_v41  ;;  %v9638_v43 = vld [vmem:[#allocation112_spill] sm:$0xff]  ;;  %v9640_v41 = vld [vmem:[#allocation114_spill] sm:$0xff] }
 0x29d   :  { %1646 = vmatpush.msrb.mxu1 %v9597_v16  ;;  %1551 = vmatpush.msra.mxu0 %v9599_v21  ;;  %v9641_v16 = vld [vmem:[#allocation115_spill] sm:$0xff]  ;;  %v9643_v21 = vld [vmem:[#allocation117_spill] sm:$0xff] }
 0x29e   :  { %1686 = vmatpush.msrb.mxu3 %v9598_v6  ;;  %1591 = vmatpush.msra.mxu2 %v9600_v39  ;;  %v9642_v6 = vld [vmem:[#allocation116_spill] sm:$0xff]  ;;  %v9644_v39 = vld [vmem:[#allocation118_spill] sm:$0xff] }
 0x29f   :  { %1647 = vmatpush.msrb.mxu1 %v9601_v13  ;;  %1552 = vmatpush.msra.mxu0 %v9603_v35  ;;  %v9645_v13 = vld [vmem:[#allocation119_spill] sm:$0xff]  ;;  %v9647_v35 = vld [vmem:[#allocation121_spill] sm:$0xff] }
 0x2a0   :  { %1687 = vmatpush.msrb.mxu3 %v9602_v46  ;;  %1592 = vmatpush.msra.mxu2 %v9604_v59  ;;  %v9646_v46 = vld [vmem:[#allocation120_spill] sm:$0xff]  ;;  %v9648_v59 = vld [vmem:[#allocation122_spill] sm:$0xff] }
 0x2a1   :  { %1648 = vmatpush.msrb.mxu1 %v9605_v49  ;;  %1553 = vmatpush.msra.mxu0 %v9607_v38  ;;  %v9649_v49 = vld [vmem:[#allocation123_spill] sm:$0xff]  ;;  %v9651_v38 = vld [vmem:[#allocation125_spill] sm:$0xff] }
 0x2a2   :  { %1688 = vmatpush.msrb.mxu3 %v9606_v58  ;;  %1593 = vmatpush.msra.mxu2 %v9608_v37  ;;  %v9650_v58 = vld [vmem:[#allocation124_spill] sm:$0xff]  ;;  %v9652_v37 = vld [vmem:[#allocation126_spill] sm:$0xff] }
 0x2a3   :  { %1649 = vmatpush.msrb.mxu1 %v9609_v61  ;;  %1554 = vmatpush.msra.mxu0 %v9611_v60  ;;  %v9653_v61 = vld [vmem:[#allocation127_spill] sm:$0xff]  ;;  %v9655_v60 = vld [vmem:[#allocation129_spill] sm:$0xff] }
 0x2a4   :  { %1689 = vmatpush.msrb.mxu3 %v9610_v34  ;;  %1594 = vmatpush.msra.mxu2 %v9612_v57  ;;  %v9654_v34 = vld [vmem:[#allocation128_spill] sm:$0xff]  ;;  %v9656_v57 = vld [vmem:[#allocation130_spill] sm:$0xff] }
 0x2a5   :  { %1650 = vmatpush.msrb.mxu1 %v9613_v62  ;;  %1555 = vmatpush.msra.mxu0 %v9615_v47  ;;  %v9657_v62 = vld [vmem:[#allocation131_spill] sm:$0xff]  ;;  %v9659_v47 = vld [vmem:[#allocation133_spill] sm:$0xff] }
 0x2a6   :  { %1690 = vmatpush.msrb.mxu3 %v9614_v9  ;;  %1595 = vmatpush.msra.mxu2 %v9616_v20  ;;  %v9658_v9 = vld [vmem:[#allocation132_spill] sm:$0xff]  ;;  %v9660_v20 = vld [vmem:[#allocation134_spill] sm:$0xff] }
 0x2a7   :  { %1651 = vmatpush.msrb.mxu1 %v9617_v8  ;;  %1556 = vmatpush.msra.mxu0 %v9619_v23  ;;  %v9661_v8 = vld [vmem:[#allocation135_spill] sm:$0xff]  ;;  %v9663_v23 = vld [vmem:[#allocation137_spill] sm:$0xff] }
 0x2a8   :  { %1691 = vmatpush.msrb.mxu3 %v9618_v63  ;;  %1596 = vmatpush.msra.mxu2 %v9620_v50  ;;  %v9662_v63 = vld [vmem:[#allocation136_spill] sm:$0xff]  ;;  %v9664_v50 = vld [vmem:[#allocation138_spill] sm:$0xff] }
 0x2a9   :  { %1652 = vmatpush.msrb.mxu1 %v9621_v17  ;;  %1557 = vmatpush.msra.mxu0 %v9623_v18  ;;  %v9665_v17 = vld [vmem:[#allocation139_spill] sm:$0xff]  ;;  %v9667_v18 = vld [vmem:[#allocation141_spill] sm:$0xff] }
 0x2aa   :  { %1692 = vmatpush.msrb.mxu3 %v9622_v19  ;;  %1597 = vmatpush.msra.mxu2 %v9624_v31  ;;  %v9666_v19 = vld [vmem:[#allocation140_spill] sm:$0xff]  ;;  %v9668_v31 = vld [vmem:[#allocation142_spill] sm:$0xff] }
 0x2ab   :  { %1653 = vmatpush.msrb.mxu1 %v9625_v1  ;;  %1558 = vmatpush.msra.mxu0 %v9627_v5  ;;  %v9669_v1 = vld [vmem:[#allocation143_spill] sm:$0xff]  ;;  %v9671_v5 = vld [vmem:[#allocation145_spill] sm:$0xff] }
 0x2ac   :  { %1693 = vmatpush.msrb.mxu3 %v9626_v29  ;;  %1598 = vmatpush.msra.mxu2 %v9628_v14  ;;  %v9670_v29 = vld [vmem:[#allocation144_spill] sm:$0xff]  ;;  %v9672_v14 = vld [vmem:[#allocation146_spill] sm:$0xff] }
 0x2ad   :  { %1654 = vmatpush.msrb.mxu1 %v9629_v11  ;;  %1559 = vmatpush.msra.mxu0 %v9631_v36  ;;  %v9673_v11 = vld [vmem:[#allocation147_spill] sm:$0xff]  ;;  %v9675_v36 = vld [vmem:[#allocation149_spill] sm:$0xff] }
 0x2ae   :  { %1694 = vmatpush.msrb.mxu3 %v9630_v55  ;;  %1599 = vmatpush.msra.mxu2 %v9632_v30  ;;  %v9674_v55 = vld [vmem:[#allocation148_spill] sm:$0xff]  ;;  %v9676_v30 = vld [vmem:[#allocation150_spill] sm:$0xff] }
 0x2af   :  { %1655 = vmatpush.msrb.mxu1 %v9633_v2  ;;  %1560 = vmatpush.msra.mxu0 %v9635_v4  ;;  %v9677_v2 = vld [vmem:[#allocation151_spill] sm:$0xff] }
 0x2b0   :  { %1695 = vmatpush.msrb.mxu3 %v9634_v7  ;;  %1600 = vmatpush.msra.mxu2 %v9636_v15  ;;  %v9678_v7 = vld [vmem:[#allocation152_spill] sm:$0xff] }
 0x2b1   :  { %1656 = vmatpush.msrb.mxu1 %v9637_v44  ;;  %1625 = vmatpush.msrb.mxu0 %v9639_v32  ;;  %v9679_v44 = vld [vmem:[#allocation35_spill] sm:$0xff] }
 0x2b2   :  { %1696 = vmatpush.msrb.mxu3 %v9638_v43  ;;  %1665 = vmatpush.msrb.mxu2 %v9640_v41 }
 0x2b3   :  { %1657 = vmatpush.msrb.mxu1 %v9641_v16  ;;  %1626 = vmatpush.msrb.mxu0 %v9643_v21  ;;  %v9680_v21 = vld [vmem:[#allocation47_spill] sm:$0xff] }
 0x2b4   :  { %1697 = vmatpush.msrb.mxu3 %v9642_v6  ;;  %1666 = vmatpush.msrb.mxu2 %v9644_v39 }
 0x2b5   :  { %1658 = vmatpush.msrb.mxu1 %v9645_v13  ;;  %1627 = vmatpush.msrb.mxu0 %v9647_v35 }
 0x2b6   :  { %1698 = vmatpush.msrb.mxu3 %v9646_v46  ;;  %1667 = vmatpush.msrb.mxu2 %v9648_v59  ;;  %v1390_v46 = vld [vmem:[%s8673_s0 + $0x68] sm:$0xff] }
 0x2b7   :  { %1659 = vmatpush.msrb.mxu1 %v9649_v49  ;;  %1628 = vmatpush.msrb.mxu0 %v9651_v38  ;;  %v9681_v49 = vld [vmem:[#allocation38_spill] sm:$0xff] }
 0x2b8   :  { %1699 = vmatpush.msrb.mxu3 %v9650_v58  ;;  %1668 = vmatpush.msrb.mxu2 %v9652_v37 }
 0x2b9   :  { %1660 = vmatpush.msrb.mxu1 %v9653_v61  ;;  %1629 = vmatpush.msrb.mxu0 %v9655_v60 }
 0x2ba   :  { %1700 = vmatpush.msrb.mxu3 %v9654_v34  ;;  %1669 = vmatpush.msrb.mxu2 %v9656_v57 }
 0x2bb   :  { %1630 = vmatpush.msrb.mxu0 %v9657_v62 }
 0x2bc   :  { %1670 = vmatpush.msrb.mxu2 %v9658_v9 }
 0x2bd   :  { %1631 = vmatpush.msrb.mxu0 %v9659_v47 }
 0x2be   :  { %1671 = vmatpush.msrb.mxu2 %v9660_v20 }
 0x2bf   :  { %1632 = vmatpush.msrb.mxu0 %v9661_v8 }
 0x2c0   :  { %1672 = vmatpush.msrb.mxu2 %v9662_v63 }
 0x2c1   :  { %1633 = vmatpush.msrb.mxu0 %v9663_v23 }
 0x2c2   :  { %1673 = vmatpush.msrb.mxu2 %v9664_v50 }
 0x2c3   :  { %1634 = vmatpush.msrb.mxu0 %v9665_v17  ;;  %v9682_v17 = vld [vmem:[#allocation49_spill] sm:$0xff] }
 0x2c4   :  { %1674 = vmatpush.msrb.mxu2 %v9666_v19 }
 0x2c5   :  { %1635 = vmatpush.msrb.mxu0 %v9667_v18 }
 0x2c6   :  { %1675 = vmatpush.msrb.mxu2 %v9668_v31 }
 0x2c7   :  { %1636 = vmatpush.msrb.mxu0 %v9669_v1 }
 0x2c8   :  { %1676 = vmatpush.msrb.mxu2 %v9670_v29 }
 0x2c9   :  { %1637 = vmatpush.msrb.mxu0 %v9671_v5 }
 0x2ca   :  { %1677 = vmatpush.msrb.mxu2 %v9672_v14 }
 0x2cb   :  { %1638 = vmatpush.msrb.mxu0 %v9673_v11 }
 0x2cc   :  { %1678 = vmatpush.msrb.mxu2 %v9674_v55 }
 0x2cd   :  { %1639 = vmatpush.msrb.mxu0 %v9675_v36 }
 0x2ce   :  { %1679 = vmatpush.msrb.mxu2 %v9676_v30 }
 0x2cf   :  { %1640 = vmatpush.msrb.mxu0 %v9677_v2 }
 0x2d0   :  { %1680 = vmatpush.msrb.mxu2 %v9678_v7 }
 0x2d3   :  { %v1200_v4 = vpop.f32.mrf.mxu1 }
 0x2d9   :  { %v1240_v13 = vpop.f32.mrf.mxu3 }
 0x2db   :  { %v1280_v32 = vpop.f32.mrf.mxu1 }
 0x2e1   :  { %v1320_v29 = vpop.f32.mrf.mxu3 }
 0x2eb   :  { %v1180_v15 = vpop.f32.mrf.mxu0 }
 0x2ec   :  { %v1181_v43 = vadd.f32 %v1180_v15, %v9679_v44  ;;  %v1389_v15 = vld [vmem:[%s8673_s0 + $0x60] sm:$0xff] }
 0x2ee   :  { %v1201_v41 = vadd.f32 %v1200_v4, %v1181_v43 }
 0x2f0   :  { %v3324_v16 = vmul.f32 -1.442695, %v1201_v41 }
 0x2f1   :  { %v1220_v6 = vpop.f32.mrf.mxu2 }
 0x2f2   :  { %3441 = vpow2.f32 %v3324_v16  ;;  %v1221_v39 = vadd.f32 %v1220_v6, %v9680_v21 }
 0x2f4   :  { %v1241_v35 = vadd.f32 %v1240_v13, %v1221_v39  ;;  %v1260_v59 = vpop.f32.mrf.mxu0 }
 0x2f5   :  { %v1261_v58 = vadd.f32 %v1260_v59, %v9681_v49  ;;  %v1431_v38 = vpop.f32.mrf.mxu1 }
 0x2f6   :  { %v3325_v37 = vmul.f32 -1.442695, %v1241_v35  ;;  %v1475_v61 = vadd.f32 %v1431_v38, %v1390_v46 }
 0x2f7   :  { %v1281_v34 = vadd.f32 %v1280_v32, %v1261_v58 }
 0x2f8   :  { %v3442_v60 = vpop.eup %3441  ;;  %3443 = vpow2.f32 %v3325_v37  ;;  %v3328_v9 = vmul.f32 -1.442695, %v1475_v61 }
 0x2f9   :  { %v1332_v57 = vadd.f32 1.0, %v3442_v60  ;;  %v3326_v62 = vmul.f32 -1.442695, %v1281_v34 }
 0x2fa   :  { %v1300_v8 = vpop.f32.mrf.mxu2 }
 0x2fb   :  { %3445 = vrcp.f32 %v1332_v57  ;;  %v1301_v19 = vadd.f32 %v1300_v8, %v9682_v17  ;;  %v1346_v2 = vand.u32 2147483648, %v1332_v57  ;;  %vm1340_vm13 = vweird.f32 %v1332_v57 }
 0x2fc   :  { %3447 = vpow2.f32 %v3326_v62  ;;  %v1344_v4 = vand.u32 2147483647, %v1332_v57  ;;  %v1471_v41 = vpop.f32.mrf.mxu3 }
 0x2fd   :  { %3449 = vpow2.f32 %v3328_v9  ;;  %v1321_v5 = vadd.f32 %v1320_v29, %v1301_v19  ;;  %v1347_v35 = vor.u32 1.1754944e-38, %v1346_v2 }
 0x2fe   :  { %v3444_v47 = vpop.eup %3443  ;;  %vm1345_vm1 = vcmp.eq.f32.partialorder %v1344_v4, 8.507059e+37 }
 0x2ff   :  { %v1333_v20 = vadd.f32 1.0, %v3444_v47  ;;  %v1391_v47 = vld [vmem:[%s8673_s0 + $0x70] sm:$0xff] }
 0x301   :  { %v3446_v63 = vpop.eup %3445  ;;  %3451 = vrcp.f32 %v1333_v20  ;;  %v1361_v32 = vand.u32 2147483648, %v1333_v20  ;;  %v1359_v16 = vand.u32 2147483647, %v1333_v20  ;;  %vm1355_vm0 = vweird.f32 %v1333_v20 }
 0x302   :  { %v3448_v23 = vpop.eup %3447  ;;  %v1336_v50 = vmul.f32 %v3446_v63, %v1332_v57  ;;  %vm1341_vm12 = vweird.f32 %v3446_v63 }
 0x303   :  { %v6442_v18 = vadd.f32 1.0, %v3448_v23  ;;  %v3450_v31 = vpop.eup %3449  ;;  %vm6451_vm14 = vmor %vm1340_vm13, %vm1341_vm12  ;;  %v1362_v37 = vor.u32 1.1754944e-38, %v1361_v32  ;;  %vm1360_vm3 = vcmp.eq.f32.partialorder %v1359_v16, 8.507059e+37  ;;  %v1392_v32 = vld [vmem:[%s8673_s0 + $0x78] sm:$0xff] }
 0x304   :  { %v1337_v1 = vsub.f32 1.0, %v1336_v50  ;;  %v6445_v55 = vadd.f32 1.0, %v3450_v31 }
 0x305   :  { %3453 = vrcp.f32 %v6442_v18  ;;  %vm1370_vm5 = vweird.f32 %v6442_v18 }
 0x306   :  { %v1338_v14 = vmul.f32 %v3446_v63, %v1337_v1  ;;  %3455 = vtanh.f32 %v1321_v5  ;;  %v1376_v5 = vand.u32 2147483648, %v6442_v18  ;;  %vm1510_vm9 = vweird.f32 %v6445_v55 }
 0x307   :  { %v3452_v11 = vpop.eup %3451  ;;  %3457 = vrcp.f32 %v6445_v55 }
 0x308   :  { %v1351_v36 = vmul.f32 %v3452_v11, %v1333_v20  ;;  %v1339_v30 = vadd.f32 %v3446_v63, %v1338_v14  ;;  %vm1356_vm15 = vweird.f32 %v3452_v11  ;;  %v1377_v2 = vor.u32 1.1754944e-38, %v1376_v5 }
 0x309   :  { %vm1357_vm2 = vmor %vm1355_vm0, %vm1356_vm15 }
 0x30a   :  { %v1352_v7 = vsub.f32 1.0, %v1351_v36  ;;  %v1343_v13 = vsel %vm6451_vm14, %v3446_v63, %v1339_v30 }
 0x30b   :  { %v3454_v43 = vpop.eup %3453  ;;  %v1348_v61 = vsel %vm1345_vm1, %v1347_v35, %v1343_v13  ;;  %v6484_v13 = vld [vmem:[%s8674_s1 + $0x1e8] sm:$0xff] }
 0x30c   :  { %v1353_v6 = vmul.f32 %v3452_v11, %v1352_v7  ;;  %v1366_v39 = vmul.f32 %v3454_v43, %v6442_v18  ;;  %v1411_v46 = vpop.f32.mrf.mxu0  ;;  %v3456_v60 = vpop.eup %3455  ;;  %vm1371_vm4 = vweird.f32 %v3454_v43 }
 0x30d   :  { %v1474_v59 = vadd.f32 %v1411_v46, %v1389_v15  ;;  %v6458_v62 = vpop.eup %3457  ;;  %v1383_v63 = vmul.f32 %v3456_v60, %v1348_v61  ;;  %vm1372_vm6 = vmor %vm1370_vm5, %vm1371_vm4  ;;  %v6490_v46 = vld [vmem:[%s8674_s1 + $0x1f8] sm:$0xff]  ;;  %v1514_v61 = vand.u32 2147483647, %v6445_v55 }
 0x30e   :  { %v1367_v58 = vsub.f32 1.0, %v1366_v39  ;;  %v1354_v38 = vadd.f32 %v3452_v11, %v1353_v6  ;;  %v1506_v31 = vmul.f32 %v6458_v62, %v6445_v55  ;;  %v1477_v39 = vadd.f32 %v1471_v41, %v1392_v32 }
 0x30f   :  { %v3327_v34 = vmul.f32 -1.442695, %v1474_v59  ;;  %vm1511_vm8 = vweird.f32 %v6458_v62  ;;  %vm1515_vm12 = vcmp.eq.f32.partialorder %v1514_v61, 8.507059e+37  ;;  %v6605_v61 = vld [vmem:[%s8674_s1 + $0xe8] sm:$0xff] }
 0x310   :  { %v1358_v57 = vsel %vm1357_vm2, %v3452_v11, %v1354_v38  ;;  %v1368_v8 = vmul.f32 %v3454_v43, %v1367_v58  ;;  %v1507_v36 = vsub.f32 1.0, %v1506_v31  ;;  %v1516_v58 = vand.u32 2147483648, %v6445_v55  ;;  %v6501_v38 = vld [vmem:[%s8674_s1 + $0x1c8] sm:$0xff]  ;;  %vm6512_vm10 = vmor %vm1510_vm9, %vm1511_vm8 }
 0x311   :  { %v1363_v9 = vsel %vm1360_vm3, %v1362_v37, %v1358_v57  ;;  %3459 = vpow2.f32 %v3327_v34  ;;  %v6507_v37 = vld [vmem:[%s8674_s1 + $0x1d8] sm:$0xff] }
 0x312   :  { %v1382_v20 = vmul.f32 %v1363_v9, %v6108_v10  ;;  %v1369_v1 = vadd.f32 %v3454_v43, %v1368_v8  ;;  %v1374_v10 = vand.u32 2147483647, %v6442_v18  ;;  %v1508_v15 = vmul.f32 %v6458_v62, %v1507_v36  ;;  %v6520_v9 = vld [vmem:[%s8674_s1 + $0x1a8] sm:$0xff] }
 0x313   :  { %v1451_v23 = vpop.f32.mrf.mxu2 }
 0x314   :  { %v6464_v50 = vadd.f32 %v1383_v63, %v1382_v20  ;;  %v1476_v19 = vadd.f32 %v1451_v23, %v1391_v47  ;;  %v1373_v30 = vsel %vm1372_vm6, %v3454_v43, %v1369_v1  ;;  %vm1375_vm7 = vcmp.eq.f32.partialorder %v1374_v10, 8.507059e+37  ;;  %v6526_v47 = vld [vmem:[%s8674_s1 + $0x1b8] sm:$0xff]  ;;  %v6536_v23 = vld [vmem:[%s8674_s1 + $0x188] sm:$0xff] }
 0x315   :  { %v1378_v4 = vsel %vm1375_vm7, %v1377_v2, %v1373_v30  ;;  %v1509_v35 = vadd.f32 %v6458_v62, %v1508_v15  ;;  %v1517_v63 = vor.u32 1.1754944e-38, %v1516_v58  ;;  %v6556_v10 = vld [vmem:[%s8674_s1 + $0x178] sm:$0xff] }
 0x316   :  { %3461 = vtanh.f32 %v6464_v50  ;;  %v3329_v29 = vmul.f32 -1.442695, %v1476_v19  ;;  %v6542_v19 = vld [vmem:[%s8674_s1 + $0x198] sm:$0xff] }
 0x317   :  { %v3460_v14 = vpop.eup %3459  ;;  %v1513_v55 = vsel %vm6512_vm10, %v6458_v62, %v1509_v35  ;;  %v6595_v35 = vld [vmem:[%s8674_s1 + $0x118] sm:$0xff] }
 0x318   :  { %v6472_v11 = vadd.f32 1.0, %v3460_v14  ;;  %3463 = vpow2.f32 %v3329_v29  ;;  %v1518_v1 = vsel %vm1515_vm12, %v1517_v63, %v1513_v55  ;;  %v6550_v14 = vld [vmem:[%s8674_s1 + $0x168] sm:$0xff] }
 0x319   :  { %v1537_v15 = vmul.f32 %v1518_v1, %v6151_v42  ;;  %v6589_v42 = vld [vmem:[%s8674_s1 + $0x108] sm:$0xff] }
 0x31a   :  { %3465 = vrcp.f32 %v6472_v11  ;;  %v1501_v57 = vand.u32 2147483648, %v6472_v11  ;;  %v1499_v20 = vand.u32 2147483647, %v6472_v11  ;;  %vm1495_vm13 = vweird.f32 %v6472_v11  ;;  %v6643_v1 = vld [vmem:[%s8674_s1 + $0x88] sm:$0xff] }
 0x31c   :  { %v3462_v7 = vpop.eup %3461  ;;  %v1502_v29 = vor.u32 1.1754944e-38, %v1501_v57  ;;  %vm1500_vm15 = vcmp.eq.f32.partialorder %v1499_v20, 8.507059e+37  ;;  %v6623_v57 = vld [vmem:[%s8674_s1 + $0xd8] sm:$0xff] }
 0x31d   :  { %v1386_v18 = vmul.f32 %v3462_v7, %v1378_v4  ;;  %v6562_v7 = vld [vmem:[%s8674_s1 + $0x148] sm:$0xff]  ;;  %v6568_v4 = vld [vmem:[%s8674_s1 + $0x158] sm:$0xff] }
 0x31e   :  { %v3464_v16 = vpop.eup %3463  ;;  %v6635_v20 = vld [vmem:[%s8674_s1 + $0xb8] sm:$0xff] }
 0x31f   :  { %v6479_v6 = vadd.f32 1.0, %v3464_v16  ;;  %1581 = vmatmul.f32.vlgmr.msra.gmra.mxu1 %v1386_v18  ;;  %1621 = vmatmul.f32.vlgmr.msra.gmra.mxu3 %v1386_v18  ;;  %v6581_v16 = vld [vmem:[%s8674_s1 + $0x138] sm:$0xff] }
 0x320   :  { %v3466_v43 = vpop.eup %3465  ;;  %1796 = vmatpush.msra.mxu1 %v6484_v13  ;;  %1836 = vmatpush.msra.mxu3 %v6490_v46 }
 0x321   :  { %v1491_v59 = vmul.f32 %v3466_v43, %v6472_v11  ;;  %3467 = vrcp.f32 %v6479_v6  ;;  %vm1496_vm11 = vweird.f32 %v3466_v43  ;;  %vm1525_vm1 = vweird.f32 %v6479_v6 }
 0x322   :  { %1797 = vmatpush.msra.mxu1 %v6501_v38  ;;  %1837 = vmatpush.msra.mxu3 %v6507_v37  ;;  %3469 = vtanh.f32 %v1477_v39  ;;  %vm1497_vm14 = vmor %vm1495_vm13, %vm1496_vm11  ;;  %v1529_v58 = vand.u32 2147483647, %v6479_v6 }
 0x323   :  { %v1492_v34 = vsub.f32 1.0, %v1491_v59  ;;  %v1531_v59 = vand.u32 2147483648, %v6479_v6 }
 0x324   :  { %1798 = vmatpush.msra.mxu1 %v6520_v9  ;;  %1838 = vmatpush.msra.mxu3 %v6526_v47  ;;  %vm1530_vm3 = vcmp.eq.f32.partialorder %v1529_v58, 8.507059e+37  ;;  %v6805_v58 = vld [vmem:[%s8674_s1 + $0x60] sm:$0xff] }
 0x325   :  { %v1493_v8 = vmul.f32 %v3466_v43, %v1492_v34  ;;  %v6611_v34 = vld [vmem:[%s8674_s1 + $0xf8] sm:$0xff]  ;;  %v1532_v55 = vor.u32 1.1754944e-38, %v1531_v59  ;;  %v6799_v59 = vld [vmem:[#allocation6 + $0x328] sm:$0xff]  ;;  %9705 = vst [vmem:[#allocation58_spill] sm:$0xff] %v6805_v58 }
 0x326   :  { %1799 = vmatpush.msra.mxu1 %v6536_v23  ;;  %1839 = vmatpush.msra.mxu3 %v6542_v19  ;;  %9704 = vst [vmem:[#allocation9_spill] sm:$0xff] %v6799_v59 }
 0x327   :  { %v3468_v62 = vpop.eup %3467  ;;  %v1494_v31 = vadd.f32 %v3466_v43, %v1493_v8  ;;  %1661 = vmatmul.f32.vlgmr.msrb.gmra.mxu1 %v1386_v18  ;;  %1701 = vmatmul.f32.vlgmr.msrb.gmra.mxu3 %v1386_v18  ;;  %v6575_v18 = vld [vmem:[%s8674_s1 + $0x128] sm:$0xff] }
 0x328   :  { %v1521_v5 = vmul.f32 %v3468_v62, %v6479_v6  ;;  %1800 = vmatpush.msra.mxu1 %v6550_v14  ;;  %1840 = vmatpush.msra.mxu3 %v6556_v10  ;;  %v3470_v36 = vpop.eup %3469  ;;  %vm1526_vm0 = vweird.f32 %v3468_v62  ;;  %v6617_v6 = vld [vmem:[%s8674_s1 + $0xc8] sm:$0xff] }
 0x329   :  { %v1498_v11 = vsel %vm1497_vm14, %v3466_v43, %v1494_v31  ;;  %vm1527_vm2 = vmor %vm1525_vm1, %vm1526_vm0  ;;  %v6629_v8 = vld [vmem:[%s8674_s1 + $0xa8] sm:$0xff] }
 0x32a   :  { %v1503_v30 = vsel %vm1500_vm15, %v1502_v29, %v1498_v11  ;;  %v1522_v2 = vsub.f32 1.0, %v1521_v5  ;;  %1801 = vmatpush.msra.mxu1 %v6562_v7  ;;  %1841 = vmatpush.msra.mxu3 %v6568_v4  ;;  %v6649_v29 = vld [vmem:[%s8674_s1 + $0x98] sm:$0xff]  ;;  %v6659_v5 = vld [vmem:[%s8674_s1 + $0x68] sm:$0xff] }
 0x32b   :  { %v1538_v32 = vmul.f32 %v3470_v36, %v1503_v30  ;;  %v6665_v11 = vld [vmem:[%s8674_s1 + $0x78] sm:$0xff]  ;;  %v6769_v36 = vld [vmem:[%s8674_s1 + $0xa0] sm:$0xff] }
 0x32c   :  { %v1523_v41 = vmul.f32 %v3468_v62, %v1522_v2  ;;  %1802 = vmatpush.msra.mxu1 %v6575_v18  ;;  %1842 = vmatpush.msra.mxu3 %v6581_v16  ;;  %9697 = vst [vmem:[#allocation59_spill] sm:$0xff] %v6769_v36  ;;  %v6772_v30 = vld [vmem:[#allocation6 + $0x340] sm:$0xff]  ;;  %v6778_v2 = vld [vmem:[%s8674_s1 + $0xb0] sm:$0xff] }
 0x32d   :  { %v6584_v43 = vadd.f32 %v1538_v32, %v1537_v15  ;;  %9698 = vst [vmem:[#allocation52_spill] sm:$0xff] %v6772_v30  ;;  %v6781_v15 = vld [vmem:[#allocation6 + $0x348] sm:$0xff]  ;;  %v6787_v32 = vld [vmem:[%s8674_s1 + $0x80] sm:$0xff] }
 0x32e   :  { %v1524_v39 = vadd.f32 %v3468_v62, %v1523_v41  ;;  %1803 = vmatpush.msra.mxu1 %v6589_v42  ;;  %1843 = vmatpush.msra.mxu3 %v6595_v35  ;;  %9699 = vst [vmem:[#allocation61_spill] sm:$0xff] %v6778_v2  ;;  %v6790_v41 = vld [vmem:[#allocation6 + $0x320] sm:$0xff] }
 0x32f   :  { %3471 = vtanh.f32 %v6584_v43  ;;  %9700 = vst [vmem:[#allocation53_spill] sm:$0xff] %v6781_v15 }
 0x330   :  { %1804 = vmatpush.msra.mxu1 %v6605_v61  ;;  %1844 = vmatpush.msra.mxu3 %v6611_v34  ;;  %v1528_v60 = vsel %vm1527_vm2, %v3468_v62, %v1524_v39  ;;  %9701 = vst [vmem:[#allocation63_spill] sm:$0xff] %v6787_v32  ;;  %v6796_v39 = vld [vmem:[%s8674_s1 + $0x90] sm:$0xff] }
 0x331   :  { %v1533_v62 = vsel %vm1530_vm3, %v1532_v55, %v1528_v60  ;;  %9702 = vst [vmem:[#allocation56_spill] sm:$0xff] %v6790_v41  ;;  %v6808_v60 = vld [vmem:[#allocation6 + $0x300] sm:$0xff]  ;;  %v6814_v55 = vld [vmem:[%s8674_s1 + $0x70] sm:$0xff] }
 0x332   :  { %1805 = vmatpush.msra.mxu1 %v6617_v6  ;;  %1845 = vmatpush.msra.mxu3 %v6623_v57  ;;  %9703 = vst [vmem:[#allocation64_spill] sm:$0xff] %v6796_v39 }
 0x333   :  { %9706 = vst [vmem:[#allocation10_spill] sm:$0xff] %v6808_v60 }
 0x334   :  { %1806 = vmatpush.msra.mxu1 %v6629_v8  ;;  %1846 = vmatpush.msra.mxu3 %v6635_v20  ;;  %9707 = vst [vmem:[#allocation65_spill] sm:$0xff] %v6814_v55 }
 0x335   :  { %v3472_v63 = vpop.eup %3471 }
 0x336   :  { %v6638_v31 = vmul.f32 %v3472_v63, %v1533_v62  ;;  %1807 = vmatpush.msra.mxu1 %v6643_v1  ;;  %1847 = vmatpush.msra.mxu3 %v6649_v29  ;;  %v6817_v63 = vld [vmem:[#allocation6 + $0x308] sm:$0xff]  ;;  %v6823_v62 = vld [vmem:[%s8674_s1 + $0x40] sm:$0xff] }
 0x337   :  { %9708 = vst [vmem:[#allocation11_spill] sm:$0xff] %v6817_v63 }
 0x338   :  { %1561 = vmatmul.f32.vlgmr.msra.gmra.mxu0 %v6638_v31  ;;  %1601 = vmatmul.f32.vlgmr.msra.gmra.mxu2 %v6638_v31  ;;  %9709 = vst [vmem:[#allocation60_spill] sm:$0xff] %v6823_v62 }
 0x339   :  { %1776 = vmatpush.msra.mxu0 %v6174_v51  ;;  %1816 = vmatpush.msra.mxu2 %v6180_v27  ;;  %v6673_v51 = vld [vmem:[%s8674_s1 + $0x48] sm:$0xff]  ;;  %v6679_v27 = vld [vmem:[%s8674_s1 + $0x58] sm:$0xff] }
 0x33a   :  { %1808 = vmatpush.msra.mxu1 %v6659_v5  ;;  %1848 = vmatpush.msra.mxu3 %v6665_v11 }
 0x33b   :  { %1777 = vmatpush.msra.mxu0 %v6188_v25  ;;  %1817 = vmatpush.msra.mxu2 %v6194_v33  ;;  %v6687_v25 = vld [vmem:[%s8674_s1 + $0x28] sm:$0xff]  ;;  %v6693_v33 = vld [vmem:[%s8674_s1 + $0x38] sm:$0xff] }
 0x33c   :  { %1809 = vmatpush.msra.mxu1 %v6673_v51  ;;  %1849 = vmatpush.msra.mxu3 %v6679_v27 }
 0x33d   :  { %1778 = vmatpush.msra.mxu0 %v6202_v0  ;;  %1818 = vmatpush.msra.mxu2 %v6208_v40  ;;  %v6701_v0 = vld [vmem:[%s8674_s1 + $0x8] sm:$0xff]  ;;  %v6707_v40 = vld [vmem:[%s8674_s1 + $0x18] sm:$0xff] }
 0x33e   :  { %1810 = vmatpush.msra.mxu1 %v6687_v25  ;;  %1850 = vmatpush.msra.mxu3 %v6693_v33 }
 0x33f   :  { %1779 = vmatpush.msra.mxu0 %v6216_v12  ;;  %1819 = vmatpush.msra.mxu2 %v6222_v56  ;;  %v6717_v12 = vld [vmem:[#allocation6 + $0x3e0] sm:$0xff]  ;;  %v6721_v56 = vld [vmem:[#allocation6 + $0x3e8] sm:$0xff] }
 0x340   :  { %1811 = vmatpush.msra.mxu1 %v6701_v0  ;;  %1851 = vmatpush.msra.mxu3 %v6707_v40 }
 0x341   :  { %1641 = vmatmul.f32.vlgmr.msrb.gmra.mxu0 %v6638_v31  ;;  %1681 = vmatmul.f32.vlgmr.msrb.gmra.mxu2 %v6638_v31 }
 0x342   :  { %1780 = vmatpush.msra.mxu0 %v6232_v28  ;;  %1812 = vmatmul.f32.vlgmr.msra.gmra.mxu1 %v6638_v31  ;;  %v6725_v28 = vld [vmem:[#allocation6 + $0x3c0] sm:$0xff] }
 0x343   :  { %1820 = vmatpush.msra.mxu2 %v6239_v52  ;;  %1852 = vmatmul.f32.vlgmr.msra.gmra.mxu3 %v6638_v31  ;;  %9687 = vst [vmem:[#allocation41_spill] sm:$0xff] %v6725_v28  ;;  %v6729_v52 = vld [vmem:[#allocation6 + $0x3c8] sm:$0xff] }
 0x344   :  { %1781 = vmatpush.msra.mxu0 %v6246_v24  ;;  %1947 = vmatpush.msrb.mxu1 %v6717_v12  ;;  %9688 = vst [vmem:[#allocation51_spill] sm:$0xff] %v6729_v52  ;;  %v6733_v24 = vld [vmem:[#allocation6 + $0x3a0] sm:$0xff] }
 0x345   :  { %1821 = vmatpush.msra.mxu2 %v6253_v45  ;;  %1987 = vmatpush.msrb.mxu3 %v6721_v56  ;;  %9689 = vst [vmem:[#allocation44_spill] sm:$0xff] %v6733_v24  ;;  %v6737_v45 = vld [vmem:[#allocation6 + $0x3a8] sm:$0xff] }
 0x346   :  { %1782 = vmatpush.msra.mxu0 %v6260_v54  ;;  %1948 = vmatpush.msrb.mxu1 %v6725_v28  ;;  %9690 = vst [vmem:[#allocation45_spill] sm:$0xff] %v6737_v45  ;;  %v6741_v54 = vld [vmem:[#allocation6 + $0x380] sm:$0xff] }
 0x347   :  { %1822 = vmatpush.msra.mxu2 %v6267_v53  ;;  %1988 = vmatpush.msrb.mxu3 %v6729_v52  ;;  %9691 = vst [vmem:[#allocation54_spill] sm:$0xff] %v6741_v54  ;;  %v6745_v53 = vld [vmem:[#allocation6 + $0x388] sm:$0xff] }
 0x348   :  { %1783 = vmatpush.msra.mxu0 %v6274_v3  ;;  %1949 = vmatpush.msrb.mxu1 %v6733_v24  ;;  %9692 = vst [vmem:[#allocation46_spill] sm:$0xff] %v6745_v53  ;;  %v6751_v3 = vld [vmem:[%s8674_s1 + $0xc0] sm:$0xff] }
 0x349   :  { %1823 = vmatpush.msra.mxu2 %v6281_v22  ;;  %1989 = vmatpush.msrb.mxu3 %v6737_v45  ;;  %9693 = vst [vmem:[#allocation55_spill] sm:$0xff] %v6751_v3  ;;  %v6754_v22 = vld [vmem:[#allocation6 + $0x360] sm:$0xff] }
 0x34a   :  { %1784 = vmatpush.msra.mxu0 %v6288_v26  ;;  %1950 = vmatpush.msrb.mxu1 %v6741_v54  ;;  %9694 = vst [vmem:[#allocation48_spill] sm:$0xff] %v6754_v22  ;;  %v6760_v26 = vld [vmem:[%s8674_s1 + $0xd0] sm:$0xff] }
 0x34b   :  { %1824 = vmatpush.msra.mxu2 %v6295_v48  ;;  %1990 = vmatpush.msrb.mxu3 %v6745_v53  ;;  %9695 = vst [vmem:[#allocation57_spill] sm:$0xff] %v6760_v26  ;;  %v6763_v48 = vld [vmem:[#allocation6 + $0x368] sm:$0xff] }
 0x34c   :  { %1785 = vmatpush.msra.mxu0 %v6751_v3  ;;  %1951 = vmatpush.msrb.mxu1 %v6754_v22  ;;  %9696 = vst [vmem:[#allocation50_spill] sm:$0xff] %v6763_v48 }
 0x34d   :  { %1825 = vmatpush.msra.mxu2 %v6760_v26  ;;  %1991 = vmatpush.msrb.mxu3 %v6763_v48 }
 0x34e   :  { %1786 = vmatpush.msra.mxu0 %v6769_v36  ;;  %1952 = vmatpush.msrb.mxu1 %v6772_v30 }
 0x34f   :  { %1826 = vmatpush.msra.mxu2 %v6778_v2  ;;  %1992 = vmatpush.msrb.mxu3 %v6781_v15 }
 0x350   :  { %1787 = vmatpush.msra.mxu0 %v6787_v32  ;;  %1953 = vmatpush.msrb.mxu1 %v6790_v41 }
 0x351   :  { %1827 = vmatpush.msra.mxu2 %v6796_v39  ;;  %1993 = vmatpush.msrb.mxu3 %v6799_v59 }
 0x352   :  { %1788 = vmatpush.msra.mxu0 %v6805_v58  ;;  %1954 = vmatpush.msrb.mxu1 %v6808_v60  ;;  %v6826_v58 = vld [vmem:[#allocation6 + $0x2e0] sm:$0xff]  ;;  %v6832_v60 = vld [vmem:[%s8674_s1 + $0x50] sm:$0xff] }
 0x353   :  { %1828 = vmatpush.msra.mxu2 %v6814_v55  ;;  %1994 = vmatpush.msrb.mxu3 %v6817_v63  ;;  %9710 = vst [vmem:[#allocation12_spill] sm:$0xff] %v6826_v58  ;;  %v6835_v55 = vld [vmem:[#allocation6 + $0x2e8] sm:$0xff]  ;;  %v6841_v63 = vld [vmem:[%s8674_s1 + $0x20] sm:$0xff] }
 0x354   :  { %1789 = vmatpush.msra.mxu0 %v6823_v62  ;;  %1955 = vmatpush.msrb.mxu1 %v6826_v58  ;;  %9711 = vst [vmem:[#allocation66_spill] sm:$0xff] %v6832_v60  ;;  %v6844_v62 = vld [vmem:[#allocation6 + $0x2c0] sm:$0xff]  ;;  %v6850_v58 = vld [vmem:[%s8674_s1 + $0x30] sm:$0xff] }
 0x355   :  { %1829 = vmatpush.msra.mxu2 %v6832_v60  ;;  %9712 = vst [vmem:[#allocation13_spill] sm:$0xff] %v6835_v55  ;;  %1995 = vmatpush.msrb.mxu3 %v6835_v55  ;;  %v6853_v60 = vld [vmem:[#allocation6 + $0x2c8] sm:$0xff]  ;;  %v6859_v55 = vld [vmem:[%s8674_s1] sm:$0xff] }
 0x356   :  { %9713 = vst [vmem:[#allocation62_spill] sm:$0xff] %v6841_v63  ;;  %1790 = vmatpush.msra.mxu0 %v6841_v63  ;;  %1956 = vmatpush.msrb.mxu1 %v6844_v62  ;;  %v6862_v63 = vld [vmem:[#allocation6 + $0x2a0] sm:$0xff] }
 0x357   :  { %9714 = vst [vmem:[#allocation14_spill] sm:$0xff] %v6844_v62  ;;  %1830 = vmatpush.msra.mxu2 %v6850_v58  ;;  %1996 = vmatpush.msrb.mxu3 %v6853_v60  ;;  %v6868_v62 = vld [vmem:[%s8674_s1 + $0x10] sm:$0xff] }
 0x358   :  { %9715 = vst [vmem:[#allocation67_spill] sm:$0xff] %v6850_v58  ;;  %1791 = vmatpush.msra.mxu0 %v6859_v55  ;;  %1957 = vmatpush.msrb.mxu1 %v6862_v63  ;;  %v6882_v58 = vld [vmem:[#allocation6 + $0x288] sm:$0xff] }
 0x359   :  { %9716 = vst [vmem:[#allocation15_spill] sm:$0xff] %v6853_v60  ;;  %1831 = vmatpush.msra.mxu2 %v6868_v62  ;;  %1792 = vmatmul.f32.vlgmr.msra.gmra.mxu0 %v6638_v31  ;;  %v6873_v60 = vld [vmem:[#allocation6 + $0x2a8] sm:$0xff] }
 0x35a   :  { %9717 = vst [vmem:[#allocation70_spill] sm:$0xff] %v6859_v55  ;;  %1832 = vmatmul.f32.vlgmr.msra.gmra.mxu2 %v6638_v31  ;;  %1997 = vmatpush.msrb.mxu3 %v6873_v60  ;;  %v6876_v55 = vld [vmem:[#allocation6 + $0x280] sm:$0xff] }
 0x35b   :  { %9718 = vst [vmem:[#allocation16_spill] sm:$0xff] %v6862_v63  ;;  %1958 = vmatpush.msrb.mxu1 %v6876_v55  ;;  %v6879_v63 = vld [vmem:[#allocation6 + $0x1e0] sm:$0xff] }
 0x35c   :  { %9719 = vst [vmem:[#allocation71_spill] sm:$0xff] %v6868_v62  ;;  %1927 = vmatpush.msrb.mxu0 %v6879_v63  ;;  %1998 = vmatpush.msrb.mxu3 %v6882_v58  ;;  %v6885_v62 = vld [vmem:[#allocation6 + $0x1e8] sm:$0xff]  ;;  %v6888_v31 = vld [vmem:[#allocation6 + $0x260] sm:$0xff] }
 0x35d   :  { %9720 = vst [vmem:[#allocation17_spill] sm:$0xff] %v6873_v60  ;;  %1967 = vmatpush.msrb.mxu2 %v6885_v62  ;;  %1959 = vmatpush.msrb.mxu1 %v6888_v31  ;;  %v6891_v60 = vld [vmem:[#allocation6 + $0x1c0] sm:$0xff] }
 0x35e   :  { %9721 = vst [vmem:[#allocation74_spill] sm:$0xff] %v6876_v55  ;;  %1928 = vmatpush.msrb.mxu0 %v6891_v60  ;;  %v6894_v55 = vld [vmem:[#allocation6 + $0x268] sm:$0xff] }
 0x35f   :  { %9722 = vst [vmem:[#allocation18_spill] sm:$0xff] %v6879_v63  ;;  %1999 = vmatpush.msrb.mxu3 %v6894_v55  ;;  %v6897_v63 = vld [vmem:[#allocation6 + $0x1c8] sm:$0xff] }
 0x360   :  { %9723 = vst [vmem:[#allocation75_spill] sm:$0xff] %v6882_v58  ;;  %1968 = vmatpush.msrb.mxu2 %v6897_v63  ;;  %v6900_v58 = vld [vmem:[#allocation6 + $0x240] sm:$0xff] }
 0x361   :  { %9724 = vst [vmem:[#allocation19_spill] sm:$0xff] %v6885_v62  ;;  %1960 = vmatpush.msrb.mxu1 %v6900_v58  ;;  %v6903_v62 = vld [vmem:[#allocation6 + $0x1a0] sm:$0xff] }
 0x362   :  { %9725 = vst [vmem:[#allocation78_spill] sm:$0xff] %v6888_v31  ;;  %1929 = vmatpush.msrb.mxu0 %v6903_v62  ;;  %v6906_v31 = vld [vmem:[#allocation6 + $0x248] sm:$0xff] }
 0x363   :  { %9726 = vst [vmem:[#allocation20_spill] sm:$0xff] %v6891_v60  ;;  %2000 = vmatpush.msrb.mxu3 %v6906_v31  ;;  %v6909_v60 = vld [vmem:[#allocation6 + $0x1a8] sm:$0xff] }
 0x364   :  { %9727 = vst [vmem:[#allocation79_spill] sm:$0xff] %v6894_v55  ;;  %1969 = vmatpush.msrb.mxu2 %v6909_v60  ;;  %v6912_v55 = vld [vmem:[#allocation6 + $0x220] sm:$0xff] }
 0x365   :  { %9728 = vst [vmem:[#allocation21_spill] sm:$0xff] %v6897_v63  ;;  %1961 = vmatpush.msrb.mxu1 %v6912_v55  ;;  %v6915_v63 = vld [vmem:[#allocation6 + $0x180] sm:$0xff] }
 0x366   :  { %9729 = vst [vmem:[#allocation82_spill] sm:$0xff] %v6900_v58  ;;  %1930 = vmatpush.msrb.mxu0 %v6915_v63  ;;  %v6918_v58 = vld [vmem:[#allocation6 + $0x228] sm:$0xff] }
 0x367   :  { %9730 = vst [vmem:[#allocation22_spill] sm:$0xff] %v6903_v62  ;;  %2001 = vmatpush.msrb.mxu3 %v6918_v58  ;;  %v6921_v62 = vld [vmem:[#allocation6 + $0x188] sm:$0xff] }
 0x368   :  { %9731 = vst [vmem:[#allocation23_spill] sm:$0xff] %v6906_v31  ;;  %1970 = vmatpush.msrb.mxu2 %v6921_v62  ;;  %v6924_v31 = vld [vmem:[#allocation6 + $0x200] sm:$0xff] }
 0x369   :  { %9732 = vst [vmem:[#allocation24_spill] sm:$0xff] %v6909_v60  ;;  %1962 = vmatpush.msrb.mxu1 %v6924_v31  ;;  %v6927_v60 = vld [vmem:[#allocation6 + $0x160] sm:$0xff] }
 0x36a   :  { %9733 = vst [vmem:[#allocation83_spill] sm:$0xff] %v6912_v55  ;;  %1931 = vmatpush.msrb.mxu0 %v6927_v60  ;;  %v6930_v55 = vld [vmem:[#allocation6 + $0x208] sm:$0xff] }
 0x36b   :  { %9734 = vst [vmem:[#allocation25_spill] sm:$0xff] %v6915_v63  ;;  %2002 = vmatpush.msrb.mxu3 %v6930_v55  ;;  %v6933_v63 = vld [vmem:[#allocation6 + $0x168] sm:$0xff] }
 0x36c   :  { %9735 = vst [vmem:[#allocation86_spill] sm:$0xff] %v6918_v58  ;;  %1971 = vmatpush.msrb.mxu2 %v6933_v63  ;;  %v6936_v58 = vld [vmem:[#allocation6 + $0x3f0] sm:$0xff] }
 0x36d   :  { %9736 = vst [vmem:[#allocation26_spill] sm:$0xff] %v6921_v62  ;;  %2027 = vmatpush.msra.mxu1 %v6936_v58  ;;  %v6939_v62 = vld [vmem:[#allocation6 + $0x3f8] sm:$0xff] }
 0x36e   :  { %9737 = vst [vmem:[#allocation87_spill] sm:$0xff] %v6924_v31  ;;  %2067 = vmatpush.msra.mxu3 %v6939_v62  ;;  %v6942_v31 = vld [vmem:[#allocation6 + $0x140] sm:$0xff] }
 0x36f   :  { %9738 = vst [vmem:[#allocation27_spill] sm:$0xff] %v6927_v60  ;;  %1932 = vmatpush.msrb.mxu0 %v6942_v31  ;;  %v6945_v60 = vld [vmem:[#allocation6 + $0x148] sm:$0xff] }
 0x370   :  { %9739 = vst [vmem:[#allocation90_spill] sm:$0xff] %v6930_v55  ;;  %1972 = vmatpush.msrb.mxu2 %v6945_v60  ;;  %v6948_v55 = vld [vmem:[#allocation6 + $0x3d0] sm:$0xff] }
 0x371   :  { %9740 = vst [vmem:[#allocation28_spill] sm:$0xff] %v6933_v63  ;;  %2028 = vmatpush.msra.mxu1 %v6948_v55  ;;  %v6951_v63 = vld [vmem:[#allocation6 + $0x3d8] sm:$0xff] }
 0x372   :  { %9741 = vst [vmem:[#allocation91_spill] sm:$0xff] %v6936_v58  ;;  %2068 = vmatpush.msra.mxu3 %v6951_v63  ;;  %v6954_v58 = vld [vmem:[#allocation6 + $0x120] sm:$0xff] }
 0x373   :  { %9742 = vst [vmem:[#allocation29_spill] sm:$0xff] %v6939_v62  ;;  %1933 = vmatpush.msrb.mxu0 %v6954_v58  ;;  %v6957_v62 = vld [vmem:[#allocation6 + $0x128] sm:$0xff] }
 0x374   :  { %9743 = vst [vmem:[#allocation30_spill] sm:$0xff] %v6942_v31  ;;  %1973 = vmatpush.msrb.mxu2 %v6957_v62  ;;  %v6960_v31 = vld [vmem:[#allocation6 + $0x3b0] sm:$0xff] }
 0x375   :  { %9744 = vst [vmem:[#allocation31_spill] sm:$0xff] %v6945_v60  ;;  %2029 = vmatpush.msra.mxu1 %v6960_v31  ;;  %v6963_v60 = vld [vmem:[#allocation6 + $0x3b8] sm:$0xff] }
 0x376   :  { %9745 = vst [vmem:[#allocation32_spill] sm:$0xff] %v6948_v55  ;;  %2069 = vmatpush.msra.mxu3 %v6963_v60  ;;  %v6966_v55 = vld [vmem:[#allocation6 + $0x100] sm:$0xff] }
 0x377   :  { %9746 = vst [vmem:[#allocation33_spill] sm:$0xff] %v6951_v63  ;;  %1934 = vmatpush.msrb.mxu0 %v6966_v55  ;;  %v6969_v63 = vld [vmem:[#allocation6 + $0x108] sm:$0xff] }
 0x378   :  { %9747 = vst [vmem:[#allocation34_spill] sm:$0xff] %v6954_v58  ;;  %1974 = vmatpush.msrb.mxu2 %v6969_v63  ;;  %v6972_v58 = vld [vmem:[#allocation6 + $0x390] sm:$0xff] }
 0x379   :  { %9748 = vst [vmem:[#allocation36_spill] sm:$0xff] %v6957_v62  ;;  %2030 = vmatpush.msra.mxu1 %v6972_v58  ;;  %v6975_v62 = vld [vmem:[#allocation6 + $0x398] sm:$0xff] }
 0x37a   :  { %9749 = vst [vmem:[#allocation37_spill] sm:$0xff] %v6960_v31  ;;  %2070 = vmatpush.msra.mxu3 %v6975_v62  ;;  %v6978_v31 = vld [vmem:[#allocation6 + $0xe0] sm:$0xff] }
 0x37b   :  { %9750 = vst [vmem:[#allocation39_spill] sm:$0xff] %v6963_v60  ;;  %1935 = vmatpush.msrb.mxu0 %v6978_v31  ;;  %v6981_v60 = vld [vmem:[#allocation6 + $0xe8] sm:$0xff] }
 0x37c   :  { %9751 = vst [vmem:[#allocation40_spill] sm:$0xff] %v6966_v55  ;;  %1975 = vmatpush.msrb.mxu2 %v6981_v60  ;;  %v6984_v55 = vld [vmem:[#allocation6 + $0x370] sm:$0xff] }
 0x37d   :  { %9752 = vst [vmem:[#allocation42_spill] sm:$0xff] %v6969_v63  ;;  %2031 = vmatpush.msra.mxu1 %v6984_v55  ;;  %v6987_v63 = vld [vmem:[#allocation6 + $0x378] sm:$0xff] }
 0x37e   :  { %9753 = vst [vmem:[#allocation43_spill] sm:$0xff] %v6972_v58  ;;  %2071 = vmatpush.msra.mxu3 %v6987_v63  ;;  %v6990_v58 = vld [vmem:[#allocation6 + $0xc0] sm:$0xff] }
 0x37f   :  { %9754 = vst [vmem:[#allocation68_spill] sm:$0xff] %v6975_v62  ;;  %1936 = vmatpush.msrb.mxu0 %v6990_v58  ;;  %v6993_v62 = vld [vmem:[#allocation6 + $0xc8] sm:$0xff] }
 0x380   :  { %9755 = vst [vmem:[#allocation69_spill] sm:$0xff] %v6978_v31  ;;  %1976 = vmatpush.msrb.mxu2 %v6993_v62  ;;  %v6996_v31 = vld [vmem:[#allocation6 + $0x350] sm:$0xff] }
 0x381   :  { %9756 = vst [vmem:[#allocation72_spill] sm:$0xff] %v6981_v60  ;;  %2032 = vmatpush.msra.mxu1 %v6996_v31  ;;  %v6999_v60 = vld [vmem:[#allocation6 + $0x358] sm:$0xff] }
 0x382   :  { %9757 = vst [vmem:[#allocation73_spill] sm:$0xff] %v6984_v55  ;;  %2072 = vmatpush.msra.mxu3 %v6999_v60  ;;  %v7002_v55 = vld [vmem:[#allocation6 + $0xa0] sm:$0xff] }
 0x383   :  { %9758 = vst [vmem:[#allocation76_spill] sm:$0xff] %v6987_v63  ;;  %1937 = vmatpush.msrb.mxu0 %v7002_v55  ;;  %v7005_v63 = vld [vmem:[#allocation6 + $0xa8] sm:$0xff] }
 0x384   :  { %9759 = vst [vmem:[#allocation77_spill] sm:$0xff] %v6990_v58  ;;  %1977 = vmatpush.msrb.mxu2 %v7005_v63  ;;  %v7008_v58 = vld [vmem:[#allocation6 + $0x330] sm:$0xff] }
 0x385   :  { %9760 = vst [vmem:[#allocation80_spill] sm:$0xff] %v6993_v62  ;;  %2033 = vmatpush.msra.mxu1 %v7008_v58  ;;  %v7011_v62 = vld [vmem:[#allocation6 + $0x338] sm:$0xff] }
 0x386   :  { %9761 = vst [vmem:[#allocation81_spill] sm:$0xff] %v6996_v31  ;;  %2073 = vmatpush.msra.mxu3 %v7011_v62  ;;  %v7014_v31 = vld [vmem:[#allocation6 + $0x80] sm:$0xff] }
 0x387   :  { %9762 = vst [vmem:[#allocation84_spill] sm:$0xff] %v6999_v60  ;;  %1938 = vmatpush.msrb.mxu0 %v7014_v31  ;;  %v7017_v60 = vld [vmem:[#allocation6 + $0x88] sm:$0xff] }
 0x388   :  { %9763 = vst [vmem:[#allocation85_spill] sm:$0xff] %v7002_v55  ;;  %1978 = vmatpush.msrb.mxu2 %v7017_v60  ;;  %v7020_v55 = vld [vmem:[#allocation6 + $0x310] sm:$0xff] }
 0x389   :  { %9764 = vst [vmem:[#allocation88_spill] sm:$0xff] %v7005_v63  ;;  %2034 = vmatpush.msra.mxu1 %v7020_v55  ;;  %v7023_v63 = vld [vmem:[#allocation6 + $0x318] sm:$0xff] }
 0x38a   :  { %9765 = vst [vmem:[#allocation89_spill] sm:$0xff] %v7008_v58  ;;  %2074 = vmatpush.msra.mxu3 %v7023_v63  ;;  %v7026_v58 = vld [vmem:[#allocation6 + $0x60] sm:$0xff] }
 0x38b   :  { %9766 = vst [vmem:[#allocation92_spill] sm:$0xff] %v7011_v62  ;;  %1939 = vmatpush.msrb.mxu0 %v7026_v58  ;;  %v7029_v62 = vld [vmem:[#allocation6 + $0x68] sm:$0xff] }
 0x38c   :  { %9767 = vst [vmem:[#allocation93_spill] sm:$0xff] %v7014_v31  ;;  %1979 = vmatpush.msrb.mxu2 %v7029_v62  ;;  %v7032_v31 = vld [vmem:[#allocation6 + $0x2f0] sm:$0xff] }
 0x38d   :  { %9768 = vst [vmem:[#allocation94_spill] sm:$0xff] %v7017_v60  ;;  %2035 = vmatpush.msra.mxu1 %v7032_v31  ;;  %v7035_v60 = vld [vmem:[#allocation6 + $0x2f8] sm:$0xff] }
 0x38e   :  { %9769 = vst [vmem:[#allocation95_spill] sm:$0xff] %v7020_v55  ;;  %2075 = vmatpush.msra.mxu3 %v7035_v60  ;;  %v7038_v55 = vld [vmem:[#allocation6 + $0x40] sm:$0xff] }
 0x38f   :  { %9770 = vst [vmem:[#allocation96_spill] sm:$0xff] %v7023_v63  ;;  %1940 = vmatpush.msrb.mxu0 %v7038_v55  ;;  %v7041_v63 = vld [vmem:[#allocation6 + $0x48] sm:$0xff] }
 0x390   :  { %9771 = vst [vmem:[#allocation97_spill] sm:$0xff] %v7026_v58  ;;  %1980 = vmatpush.msrb.mxu2 %v7041_v63  ;;  %v7044_v58 = vld [vmem:[#allocation6 + $0x2d0] sm:$0xff] }
 0x391   :  { %9772 = vst [vmem:[#allocation98_spill] sm:$0xff] %v7029_v62  ;;  %2036 = vmatpush.msra.mxu1 %v7044_v58  ;;  %v7047_v62 = vld [vmem:[#allocation6 + $0x2d8] sm:$0xff] }
 0x392   :  { %9773 = vst [vmem:[#allocation99_spill] sm:$0xff] %v7032_v31  ;;  %2076 = vmatpush.msra.mxu3 %v7047_v62  ;;  %v7050_v31 = vld [vmem:[#allocation6 + $0x20] sm:$0xff] }
 0x393   :  { %9774 = vst [vmem:[#allocation100_spill] sm:$0xff] %v7035_v60  ;;  %1941 = vmatpush.msrb.mxu0 %v7050_v31  ;;  %v7053_v60 = vld [vmem:[#allocation6 + $0x28] sm:$0xff] }
 0x394   :  { %9775 = vst [vmem:[#allocation101_spill] sm:$0xff] %v7038_v55  ;;  %1981 = vmatpush.msrb.mxu2 %v7053_v60  ;;  %v7056_v55 = vld [vmem:[#allocation6 + $0x2b0] sm:$0xff] }
 0x395   :  { %9776 = vst [vmem:[#allocation102_spill] sm:$0xff] %v7041_v63  ;;  %2037 = vmatpush.msra.mxu1 %v7056_v55  ;;  %v7059_v63 = vld [vmem:[#allocation6 + $0x2b8] sm:$0xff] }
 0x396   :  { %9777 = vst [vmem:[#allocation103_spill] sm:$0xff] %v7044_v58  ;;  %2077 = vmatpush.msra.mxu3 %v7059_v63  ;;  %v7062_v58 = vld [vmem:[#allocation6] sm:$0xff] }
 0x397   :  { %9778 = vst [vmem:[#allocation104_spill] sm:$0xff] %v7047_v62  ;;  %1942 = vmatpush.msrb.mxu0 %v7062_v58  ;;  %v7065_v62 = vld [vmem:[#allocation6 + $0x8] sm:$0xff] }
 0x398   :  { %9779 = vst [vmem:[#allocation105_spill] sm:$0xff] %v7050_v31  ;;  %1982 = vmatpush.msrb.mxu2 %v7065_v62  ;;  %v7068_v31 = vld [vmem:[#allocation6 + $0x290] sm:$0xff] }
 0x399   :  { %9780 = vst [vmem:[#allocation106_spill] sm:$0xff] %v7053_v60  ;;  %2038 = vmatpush.msra.mxu1 %v7068_v31  ;;  %v7071_v60 = vld [vmem:[#allocation6 + $0x298] sm:$0xff] }
 0x39a   :  { %9781 = vst [vmem:[#allocation107_spill] sm:$0xff] %v7056_v55  ;;  %2078 = vmatpush.msra.mxu3 %v7071_v60  ;;  %v7074_v55 = vld [vmem:[#allocation6 + $0x1f0] sm:$0xff] }
 0x39b   :  { %9782 = vst [vmem:[#allocation108_spill] sm:$0xff] %v7059_v63  ;;  %2007 = vmatpush.msra.mxu0 %v7074_v55  ;;  %v7077_v63 = vld [vmem:[#allocation6 + $0x1f8] sm:$0xff] }
 0x39c   :  { %9783 = vst [vmem:[#allocation109_spill] sm:$0xff] %v7062_v58  ;;  %2047 = vmatpush.msra.mxu2 %v7077_v63  ;;  %v7080_v58 = vld [vmem:[#allocation6 + $0x270] sm:$0xff] }
 0x39d   :  { %9784 = vst [vmem:[#allocation110_spill] sm:$0xff] %v7065_v62  ;;  %2039 = vmatpush.msra.mxu1 %v7080_v58  ;;  %v7083_v62 = vld [vmem:[#allocation6 + $0x278] sm:$0xff] }
 0x39e   :  { %9785 = vst [vmem:[#allocation111_spill] sm:$0xff] %v7068_v31  ;;  %2079 = vmatpush.msra.mxu3 %v7083_v62  ;;  %v7086_v31 = vld [vmem:[#allocation6 + $0x1d0] sm:$0xff] }
 0x39f   :  { %9786 = vst [vmem:[#allocation112_spill] sm:$0xff] %v7071_v60  ;;  %2008 = vmatpush.msra.mxu0 %v7086_v31  ;;  %v7089_v60 = vld [vmem:[#allocation6 + $0x1d8] sm:$0xff] }
 0x3a0   :  { %9787 = vst [vmem:[#allocation113_spill] sm:$0xff] %v7074_v55  ;;  %2048 = vmatpush.msra.mxu2 %v7089_v60  ;;  %v7092_v55 = vld [vmem:[#allocation6 + $0x250] sm:$0xff] }
 0x3a1   :  { %9788 = vst [vmem:[#allocation114_spill] sm:$0xff] %v7077_v63  ;;  %2040 = vmatpush.msra.mxu1 %v7092_v55  ;;  %v7095_v63 = vld [vmem:[#allocation6 + $0x258] sm:$0xff] }
 0x3a2   :  { %9789 = vst [vmem:[#allocation115_spill] sm:$0xff] %v7080_v58  ;;  %2080 = vmatpush.msra.mxu3 %v7095_v63  ;;  %v7098_v58 = vld [vmem:[#allocation6 + $0x1b0] sm:$0xff] }
 0x3a3   :  { %9790 = vst [vmem:[#allocation116_spill] sm:$0xff] %v7083_v62  ;;  %2009 = vmatpush.msra.mxu0 %v7098_v58  ;;  %v7101_v62 = vld [vmem:[#allocation6 + $0x1b8] sm:$0xff] }
 0x3a4   :  { %9791 = vst [vmem:[#allocation117_spill] sm:$0xff] %v7086_v31  ;;  %2049 = vmatpush.msra.mxu2 %v7101_v62  ;;  %v7104_v31 = vld [vmem:[#allocation6 + $0x230] sm:$0xff] }
 0x3a5   :  { %9792 = vst [vmem:[#allocation118_spill] sm:$0xff] %v7089_v60  ;;  %2041 = vmatpush.msra.mxu1 %v7104_v31  ;;  %v7107_v60 = vld [vmem:[#allocation6 + $0x238] sm:$0xff] }
 0x3a6   :  { %9793 = vst [vmem:[#allocation119_spill] sm:$0xff] %v7092_v55  ;;  %2081 = vmatpush.msra.mxu3 %v7107_v60  ;;  %v7110_v55 = vld [vmem:[#allocation6 + $0x190] sm:$0xff] }
 0x3a7   :  { %9794 = vst [vmem:[#allocation120_spill] sm:$0xff] %v7095_v63  ;;  %2010 = vmatpush.msra.mxu0 %v7110_v55  ;;  %v7113_v63 = vld [vmem:[#allocation6 + $0x198] sm:$0xff] }
 0x3a8   :  { %9795 = vst [vmem:[#allocation121_spill] sm:$0xff] %v7098_v58  ;;  %2050 = vmatpush.msra.mxu2 %v7113_v63  ;;  %v7116_v58 = vld [vmem:[#allocation6 + $0x210] sm:$0xff] }
 0x3a9   :  { %9796 = vst [vmem:[#allocation122_spill] sm:$0xff] %v7101_v62  ;;  %2042 = vmatpush.msra.mxu1 %v7116_v58  ;;  %v7119_v62 = vld [vmem:[#allocation6 + $0x218] sm:$0xff] }
 0x3aa   :  { %9797 = vst [vmem:[#allocation123_spill] sm:$0xff] %v7104_v31  ;;  %2082 = vmatpush.msra.mxu3 %v7119_v62  ;;  %v7122_v31 = vld [vmem:[#allocation6 + $0x170] sm:$0xff] }
 0x3ab   :  { %9798 = vst [vmem:[#allocation124_spill] sm:$0xff] %v7107_v60  ;;  %2011 = vmatpush.msra.mxu0 %v7122_v31  ;;  %v7125_v60 = vld [vmem:[#allocation6 + $0x178] sm:$0xff] }
 0x3ac   :  { %9799 = vst [vmem:[#allocation125_spill] sm:$0xff] %v7110_v55  ;;  %2051 = vmatpush.msra.mxu2 %v7125_v60  ;;  %v7128_v55 = vld [vmem:[#allocation6 + $0x150] sm:$0xff] }
 0x3ad   :  { %9800 = vst [vmem:[#allocation126_spill] sm:$0xff] %v7113_v63  ;;  %2012 = vmatpush.msra.mxu0 %v7128_v55  ;;  %v7131_v63 = vld [vmem:[#allocation6 + $0x158] sm:$0xff] }
 0x3ae   :  { %9801 = vst [vmem:[#allocation127_spill] sm:$0xff] %v7116_v58  ;;  %2052 = vmatpush.msra.mxu2 %v7131_v63  ;;  %v7134_v58 = vld [vmem:[#allocation6 + $0x130] sm:$0xff] }
 0x3af   :  { %9802 = vst [vmem:[#allocation128_spill] sm:$0xff] %v7119_v62  ;;  %2013 = vmatpush.msra.mxu0 %v7134_v58  ;;  %v7137_v62 = vld [vmem:[#allocation6 + $0x138] sm:$0xff] }
 0x3b0   :  { %9803 = vst [vmem:[#allocation129_spill] sm:$0xff] %v7122_v31  ;;  %2053 = vmatpush.msra.mxu2 %v7137_v62  ;;  %v7140_v31 = vld [vmem:[#allocation6 + $0x110] sm:$0xff] }
 0x3b1   :  { %9804 = vst [vmem:[#allocation130_spill] sm:$0xff] %v7125_v60  ;;  %2014 = vmatpush.msra.mxu0 %v7140_v31  ;;  %v7143_v60 = vld [vmem:[#allocation6 + $0x118] sm:$0xff] }
 0x3b2   :  { %9805 = vst [vmem:[#allocation131_spill] sm:$0xff] %v7128_v55  ;;  %2054 = vmatpush.msra.mxu2 %v7143_v60  ;;  %v7146_v55 = vld [vmem:[#allocation6 + $0xf0] sm:$0xff] }
 0x3b3   :  { %9806 = vst [vmem:[#allocation132_spill] sm:$0xff] %v7131_v63  ;;  %2015 = vmatpush.msra.mxu0 %v7146_v55  ;;  %v7149_v63 = vld [vmem:[#allocation6 + $0xf8] sm:$0xff] }
 0x3b4   :  { %9807 = vst [vmem:[#allocation133_spill] sm:$0xff] %v7134_v58  ;;  %2055 = vmatpush.msra.mxu2 %v7149_v63  ;;  %v7152_v58 = vld [vmem:[#allocation6 + $0xd0] sm:$0xff] }
 0x3b5   :  { %9808 = vst [vmem:[#allocation134_spill] sm:$0xff] %v7137_v62  ;;  %2016 = vmatpush.msra.mxu0 %v7152_v58  ;;  %v7155_v62 = vld [vmem:[#allocation6 + $0xd8] sm:$0xff]  ;;  %v1562_v59 = vpop.f32.mrf.mxu0 }
 0x3b6   :  { %9809 = vst [vmem:[#allocation135_spill] sm:$0xff] %v7140_v31  ;;  %2056 = vmatpush.msra.mxu2 %v7155_v62  ;;  %v7158_v31 = vld [vmem:[#allocation6 + $0xb0] sm:$0xff] }
 0x3b7   :  { %9810 = vst [vmem:[#allocation136_spill] sm:$0xff] %v7143_v60  ;;  %2017 = vmatpush.msra.mxu0 %v7158_v31  ;;  %v7161_v60 = vld [vmem:[#allocation6 + $0xb8] sm:$0xff] }
 0x3b8   :  { %9811 = vst [vmem:[#allocation137_spill] sm:$0xff] %v7146_v55  ;;  %2057 = vmatpush.msra.mxu2 %v7161_v60  ;;  %v7164_v55 = vld [vmem:[#allocation6 + $0x90] sm:$0xff] }
 0x3b9   :  { %9812 = vst [vmem:[#allocation138_spill] sm:$0xff] %v7149_v63  ;;  %2018 = vmatpush.msra.mxu0 %v7164_v55  ;;  %v7167_v63 = vld [vmem:[#allocation6 + $0x98] sm:$0xff] }
 0x3ba   :  { %9813 = vst [vmem:[#allocation139_spill] sm:$0xff] %v7152_v58  ;;  %2058 = vmatpush.msra.mxu2 %v7167_v63  ;;  %v7170_v58 = vld [vmem:[#allocation6 + $0x70] sm:$0xff] }
 0x3bb   :  { %9814 = vst [vmem:[#allocation140_spill] sm:$0xff] %v7155_v62  ;;  %2019 = vmatpush.msra.mxu0 %v7170_v58  ;;  %v7173_v62 = vld [vmem:[#allocation6 + $0x78] sm:$0xff] }
 0x3bc   :  { %9815 = vst [vmem:[#allocation141_spill] sm:$0xff] %v7158_v31  ;;  %2059 = vmatpush.msra.mxu2 %v7173_v62  ;;  %v7176_v31 = vld [vmem:[#allocation6 + $0x50] sm:$0xff] }
 0x3bd   :  { %9816 = vst [vmem:[#allocation142_spill] sm:$0xff] %v7161_v60  ;;  %2020 = vmatpush.msra.mxu0 %v7176_v31  ;;  %v7179_v60 = vld [vmem:[#allocation6 + $0x58] sm:$0xff] }
 0x3be   :  { %9817 = vst [vmem:[#allocation143_spill] sm:$0xff] %v7164_v55  ;;  %2060 = vmatpush.msra.mxu2 %v7179_v60  ;;  %v7182_v55 = vld [vmem:[#allocation6 + $0x30] sm:$0xff]  ;;  %v1642_v30 = vpop.f32.mrf.mxu0 }
 0x3bf   :  { %9818 = vst [vmem:[#allocation144_spill] sm:$0xff] %v7167_v63  ;;  %2021 = vmatpush.msra.mxu0 %v7182_v55  ;;  %v7185_v63 = vld [vmem:[#allocation6 + $0x38] sm:$0xff] }
 0x3c0   :  { %9819 = vst [vmem:[#allocation145_spill] sm:$0xff] %v7170_v58  ;;  %2061 = vmatpush.msra.mxu2 %v7185_v63  ;;  %v7188_v58 = vld [vmem:[#allocation6 + $0x10] sm:$0xff] }
 0x3c1   :  { %9820 = vst [vmem:[#allocation146_spill] sm:$0xff] %v7173_v62  ;;  %2022 = vmatpush.msra.mxu0 %v7188_v58  ;;  %v7191_v62 = vld [vmem:[#allocation6 + $0x18] sm:$0xff] }
 0x3c2   :  { %9821 = vst [vmem:[#allocation147_spill] sm:$0xff] %v7176_v31  ;;  %2062 = vmatpush.msra.mxu2 %v7191_v62  ;;  %v1582_v31 = vpop.f32.mrf.mxu1 }
 0x3c3   :  { %9822 = vst [vmem:[#allocation148_spill] sm:$0xff] %v7179_v60  ;;  %v1563_v60 = vadd.f32 %v1562_v59, %v9679_v44 }
 0x3c4   :  { %9823 = vst [vmem:[#allocation149_spill] sm:$0xff] %v7182_v55  ;;  %v1602_v55 = vpop.f32.mrf.mxu2 }
 0x3c5   :  { %9824 = vst [vmem:[#allocation150_spill] sm:$0xff] %v7185_v63  ;;  %v1583_v41 = vadd.f32 %v1582_v31, %v1563_v60  ;;  %v1603_v15 = vadd.f32 %v1602_v55, %v9680_v21  ;;  %v1622_v63 = vpop.f32.mrf.mxu3 }
 0x3c6   :  { %9825 = vst [vmem:[#allocation151_spill] sm:$0xff] %v7188_v58  ;;  %v1772_v58 = vld [vmem:[%s8673_s0 + $0x88] sm:$0xff] }
 0x3c7   :  { %9826 = vst [vmem:[#allocation152_spill] sm:$0xff] %v7191_v62  ;;  %v3330_v32 = vmul.f32 -1.442695, %v1583_v41  ;;  %v1623_v2 = vadd.f32 %v1622_v63, %v1603_v15  ;;  %v1643_v62 = vadd.f32 %v1642_v30, %v9681_v49 }
 0x3c9   :  { %3473 = vpow2.f32 %v3330_v32  ;;  %v3331_v48 = vmul.f32 -1.442695, %v1623_v2 }
 0x3ca   :  { %v1662_v39 = vpop.f32.mrf.mxu1 }
 0x3cb   :  { %v1663_v59 = vadd.f32 %v1662_v39, %v1643_v62  ;;  %3475 = vpow2.f32 %v3331_v48 }
 0x3cc   :  { %v1682_v21 = vpop.f32.mrf.mxu2 }
 0x3cd   :  { %v3332_v60 = vmul.f32 -1.442695, %v1663_v59  ;;  %v1683_v30 = vadd.f32 %v1682_v21, %v9682_v17  ;;  %v1702_v48 = vpop.f32.mrf.mxu3  ;;  %v1771_v21 = vld [vmem:[%s8673_s0 + $0x80] sm:$0xff] }
 0x3cf   :  { %v3474_v44 = vpop.eup %3473 }
 0x3d0   :  { %v1714_v41 = vadd.f32 1.0, %v3474_v44  ;;  %v1703_v44 = vadd.f32 %v1702_v48, %v1683_v30 }
 0x3d1   :  { %v3476_v55 = vpop.eup %3475 }
 0x3d2   :  { %v1813_v36 = vpop.f32.mrf.mxu1  ;;  %3477 = vrcp.f32 %v1714_v41  ;;  %v1715_v31 = vadd.f32 1.0, %v3476_v55  ;;  %vm1722_vm5 = vweird.f32 %v1714_v41  ;;  %v1726_v49 = vand.u32 2147483647, %v1714_v41 }
 0x3d3   :  { %v1857_v26 = vadd.f32 %v1813_v36, %v1772_v58  ;;  %3479 = vpow2.f32 %v3332_v60 }
 0x3d4   :  { %vm1737_vm8 = vweird.f32 %v1715_v31  ;;  %vm1727_vm9 = vcmp.eq.f32.partialorder %v1726_v49, 8.507059e+37 }
 0x3d5   :  { %v3334_v32 = vmul.f32 -1.442695, %v1857_v26 }
 0x3d7   :  { %3481 = vpow2.f32 %v3334_v32  ;;  %v1728_v32 = vand.u32 2147483648, %v1714_v41 }
 0x3d8   :  { %v3478_v22 = vpop.eup %3477  ;;  %3483 = vrcp.f32 %v1715_v31 }
 0x3d9   :  { %v3480_v15 = vpop.eup %3479  ;;  %v1718_v63 = vmul.f32 %v3478_v22, %v1714_v41  ;;  %vm1723_vm4 = vweird.f32 %v3478_v22 }
 0x3da   :  { %v7201_v2 = vadd.f32 1.0, %v3480_v15  ;;  %vm7210_vm6 = vmor %vm1722_vm5, %vm1723_vm4 }
 0x3db   :  { %v1719_v39 = vsub.f32 1.0, %v1718_v63  ;;  %v1743_v63 = vand.u32 2147483648, %v1715_v31 }
 0x3dc   :  { %3485 = vrcp.f32 %v7201_v2  ;;  %vm1752_vm13 = vweird.f32 %v7201_v2 }
 0x3dd   :  { %v3482_v36 = vpop.eup %3481  ;;  %v1720_v26 = vmul.f32 %v3478_v22, %v1719_v39  ;;  %3487 = vtanh.f32 %v1703_v44  ;;  %v1793_v44 = vpop.f32.mrf.mxu0  ;;  %v1744_v53 = vor.u32 1.1754944e-38, %v1743_v63 }
 0x3de   :  { %v3484_v58 = vpop.eup %3483  ;;  %v7204_v62 = vadd.f32 1.0, %v3482_v36  ;;  %v1741_v36 = vand.u32 2147483647, %v1715_v31 }
 0x3df   :  { %v1733_v59 = vmul.f32 %v3484_v58, %v1715_v31  ;;  %v1721_v60 = vadd.f32 %v3478_v22, %v1720_v26  ;;  %vm1738_vm7 = vweird.f32 %v3484_v58  ;;  %v1729_v26 = vor.u32 1.1754944e-38, %v1728_v32  ;;  %v1833_v32 = vpop.f32.mrf.mxu2 }
 0x3e0   :  { %3489 = vrcp.f32 %v7204_v62  ;;  %vm1739_vm10 = vmor %vm1737_vm8, %vm1738_vm7  ;;  %vm1742_vm11 = vcmp.eq.f32.partialorder %v1741_v36, 8.507059e+37  ;;  %vm1892_vm1 = vweird.f32 %v7204_v62 }
 0x3e1   :  { %v1734_v55 = vsub.f32 1.0, %v1733_v59  ;;  %v1725_v41 = vsel %vm7210_vm6, %v3478_v22, %v1721_v60  ;;  %v1856_v59 = vadd.f32 %v1793_v44, %v1771_v21  ;;  %v1773_v22 = vld [vmem:[%s8673_s0 + $0x90] sm:$0xff] }
 0x3e2   :  { %v3486_v15 = vpop.eup %3485  ;;  %v1730_v54 = vsel %vm1727_vm9, %v1729_v26, %v1725_v41  ;;  %v1858_v63 = vadd.f32 %v1833_v32, %v1773_v22  ;;  %v1853_v41 = vpop.f32.mrf.mxu3 }
 0x3e3   :  { %v1735_v39 = vmul.f32 %v3484_v58, %v1734_v55  ;;  %v1748_v48 = vmul.f32 %v3486_v15, %v7201_v2  ;;  %v3333_v45 = vmul.f32 -1.442695, %v1856_v59  ;;  %v3488_v24 = vpop.eup %3487  ;;  %vm1753_vm12 = vweird.f32 %v3486_v15 }
 0x3e4   :  { %v1765_v49 = vmul.f32 %v3488_v24, %v1730_v54  ;;  %vm1754_vm14 = vmor %vm1752_vm13, %vm1753_vm12 }
 0x3e5   :  { %v1749_v17 = vsub.f32 1.0, %v1748_v48  ;;  %v1736_v3 = vadd.f32 %v3484_v58, %v1735_v39  ;;  %3491 = vpow2.f32 %v3333_v45  ;;  %v1758_v45 = vand.u32 2147483648, %v7201_v2  ;;  %v1774_v48 = vld [vmem:[%s8673_s0 + $0x98] sm:$0xff] }
 0x3e6   :  { %v7217_v55 = vpop.eup %3489 }
 0x3e7   :  { %v1740_v52 = vsel %vm1739_vm10, %v3484_v58, %v1736_v3  ;;  %v1750_v60 = vmul.f32 %v3486_v15, %v1749_v17  ;;  %v1888_v3 = vmul.f32 %v7217_v55, %v7204_v62  ;;  %v1756_v17 = vand.u32 2147483647, %v7201_v2 }
 0x3e8   :  { %v1745_v28 = vsel %vm1742_vm11, %v1744_v53, %v1740_v52  ;;  %v3335_v52 = vmul.f32 -1.442695, %v1858_v63  ;;  %v1759_v54 = vor.u32 1.1754944e-38, %v1758_v45  ;;  %vm1893_vm0 = vweird.f32 %v7217_v55 }
 0x3e9   :  { %v1764_v31 = vmul.f32 %v1745_v28, %v6464_v50  ;;  %v1751_v58 = vadd.f32 %v3486_v15, %v1750_v60  ;;  %v1889_v28 = vsub.f32 1.0, %v1888_v3  ;;  %vm1757_vm15 = vcmp.eq.f32.partialorder %v1756_v17, 8.507059e+37  ;;  %vm7247_vm2 = vmor %vm1892_vm1, %vm1893_vm0 }
 0x3eb   :  { %v7223_v21 = vadd.f32 %v1765_v49, %v1764_v31  ;;  %v3492_v53 = vpop.eup %3491  ;;  %v1755_v24 = vsel %vm1754_vm14, %v3486_v15, %v1751_v58  ;;  %v1890_v39 = vmul.f32 %v7217_v55, %v1889_v28  ;;  %v1859_v15 = vadd.f32 %v1853_v41, %v1774_v48  ;;  %v7396_v28 = vld [vmem:[%s8674_s1 + $0x110] sm:$0xff]  ;;  %v9838_v41 = vld [vmem:[#allocation48_spill] sm:$0xff] }
 0x3ec   :  { %v1869_v50 = vadd.f32 1.0, %v3492_v53  ;;  %v1760_v36 = vsel %vm1757_vm15, %v1759_v54, %v1755_v24  ;;  %v1898_v31 = vand.u32 2147483648, %v7204_v62  ;;  %v1896_v49 = vand.u32 2147483647, %v7204_v62  ;;  %v9834_v24 = vld [vmem:[#allocation45_spill] sm:$0xff]  ;;  %v9837_v48 = vld [vmem:[#allocation55_spill] sm:$0xff] }
 0x3ed   :  { %3493 = vtanh.f32 %v7223_v21  ;;  %v1891_v22 = vadd.f32 %v7217_v55, %v1890_v39  ;;  %v7403_v54 = vld [vmem:[%s8674_s1 + $0xe0] sm:$0xff]  ;;  %v9836_v39 = vld [vmem:[#allocation46_spill] sm:$0xff] }
 0x3ee   :  { %3495 = vpow2.f32 %v3335_v52  ;;  %v1883_v32 = vand.u32 2147483648, %v1869_v50  ;;  %v1881_v63 = vand.u32 2147483647, %v1869_v50  ;;  %v1899_v3 = vor.u32 1.1754944e-38, %v1898_v31  ;;  %v9846_v31 = vld [vmem:[#allocation56_spill] sm:$0xff] }
 0x3ef   :  { %3497 = vrcp.f32 %v1869_v50  ;;  %vm1897_vm4 = vcmp.eq.f32.partialorder %v1896_v49, 8.507059e+37  ;;  %vm1877_vm5 = vweird.f32 %v1869_v50  ;;  %v9847_v49 = vld [vmem:[#allocation64_spill] sm:$0xff] }
 0x3f0   :  { %vm1882_vm7 = vcmp.eq.f32.partialorder %v1881_v63, 8.507059e+37  ;;  %v9853_v63 = vld [vmem:[#allocation60_spill] sm:$0xff] }
 0x3f3   :  { %v3494_v30 = vpop.eup %3493 }
 0x3f4   :  { %v1768_v44 = vmul.f32 %v3494_v30, %v1760_v36  ;;  %v3496_v26 = vpop.eup %3495  ;;  %v9835_v30 = vld [vmem:[#allocation54_spill] sm:$0xff]  ;;  %v7410_v36 = vld [vmem:[%s8674_s1 + $0xf0] sm:$0xff] }
 0x3f5   :  { %v7235_v2 = vadd.f32 1.0, %v3496_v26  ;;  %v3498_v59 = vpop.eup %3497  ;;  %v9840_v26 = vld [vmem:[#allocation50_spill] sm:$0xff] }
 0x3f6   :  { %1963 = vmatmul.f32.vlgmr.msrb.gmra.mxu1 %v1768_v44  ;;  %2003 = vmatmul.f32.vlgmr.msrb.gmra.mxu3 %v1768_v44  ;;  %v1873_v60 = vmul.f32 %v3498_v59, %v1869_v50  ;;  %vm1878_vm3 = vweird.f32 %v3498_v59 }
 0x3f7   :  { %2178 = vmatpush.msrb.mxu1 %v6484_v13  ;;  %2218 = vmatpush.msrb.mxu3 %v6490_v46  ;;  %3499 = vrcp.f32 %v7235_v2  ;;  %vm1879_vm6 = vmor %vm1877_vm5, %vm1878_vm3  ;;  %vm1907_vm9 = vweird.f32 %v7235_v2  ;;  %v9849_v46 = vld [vmem:[#allocation58_spill] sm:$0xff] }
 0x3f8   :  { %v1874_v13 = vsub.f32 1.0, %v1873_v60  ;;  %3501 = vtanh.f32 %v1859_v15  ;;  %v9843_v15 = vld [vmem:[#allocation61_spill] sm:$0xff]  ;;  %v9845_v60 = vld [vmem:[#allocation63_spill] sm:$0xff] }
 0x3f9   :  { %2179 = vmatpush.msrb.mxu1 %v6501_v38  ;;  %2219 = vmatpush.msrb.mxu3 %v6507_v37  ;;  %v1895_v38 = vsel %vm7247_vm2, %v7217_v55, %v1891_v22  ;;  %v9844_v22 = vld [vmem:[#allocation53_spill] sm:$0xff] }
 0x3fa   :  { %v1875_v37 = vmul.f32 %v3498_v59, %v1874_v13  ;;  %v9848_v13 = vld [vmem:[#allocation9_spill] sm:$0xff] }
 0x3fb   :  { %2180 = vmatpush.msrb.mxu1 %v6520_v9  ;;  %2220 = vmatpush.msrb.mxu3 %v6526_v47  ;;  %v1900_v9 = vsel %vm1897_vm4, %v1899_v3, %v1895_v38  ;;  %v1884_v47 = vor.u32 1.1754944e-38, %v1883_v32  ;;  %v9850_v32 = vld [vmem:[#allocation10_spill] sm:$0xff]  ;;  %v9851_v38 = vld [vmem:[#allocation65_spill] sm:$0xff]  ;;  %v9854_v3 = vld [vmem:[#allocation12_spill] sm:$0xff] }
 0x3fc   :  { %v1876_v58 = vadd.f32 %v3498_v59, %v1875_v37  ;;  %v1919_v53 = vmul.f32 %v1900_v9, %v6584_v43  ;;  %v9852_v37 = vld [vmem:[#allocation11_spill] sm:$0xff]  ;;  %v9857_v9 = vld [vmem:[#allocation62_spill] sm:$0xff] }
 0x3fd   :  { %2181 = vmatpush.msrb.mxu1 %v6536_v23  ;;  %2221 = vmatpush.msrb.mxu3 %v6542_v19  ;;  %v3500_v62 = vpop.eup %3499 }
 0x3fe   :  { %2043 = vmatmul.f32.vlgmr.msra.gmra.mxu1 %v1768_v44  ;;  %2083 = vmatmul.f32.vlgmr.msra.gmra.mxu3 %v1768_v44  ;;  %v1903_v52 = vmul.f32 %v3500_v62, %v7235_v2  ;;  %v1880_v55 = vsel %vm1879_vm6, %v3498_v59, %v1876_v58  ;;  %v3502_v23 = vpop.eup %3501  ;;  %vm1908_vm8 = vweird.f32 %v3500_v62  ;;  %v9839_v44 = vld [vmem:[#allocation57_spill] sm:$0xff]  ;;  %v9842_v59 = vld [vmem:[#allocation52_spill] sm:$0xff] }
 0x3ff   :  { %2182 = vmatpush.msrb.mxu1 %v6550_v14  ;;  %2222 = vmatpush.msrb.mxu3 %v6556_v10  ;;  %v1885_v45 = vsel %vm1882_vm7, %v1884_v47, %v1880_v55  ;;  %vm1909_vm10 = vmor %vm1907_vm9, %vm1908_vm8  ;;  %v9856_v58 = vld [vmem:[#allocation13_spill] sm:$0xff]  ;;  %v9858_v47 = vld [vmem:[#allocation14_spill] sm:$0xff] }
 0x400   :  { %v1904_v19 = vsub.f32 1.0, %v1903_v52  ;;  %v1920_v17 = vmul.f32 %v3502_v23, %v1885_v45  ;;  %v9859_v52 = vld [vmem:[#allocation67_spill] sm:$0xff]  ;;  %v9861_v23 = vld [vmem:[#allocation70_spill] sm:$0xff]  ;;  %v9862_v45 = vld [vmem:[#allocation16_spill] sm:$0xff] }
 0x401   :  { %2183 = vmatpush.msrb.mxu1 %v6562_v7  ;;  %2223 = vmatpush.msrb.mxu3 %v6568_v4  ;;  %v1913_v7 = vand.u32 2147483648, %v7235_v2  ;;  %v1911_v4 = vand.u32 2147483647, %v7235_v2  ;;  %v9841_v2 = vld [vmem:[#allocation59_spill] sm:$0xff] }
 0x402   :  { %v1905_v50 = vmul.f32 %v3500_v62, %v1904_v19  ;;  %v7266_v14 = vadd.f32 %v1920_v17, %v1919_v53  ;;  %v9860_v55 = vld [vmem:[#allocation15_spill] sm:$0xff]  ;;  %v9864_v53 = vld [vmem:[#allocation17_spill] sm:$0xff]  ;;  %v9865_v17 = vld [vmem:[#allocation74_spill] sm:$0xff] }
 0x403   :  { %2184 = vmatpush.msrb.mxu1 %v6575_v18  ;;  %2224 = vmatpush.msrb.mxu3 %v6581_v16  ;;  %v1914_v16 = vor.u32 1.1754944e-38, %v1913_v7  ;;  %vm1912_vm11 = vcmp.eq.f32.partialorder %v1911_v4, 8.507059e+37  ;;  %v9863_v19 = vld [vmem:[#allocation71_spill] sm:$0xff]  ;;  %v9869_v4 = vld [vmem:[#allocation78_spill] sm:$0xff] }
 0x404   :  { %v1906_v10 = vadd.f32 %v3500_v62, %v1905_v50  ;;  %3503 = vtanh.f32 %v7266_v14  ;;  %v9866_v50 = vld [vmem:[#allocation18_spill] sm:$0xff]  ;;  %v9868_v7 = vld [vmem:[#allocation19_spill] sm:$0xff] }
 0x405   :  { %2185 = vmatpush.msrb.mxu1 %v6589_v42  ;;  %2225 = vmatpush.msrb.mxu3 %v6595_v35 }
 0x406   :  { %v1910_v18 = vsel %vm1909_vm10, %v3500_v62, %v1906_v10  ;;  %v9855_v62 = vld [vmem:[#allocation66_spill] sm:$0xff]  ;;  %v9867_v10 = vld [vmem:[#allocation75_spill] sm:$0xff] }
 0x407   :  { %2186 = vmatpush.msrb.mxu1 %v6605_v61  ;;  %2226 = vmatpush.msrb.mxu3 %v6611_v34  ;;  %v1915_v42 = vsel %vm1912_vm11, %v1914_v16, %v1910_v18  ;;  %v7289_v61 = vld [vmem:[%s8674_s1 + $0x1e0] sm:$0xff]  ;;  %v7295_v34 = vld [vmem:[%s8674_s1 + $0x1f0] sm:$0xff]  ;;  %v9870_v18 = vld [vmem:[#allocation20_spill] sm:$0xff] }
 0x408   :  { %v9871_v16 = vld [vmem:[#allocation79_spill] sm:$0xff] }
 0x409   :  { %2187 = vmatpush.msrb.mxu1 %v6617_v6  ;;  %2227 = vmatpush.msrb.mxu3 %v6623_v57  ;;  %v7303_v6 = vld [vmem:[%s8674_s1 + $0x1c0] sm:$0xff]  ;;  %v7309_v57 = vld [vmem:[%s8674_s1 + $0x1d0] sm:$0xff] }
 0x40a   :  { %v3504_v43 = vpop.eup %3503 }
 0x40b   :  { %2188 = vmatpush.msrb.mxu1 %v6629_v8  ;;  %2228 = vmatpush.msrb.mxu3 %v6635_v20  ;;  %v7280_v35 = vmul.f32 %v3504_v43, %v1915_v42  ;;  %v7317_v8 = vld [vmem:[%s8674_s1 + $0x1a0] sm:$0xff]  ;;  %v7323_v20 = vld [vmem:[%s8674_s1 + $0x1b0] sm:$0xff]  ;;  %v9873_v42 = vld [vmem:[#allocation82_spill] sm:$0xff] }
 0x40c   :  { %v9872_v43 = vld [vmem:[#allocation21_spill] sm:$0xff] }
 0x40d   :  { %2189 = vmatpush.msrb.mxu1 %v6643_v1  ;;  %2229 = vmatpush.msrb.mxu3 %v6649_v29  ;;  %v7331_v1 = vld [vmem:[%s8674_s1 + $0x180] sm:$0xff]  ;;  %v7337_v29 = vld [vmem:[%s8674_s1 + $0x190] sm:$0xff] }
 0x40e   :  { %1943 = vmatmul.f32.vlgmr.msrb.gmra.mxu0 %v7280_v35  ;;  %1983 = vmatmul.f32.vlgmr.msrb.gmra.mxu2 %v7280_v35 }
 0x40f   :  { %2158 = vmatpush.msrb.mxu0 %v7289_v61  ;;  %2198 = vmatpush.msrb.mxu2 %v7295_v34 }
 0x410   :  { %2190 = vmatpush.msrb.mxu1 %v6659_v5  ;;  %2230 = vmatpush.msrb.mxu3 %v6665_v11  ;;  %v7347_v5 = vld [vmem:[%s8674_s1 + $0x160] sm:$0xff]  ;;  %v7354_v11 = vld [vmem:[%s8674_s1 + $0x170] sm:$0xff] }
 0x411   :  { %2159 = vmatpush.msrb.mxu0 %v7303_v6  ;;  %2199 = vmatpush.msrb.mxu2 %v7309_v57 }
 0x412   :  { %2191 = vmatpush.msrb.mxu1 %v6673_v51  ;;  %2231 = vmatpush.msrb.mxu3 %v6679_v27  ;;  %v7361_v51 = vld [vmem:[%s8674_s1 + $0x140] sm:$0xff]  ;;  %v7368_v27 = vld [vmem:[%s8674_s1 + $0x150] sm:$0xff] }
 0x413   :  { %2160 = vmatpush.msrb.mxu0 %v7317_v8  ;;  %2200 = vmatpush.msrb.mxu2 %v7323_v20 }
 0x414   :  { %2192 = vmatpush.msrb.mxu1 %v6687_v25  ;;  %2232 = vmatpush.msrb.mxu3 %v6693_v33  ;;  %v7375_v25 = vld [vmem:[%s8674_s1 + $0x120] sm:$0xff] }
 0x415   :  { %2161 = vmatpush.msrb.mxu0 %v7331_v1  ;;  %2201 = vmatpush.msrb.mxu2 %v7337_v29  ;;  %v9831_v33 = vld [vmem:[#allocation41_spill] sm:$0xff] }
 0x416   :  { %2193 = vmatpush.msrb.mxu1 %v6701_v0  ;;  %2233 = vmatpush.msrb.mxu3 %v6707_v40  ;;  %v7382_v0 = vld [vmem:[%s8674_s1 + $0x130] sm:$0xff] }
 0x417   :  { %2023 = vmatmul.f32.vlgmr.msra.gmra.mxu0 %v7280_v35  ;;  %2063 = vmatmul.f32.vlgmr.msra.gmra.mxu2 %v7280_v35  ;;  %v9832_v40 = vld [vmem:[#allocation51_spill] sm:$0xff] }
 0x418   :  { %2162 = vmatpush.msrb.mxu0 %v7347_v5  ;;  %2194 = vmatmul.f32.vlgmr.msrb.gmra.mxu1 %v7280_v35 }
 0x419   :  { %2202 = vmatpush.msrb.mxu2 %v7354_v11  ;;  %2234 = vmatmul.f32.vlgmr.msrb.gmra.mxu3 %v7280_v35 }
 0x41a   :  { %2163 = vmatpush.msrb.mxu0 %v7361_v51  ;;  %2329 = vmatpush.msra.mxu1 %v6717_v12  ;;  %v7389_v12 = vld [vmem:[%s8674_s1 + $0x100] sm:$0xff] }
 0x41b   :  { %2203 = vmatpush.msrb.mxu2 %v7368_v27  ;;  %2369 = vmatpush.msra.mxu3 %v6721_v56  ;;  %v9833_v56 = vld [vmem:[#allocation44_spill] sm:$0xff] }
 0x41c   :  { %2164 = vmatpush.msrb.mxu0 %v7375_v25  ;;  %2330 = vmatpush.msra.mxu1 %v9831_v33  ;;  %v9875_v33 = vld [vmem:[#allocation23_spill] sm:$0xff] }
 0x41d   :  { %2204 = vmatpush.msrb.mxu2 %v7382_v0  ;;  %2370 = vmatpush.msra.mxu3 %v9832_v40  ;;  %v9876_v40 = vld [vmem:[#allocation24_spill] sm:$0xff] }
 0x41e   :  { %2165 = vmatpush.msrb.mxu0 %v7389_v12  ;;  %2331 = vmatpush.msra.mxu1 %v9833_v56  ;;  %v9877_v56 = vld [vmem:[#allocation83_spill] sm:$0xff] }
 0x41f   :  { %2205 = vmatpush.msrb.mxu2 %v7396_v28  ;;  %2371 = vmatpush.msra.mxu3 %v9834_v24  ;;  %v9878_v24 = vld [vmem:[#allocation25_spill] sm:$0xff] }
 0x420   :  { %2166 = vmatpush.msrb.mxu0 %v7403_v54  ;;  %2332 = vmatpush.msra.mxu1 %v9835_v30  ;;  %v9879_v30 = vld [vmem:[#allocation86_spill] sm:$0xff] }
 0x421   :  { %2206 = vmatpush.msrb.mxu2 %v7410_v36  ;;  %2372 = vmatpush.msra.mxu3 %v9836_v39  ;;  %v9880_v39 = vld [vmem:[#allocation26_spill] sm:$0xff] }
 0x422   :  { %2167 = vmatpush.msrb.mxu0 %v9837_v48  ;;  %2333 = vmatpush.msra.mxu1 %v9838_v41  ;;  %v9881_v48 = vld [vmem:[#allocation87_spill] sm:$0xff] }
 0x423   :  { %2207 = vmatpush.msrb.mxu2 %v9839_v44  ;;  %2373 = vmatpush.msra.mxu3 %v9840_v26  ;;  %v9882_v41 = vld [vmem:[#allocation27_spill] sm:$0xff]  ;;  %v9883_v44 = vld [vmem:[#allocation90_spill] sm:$0xff]  ;;  %v9884_v26 = vld [vmem:[#allocation28_spill] sm:$0xff] }
 0x424   :  { %2168 = vmatpush.msrb.mxu0 %v9841_v2  ;;  %2334 = vmatpush.msra.mxu1 %v9842_v59  ;;  %v9885_v2 = vld [vmem:[#allocation91_spill] sm:$0xff]  ;;  %v9886_v59 = vld [vmem:[#allocation29_spill] sm:$0xff] }
 0x425   :  { %2208 = vmatpush.msrb.mxu2 %v9843_v15  ;;  %2374 = vmatpush.msra.mxu3 %v9844_v22  ;;  %v9887_v15 = vld [vmem:[#allocation30_spill] sm:$0xff]  ;;  %v9888_v22 = vld [vmem:[#allocation31_spill] sm:$0xff] }
 0x426   :  { %2169 = vmatpush.msrb.mxu0 %v9845_v60  ;;  %2335 = vmatpush.msra.mxu1 %v9846_v31  ;;  %v9889_v60 = vld [vmem:[#allocation32_spill] sm:$0xff]  ;;  %v9890_v31 = vld [vmem:[#allocation33_spill] sm:$0xff] }
 0x427   :  { %2209 = vmatpush.msrb.mxu2 %v9847_v49  ;;  %2375 = vmatpush.msra.mxu3 %v9848_v13  ;;  %v9891_v49 = vld [vmem:[#allocation34_spill] sm:$0xff]  ;;  %v9892_v13 = vld [vmem:[#allocation36_spill] sm:$0xff] }
 0x428   :  { %2170 = vmatpush.msrb.mxu0 %v9849_v46  ;;  %2336 = vmatpush.msra.mxu1 %v9850_v32  ;;  %v9893_v46 = vld [vmem:[#allocation37_spill] sm:$0xff]  ;;  %v9894_v32 = vld [vmem:[#allocation39_spill] sm:$0xff] }
 0x429   :  { %2210 = vmatpush.msrb.mxu2 %v9851_v38  ;;  %2376 = vmatpush.msra.mxu3 %v9852_v37  ;;  %v9895_v38 = vld [vmem:[#allocation40_spill] sm:$0xff]  ;;  %v9896_v37 = vld [vmem:[#allocation42_spill] sm:$0xff] }
 0x42a   :  { %2171 = vmatpush.msrb.mxu0 %v9853_v63  ;;  %2337 = vmatpush.msra.mxu1 %v9854_v3  ;;  %v9897_v63 = vld [vmem:[#allocation43_spill] sm:$0xff]  ;;  %v9898_v3 = vld [vmem:[#allocation68_spill] sm:$0xff] }
 0x42b   :  { %2211 = vmatpush.msrb.mxu2 %v9855_v62  ;;  %2377 = vmatpush.msra.mxu3 %v9856_v58  ;;  %v9899_v62 = vld [vmem:[#allocation69_spill] sm:$0xff]  ;;  %v9900_v58 = vld [vmem:[#allocation72_spill] sm:$0xff] }
 0x42c   :  { %2172 = vmatpush.msrb.mxu0 %v9857_v9  ;;  %2338 = vmatpush.msra.mxu1 %v9858_v47  ;;  %v9901_v9 = vld [vmem:[#allocation73_spill] sm:$0xff]  ;;  %v9902_v47 = vld [vmem:[#allocation76_spill] sm:$0xff] }
 0x42d   :  { %2212 = vmatpush.msrb.mxu2 %v9859_v52  ;;  %2378 = vmatpush.msra.mxu3 %v9860_v55  ;;  %v9903_v52 = vld [vmem:[#allocation77_spill] sm:$0xff]  ;;  %v9904_v55 = vld [vmem:[#allocation80_spill] sm:$0xff] }
 0x42e   :  { %2173 = vmatpush.msrb.mxu0 %v9861_v23  ;;  %2339 = vmatpush.msra.mxu1 %v9862_v45  ;;  %v9905_v23 = vld [vmem:[#allocation81_spill] sm:$0xff]  ;;  %v9906_v45 = vld [vmem:[#allocation84_spill] sm:$0xff] }
 0x42f   :  { %2213 = vmatpush.msrb.mxu2 %v9863_v19  ;;  %2174 = vmatmul.f32.vlgmr.msrb.gmra.mxu0 %v7280_v35  ;;  %v9907_v19 = vld [vmem:[#allocation85_spill] sm:$0xff] }
 0x430   :  { %2214 = vmatmul.f32.vlgmr.msrb.gmra.mxu2 %v7280_v35  ;;  %2379 = vmatpush.msra.mxu3 %v9864_v53  ;;  %v9874_v35 = vld [vmem:[#allocation22_spill] sm:$0xff]  ;;  %v9908_v53 = vld [vmem:[#allocation88_spill] sm:$0xff] }
 0x431   :  { %2340 = vmatpush.msra.mxu1 %v9865_v17  ;;  %2309 = vmatpush.msra.mxu0 %v9866_v50  ;;  %v9909_v17 = vld [vmem:[#allocation89_spill] sm:$0xff]  ;;  %v9910_v50 = vld [vmem:[#allocation92_spill] sm:$0xff] }
 0x432   :  { %2380 = vmatpush.msra.mxu3 %v9867_v10  ;;  %2349 = vmatpush.msra.mxu2 %v9868_v7  ;;  %v9911_v10 = vld [vmem:[#allocation93_spill] sm:$0xff]  ;;  %v9912_v7 = vld [vmem:[#allocation94_spill] sm:$0xff] }
 0x433   :  { %2341 = vmatpush.msra.mxu1 %v9869_v4  ;;  %2310 = vmatpush.msra.mxu0 %v9870_v18  ;;  %v9913_v4 = vld [vmem:[#allocation95_spill] sm:$0xff]  ;;  %v9914_v18 = vld [vmem:[#allocation96_spill] sm:$0xff] }
 0x434   :  { %2381 = vmatpush.msra.mxu3 %v9871_v16  ;;  %2350 = vmatpush.msra.mxu2 %v9872_v43  ;;  %v9915_v16 = vld [vmem:[#allocation97_spill] sm:$0xff]  ;;  %v9916_v43 = vld [vmem:[#allocation98_spill] sm:$0xff] }
 0x435   :  { %2342 = vmatpush.msra.mxu1 %v9873_v42  ;;  %2311 = vmatpush.msra.mxu0 %v9874_v35  ;;  %v9917_v42 = vld [vmem:[#allocation99_spill] sm:$0xff]  ;;  %v9918_v35 = vld [vmem:[#allocation100_spill] sm:$0xff] }
 0x436   :  { %2382 = vmatpush.msra.mxu3 %v9875_v33  ;;  %2351 = vmatpush.msra.mxu2 %v9876_v40  ;;  %v9919_v33 = vld [vmem:[#allocation101_spill] sm:$0xff]  ;;  %v9920_v40 = vld [vmem:[#allocation102_spill] sm:$0xff] }
 0x437   :  { %2343 = vmatpush.msra.mxu1 %v9877_v56  ;;  %2312 = vmatpush.msra.mxu0 %v9878_v24  ;;  %v9921_v56 = vld [vmem:[#allocation103_spill] sm:$0xff]  ;;  %v9922_v24 = vld [vmem:[#allocation104_spill] sm:$0xff] }
 0x438   :  { %2383 = vmatpush.msra.mxu3 %v9879_v30  ;;  %2352 = vmatpush.msra.mxu2 %v9880_v39  ;;  %v9923_v30 = vld [vmem:[#allocation105_spill] sm:$0xff]  ;;  %v9924_v39 = vld [vmem:[#allocation106_spill] sm:$0xff] }
 0x439   :  { %2344 = vmatpush.msra.mxu1 %v9881_v48  ;;  %2313 = vmatpush.msra.mxu0 %v9882_v41  ;;  %v9925_v48 = vld [vmem:[#allocation107_spill] sm:$0xff]  ;;  %v9926_v41 = vld [vmem:[#allocation108_spill] sm:$0xff] }
 0x43a   :  { %2384 = vmatpush.msra.mxu3 %v9883_v44  ;;  %2353 = vmatpush.msra.mxu2 %v9884_v26  ;;  %v9927_v44 = vld [vmem:[#allocation109_spill] sm:$0xff]  ;;  %v9928_v26 = vld [vmem:[#allocation110_spill] sm:$0xff] }
 0x43b   :  { %2409 = vmatpush.msrb.mxu1 %v9885_v2  ;;  %2314 = vmatpush.msra.mxu0 %v9887_v15  ;;  %v9929_v2 = vld [vmem:[#allocation111_spill] sm:$0xff]  ;;  %v9931_v15 = vld [vmem:[#allocation113_spill] sm:$0xff] }
 0x43c   :  { %2449 = vmatpush.msrb.mxu3 %v9886_v59  ;;  %2354 = vmatpush.msra.mxu2 %v9888_v22  ;;  %v9930_v59 = vld [vmem:[#allocation112_spill] sm:$0xff]  ;;  %v9932_v22 = vld [vmem:[#allocation114_spill] sm:$0xff] }
 0x43d   :  { %2410 = vmatpush.msrb.mxu1 %v9889_v60  ;;  %2315 = vmatpush.msra.mxu0 %v9891_v49  ;;  %v9933_v60 = vld [vmem:[#allocation115_spill] sm:$0xff]  ;;  %v9935_v49 = vld [vmem:[#allocation117_spill] sm:$0xff] }
 0x43e   :  { %2450 = vmatpush.msrb.mxu3 %v9890_v31  ;;  %2355 = vmatpush.msra.mxu2 %v9892_v13  ;;  %v9934_v31 = vld [vmem:[#allocation116_spill] sm:$0xff]  ;;  %v9936_v13 = vld [vmem:[#allocation118_spill] sm:$0xff] }
 0x43f   :  { %2411 = vmatpush.msrb.mxu1 %v9893_v46  ;;  %2316 = vmatpush.msra.mxu0 %v9895_v38  ;;  %v9937_v46 = vld [vmem:[#allocation119_spill] sm:$0xff]  ;;  %v9939_v38 = vld [vmem:[#allocation121_spill] sm:$0xff] }
 0x440   :  { %2451 = vmatpush.msrb.mxu3 %v9894_v32  ;;  %2356 = vmatpush.msra.mxu2 %v9896_v37  ;;  %v9938_v32 = vld [vmem:[#allocation120_spill] sm:$0xff]  ;;  %v9940_v37 = vld [vmem:[#allocation122_spill] sm:$0xff] }
 0x441   :  { %2412 = vmatpush.msrb.mxu1 %v9897_v63  ;;  %2317 = vmatpush.msra.mxu0 %v9899_v62  ;;  %v9941_v63 = vld [vmem:[#allocation123_spill] sm:$0xff]  ;;  %v9943_v62 = vld [vmem:[#allocation125_spill] sm:$0xff] }
 0x442   :  { %2452 = vmatpush.msrb.mxu3 %v9898_v3  ;;  %2357 = vmatpush.msra.mxu2 %v9900_v58  ;;  %v9942_v3 = vld [vmem:[#allocation124_spill] sm:$0xff]  ;;  %v9944_v58 = vld [vmem:[#allocation126_spill] sm:$0xff] }
 0x443   :  { %2413 = vmatpush.msrb.mxu1 %v9901_v9  ;;  %2318 = vmatpush.msra.mxu0 %v9903_v52  ;;  %v9945_v9 = vld [vmem:[#allocation127_spill] sm:$0xff]  ;;  %v9947_v52 = vld [vmem:[#allocation129_spill] sm:$0xff] }
 0x444   :  { %2453 = vmatpush.msrb.mxu3 %v9902_v47  ;;  %2358 = vmatpush.msra.mxu2 %v9904_v55  ;;  %v9946_v47 = vld [vmem:[#allocation128_spill] sm:$0xff]  ;;  %v9948_v55 = vld [vmem:[#allocation130_spill] sm:$0xff] }
 0x445   :  { %2414 = vmatpush.msrb.mxu1 %v9905_v23  ;;  %2319 = vmatpush.msra.mxu0 %v9907_v19  ;;  %v9949_v23 = vld [vmem:[#allocation131_spill] sm:$0xff]  ;;  %v9951_v19 = vld [vmem:[#allocation133_spill] sm:$0xff] }
 0x446   :  { %2454 = vmatpush.msrb.mxu3 %v9906_v45  ;;  %2359 = vmatpush.msra.mxu2 %v9908_v53  ;;  %v9950_v45 = vld [vmem:[#allocation132_spill] sm:$0xff]  ;;  %v9952_v53 = vld [vmem:[#allocation134_spill] sm:$0xff] }
 0x447   :  { %2415 = vmatpush.msrb.mxu1 %v9909_v17  ;;  %2320 = vmatpush.msra.mxu0 %v9911_v10  ;;  %v9953_v17 = vld [vmem:[#allocation135_spill] sm:$0xff]  ;;  %v9955_v10 = vld [vmem:[#allocation137_spill] sm:$0xff] }
 0x448   :  { %2455 = vmatpush.msrb.mxu3 %v9910_v50  ;;  %2360 = vmatpush.msra.mxu2 %v9912_v7  ;;  %v9954_v50 = vld [vmem:[#allocation136_spill] sm:$0xff]  ;;  %v9956_v7 = vld [vmem:[#allocation138_spill] sm:$0xff] }
 0x449   :  { %2416 = vmatpush.msrb.mxu1 %v9913_v4  ;;  %2321 = vmatpush.msra.mxu0 %v9915_v16  ;;  %v9957_v4 = vld [vmem:[#allocation139_spill] sm:$0xff]  ;;  %v9959_v16 = vld [vmem:[#allocation141_spill] sm:$0xff] }
 0x44a   :  { %2456 = vmatpush.msrb.mxu3 %v9914_v18  ;;  %2361 = vmatpush.msra.mxu2 %v9916_v43  ;;  %v9958_v18 = vld [vmem:[#allocation140_spill] sm:$0xff]  ;;  %v9960_v43 = vld [vmem:[#allocation142_spill] sm:$0xff] }
 0x44b   :  { %2417 = vmatpush.msrb.mxu1 %v9917_v42  ;;  %2322 = vmatpush.msra.mxu0 %v9919_v33  ;;  %v9961_v42 = vld [vmem:[#allocation143_spill] sm:$0xff]  ;;  %v9963_v33 = vld [vmem:[#allocation145_spill] sm:$0xff] }
 0x44c   :  { %2457 = vmatpush.msrb.mxu3 %v9918_v35  ;;  %2362 = vmatpush.msra.mxu2 %v9920_v40  ;;  %v9962_v35 = vld [vmem:[#allocation144_spill] sm:$0xff]  ;;  %v9964_v40 = vld [vmem:[#allocation146_spill] sm:$0xff] }
 0x44d   :  { %2418 = vmatpush.msrb.mxu1 %v9921_v56  ;;  %2323 = vmatpush.msra.mxu0 %v9923_v30  ;;  %v9965_v56 = vld [vmem:[#allocation147_spill] sm:$0xff]  ;;  %v9967_v30 = vld [vmem:[#allocation149_spill] sm:$0xff] }
 0x44e   :  { %2458 = vmatpush.msrb.mxu3 %v9922_v24  ;;  %2363 = vmatpush.msra.mxu2 %v9924_v39  ;;  %v9966_v24 = vld [vmem:[#allocation148_spill] sm:$0xff]  ;;  %v9968_v39 = vld [vmem:[#allocation150_spill] sm:$0xff] }
 0x44f   :  { %2419 = vmatpush.msrb.mxu1 %v9925_v48  ;;  %2324 = vmatpush.msra.mxu0 %v9927_v44  ;;  %v9969_v48 = vld [vmem:[#allocation151_spill] sm:$0xff] }
 0x450   :  { %2459 = vmatpush.msrb.mxu3 %v9926_v41  ;;  %2364 = vmatpush.msra.mxu2 %v9928_v26  ;;  %v9970_v41 = vld [vmem:[#allocation152_spill] sm:$0xff] }
 0x451   :  { %2420 = vmatpush.msrb.mxu1 %v9929_v2  ;;  %2389 = vmatpush.msrb.mxu0 %v9931_v15  ;;  %v9971_v2 = vld [vmem:[#allocation35_spill] sm:$0xff] }
 0x452   :  { %2460 = vmatpush.msrb.mxu3 %v9930_v59  ;;  %2429 = vmatpush.msrb.mxu2 %v9932_v22 }
 0x453   :  { %2421 = vmatpush.msrb.mxu1 %v9933_v60  ;;  %2390 = vmatpush.msrb.mxu0 %v9935_v49  ;;  %v9972_v49 = vld [vmem:[#allocation47_spill] sm:$0xff] }
 0x454   :  { %2461 = vmatpush.msrb.mxu3 %v9934_v31  ;;  %2430 = vmatpush.msrb.mxu2 %v9936_v13 }
 0x455   :  { %2422 = vmatpush.msrb.mxu1 %v9937_v46  ;;  %2391 = vmatpush.msrb.mxu0 %v9939_v38 }
 0x456   :  { %2462 = vmatpush.msrb.mxu3 %v9938_v32  ;;  %2431 = vmatpush.msrb.mxu2 %v9940_v37  ;;  %v2154_v32 = vld [vmem:[%s8673_s0 + $0xa8] sm:$0xff] }
 0x457   :  { %2423 = vmatpush.msrb.mxu1 %v9941_v63  ;;  %2392 = vmatpush.msrb.mxu0 %v9943_v62  ;;  %v9973_v63 = vld [vmem:[#allocation38_spill] sm:$0xff] }
 0x458   :  { %2463 = vmatpush.msrb.mxu3 %v9942_v3  ;;  %2432 = vmatpush.msrb.mxu2 %v9944_v58 }
 0x459   :  { %2424 = vmatpush.msrb.mxu1 %v9945_v9  ;;  %2393 = vmatpush.msrb.mxu0 %v9947_v52 }
 0x45a   :  { %2464 = vmatpush.msrb.mxu3 %v9946_v47  ;;  %2433 = vmatpush.msrb.mxu2 %v9948_v55 }
 0x45b   :  { %2394 = vmatpush.msrb.mxu0 %v9949_v23 }
 0x45c   :  { %2434 = vmatpush.msrb.mxu2 %v9950_v45 }
 0x45d   :  { %2395 = vmatpush.msrb.mxu0 %v9951_v19 }
 0x45e   :  { %2435 = vmatpush.msrb.mxu2 %v9952_v53 }
 0x45f   :  { %2396 = vmatpush.msrb.mxu0 %v9953_v17 }
 0x460   :  { %2436 = vmatpush.msrb.mxu2 %v9954_v50 }
 0x461   :  { %2397 = vmatpush.msrb.mxu0 %v9955_v10 }
 0x462   :  { %2437 = vmatpush.msrb.mxu2 %v9956_v7 }
 0x463   :  { %2398 = vmatpush.msrb.mxu0 %v9957_v4  ;;  %v9974_v4 = vld [vmem:[#allocation49_spill] sm:$0xff] }
 0x464   :  { %2438 = vmatpush.msrb.mxu2 %v9958_v18 }
 0x465   :  { %2399 = vmatpush.msrb.mxu0 %v9959_v16 }
 0x466   :  { %2439 = vmatpush.msrb.mxu2 %v9960_v43 }
 0x467   :  { %2400 = vmatpush.msrb.mxu0 %v9961_v42 }
 0x468   :  { %2440 = vmatpush.msrb.mxu2 %v9962_v35 }
 0x469   :  { %2401 = vmatpush.msrb.mxu0 %v9963_v33 }
 0x46a   :  { %2441 = vmatpush.msrb.mxu2 %v9964_v40 }
 0x46b   :  { %2402 = vmatpush.msrb.mxu0 %v9965_v56 }
 0x46c   :  { %2442 = vmatpush.msrb.mxu2 %v9966_v24 }
 0x46d   :  { %2403 = vmatpush.msrb.mxu0 %v9967_v30 }
 0x46e   :  { %2443 = vmatpush.msrb.mxu2 %v9968_v39 }
 0x46f   :  { %2404 = vmatpush.msrb.mxu0 %v9969_v48 }
 0x470   :  { %2444 = vmatpush.msrb.mxu2 %v9970_v41 }
 0x473   :  { %v1964_v44 = vpop.f32.mrf.mxu1 }
 0x479   :  { %v2004_v46 = vpop.f32.mrf.mxu3 }
 0x47b   :  { %v2044_v15 = vpop.f32.mrf.mxu1 }
 0x481   :  { %v2084_v35 = vpop.f32.mrf.mxu3 }
 0x48b   :  { %v1944_v26 = vpop.f32.mrf.mxu0 }
 0x48c   :  { %v1945_v59 = vadd.f32 %v1944_v26, %v9971_v2  ;;  %v2153_v26 = vld [vmem:[%s8673_s0 + $0xa0] sm:$0xff] }
 0x48e   :  { %v1965_v22 = vadd.f32 %v1964_v44, %v1945_v59 }
 0x490   :  { %v3336_v60 = vmul.f32 -1.442695, %v1965_v22 }
 0x491   :  { %v1984_v31 = vpop.f32.mrf.mxu2 }
 0x492   :  { %3505 = vpow2.f32 %v3336_v60  ;;  %v1985_v13 = vadd.f32 %v1984_v31, %v9972_v49 }
 0x494   :  { %v2005_v38 = vadd.f32 %v2004_v46, %v1985_v13  ;;  %v2024_v37 = vpop.f32.mrf.mxu0 }
 0x495   :  { %v2025_v3 = vadd.f32 %v2024_v37, %v9973_v63  ;;  %v2195_v62 = vpop.f32.mrf.mxu1 }
 0x496   :  { %v3337_v58 = vmul.f32 -1.442695, %v2005_v38  ;;  %v2239_v9 = vadd.f32 %v2195_v62, %v2154_v32 }
 0x497   :  { %v2045_v47 = vadd.f32 %v2044_v15, %v2025_v3 }
 0x498   :  { %v3506_v52 = vpop.eup %3505  ;;  %3507 = vpow2.f32 %v3337_v58  ;;  %v3340_v45 = vmul.f32 -1.442695, %v2239_v9 }
 0x499   :  { %v2096_v55 = vadd.f32 1.0, %v3506_v52  ;;  %v3338_v23 = vmul.f32 -1.442695, %v2045_v47 }
 0x49a   :  { %v2064_v17 = vpop.f32.mrf.mxu2 }
 0x49b   :  { %3509 = vrcp.f32 %v2096_v55  ;;  %v2065_v18 = vadd.f32 %v2064_v17, %v9974_v4  ;;  %v2110_v48 = vand.u32 2147483648, %v2096_v55  ;;  %vm2104_vm13 = vweird.f32 %v2096_v55 }
 0x49c   :  { %3511 = vpow2.f32 %v3338_v23  ;;  %v2108_v44 = vand.u32 2147483647, %v2096_v55  ;;  %v2235_v22 = vpop.f32.mrf.mxu3 }
 0x49d   :  { %3513 = vpow2.f32 %v3340_v45  ;;  %v2085_v33 = vadd.f32 %v2084_v35, %v2065_v18  ;;  %v2111_v38 = vor.u32 1.1754944e-38, %v2110_v48 }
 0x49e   :  { %v3508_v19 = vpop.eup %3507  ;;  %vm2109_vm1 = vcmp.eq.f32.partialorder %v2108_v44, 8.507059e+37 }
 0x49f   :  { %v2097_v53 = vadd.f32 1.0, %v3508_v19  ;;  %v2155_v19 = vld [vmem:[%s8673_s0 + $0xb0] sm:$0xff] }
 0x4a1   :  { %v3510_v50 = vpop.eup %3509  ;;  %3515 = vrcp.f32 %v2097_v53  ;;  %v2125_v15 = vand.u32 2147483648, %v2097_v53  ;;  %v2123_v60 = vand.u32 2147483647, %v2097_v53  ;;  %vm2119_vm0 = vweird.f32 %v2097_v53 }
 0x4a2   :  { %v3512_v10 = vpop.eup %3511  ;;  %v2100_v7 = vmul.f32 %v3510_v50, %v2096_v55  ;;  %vm2105_vm12 = vweird.f32 %v3510_v50 }
 0x4a3   :  { %v7557_v16 = vadd.f32 1.0, %v3512_v10  ;;  %v3514_v43 = vpop.eup %3513  ;;  %vm7566_vm14 = vmor %vm2104_vm13, %vm2105_vm12  ;;  %v2126_v58 = vor.u32 1.1754944e-38, %v2125_v15  ;;  %vm2124_vm3 = vcmp.eq.f32.partialorder %v2123_v60, 8.507059e+37  ;;  %v2156_v15 = vld [vmem:[%s8673_s0 + $0xb8] sm:$0xff] }
 0x4a4   :  { %v2101_v42 = vsub.f32 1.0, %v2100_v7  ;;  %v7560_v24 = vadd.f32 1.0, %v3514_v43 }
 0x4a5   :  { %3517 = vrcp.f32 %v7557_v16  ;;  %vm2134_vm5 = vweird.f32 %v7557_v16 }
 0x4a6   :  { %v2102_v40 = vmul.f32 %v3510_v50, %v2101_v42  ;;  %3519 = vtanh.f32 %v2085_v33  ;;  %v2140_v33 = vand.u32 2147483648, %v7557_v16  ;;  %vm2274_vm9 = vweird.f32 %v7560_v24 }
 0x4a7   :  { %v3516_v56 = vpop.eup %3515  ;;  %3521 = vrcp.f32 %v7560_v24 }
 0x4a8   :  { %v2115_v30 = vmul.f32 %v3516_v56, %v2097_v53  ;;  %v2103_v39 = vadd.f32 %v3510_v50, %v2102_v40  ;;  %vm2120_vm15 = vweird.f32 %v3516_v56  ;;  %v2141_v48 = vor.u32 1.1754944e-38, %v2140_v33 }
 0x4a9   :  { %vm2121_vm2 = vmor %vm2119_vm0, %vm2120_vm15 }
 0x4aa   :  { %v2116_v41 = vsub.f32 1.0, %v2115_v30  ;;  %v2107_v46 = vsel %vm7566_vm14, %v3510_v50, %v2103_v39 }
 0x4ab   :  { %v3518_v59 = vpop.eup %3517  ;;  %v2112_v9 = vsel %vm2109_vm1, %v2111_v38, %v2107_v46  ;;  %v7599_v46 = vld [vmem:[%s8674_s1 + $0x1e8] sm:$0xff] }
 0x4ac   :  { %v2117_v31 = vmul.f32 %v3516_v56, %v2116_v41  ;;  %v2130_v13 = vmul.f32 %v3518_v59, %v7557_v16  ;;  %v2175_v32 = vpop.f32.mrf.mxu0  ;;  %v3520_v52 = vpop.eup %3519  ;;  %vm2135_vm4 = vweird.f32 %v3518_v59 }
 0x4ad   :  { %v2238_v37 = vadd.f32 %v2175_v32, %v2153_v26  ;;  %v7573_v23 = vpop.eup %3521  ;;  %v2147_v50 = vmul.f32 %v3520_v52, %v2112_v9  ;;  %vm2136_vm6 = vmor %vm2134_vm5, %vm2135_vm4  ;;  %v7605_v32 = vld [vmem:[%s8674_s1 + $0x1f8] sm:$0xff]  ;;  %v2278_v9 = vand.u32 2147483647, %v7560_v24 }
 0x4ae   :  { %v2131_v3 = vsub.f32 1.0, %v2130_v13  ;;  %v2118_v62 = vadd.f32 %v3516_v56, %v2117_v31  ;;  %v2270_v43 = vmul.f32 %v7573_v23, %v7560_v24  ;;  %v2241_v13 = vadd.f32 %v2235_v22, %v2156_v15 }
 0x4af   :  { %v3339_v47 = vmul.f32 -1.442695, %v2238_v37  ;;  %vm2275_vm8 = vweird.f32 %v7573_v23  ;;  %vm2279_vm12 = vcmp.eq.f32.partialorder %v2278_v9, 8.507059e+37  ;;  %v7720_v9 = vld [vmem:[%s8674_s1 + $0xe8] sm:$0xff] }
 0x4b0   :  { %v2122_v55 = vsel %vm2121_vm2, %v3516_v56, %v2118_v62  ;;  %v2132_v17 = vmul.f32 %v3518_v59, %v2131_v3  ;;  %v2271_v30 = vsub.f32 1.0, %v2270_v43  ;;  %v2280_v3 = vand.u32 2147483648, %v7560_v24  ;;  %v7616_v62 = vld [vmem:[%s8674_s1 + $0x1c8] sm:$0xff]  ;;  %vm7627_vm10 = vmor %vm2274_vm9, %vm2275_vm8 }
 0x4b1   :  { %v2127_v45 = vsel %vm2124_vm3, %v2126_v58, %v2122_v55  ;;  %3523 = vpow2.f32 %v3339_v47  ;;  %v7622_v58 = vld [vmem:[%s8674_s1 + $0x1d8] sm:$0xff] }
 0x4b2   :  { %v2146_v53 = vmul.f32 %v2127_v45, %v7223_v21  ;;  %v2133_v42 = vadd.f32 %v3518_v59, %v2132_v17  ;;  %v2138_v21 = vand.u32 2147483647, %v7557_v16  ;;  %v2272_v26 = vmul.f32 %v7573_v23, %v2271_v30  ;;  %v7635_v45 = vld [vmem:[%s8674_s1 + $0x1a8] sm:$0xff] }
 0x4b3   :  { %v2215_v10 = vpop.f32.mrf.mxu2 }
 0x4b4   :  { %v7579_v7 = vadd.f32 %v2147_v50, %v2146_v53  ;;  %v2240_v18 = vadd.f32 %v2215_v10, %v2155_v19  ;;  %v2137_v39 = vsel %vm2136_vm6, %v3518_v59, %v2133_v42  ;;  %vm2139_vm7 = vcmp.eq.f32.partialorder %v2138_v21, 8.507059e+37  ;;  %v7641_v19 = vld [vmem:[%s8674_s1 + $0x1b8] sm:$0xff]  ;;  %v7651_v10 = vld [vmem:[%s8674_s1 + $0x188] sm:$0xff] }
 0x4b5   :  { %v2142_v44 = vsel %vm2139_vm7, %v2141_v48, %v2137_v39  ;;  %v2273_v38 = vadd.f32 %v7573_v23, %v2272_v26  ;;  %v2281_v50 = vor.u32 1.1754944e-38, %v2280_v3  ;;  %v7671_v21 = vld [vmem:[%s8674_s1 + $0x178] sm:$0xff] }
 0x4b6   :  { %3525 = vtanh.f32 %v7579_v7  ;;  %v3341_v35 = vmul.f32 -1.442695, %v2240_v18  ;;  %v7657_v18 = vld [vmem:[%s8674_s1 + $0x198] sm:$0xff] }
 0x4b7   :  { %v3524_v40 = vpop.eup %3523  ;;  %v2277_v24 = vsel %vm7627_vm10, %v7573_v23, %v2273_v38  ;;  %v7710_v38 = vld [vmem:[%s8674_s1 + $0x118] sm:$0xff] }
 0x4b8   :  { %v7587_v56 = vadd.f32 1.0, %v3524_v40  ;;  %3527 = vpow2.f32 %v3341_v35  ;;  %v2282_v42 = vsel %vm2279_vm12, %v2281_v50, %v2277_v24  ;;  %v7665_v40 = vld [vmem:[%s8674_s1 + $0x168] sm:$0xff] }
 0x4b9   :  { %v2301_v26 = vmul.f32 %v2282_v42, %v7266_v14  ;;  %v7704_v14 = vld [vmem:[%s8674_s1 + $0x108] sm:$0xff] }
 0x4ba   :  { %3529 = vrcp.f32 %v7587_v56  ;;  %v2265_v55 = vand.u32 2147483648, %v7587_v56  ;;  %v2263_v53 = vand.u32 2147483647, %v7587_v56  ;;  %vm2259_vm13 = vweird.f32 %v7587_v56  ;;  %v7758_v42 = vld [vmem:[%s8674_s1 + $0x88] sm:$0xff] }
 0x4bc   :  { %v3526_v41 = vpop.eup %3525  ;;  %v2266_v35 = vor.u32 1.1754944e-38, %v2265_v55  ;;  %vm2264_vm15 = vcmp.eq.f32.partialorder %v2263_v53, 8.507059e+37  ;;  %v7738_v55 = vld [vmem:[%s8674_s1 + $0xd8] sm:$0xff] }
 0x4bd   :  { %v2150_v16 = vmul.f32 %v3526_v41, %v2142_v44  ;;  %v7677_v41 = vld [vmem:[%s8674_s1 + $0x148] sm:$0xff]  ;;  %v7683_v44 = vld [vmem:[%s8674_s1 + $0x158] sm:$0xff] }
 0x4be   :  { %v3528_v60 = vpop.eup %3527  ;;  %v7750_v53 = vld [vmem:[%s8674_s1 + $0xb8] sm:$0xff] }
 0x4bf   :  { %v7594_v31 = vadd.f32 1.0, %v3528_v60  ;;  %2345 = vmatmul.f32.vlgmr.msra.gmra.mxu1 %v2150_v16  ;;  %2385 = vmatmul.f32.vlgmr.msra.gmra.mxu3 %v2150_v16  ;;  %v7696_v60 = vld [vmem:[%s8674_s1 + $0x138] sm:$0xff] }
 0x4c0   :  { %v3530_v59 = vpop.eup %3529  ;;  %2560 = vmatpush.msra.mxu1 %v7599_v46  ;;  %2600 = vmatpush.msra.mxu3 %v7605_v32 }
 0x4c1   :  { %v2255_v37 = vmul.f32 %v3530_v59, %v7587_v56  ;;  %3531 = vrcp.f32 %v7594_v31  ;;  %vm2260_vm11 = vweird.f32 %v3530_v59  ;;  %vm2289_vm1 = vweird.f32 %v7594_v31 }
 0x4c2   :  { %2561 = vmatpush.msra.mxu1 %v7616_v62  ;;  %2601 = vmatpush.msra.mxu3 %v7622_v58  ;;  %3533 = vtanh.f32 %v2241_v13  ;;  %vm2261_vm14 = vmor %vm2259_vm13, %vm2260_vm11  ;;  %v2293_v3 = vand.u32 2147483647, %v7594_v31 }
 0x4c3   :  { %v2256_v47 = vsub.f32 1.0, %v2255_v37  ;;  %v2295_v37 = vand.u32 2147483648, %v7594_v31 }
 0x4c4   :  { %2562 = vmatpush.msra.mxu1 %v7635_v45  ;;  %2602 = vmatpush.msra.mxu3 %v7641_v19  ;;  %vm2294_vm3 = vcmp.eq.f32.partialorder %v2293_v3, 8.507059e+37  ;;  %v7920_v3 = vld [vmem:[%s8674_s1 + $0x60] sm:$0xff] }
 0x4c5   :  { %v2257_v17 = vmul.f32 %v3530_v59, %v2256_v47  ;;  %v7726_v47 = vld [vmem:[%s8674_s1 + $0xf8] sm:$0xff]  ;;  %v2296_v24 = vor.u32 1.1754944e-38, %v2295_v37  ;;  %v7914_v37 = vld [vmem:[#allocation6 + $0x328] sm:$0xff]  ;;  %9997 = vst [vmem:[#allocation58_spill] sm:$0xff] %v7920_v3 }
 0x4c6   :  { %2563 = vmatpush.msra.mxu1 %v7651_v10  ;;  %2603 = vmatpush.msra.mxu3 %v7657_v18  ;;  %9996 = vst [vmem:[#allocation9_spill] sm:$0xff] %v7914_v37 }
 0x4c7   :  { %v3532_v23 = vpop.eup %3531  ;;  %v2258_v43 = vadd.f32 %v3530_v59, %v2257_v17  ;;  %2425 = vmatmul.f32.vlgmr.msrb.gmra.mxu1 %v2150_v16  ;;  %2465 = vmatmul.f32.vlgmr.msrb.gmra.mxu3 %v2150_v16  ;;  %v7690_v16 = vld [vmem:[%s8674_s1 + $0x128] sm:$0xff] }
 0x4c8   :  { %v2285_v33 = vmul.f32 %v3532_v23, %v7594_v31  ;;  %2564 = vmatpush.msra.mxu1 %v7665_v40  ;;  %2604 = vmatpush.msra.mxu3 %v7671_v21  ;;  %v3534_v30 = vpop.eup %3533  ;;  %vm2290_vm0 = vweird.f32 %v3532_v23  ;;  %v7732_v31 = vld [vmem:[%s8674_s1 + $0xc8] sm:$0xff] }
 0x4c9   :  { %v2262_v56 = vsel %vm2261_vm14, %v3530_v59, %v2258_v43  ;;  %vm2291_vm2 = vmor %vm2289_vm1, %vm2290_vm0  ;;  %v7744_v17 = vld [vmem:[%s8674_s1 + $0xa8] sm:$0xff] }
 0x4ca   :  { %v2267_v39 = vsel %vm2264_vm15, %v2266_v35, %v2262_v56  ;;  %v2286_v48 = vsub.f32 1.0, %v2285_v33  ;;  %2565 = vmatpush.msra.mxu1 %v7677_v41  ;;  %2605 = vmatpush.msra.mxu3 %v7683_v44  ;;  %v7764_v35 = vld [vmem:[%s8674_s1 + $0x98] sm:$0xff]  ;;  %v7774_v33 = vld [vmem:[%s8674_s1 + $0x68] sm:$0xff] }
 0x4cb   :  { %v2302_v15 = vmul.f32 %v3534_v30, %v2267_v39  ;;  %v7780_v56 = vld [vmem:[%s8674_s1 + $0x78] sm:$0xff]  ;;  %v7884_v30 = vld [vmem:[%s8674_s1 + $0xa0] sm:$0xff] }
 0x4cc   :  { %v2287_v22 = vmul.f32 %v3532_v23, %v2286_v48  ;;  %2566 = vmatpush.msra.mxu1 %v7690_v16  ;;  %2606 = vmatpush.msra.mxu3 %v7696_v60  ;;  %9989 = vst [vmem:[#allocation59_spill] sm:$0xff] %v7884_v30  ;;  %v7887_v39 = vld [vmem:[#allocation6 + $0x340] sm:$0xff]  ;;  %v7893_v48 = vld [vmem:[%s8674_s1 + $0xb0] sm:$0xff] }
 0x4cd   :  { %v7699_v59 = vadd.f32 %v2302_v15, %v2301_v26  ;;  %9990 = vst [vmem:[#allocation52_spill] sm:$0xff] %v7887_v39  ;;  %v7896_v26 = vld [vmem:[#allocation6 + $0x348] sm:$0xff]  ;;  %v7902_v15 = vld [vmem:[%s8674_s1 + $0x80] sm:$0xff] }
 0x4ce   :  { %v2288_v13 = vadd.f32 %v3532_v23, %v2287_v22  ;;  %2567 = vmatpush.msra.mxu1 %v7704_v14  ;;  %2607 = vmatpush.msra.mxu3 %v7710_v38  ;;  %9991 = vst [vmem:[#allocation61_spill] sm:$0xff] %v7893_v48  ;;  %v7905_v22 = vld [vmem:[#allocation6 + $0x320] sm:$0xff] }
 0x4cf   :  { %3535 = vtanh.f32 %v7699_v59  ;;  %9992 = vst [vmem:[#allocation53_spill] sm:$0xff] %v7896_v26 }
 0x4d0   :  { %2568 = vmatpush.msra.mxu1 %v7720_v9  ;;  %2608 = vmatpush.msra.mxu3 %v7726_v47  ;;  %v2292_v52 = vsel %vm2291_vm2, %v3532_v23, %v2288_v13  ;;  %9993 = vst [vmem:[#allocation63_spill] sm:$0xff] %v7902_v15  ;;  %v7911_v13 = vld [vmem:[%s8674_s1 + $0x90] sm:$0xff] }
 0x4d1   :  { %v2297_v23 = vsel %vm2294_vm3, %v2296_v24, %v2292_v52  ;;  %9994 = vst [vmem:[#allocation56_spill] sm:$0xff] %v7905_v22  ;;  %v7923_v52 = vld [vmem:[#allocation6 + $0x300] sm:$0xff]  ;;  %v7929_v24 = vld [vmem:[%s8674_s1 + $0x70] sm:$0xff] }
 0x4d2   :  { %2569 = vmatpush.msra.mxu1 %v7732_v31  ;;  %2609 = vmatpush.msra.mxu3 %v7738_v55  ;;  %9995 = vst [vmem:[#allocation64_spill] sm:$0xff] %v7911_v13 }
 0x4d3   :  { %9998 = vst [vmem:[#allocation10_spill] sm:$0xff] %v7923_v52 }
 0x4d4   :  { %2570 = vmatpush.msra.mxu1 %v7744_v17  ;;  %2610 = vmatpush.msra.mxu3 %v7750_v53  ;;  %9999 = vst [vmem:[#allocation65_spill] sm:$0xff] %v7929_v24 }
 0x4d5   :  { %v3536_v50 = vpop.eup %3535 }
 0x4d6   :  { %v7753_v43 = vmul.f32 %v3536_v50, %v2297_v23  ;;  %2571 = vmatpush.msra.mxu1 %v7758_v42  ;;  %2611 = vmatpush.msra.mxu3 %v7764_v35  ;;  %v7932_v50 = vld [vmem:[#allocation6 + $0x308] sm:$0xff]  ;;  %v7938_v23 = vld [vmem:[%s8674_s1 + $0x40] sm:$0xff] }
 0x4d7   :  { %10000 = vst [vmem:[#allocation11_spill] sm:$0xff] %v7932_v50 }
 0x4d8   :  { %2325 = vmatmul.f32.vlgmr.msra.gmra.mxu0 %v7753_v43  ;;  %2365 = vmatmul.f32.vlgmr.msra.gmra.mxu2 %v7753_v43  ;;  %10001 = vst [vmem:[#allocation60_spill] sm:$0xff] %v7938_v23 }
 0x4d9   :  { %2540 = vmatpush.msra.mxu0 %v7289_v61  ;;  %2580 = vmatpush.msra.mxu2 %v7295_v34  ;;  %v7788_v61 = vld [vmem:[%s8674_s1 + $0x48] sm:$0xff]  ;;  %v7794_v34 = vld [vmem:[%s8674_s1 + $0x58] sm:$0xff] }
 0x4da   :  { %2572 = vmatpush.msra.mxu1 %v7774_v33  ;;  %2612 = vmatpush.msra.mxu3 %v7780_v56 }
 0x4db   :  { %2541 = vmatpush.msra.mxu0 %v7303_v6  ;;  %2581 = vmatpush.msra.mxu2 %v7309_v57  ;;  %v7802_v6 = vld [vmem:[%s8674_s1 + $0x28] sm:$0xff]  ;;  %v7808_v57 = vld [vmem:[%s8674_s1 + $0x38] sm:$0xff] }
 0x4dc   :  { %2573 = vmatpush.msra.mxu1 %v7788_v61  ;;  %2613 = vmatpush.msra.mxu3 %v7794_v34 }
 0x4dd   :  { %2542 = vmatpush.msra.mxu0 %v7317_v8  ;;  %2582 = vmatpush.msra.mxu2 %v7323_v20  ;;  %v7816_v8 = vld [vmem:[%s8674_s1 + $0x8] sm:$0xff]  ;;  %v7822_v20 = vld [vmem:[%s8674_s1 + $0x18] sm:$0xff] }
 0x4de   :  { %2574 = vmatpush.msra.mxu1 %v7802_v6  ;;  %2614 = vmatpush.msra.mxu3 %v7808_v57 }
 0x4df   :  { %2543 = vmatpush.msra.mxu0 %v7331_v1  ;;  %2583 = vmatpush.msra.mxu2 %v7337_v29  ;;  %v7832_v1 = vld [vmem:[#allocation6 + $0x3e0] sm:$0xff]  ;;  %v7836_v29 = vld [vmem:[#allocation6 + $0x3e8] sm:$0xff] }
 0x4e0   :  { %2575 = vmatpush.msra.mxu1 %v7816_v8  ;;  %2615 = vmatpush.msra.mxu3 %v7822_v20 }
 0x4e1   :  { %2405 = vmatmul.f32.vlgmr.msrb.gmra.mxu0 %v7753_v43  ;;  %2445 = vmatmul.f32.vlgmr.msrb.gmra.mxu2 %v7753_v43 }
 0x4e2   :  { %2544 = vmatpush.msra.mxu0 %v7347_v5  ;;  %2576 = vmatmul.f32.vlgmr.msra.gmra.mxu1 %v7753_v43  ;;  %v7840_v5 = vld [vmem:[#allocation6 + $0x3c0] sm:$0xff] }
 0x4e3   :  { %2584 = vmatpush.msra.mxu2 %v7354_v11  ;;  %2616 = vmatmul.f32.vlgmr.msra.gmra.mxu3 %v7753_v43  ;;  %9979 = vst [vmem:[#allocation41_spill] sm:$0xff] %v7840_v5  ;;  %v7844_v11 = vld [vmem:[#allocation6 + $0x3c8] sm:$0xff] }
 0x4e4   :  { %2545 = vmatpush.msra.mxu0 %v7361_v51  ;;  %2711 = vmatpush.msrb.mxu1 %v7832_v1  ;;  %9980 = vst [vmem:[#allocation51_spill] sm:$0xff] %v7844_v11  ;;  %v7848_v51 = vld [vmem:[#allocation6 + $0x3a0] sm:$0xff] }
 0x4e5   :  { %2585 = vmatpush.msra.mxu2 %v7368_v27  ;;  %2751 = vmatpush.msrb.mxu3 %v7836_v29  ;;  %9981 = vst [vmem:[#allocation44_spill] sm:$0xff] %v7848_v51  ;;  %v7852_v27 = vld [vmem:[#allocation6 + $0x3a8] sm:$0xff] }
 0x4e6   :  { %2546 = vmatpush.msra.mxu0 %v7375_v25  ;;  %2712 = vmatpush.msrb.mxu1 %v7840_v5  ;;  %9982 = vst [vmem:[#allocation45_spill] sm:$0xff] %v7852_v27  ;;  %v7856_v25 = vld [vmem:[#allocation6 + $0x380] sm:$0xff] }
 0x4e7   :  { %2586 = vmatpush.msra.mxu2 %v7382_v0  ;;  %2752 = vmatpush.msrb.mxu3 %v7844_v11  ;;  %9983 = vst [vmem:[#allocation54_spill] sm:$0xff] %v7856_v25  ;;  %v7860_v0 = vld [vmem:[#allocation6 + $0x388] sm:$0xff] }
 0x4e8   :  { %2547 = vmatpush.msra.mxu0 %v7389_v12  ;;  %2713 = vmatpush.msrb.mxu1 %v7848_v51  ;;  %9984 = vst [vmem:[#allocation46_spill] sm:$0xff] %v7860_v0  ;;  %v7866_v12 = vld [vmem:[%s8674_s1 + $0xc0] sm:$0xff] }
 0x4e9   :  { %2587 = vmatpush.msra.mxu2 %v7396_v28  ;;  %2753 = vmatpush.msrb.mxu3 %v7852_v27  ;;  %9985 = vst [vmem:[#allocation55_spill] sm:$0xff] %v7866_v12  ;;  %v7869_v28 = vld [vmem:[#allocation6 + $0x360] sm:$0xff] }
 0x4ea   :  { %2548 = vmatpush.msra.mxu0 %v7403_v54  ;;  %2714 = vmatpush.msrb.mxu1 %v7856_v25  ;;  %9986 = vst [vmem:[#allocation48_spill] sm:$0xff] %v7869_v28  ;;  %v7875_v54 = vld [vmem:[%s8674_s1 + $0xd0] sm:$0xff] }
 0x4eb   :  { %2588 = vmatpush.msra.mxu2 %v7410_v36  ;;  %2754 = vmatpush.msrb.mxu3 %v7860_v0  ;;  %9987 = vst [vmem:[#allocation57_spill] sm:$0xff] %v7875_v54  ;;  %v7878_v36 = vld [vmem:[#allocation6 + $0x368] sm:$0xff] }
 0x4ec   :  { %2549 = vmatpush.msra.mxu0 %v7866_v12  ;;  %2715 = vmatpush.msrb.mxu1 %v7869_v28  ;;  %9988 = vst [vmem:[#allocation50_spill] sm:$0xff] %v7878_v36 }
 0x4ed   :  { %2589 = vmatpush.msra.mxu2 %v7875_v54  ;;  %2755 = vmatpush.msrb.mxu3 %v7878_v36 }
 0x4ee   :  { %2550 = vmatpush.msra.mxu0 %v7884_v30  ;;  %2716 = vmatpush.msrb.mxu1 %v7887_v39 }
 0x4ef   :  { %2590 = vmatpush.msra.mxu2 %v7893_v48  ;;  %2756 = vmatpush.msrb.mxu3 %v7896_v26 }
 0x4f0   :  { %2551 = vmatpush.msra.mxu0 %v7902_v15  ;;  %2717 = vmatpush.msrb.mxu1 %v7905_v22 }
 0x4f1   :  { %2591 = vmatpush.msra.mxu2 %v7911_v13  ;;  %2757 = vmatpush.msrb.mxu3 %v7914_v37 }
 0x4f2   :  { %2552 = vmatpush.msra.mxu0 %v7920_v3  ;;  %2718 = vmatpush.msrb.mxu1 %v7923_v52  ;;  %v7941_v3 = vld [vmem:[#allocation6 + $0x2e0] sm:$0xff]  ;;  %v7947_v52 = vld [vmem:[%s8674_s1 + $0x50] sm:$0xff] }
 0x4f3   :  { %2592 = vmatpush.msra.mxu2 %v7929_v24  ;;  %2758 = vmatpush.msrb.mxu3 %v7932_v50  ;;  %10002 = vst [vmem:[#allocation12_spill] sm:$0xff] %v7941_v3  ;;  %v7950_v24 = vld [vmem:[#allocation6 + $0x2e8] sm:$0xff]  ;;  %v7956_v50 = vld [vmem:[%s8674_s1 + $0x20] sm:$0xff] }
 0x4f4   :  { %2553 = vmatpush.msra.mxu0 %v7938_v23  ;;  %2719 = vmatpush.msrb.mxu1 %v7941_v3  ;;  %10003 = vst [vmem:[#allocation66_spill] sm:$0xff] %v7947_v52  ;;  %v7959_v23 = vld [vmem:[#allocation6 + $0x2c0] sm:$0xff]  ;;  %v7965_v3 = vld [vmem:[%s8674_s1 + $0x30] sm:$0xff] }
 0x4f5   :  { %2593 = vmatpush.msra.mxu2 %v7947_v52  ;;  %10004 = vst [vmem:[#allocation13_spill] sm:$0xff] %v7950_v24  ;;  %2759 = vmatpush.msrb.mxu3 %v7950_v24  ;;  %v7968_v52 = vld [vmem:[#allocation6 + $0x2c8] sm:$0xff]  ;;  %v7974_v24 = vld [vmem:[%s8674_s1] sm:$0xff] }
 0x4f6   :  { %10005 = vst [vmem:[#allocation62_spill] sm:$0xff] %v7956_v50  ;;  %2554 = vmatpush.msra.mxu0 %v7956_v50  ;;  %2720 = vmatpush.msrb.mxu1 %v7959_v23  ;;  %v7977_v50 = vld [vmem:[#allocation6 + $0x2a0] sm:$0xff] }
 0x4f7   :  { %10006 = vst [vmem:[#allocation14_spill] sm:$0xff] %v7959_v23  ;;  %2594 = vmatpush.msra.mxu2 %v7965_v3  ;;  %2760 = vmatpush.msrb.mxu3 %v7968_v52  ;;  %v7983_v23 = vld [vmem:[%s8674_s1 + $0x10] sm:$0xff] }
 0x4f8   :  { %10007 = vst [vmem:[#allocation67_spill] sm:$0xff] %v7965_v3  ;;  %2555 = vmatpush.msra.mxu0 %v7974_v24  ;;  %2721 = vmatpush.msrb.mxu1 %v7977_v50  ;;  %v7997_v3 = vld [vmem:[#allocation6 + $0x288] sm:$0xff] }
 0x4f9   :  { %10008 = vst [vmem:[#allocation15_spill] sm:$0xff] %v7968_v52  ;;  %2595 = vmatpush.msra.mxu2 %v7983_v23  ;;  %2556 = vmatmul.f32.vlgmr.msra.gmra.mxu0 %v7753_v43  ;;  %v7988_v52 = vld [vmem:[#allocation6 + $0x2a8] sm:$0xff] }
 0x4fa   :  { %10009 = vst [vmem:[#allocation70_spill] sm:$0xff] %v7974_v24  ;;  %2596 = vmatmul.f32.vlgmr.msra.gmra.mxu2 %v7753_v43  ;;  %2761 = vmatpush.msrb.mxu3 %v7988_v52  ;;  %v7991_v24 = vld [vmem:[#allocation6 + $0x280] sm:$0xff] }
 0x4fb   :  { %10010 = vst [vmem:[#allocation16_spill] sm:$0xff] %v7977_v50  ;;  %2722 = vmatpush.msrb.mxu1 %v7991_v24  ;;  %v7994_v50 = vld [vmem:[#allocation6 + $0x1e0] sm:$0xff] }
 0x4fc   :  { %10011 = vst [vmem:[#allocation71_spill] sm:$0xff] %v7983_v23  ;;  %2691 = vmatpush.msrb.mxu0 %v7994_v50  ;;  %2762 = vmatpush.msrb.mxu3 %v7997_v3  ;;  %v8000_v23 = vld [vmem:[#allocation6 + $0x1e8] sm:$0xff]  ;;  %v8003_v43 = vld [vmem:[#allocation6 + $0x260] sm:$0xff] }
 0x4fd   :  { %10012 = vst [vmem:[#allocation17_spill] sm:$0xff] %v7988_v52  ;;  %2731 = vmatpush.msrb.mxu2 %v8000_v23  ;;  %2723 = vmatpush.msrb.mxu1 %v8003_v43  ;;  %v8006_v52 = vld [vmem:[#allocation6 + $0x1c0] sm:$0xff] }
 0x4fe   :  { %10013 = vst [vmem:[#allocation74_spill] sm:$0xff] %v7991_v24  ;;  %2692 = vmatpush.msrb.mxu0 %v8006_v52  ;;  %v8009_v24 = vld [vmem:[#allocation6 + $0x268] sm:$0xff] }
 0x4ff   :  { %10014 = vst [vmem:[#allocation18_spill] sm:$0xff] %v7994_v50  ;;  %2763 = vmatpush.msrb.mxu3 %v8009_v24  ;;  %v8012_v50 = vld [vmem:[#allocation6 + $0x1c8] sm:$0xff] }
 0x500   :  { %10015 = vst [vmem:[#allocation75_spill] sm:$0xff] %v7997_v3  ;;  %2732 = vmatpush.msrb.mxu2 %v8012_v50  ;;  %v8015_v3 = vld [vmem:[#allocation6 + $0x240] sm:$0xff] }
 0x501   :  { %10016 = vst [vmem:[#allocation19_spill] sm:$0xff] %v8000_v23  ;;  %2724 = vmatpush.msrb.mxu1 %v8015_v3  ;;  %v8018_v23 = vld [vmem:[#allocation6 + $0x1a0] sm:$0xff] }
 0x502   :  { %10017 = vst [vmem:[#allocation78_spill] sm:$0xff] %v8003_v43  ;;  %2693 = vmatpush.msrb.mxu0 %v8018_v23  ;;  %v8021_v43 = vld [vmem:[#allocation6 + $0x248] sm:$0xff] }
 0x503   :  { %10018 = vst [vmem:[#allocation20_spill] sm:$0xff] %v8006_v52  ;;  %2764 = vmatpush.msrb.mxu3 %v8021_v43  ;;  %v8024_v52 = vld [vmem:[#allocation6 + $0x1a8] sm:$0xff] }
 0x504   :  { %10019 = vst [vmem:[#allocation79_spill] sm:$0xff] %v8009_v24  ;;  %2733 = vmatpush.msrb.mxu2 %v8024_v52  ;;  %v8027_v24 = vld [vmem:[#allocation6 + $0x220] sm:$0xff] }
 0x505   :  { %10020 = vst [vmem:[#allocation21_spill] sm:$0xff] %v8012_v50  ;;  %2725 = vmatpush.msrb.mxu1 %v8027_v24  ;;  %v8030_v50 = vld [vmem:[#allocation6 + $0x180] sm:$0xff] }
 0x506   :  { %10021 = vst [vmem:[#allocation82_spill] sm:$0xff] %v8015_v3  ;;  %2694 = vmatpush.msrb.mxu0 %v8030_v50  ;;  %v8033_v3 = vld [vmem:[#allocation6 + $0x228] sm:$0xff] }
 0x507   :  { %10022 = vst [vmem:[#allocation22_spill] sm:$0xff] %v8018_v23  ;;  %2765 = vmatpush.msrb.mxu3 %v8033_v3  ;;  %v8036_v23 = vld [vmem:[#allocation6 + $0x188] sm:$0xff] }
 0x508   :  { %10023 = vst [vmem:[#allocation23_spill] sm:$0xff] %v8021_v43  ;;  %2734 = vmatpush.msrb.mxu2 %v8036_v23  ;;  %v8039_v43 = vld [vmem:[#allocation6 + $0x200] sm:$0xff] }
 0x509   :  { %10024 = vst [vmem:[#allocation24_spill] sm:$0xff] %v8024_v52  ;;  %2726 = vmatpush.msrb.mxu1 %v8039_v43  ;;  %v8042_v52 = vld [vmem:[#allocation6 + $0x160] sm:$0xff] }
 0x50a   :  { %10025 = vst [vmem:[#allocation83_spill] sm:$0xff] %v8027_v24  ;;  %2695 = vmatpush.msrb.mxu0 %v8042_v52  ;;  %v8045_v24 = vld [vmem:[#allocation6 + $0x208] sm:$0xff] }
 0x50b   :  { %10026 = vst [vmem:[#allocation25_spill] sm:$0xff] %v8030_v50  ;;  %2766 = vmatpush.msrb.mxu3 %v8045_v24  ;;  %v8048_v50 = vld [vmem:[#allocation6 + $0x168] sm:$0xff] }
 0x50c   :  { %10027 = vst [vmem:[#allocation86_spill] sm:$0xff] %v8033_v3  ;;  %2735 = vmatpush.msrb.mxu2 %v8048_v50  ;;  %v8051_v3 = vld [vmem:[#allocation6 + $0x3f0] sm:$0xff] }
 0x50d   :  { %10028 = vst [vmem:[#allocation26_spill] sm:$0xff] %v8036_v23  ;;  %2791 = vmatpush.msra.mxu1 %v8051_v3  ;;  %v8054_v23 = vld [vmem:[#allocation6 + $0x3f8] sm:$0xff] }
 0x50e   :  { %10029 = vst [vmem:[#allocation87_spill] sm:$0xff] %v8039_v43  ;;  %2831 = vmatpush.msra.mxu3 %v8054_v23  ;;  %v8057_v43 = vld [vmem:[#allocation6 + $0x140] sm:$0xff] }
 0x50f   :  { %10030 = vst [vmem:[#allocation27_spill] sm:$0xff] %v8042_v52  ;;  %2696 = vmatpush.msrb.mxu0 %v8057_v43  ;;  %v8060_v52 = vld [vmem:[#allocation6 + $0x148] sm:$0xff] }
 0x510   :  { %10031 = vst [vmem:[#allocation90_spill] sm:$0xff] %v8045_v24  ;;  %2736 = vmatpush.msrb.mxu2 %v8060_v52  ;;  %v8063_v24 = vld [vmem:[#allocation6 + $0x3d0] sm:$0xff] }
 0x511   :  { %10032 = vst [vmem:[#allocation28_spill] sm:$0xff] %v8048_v50  ;;  %2792 = vmatpush.msra.mxu1 %v8063_v24  ;;  %v8066_v50 = vld [vmem:[#allocation6 + $0x3d8] sm:$0xff] }
 0x512   :  { %10033 = vst [vmem:[#allocation91_spill] sm:$0xff] %v8051_v3  ;;  %2832 = vmatpush.msra.mxu3 %v8066_v50  ;;  %v8069_v3 = vld [vmem:[#allocation6 + $0x120] sm:$0xff] }
 0x513   :  { %10034 = vst [vmem:[#allocation29_spill] sm:$0xff] %v8054_v23  ;;  %2697 = vmatpush.msrb.mxu0 %v8069_v3  ;;  %v8072_v23 = vld [vmem:[#allocation6 + $0x128] sm:$0xff] }
 0x514   :  { %10035 = vst [vmem:[#allocation30_spill] sm:$0xff] %v8057_v43  ;;  %2737 = vmatpush.msrb.mxu2 %v8072_v23  ;;  %v8075_v43 = vld [vmem:[#allocation6 + $0x3b0] sm:$0xff] }
 0x515   :  { %10036 = vst [vmem:[#allocation31_spill] sm:$0xff] %v8060_v52  ;;  %2793 = vmatpush.msra.mxu1 %v8075_v43  ;;  %v8078_v52 = vld [vmem:[#allocation6 + $0x3b8] sm:$0xff] }
 0x516   :  { %10037 = vst [vmem:[#allocation32_spill] sm:$0xff] %v8063_v24  ;;  %2833 = vmatpush.msra.mxu3 %v8078_v52  ;;  %v8081_v24 = vld [vmem:[#allocation6 + $0x100] sm:$0xff] }
 0x517   :  { %10038 = vst [vmem:[#allocation33_spill] sm:$0xff] %v8066_v50  ;;  %2698 = vmatpush.msrb.mxu0 %v8081_v24  ;;  %v8084_v50 = vld [vmem:[#allocation6 + $0x108] sm:$0xff] }
 0x518   :  { %10039 = vst [vmem:[#allocation34_spill] sm:$0xff] %v8069_v3  ;;  %2738 = vmatpush.msrb.mxu2 %v8084_v50  ;;  %v8087_v3 = vld [vmem:[#allocation6 + $0x390] sm:$0xff] }
 0x519   :  { %10040 = vst [vmem:[#allocation36_spill] sm:$0xff] %v8072_v23  ;;  %2794 = vmatpush.msra.mxu1 %v8087_v3  ;;  %v8090_v23 = vld [vmem:[#allocation6 + $0x398] sm:$0xff] }
 0x51a   :  { %10041 = vst [vmem:[#allocation37_spill] sm:$0xff] %v8075_v43  ;;  %2834 = vmatpush.msra.mxu3 %v8090_v23  ;;  %v8093_v43 = vld [vmem:[#allocation6 + $0xe0] sm:$0xff] }
 0x51b   :  { %10042 = vst [vmem:[#allocation39_spill] sm:$0xff] %v8078_v52  ;;  %2699 = vmatpush.msrb.mxu0 %v8093_v43  ;;  %v8096_v52 = vld [vmem:[#allocation6 + $0xe8] sm:$0xff] }
 0x51c   :  { %10043 = vst [vmem:[#allocation40_spill] sm:$0xff] %v8081_v24  ;;  %2739 = vmatpush.msrb.mxu2 %v8096_v52  ;;  %v8099_v24 = vld [vmem:[#allocation6 + $0x370] sm:$0xff] }
 0x51d   :  { %10044 = vst [vmem:[#allocation42_spill] sm:$0xff] %v8084_v50  ;;  %2795 = vmatpush.msra.mxu1 %v8099_v24  ;;  %v8102_v50 = vld [vmem:[#allocation6 + $0x378] sm:$0xff] }
 0x51e   :  { %10045 = vst [vmem:[#allocation43_spill] sm:$0xff] %v8087_v3  ;;  %2835 = vmatpush.msra.mxu3 %v8102_v50  ;;  %v8105_v3 = vld [vmem:[#allocation6 + $0xc0] sm:$0xff] }
 0x51f   :  { %10046 = vst [vmem:[#allocation68_spill] sm:$0xff] %v8090_v23  ;;  %2700 = vmatpush.msrb.mxu0 %v8105_v3  ;;  %v8108_v23 = vld [vmem:[#allocation6 + $0xc8] sm:$0xff] }
 0x520   :  { %10047 = vst [vmem:[#allocation69_spill] sm:$0xff] %v8093_v43  ;;  %2740 = vmatpush.msrb.mxu2 %v8108_v23  ;;  %v8111_v43 = vld [vmem:[#allocation6 + $0x350] sm:$0xff] }
 0x521   :  { %10048 = vst [vmem:[#allocation72_spill] sm:$0xff] %v8096_v52  ;;  %2796 = vmatpush.msra.mxu1 %v8111_v43  ;;  %v8114_v52 = vld [vmem:[#allocation6 + $0x358] sm:$0xff] }
 0x522   :  { %10049 = vst [vmem:[#allocation73_spill] sm:$0xff] %v8099_v24  ;;  %2836 = vmatpush.msra.mxu3 %v8114_v52  ;;  %v8117_v24 = vld [vmem:[#allocation6 + $0xa0] sm:$0xff] }
 0x523   :  { %10050 = vst [vmem:[#allocation76_spill] sm:$0xff] %v8102_v50  ;;  %2701 = vmatpush.msrb.mxu0 %v8117_v24  ;;  %v8120_v50 = vld [vmem:[#allocation6 + $0xa8] sm:$0xff] }
 0x524   :  { %10051 = vst [vmem:[#allocation77_spill] sm:$0xff] %v8105_v3  ;;  %2741 = vmatpush.msrb.mxu2 %v8120_v50  ;;  %v8123_v3 = vld [vmem:[#allocation6 + $0x330] sm:$0xff] }
 0x525   :  { %10052 = vst [vmem:[#allocation80_spill] sm:$0xff] %v8108_v23  ;;  %2797 = vmatpush.msra.mxu1 %v8123_v3  ;;  %v8126_v23 = vld [vmem:[#allocation6 + $0x338] sm:$0xff] }
 0x526   :  { %10053 = vst [vmem:[#allocation81_spill] sm:$0xff] %v8111_v43  ;;  %2837 = vmatpush.msra.mxu3 %v8126_v23  ;;  %v8129_v43 = vld [vmem:[#allocation6 + $0x80] sm:$0xff] }
 0x527   :  { %10054 = vst [vmem:[#allocation84_spill] sm:$0xff] %v8114_v52  ;;  %2702 = vmatpush.msrb.mxu0 %v8129_v43  ;;  %v8132_v52 = vld [vmem:[#allocation6 + $0x88] sm:$0xff] }
 0x528   :  { %10055 = vst [vmem:[#allocation85_spill] sm:$0xff] %v8117_v24  ;;  %2742 = vmatpush.msrb.mxu2 %v8132_v52  ;;  %v8135_v24 = vld [vmem:[#allocation6 + $0x310] sm:$0xff] }
 0x529   :  { %10056 = vst [vmem:[#allocation88_spill] sm:$0xff] %v8120_v50  ;;  %2798 = vmatpush.msra.mxu1 %v8135_v24  ;;  %v8138_v50 = vld [vmem:[#allocation6 + $0x318] sm:$0xff] }
 0x52a   :  { %10057 = vst [vmem:[#allocation89_spill] sm:$0xff] %v8123_v3  ;;  %2838 = vmatpush.msra.mxu3 %v8138_v50  ;;  %v8141_v3 = vld [vmem:[#allocation6 + $0x60] sm:$0xff] }
 0x52b   :  { %10058 = vst [vmem:[#allocation92_spill] sm:$0xff] %v8126_v23  ;;  %2703 = vmatpush.msrb.mxu0 %v8141_v3  ;;  %v8144_v23 = vld [vmem:[#allocation6 + $0x68] sm:$0xff] }
 0x52c   :  { %10059 = vst [vmem:[#allocation93_spill] sm:$0xff] %v8129_v43  ;;  %2743 = vmatpush.msrb.mxu2 %v8144_v23  ;;  %v8147_v43 = vld [vmem:[#allocation6 + $0x2f0] sm:$0xff] }
 0x52d   :  { %10060 = vst [vmem:[#allocation94_spill] sm:$0xff] %v8132_v52  ;;  %2799 = vmatpush.msra.mxu1 %v8147_v43  ;;  %v8150_v52 = vld [vmem:[#allocation6 + $0x2f8] sm:$0xff] }
 0x52e   :  { %10061 = vst [vmem:[#allocation95_spill] sm:$0xff] %v8135_v24  ;;  %2839 = vmatpush.msra.mxu3 %v8150_v52  ;;  %v8153_v24 = vld [vmem:[#allocation6 + $0x40] sm:$0xff] }
 0x52f   :  { %10062 = vst [vmem:[#allocation96_spill] sm:$0xff] %v8138_v50  ;;  %2704 = vmatpush.msrb.mxu0 %v8153_v24  ;;  %v8156_v50 = vld [vmem:[#allocation6 + $0x48] sm:$0xff] }
 0x530   :  { %10063 = vst [vmem:[#allocation97_spill] sm:$0xff] %v8141_v3  ;;  %2744 = vmatpush.msrb.mxu2 %v8156_v50  ;;  %v8159_v3 = vld [vmem:[#allocation6 + $0x2d0] sm:$0xff] }
 0x531   :  { %10064 = vst [vmem:[#allocation98_spill] sm:$0xff] %v8144_v23  ;;  %2800 = vmatpush.msra.mxu1 %v8159_v3  ;;  %v8162_v23 = vld [vmem:[#allocation6 + $0x2d8] sm:$0xff] }
 0x532   :  { %10065 = vst [vmem:[#allocation99_spill] sm:$0xff] %v8147_v43  ;;  %2840 = vmatpush.msra.mxu3 %v8162_v23  ;;  %v8165_v43 = vld [vmem:[#allocation6 + $0x20] sm:$0xff] }
 0x533   :  { %10066 = vst [vmem:[#allocation100_spill] sm:$0xff] %v8150_v52  ;;  %2705 = vmatpush.msrb.mxu0 %v8165_v43  ;;  %v8168_v52 = vld [vmem:[#allocation6 + $0x28] sm:$0xff] }
 0x534   :  { %10067 = vst [vmem:[#allocation101_spill] sm:$0xff] %v8153_v24  ;;  %2745 = vmatpush.msrb.mxu2 %v8168_v52  ;;  %v8171_v24 = vld [vmem:[#allocation6 + $0x2b0] sm:$0xff] }
 0x535   :  { %10068 = vst [vmem:[#allocation102_spill] sm:$0xff] %v8156_v50  ;;  %2801 = vmatpush.msra.mxu1 %v8171_v24  ;;  %v8174_v50 = vld [vmem:[#allocation6 + $0x2b8] sm:$0xff] }
 0x536   :  { %10069 = vst [vmem:[#allocation103_spill] sm:$0xff] %v8159_v3  ;;  %2841 = vmatpush.msra.mxu3 %v8174_v50  ;;  %v8177_v3 = vld [vmem:[#allocation6] sm:$0xff] }
 0x537   :  { %10070 = vst [vmem:[#allocation104_spill] sm:$0xff] %v8162_v23  ;;  %2706 = vmatpush.msrb.mxu0 %v8177_v3  ;;  %v8180_v23 = vld [vmem:[#allocation6 + $0x8] sm:$0xff] }
 0x538   :  { %10071 = vst [vmem:[#allocation105_spill] sm:$0xff] %v8165_v43  ;;  %2746 = vmatpush.msrb.mxu2 %v8180_v23  ;;  %v8183_v43 = vld [vmem:[#allocation6 + $0x290] sm:$0xff] }
 0x539   :  { %10072 = vst [vmem:[#allocation106_spill] sm:$0xff] %v8168_v52  ;;  %2802 = vmatpush.msra.mxu1 %v8183_v43  ;;  %v8186_v52 = vld [vmem:[#allocation6 + $0x298] sm:$0xff] }
 0x53a   :  { %10073 = vst [vmem:[#allocation107_spill] sm:$0xff] %v8171_v24  ;;  %2842 = vmatpush.msra.mxu3 %v8186_v52  ;;  %v8189_v24 = vld [vmem:[#allocation6 + $0x1f0] sm:$0xff] }
 0x53b   :  { %10074 = vst [vmem:[#allocation108_spill] sm:$0xff] %v8174_v50  ;;  %2771 = vmatpush.msra.mxu0 %v8189_v24  ;;  %v8192_v50 = vld [vmem:[#allocation6 + $0x1f8] sm:$0xff] }
 0x53c   :  { %10075 = vst [vmem:[#allocation109_spill] sm:$0xff] %v8177_v3  ;;  %2811 = vmatpush.msra.mxu2 %v8192_v50  ;;  %v8195_v3 = vld [vmem:[#allocation6 + $0x270] sm:$0xff] }
 0x53d   :  { %10076 = vst [vmem:[#allocation110_spill] sm:$0xff] %v8180_v23  ;;  %2803 = vmatpush.msra.mxu1 %v8195_v3  ;;  %v8198_v23 = vld [vmem:[#allocation6 + $0x278] sm:$0xff] }
 0x53e   :  { %10077 = vst [vmem:[#allocation111_spill] sm:$0xff] %v8183_v43  ;;  %2843 = vmatpush.msra.mxu3 %v8198_v23  ;;  %v8201_v43 = vld [vmem:[#allocation6 + $0x1d0] sm:$0xff] }
 0x53f   :  { %10078 = vst [vmem:[#allocation112_spill] sm:$0xff] %v8186_v52  ;;  %2772 = vmatpush.msra.mxu0 %v8201_v43  ;;  %v8204_v52 = vld [vmem:[#allocation6 + $0x1d8] sm:$0xff] }
 0x540   :  { %10079 = vst [vmem:[#allocation113_spill] sm:$0xff] %v8189_v24  ;;  %2812 = vmatpush.msra.mxu2 %v8204_v52  ;;  %v8207_v24 = vld [vmem:[#allocation6 + $0x250] sm:$0xff] }
 0x541   :  { %10080 = vst [vmem:[#allocation114_spill] sm:$0xff] %v8192_v50  ;;  %2804 = vmatpush.msra.mxu1 %v8207_v24  ;;  %v8210_v50 = vld [vmem:[#allocation6 + $0x258] sm:$0xff] }
 0x542   :  { %10081 = vst [vmem:[#allocation115_spill] sm:$0xff] %v8195_v3  ;;  %2844 = vmatpush.msra.mxu3 %v8210_v50  ;;  %v8213_v3 = vld [vmem:[#allocation6 + $0x1b0] sm:$0xff] }
 0x543   :  { %10082 = vst [vmem:[#allocation116_spill] sm:$0xff] %v8198_v23  ;;  %2773 = vmatpush.msra.mxu0 %v8213_v3  ;;  %v8216_v23 = vld [vmem:[#allocation6 + $0x1b8] sm:$0xff] }
 0x544   :  { %10083 = vst [vmem:[#allocation117_spill] sm:$0xff] %v8201_v43  ;;  %2813 = vmatpush.msra.mxu2 %v8216_v23  ;;  %v8219_v43 = vld [vmem:[#allocation6 + $0x230] sm:$0xff] }
 0x545   :  { %10084 = vst [vmem:[#allocation118_spill] sm:$0xff] %v8204_v52  ;;  %2805 = vmatpush.msra.mxu1 %v8219_v43  ;;  %v8222_v52 = vld [vmem:[#allocation6 + $0x238] sm:$0xff] }
 0x546   :  { %10085 = vst [vmem:[#allocation119_spill] sm:$0xff] %v8207_v24  ;;  %2845 = vmatpush.msra.mxu3 %v8222_v52  ;;  %v8225_v24 = vld [vmem:[#allocation6 + $0x190] sm:$0xff] }
 0x547   :  { %10086 = vst [vmem:[#allocation120_spill] sm:$0xff] %v8210_v50  ;;  %2774 = vmatpush.msra.mxu0 %v8225_v24  ;;  %v8228_v50 = vld [vmem:[#allocation6 + $0x198] sm:$0xff] }
 0x548   :  { %10087 = vst [vmem:[#allocation121_spill] sm:$0xff] %v8213_v3  ;;  %2814 = vmatpush.msra.mxu2 %v8228_v50  ;;  %v8231_v3 = vld [vmem:[#allocation6 + $0x210] sm:$0xff] }
 0x549   :  { %10088 = vst [vmem:[#allocation122_spill] sm:$0xff] %v8216_v23  ;;  %2806 = vmatpush.msra.mxu1 %v8231_v3  ;;  %v8234_v23 = vld [vmem:[#allocation6 + $0x218] sm:$0xff] }
 0x54a   :  { %10089 = vst [vmem:[#allocation123_spill] sm:$0xff] %v8219_v43  ;;  %2846 = vmatpush.msra.mxu3 %v8234_v23  ;;  %v8237_v43 = vld [vmem:[#allocation6 + $0x170] sm:$0xff] }
 0x54b   :  { %10090 = vst [vmem:[#allocation124_spill] sm:$0xff] %v8222_v52  ;;  %2775 = vmatpush.msra.mxu0 %v8237_v43  ;;  %v8240_v52 = vld [vmem:[#allocation6 + $0x178] sm:$0xff] }
 0x54c   :  { %10091 = vst [vmem:[#allocation125_spill] sm:$0xff] %v8225_v24  ;;  %2815 = vmatpush.msra.mxu2 %v8240_v52  ;;  %v8243_v24 = vld [vmem:[#allocation6 + $0x150] sm:$0xff] }
 0x54d   :  { %10092 = vst [vmem:[#allocation126_spill] sm:$0xff] %v8228_v50  ;;  %2776 = vmatpush.msra.mxu0 %v8243_v24  ;;  %v8246_v50 = vld [vmem:[#allocation6 + $0x158] sm:$0xff] }
 0x54e   :  { %10093 = vst [vmem:[#allocation127_spill] sm:$0xff] %v8231_v3  ;;  %2816 = vmatpush.msra.mxu2 %v8246_v50  ;;  %v8249_v3 = vld [vmem:[#allocation6 + $0x130] sm:$0xff] }
 0x54f   :  { %10094 = vst [vmem:[#allocation128_spill] sm:$0xff] %v8234_v23  ;;  %2777 = vmatpush.msra.mxu0 %v8249_v3  ;;  %v8252_v23 = vld [vmem:[#allocation6 + $0x138] sm:$0xff] }
 0x550   :  { %10095 = vst [vmem:[#allocation129_spill] sm:$0xff] %v8237_v43  ;;  %2817 = vmatpush.msra.mxu2 %v8252_v23  ;;  %v8255_v43 = vld [vmem:[#allocation6 + $0x110] sm:$0xff] }
 0x551   :  { %10096 = vst [vmem:[#allocation130_spill] sm:$0xff] %v8240_v52  ;;  %2778 = vmatpush.msra.mxu0 %v8255_v43  ;;  %v8258_v52 = vld [vmem:[#allocation6 + $0x118] sm:$0xff] }
 0x552   :  { %10097 = vst [vmem:[#allocation131_spill] sm:$0xff] %v8243_v24  ;;  %2818 = vmatpush.msra.mxu2 %v8258_v52  ;;  %v8261_v24 = vld [vmem:[#allocation6 + $0xf0] sm:$0xff] }
 0x553   :  { %10098 = vst [vmem:[#allocation132_spill] sm:$0xff] %v8246_v50  ;;  %2779 = vmatpush.msra.mxu0 %v8261_v24  ;;  %v8264_v50 = vld [vmem:[#allocation6 + $0xf8] sm:$0xff] }
 0x554   :  { %10099 = vst [vmem:[#allocation133_spill] sm:$0xff] %v8249_v3  ;;  %2819 = vmatpush.msra.mxu2 %v8264_v50  ;;  %v8267_v3 = vld [vmem:[#allocation6 + $0xd0] sm:$0xff] }
 0x555   :  { %10100 = vst [vmem:[#allocation134_spill] sm:$0xff] %v8252_v23  ;;  %2780 = vmatpush.msra.mxu0 %v8267_v3  ;;  %v8270_v23 = vld [vmem:[#allocation6 + $0xd8] sm:$0xff]  ;;  %v2326_v37 = vpop.f32.mrf.mxu0 }
 0x556   :  { %10101 = vst [vmem:[#allocation135_spill] sm:$0xff] %v8255_v43  ;;  %2820 = vmatpush.msra.mxu2 %v8270_v23  ;;  %v8273_v43 = vld [vmem:[#allocation6 + $0xb0] sm:$0xff] }
 0x557   :  { %10102 = vst [vmem:[#allocation136_spill] sm:$0xff] %v8258_v52  ;;  %2781 = vmatpush.msra.mxu0 %v8273_v43  ;;  %v8276_v52 = vld [vmem:[#allocation6 + $0xb8] sm:$0xff] }
 0x558   :  { %10103 = vst [vmem:[#allocation137_spill] sm:$0xff] %v8261_v24  ;;  %2821 = vmatpush.msra.mxu2 %v8276_v52  ;;  %v8279_v24 = vld [vmem:[#allocation6 + $0x90] sm:$0xff] }
 0x559   :  { %10104 = vst [vmem:[#allocation138_spill] sm:$0xff] %v8264_v50  ;;  %2782 = vmatpush.msra.mxu0 %v8279_v24  ;;  %v8282_v50 = vld [vmem:[#allocation6 + $0x98] sm:$0xff] }
 0x55a   :  { %10105 = vst [vmem:[#allocation139_spill] sm:$0xff] %v8267_v3  ;;  %2822 = vmatpush.msra.mxu2 %v8282_v50  ;;  %v8285_v3 = vld [vmem:[#allocation6 + $0x70] sm:$0xff] }
 0x55b   :  { %10106 = vst [vmem:[#allocation140_spill] sm:$0xff] %v8270_v23  ;;  %2783 = vmatpush.msra.mxu0 %v8285_v3  ;;  %v8288_v23 = vld [vmem:[#allocation6 + $0x78] sm:$0xff] }
 0x55c   :  { %10107 = vst [vmem:[#allocation141_spill] sm:$0xff] %v8273_v43  ;;  %2823 = vmatpush.msra.mxu2 %v8288_v23  ;;  %v8291_v43 = vld [vmem:[#allocation6 + $0x50] sm:$0xff] }
 0x55d   :  { %10108 = vst [vmem:[#allocation142_spill] sm:$0xff] %v8276_v52  ;;  %2784 = vmatpush.msra.mxu0 %v8291_v43  ;;  %v8294_v52 = vld [vmem:[#allocation6 + $0x58] sm:$0xff] }
 0x55e   :  { %10109 = vst [vmem:[#allocation143_spill] sm:$0xff] %v8279_v24  ;;  %2824 = vmatpush.msra.mxu2 %v8294_v52  ;;  %v8297_v24 = vld [vmem:[#allocation6 + $0x30] sm:$0xff]  ;;  %v2406_v39 = vpop.f32.mrf.mxu0 }
 0x55f   :  { %10110 = vst [vmem:[#allocation144_spill] sm:$0xff] %v8282_v50  ;;  %2785 = vmatpush.msra.mxu0 %v8297_v24  ;;  %v8300_v50 = vld [vmem:[#allocation6 + $0x38] sm:$0xff] }
 0x560   :  { %10111 = vst [vmem:[#allocation145_spill] sm:$0xff] %v8285_v3  ;;  %2825 = vmatpush.msra.mxu2 %v8300_v50  ;;  %v8303_v3 = vld [vmem:[#allocation6 + $0x10] sm:$0xff] }
 0x561   :  { %10112 = vst [vmem:[#allocation146_spill] sm:$0xff] %v8288_v23  ;;  %2786 = vmatpush.msra.mxu0 %v8303_v3  ;;  %v8306_v23 = vld [vmem:[#allocation6 + $0x18] sm:$0xff] }
 0x562   :  { %10113 = vst [vmem:[#allocation147_spill] sm:$0xff] %v8291_v43  ;;  %2826 = vmatpush.msra.mxu2 %v8306_v23  ;;  %v2346_v43 = vpop.f32.mrf.mxu1 }
 0x563   :  { %10114 = vst [vmem:[#allocation148_spill] sm:$0xff] %v8294_v52  ;;  %v2327_v52 = vadd.f32 %v2326_v37, %v9971_v2 }
 0x564   :  { %10115 = vst [vmem:[#allocation149_spill] sm:$0xff] %v8297_v24  ;;  %v2366_v24 = vpop.f32.mrf.mxu2 }
 0x565   :  { %10116 = vst [vmem:[#allocation150_spill] sm:$0xff] %v8300_v50  ;;  %v2347_v22 = vadd.f32 %v2346_v43, %v2327_v52  ;;  %v2367_v26 = vadd.f32 %v2366_v24, %v9972_v49  ;;  %v2386_v50 = vpop.f32.mrf.mxu3 }
 0x566   :  { %10117 = vst [vmem:[#allocation151_spill] sm:$0xff] %v8303_v3  ;;  %v2536_v3 = vld [vmem:[%s8673_s0 + $0xc8] sm:$0xff] }
 0x567   :  { %10118 = vst [vmem:[#allocation152_spill] sm:$0xff] %v8306_v23  ;;  %v3342_v15 = vmul.f32 -1.442695, %v2347_v22  ;;  %v2387_v48 = vadd.f32 %v2386_v50, %v2367_v26  ;;  %v2407_v23 = vadd.f32 %v2406_v39, %v9973_v63 }
 0x569   :  { %3537 = vpow2.f32 %v3342_v15  ;;  %v3343_v36 = vmul.f32 -1.442695, %v2387_v48 }
 0x56a   :  { %v2426_v13 = vpop.f32.mrf.mxu1 }
 0x56b   :  { %v2427_v37 = vadd.f32 %v2426_v13, %v2407_v23  ;;  %3539 = vpow2.f32 %v3343_v36 }
 0x56c   :  { %v2446_v49 = vpop.f32.mrf.mxu2 }
 0x56d   :  { %v3344_v52 = vmul.f32 -1.442695, %v2427_v37  ;;  %v2447_v39 = vadd.f32 %v2446_v49, %v9974_v4  ;;  %v2466_v36 = vpop.f32.mrf.mxu3  ;;  %v2535_v49 = vld [vmem:[%s8673_s0 + $0xc0] sm:$0xff] }
 0x56f   :  { %v3538_v2 = vpop.eup %3537 }
 0x570   :  { %v2478_v22 = vadd.f32 1.0, %v3538_v2  ;;  %v2467_v2 = vadd.f32 %v2466_v36, %v2447_v39 }
 0x571   :  { %v3540_v24 = vpop.eup %3539 }
 0x572   :  { %v2577_v30 = vpop.f32.mrf.mxu1  ;;  %3541 = vrcp.f32 %v2478_v22  ;;  %v2479_v43 = vadd.f32 1.0, %v3540_v24  ;;  %vm2486_vm5 = vweird.f32 %v2478_v22  ;;  %v2490_v63 = vand.u32 2147483647, %v2478_v22 }
 0x573   :  { %v2621_v54 = vadd.f32 %v2577_v30, %v2536_v3  ;;  %3543 = vpow2.f32 %v3344_v52 }
 0x574   :  { %vm2501_vm8 = vweird.f32 %v2479_v43  ;;  %vm2491_vm9 = vcmp.eq.f32.partialorder %v2490_v63, 8.507059e+37 }
 0x575   :  { %v3346_v15 = vmul.f32 -1.442695, %v2621_v54 }
 0x577   :  { %3545 = vpow2.f32 %v3346_v15  ;;  %v2492_v15 = vand.u32 2147483648, %v2478_v22 }
 0x578   :  { %v3542_v28 = vpop.eup %3541  ;;  %3547 = vrcp.f32 %v2479_v43 }
 0x579   :  { %v3544_v26 = vpop.eup %3543  ;;  %v2482_v50 = vmul.f32 %v3542_v28, %v2478_v22  ;;  %vm2487_vm4 = vweird.f32 %v3542_v28 }
 0x57a   :  { %v8316_v48 = vadd.f32 1.0, %v3544_v26  ;;  %vm8325_vm6 = vmor %vm2486_vm5, %vm2487_vm4 }
 0x57b   :  { %v2483_v13 = vsub.f32 1.0, %v2482_v50  ;;  %v2507_v50 = vand.u32 2147483648, %v2479_v43 }
 0x57c   :  { %3549 = vrcp.f32 %v8316_v48  ;;  %vm2516_vm13 = vweird.f32 %v8316_v48 }
 0x57d   :  { %v3546_v30 = vpop.eup %3545  ;;  %v2484_v54 = vmul.f32 %v3542_v28, %v2483_v13  ;;  %3551 = vtanh.f32 %v2467_v2  ;;  %v2557_v2 = vpop.f32.mrf.mxu0  ;;  %v2508_v0 = vor.u32 1.1754944e-38, %v2507_v50 }
 0x57e   :  { %v3548_v3 = vpop.eup %3547  ;;  %v8319_v23 = vadd.f32 1.0, %v3546_v30  ;;  %v2505_v30 = vand.u32 2147483647, %v2479_v43 }
 0x57f   :  { %v2497_v37 = vmul.f32 %v3548_v3, %v2479_v43  ;;  %v2485_v52 = vadd.f32 %v3542_v28, %v2484_v54  ;;  %vm2502_vm7 = vweird.f32 %v3548_v3  ;;  %v2493_v54 = vor.u32 1.1754944e-38, %v2492_v15  ;;  %v2597_v15 = vpop.f32.mrf.mxu2 }
 0x580   :  { %3553 = vrcp.f32 %v8319_v23  ;;  %vm2503_vm10 = vmor %vm2501_vm8, %vm2502_vm7  ;;  %vm2506_vm11 = vcmp.eq.f32.partialorder %v2505_v30, 8.507059e+37  ;;  %vm2656_vm1 = vweird.f32 %v8319_v23 }
 0x581   :  { %v2498_v24 = vsub.f32 1.0, %v2497_v37  ;;  %v2489_v22 = vsel %vm8325_vm6, %v3542_v28, %v2485_v52  ;;  %v2620_v37 = vadd.f32 %v2557_v2, %v2535_v49  ;;  %v2537_v28 = vld [vmem:[%s8673_s0 + $0xd0] sm:$0xff] }
 0x582   :  { %v3550_v26 = vpop.eup %3549  ;;  %v2494_v25 = vsel %vm2491_vm9, %v2493_v54, %v2489_v22  ;;  %v2622_v50 = vadd.f32 %v2597_v15, %v2537_v28  ;;  %v2617_v22 = vpop.f32.mrf.mxu3 }
 0x583   :  { %v2499_v13 = vmul.f32 %v3548_v3, %v2498_v24  ;;  %v2512_v36 = vmul.f32 %v3550_v26, %v8316_v48  ;;  %v3345_v27 = vmul.f32 -1.442695, %v2620_v37  ;;  %v3552_v51 = vpop.eup %3551  ;;  %vm2517_vm12 = vweird.f32 %v3550_v26 }
 0x584   :  { %v2529_v63 = vmul.f32 %v3552_v51, %v2494_v25  ;;  %vm2518_vm14 = vmor %vm2516_vm13, %vm2517_vm12 }
 0x585   :  { %v2513_v4 = vsub.f32 1.0, %v2512_v36  ;;  %v2500_v12 = vadd.f32 %v3548_v3, %v2499_v13  ;;  %3555 = vpow2.f32 %v3345_v27  ;;  %v2522_v27 = vand.u32 2147483648, %v8316_v48  ;;  %v2538_v36 = vld [vmem:[%s8673_s0 + $0xd8] sm:$0xff] }
 0x586   :  { %v8332_v24 = vpop.eup %3553 }
 0x587   :  { %v2504_v11 = vsel %vm2503_vm10, %v3548_v3, %v2500_v12  ;;  %v2514_v52 = vmul.f32 %v3550_v26, %v2513_v4  ;;  %v2652_v12 = vmul.f32 %v8332_v24, %v8319_v23  ;;  %v2520_v4 = vand.u32 2147483647, %v8316_v48 }
 0x588   :  { %v2509_v5 = vsel %vm2506_vm11, %v2508_v0, %v2504_v11  ;;  %v3347_v11 = vmul.f32 -1.442695, %v2622_v50  ;;  %v2523_v25 = vor.u32 1.1754944e-38, %v2522_v27  ;;  %vm2657_vm0 = vweird.f32 %v8332_v24 }
 0x589   :  { %v2528_v43 = vmul.f32 %v2509_v5, %v7579_v7  ;;  %v2515_v3 = vadd.f32 %v3550_v26, %v2514_v52  ;;  %v2653_v5 = vsub.f32 1.0, %v2652_v12  ;;  %vm2521_vm15 = vcmp.eq.f32.partialorder %v2520_v4, 8.507059e+37  ;;  %vm8362_vm2 = vmor %vm2656_vm1, %vm2657_vm0 }
 0x58b   :  { %v8338_v49 = vadd.f32 %v2529_v63, %v2528_v43  ;;  %v3556_v0 = vpop.eup %3555  ;;  %v2519_v51 = vsel %vm2518_vm14, %v3550_v26, %v2515_v3  ;;  %v2654_v13 = vmul.f32 %v8332_v24, %v2653_v5  ;;  %v2623_v26 = vadd.f32 %v2617_v22, %v2538_v36  ;;  %v4208_v5 = vld [vmem:[%s8674_s1 + $0x110] sm:$0xff]  ;;  %v10130_v22 = vld [vmem:[#allocation48_spill] sm:$0xff] }
 0x58c   :  { %v2633_v7 = vadd.f32 1.0, %v3556_v0  ;;  %v2524_v30 = vsel %vm2521_vm15, %v2523_v25, %v2519_v51  ;;  %v2662_v43 = vand.u32 2147483648, %v8319_v23  ;;  %v2660_v63 = vand.u32 2147483647, %v8319_v23  ;;  %v10126_v51 = vld [vmem:[#allocation45_spill] sm:$0xff]  ;;  %v10129_v36 = vld [vmem:[#allocation55_spill] sm:$0xff] }
 0x58d   :  { %3557 = vtanh.f32 %v8338_v49  ;;  %v2655_v28 = vadd.f32 %v8332_v24, %v2654_v13  ;;  %v4209_v25 = vld [vmem:[%s8674_s1 + $0xe0] sm:$0xff]  ;;  %v10128_v13 = vld [vmem:[#allocation46_spill] sm:$0xff] }
 0x58e   :  { %3559 = vpow2.f32 %v3347_v11  ;;  %v2647_v15 = vand.u32 2147483648, %v2633_v7  ;;  %v2645_v50 = vand.u32 2147483647, %v2633_v7  ;;  %v2663_v12 = vor.u32 1.1754944e-38, %v2662_v43  ;;  %v10138_v43 = vld [vmem:[#allocation56_spill] sm:$0xff] }
 0x58f   :  { %3561 = vrcp.f32 %v2633_v7  ;;  %vm2661_vm4 = vcmp.eq.f32.partialorder %v2660_v63, 8.507059e+37  ;;  %vm2641_vm5 = vweird.f32 %v2633_v7  ;;  %v10139_v63 = vld [vmem:[#allocation64_spill] sm:$0xff] }
 0x590   :  { %vm2646_vm7 = vcmp.eq.f32.partialorder %v2645_v50, 8.507059e+37  ;;  %v10145_v50 = vld [vmem:[#allocation60_spill] sm:$0xff] }
 0x593   :  { %v3558_v39 = vpop.eup %3557 }
 0x594   :  { %v2532_v2 = vmul.f32 %v3558_v39, %v2524_v30  ;;  %v3560_v54 = vpop.eup %3559  ;;  %v10127_v39 = vld [vmem:[#allocation54_spill] sm:$0xff]  ;;  %v4210_v30 = vld [vmem:[%s8674_s1 + $0xf0] sm:$0xff] }
 0x595   :  { %v8350_v48 = vadd.f32 1.0, %v3560_v54  ;;  %v3562_v37 = vpop.eup %3561  ;;  %v10132_v54 = vld [vmem:[#allocation50_spill] sm:$0xff] }
 0x596   :  { %2727 = vmatmul.f32.vlgmr.msrb.gmra.mxu1 %v2532_v2  ;;  %2767 = vmatmul.f32.vlgmr.msrb.gmra.mxu3 %v2532_v2  ;;  %v2637_v52 = vmul.f32 %v3562_v37, %v2633_v7  ;;  %vm2642_vm3 = vweird.f32 %v3562_v37 }
 0x597   :  { %2942 = vmatpush.msrb.mxu1 %v7599_v46  ;;  %2982 = vmatpush.msrb.mxu3 %v7605_v32  ;;  %3563 = vrcp.f32 %v8350_v48  ;;  %vm2643_vm6 = vmor %vm2641_vm5, %vm2642_vm3  ;;  %vm2671_vm9 = vweird.f32 %v8350_v48  ;;  %v10141_v32 = vld [vmem:[#allocation58_spill] sm:$0xff] }
 0x598   :  { %v2638_v46 = vsub.f32 1.0, %v2637_v52  ;;  %3565 = vtanh.f32 %v2623_v26  ;;  %v10135_v26 = vld [vmem:[#allocation61_spill] sm:$0xff]  ;;  %v10137_v52 = vld [vmem:[#allocation63_spill] sm:$0xff] }
 0x599   :  { %2943 = vmatpush.msrb.mxu1 %v7616_v62  ;;  %2983 = vmatpush.msrb.mxu3 %v7622_v58  ;;  %v2659_v62 = vsel %vm8362_vm2, %v8332_v24, %v2655_v28  ;;  %v10136_v28 = vld [vmem:[#allocation53_spill] sm:$0xff] }
 0x59a   :  { %v2639_v58 = vmul.f32 %v3562_v37, %v2638_v46  ;;  %v10140_v46 = vld [vmem:[#allocation9_spill] sm:$0xff] }
 0x59b   :  { %2944 = vmatpush.msrb.mxu1 %v7635_v45  ;;  %2984 = vmatpush.msrb.mxu3 %v7641_v19  ;;  %v2664_v45 = vsel %vm2661_vm4, %v2663_v12, %v2659_v62  ;;  %v2648_v19 = vor.u32 1.1754944e-38, %v2647_v15  ;;  %v10142_v15 = vld [vmem:[#allocation10_spill] sm:$0xff]  ;;  %v10143_v62 = vld [vmem:[#allocation65_spill] sm:$0xff]  ;;  %v10146_v12 = vld [vmem:[#allocation12_spill] sm:$0xff] }
 0x59c   :  { %v2640_v3 = vadd.f32 %v3562_v37, %v2639_v58  ;;  %v2683_v0 = vmul.f32 %v2664_v45, %v7699_v59  ;;  %v10144_v58 = vld [vmem:[#allocation11_spill] sm:$0xff]  ;;  %v10149_v45 = vld [vmem:[#allocation62_spill] sm:$0xff] }
 0x59d   :  { %2945 = vmatpush.msrb.mxu1 %v7651_v10  ;;  %2985 = vmatpush.msrb.mxu3 %v7657_v18  ;;  %v3564_v23 = vpop.eup %3563 }
 0x59e   :  { %2807 = vmatmul.f32.vlgmr.msra.gmra.mxu1 %v2532_v2  ;;  %2847 = vmatmul.f32.vlgmr.msra.gmra.mxu3 %v2532_v2  ;;  %v2667_v11 = vmul.f32 %v3564_v23, %v8350_v48  ;;  %v2644_v24 = vsel %vm2643_vm6, %v3562_v37, %v2640_v3  ;;  %v3566_v10 = vpop.eup %3565  ;;  %vm2672_vm8 = vweird.f32 %v3564_v23  ;;  %v10131_v2 = vld [vmem:[#allocation57_spill] sm:$0xff]  ;;  %v10134_v37 = vld [vmem:[#allocation52_spill] sm:$0xff] }
 0x59f   :  { %2946 = vmatpush.msrb.mxu1 %v7665_v40  ;;  %2986 = vmatpush.msrb.mxu3 %v7671_v21  ;;  %v2649_v27 = vsel %vm2646_vm7, %v2648_v19, %v2644_v24  ;;  %vm2673_vm10 = vmor %vm2671_vm9, %vm2672_vm8  ;;  %v10148_v3 = vld [vmem:[#allocation13_spill] sm:$0xff]  ;;  %v10150_v19 = vld [vmem:[#allocation14_spill] sm:$0xff] }
 0x5a0   :  { %v2668_v18 = vsub.f32 1.0, %v2667_v11  ;;  %v2684_v4 = vmul.f32 %v3566_v10, %v2649_v27  ;;  %v10151_v11 = vld [vmem:[#allocation67_spill] sm:$0xff]  ;;  %v10153_v10 = vld [vmem:[#allocation70_spill] sm:$0xff]  ;;  %v10154_v27 = vld [vmem:[#allocation16_spill] sm:$0xff] }
 0x5a1   :  { %2947 = vmatpush.msrb.mxu1 %v7677_v41  ;;  %2987 = vmatpush.msrb.mxu3 %v7683_v44  ;;  %v2677_v41 = vand.u32 2147483648, %v8350_v48  ;;  %v2675_v44 = vand.u32 2147483647, %v8350_v48  ;;  %v10133_v48 = vld [vmem:[#allocation59_spill] sm:$0xff] }
 0x5a2   :  { %v2669_v7 = vmul.f32 %v3564_v23, %v2668_v18  ;;  %v8381_v40 = vadd.f32 %v2684_v4, %v2683_v0  ;;  %v10152_v24 = vld [vmem:[#allocation15_spill] sm:$0xff]  ;;  %v10156_v0 = vld [vmem:[#allocation17_spill] sm:$0xff]  ;;  %v10157_v4 = vld [vmem:[#allocation74_spill] sm:$0xff] }
 0x5a3   :  { %2948 = vmatpush.msrb.mxu1 %v7690_v16  ;;  %2988 = vmatpush.msrb.mxu3 %v7696_v60  ;;  %v2678_v60 = vor.u32 1.1754944e-38, %v2677_v41  ;;  %vm2676_vm11 = vcmp.eq.f32.partialorder %v2675_v44, 8.507059e+37  ;;  %v10155_v18 = vld [vmem:[#allocation71_spill] sm:$0xff]  ;;  %v10161_v44 = vld [vmem:[#allocation78_spill] sm:$0xff] }
 0x5a4   :  { %v2670_v21 = vadd.f32 %v3564_v23, %v2669_v7  ;;  %3567 = vtanh.f32 %v8381_v40  ;;  %v10158_v7 = vld [vmem:[#allocation18_spill] sm:$0xff]  ;;  %v10160_v41 = vld [vmem:[#allocation19_spill] sm:$0xff] }
 0x5a5   :  { %2949 = vmatpush.msrb.mxu1 %v7704_v14  ;;  %2989 = vmatpush.msrb.mxu3 %v7710_v38 }
 0x5a6   :  { %v2674_v16 = vsel %vm2673_vm10, %v3564_v23, %v2670_v21  ;;  %v10147_v23 = vld [vmem:[#allocation66_spill] sm:$0xff]  ;;  %v10159_v21 = vld [vmem:[#allocation75_spill] sm:$0xff] }
 0x5a7   :  { %2950 = vmatpush.msrb.mxu1 %v7720_v9  ;;  %2990 = vmatpush.msrb.mxu3 %v7726_v47  ;;  %v2679_v14 = vsel %vm2676_vm11, %v2678_v60, %v2674_v16  ;;  %v4193_v9 = vld [vmem:[%s8674_s1 + $0x1e0] sm:$0xff]  ;;  %v4194_v47 = vld [vmem:[%s8674_s1 + $0x1f0] sm:$0xff]  ;;  %v10162_v16 = vld [vmem:[#allocation20_spill] sm:$0xff] }
 0x5a8   :  { %v10163_v60 = vld [vmem:[#allocation79_spill] sm:$0xff] }
 0x5a9   :  { %2951 = vmatpush.msrb.mxu1 %v7732_v31  ;;  %2991 = vmatpush.msrb.mxu3 %v7738_v55  ;;  %v4195_v31 = vld [vmem:[%s8674_s1 + $0x1c0] sm:$0xff]  ;;  %v4196_v55 = vld [vmem:[%s8674_s1 + $0x1d0] sm:$0xff] }
 0x5aa   :  { %v3568_v59 = vpop.eup %3567 }
 0x5ab   :  { %2952 = vmatpush.msrb.mxu1 %v7744_v17  ;;  %2992 = vmatpush.msrb.mxu3 %v7750_v53  ;;  %v8395_v38 = vmul.f32 %v3568_v59, %v2679_v14  ;;  %v4197_v17 = vld [vmem:[%s8674_s1 + $0x1a0] sm:$0xff]  ;;  %v4198_v53 = vld [vmem:[%s8674_s1 + $0x1b0] sm:$0xff]  ;;  %v10165_v14 = vld [vmem:[#allocation82_spill] sm:$0xff] }
 0x5ac   :  { %v10164_v59 = vld [vmem:[#allocation21_spill] sm:$0xff] }
 0x5ad   :  { %2953 = vmatpush.msrb.mxu1 %v7758_v42  ;;  %2993 = vmatpush.msrb.mxu3 %v7764_v35  ;;  %v4199_v42 = vld [vmem:[%s8674_s1 + $0x180] sm:$0xff]  ;;  %v4200_v35 = vld [vmem:[%s8674_s1 + $0x190] sm:$0xff] }
 0x5ae   :  { %2707 = vmatmul.f32.vlgmr.msrb.gmra.mxu0 %v8395_v38  ;;  %2747 = vmatmul.f32.vlgmr.msrb.gmra.mxu2 %v8395_v38 }
 0x5af   :  { %2922 = vmatpush.msrb.mxu0 %v4193_v9  ;;  %2962 = vmatpush.msrb.mxu2 %v4194_v47  ;;  %v10167_v9 = vld [vmem:[#allocation23_spill] sm:$0xff]  ;;  %v10168_v47 = vld [vmem:[#allocation24_spill] sm:$0xff] }
 0x5b0   :  { %2954 = vmatpush.msrb.mxu1 %v7774_v33  ;;  %2994 = vmatpush.msrb.mxu3 %v7780_v56  ;;  %v4201_v33 = vld [vmem:[%s8674_s1 + $0x160] sm:$0xff]  ;;  %v4202_v56 = vld [vmem:[%s8674_s1 + $0x170] sm:$0xff] }
 0x5b1   :  { %2923 = vmatpush.msrb.mxu0 %v4195_v31  ;;  %2963 = vmatpush.msrb.mxu2 %v4196_v55  ;;  %v10169_v31 = vld [vmem:[#allocation83_spill] sm:$0xff]  ;;  %v10170_v55 = vld [vmem:[#allocation25_spill] sm:$0xff] }
 0x5b2   :  { %2955 = vmatpush.msrb.mxu1 %v7788_v61  ;;  %2995 = vmatpush.msrb.mxu3 %v7794_v34  ;;  %v4203_v61 = vld [vmem:[%s8674_s1 + $0x140] sm:$0xff]  ;;  %v4204_v34 = vld [vmem:[%s8674_s1 + $0x150] sm:$0xff] }
 0x5b3   :  { %2924 = vmatpush.msrb.mxu0 %v4197_v17  ;;  %2964 = vmatpush.msrb.mxu2 %v4198_v53  ;;  %v10171_v17 = vld [vmem:[#allocation86_spill] sm:$0xff] }
 0x5b4   :  { %2956 = vmatpush.msrb.mxu1 %v7802_v6  ;;  %2996 = vmatpush.msrb.mxu3 %v7808_v57  ;;  %v4205_v6 = vld [vmem:[%s8674_s1 + $0x120] sm:$0xff]  ;;  %v10172_v53 = vld [vmem:[#allocation26_spill] sm:$0xff] }
 0x5b5   :  { %2925 = vmatpush.msrb.mxu0 %v4199_v42  ;;  %2965 = vmatpush.msrb.mxu2 %v4200_v35  ;;  %v10123_v57 = vld [vmem:[#allocation41_spill] sm:$0xff]  ;;  %v10173_v42 = vld [vmem:[#allocation87_spill] sm:$0xff] }
 0x5b6   :  { %2957 = vmatpush.msrb.mxu1 %v7816_v8  ;;  %2997 = vmatpush.msrb.mxu3 %v7822_v20  ;;  %v4206_v8 = vld [vmem:[%s8674_s1 + $0x130] sm:$0xff] }
 0x5b7   :  { %2787 = vmatmul.f32.vlgmr.msra.gmra.mxu0 %v8395_v38  ;;  %2827 = vmatmul.f32.vlgmr.msra.gmra.mxu2 %v8395_v38  ;;  %v10124_v20 = vld [vmem:[#allocation51_spill] sm:$0xff] }
 0x5b8   :  { %2926 = vmatpush.msrb.mxu0 %v4201_v33  ;;  %2958 = vmatmul.f32.vlgmr.msrb.gmra.mxu1 %v8395_v38  ;;  %v10174_v35 = vld [vmem:[#allocation27_spill] sm:$0xff]  ;;  %v10175_v33 = vld [vmem:[#allocation90_spill] sm:$0xff] }
 0x5b9   :  { %2966 = vmatpush.msrb.mxu2 %v4202_v56  ;;  %2998 = vmatmul.f32.vlgmr.msrb.gmra.mxu3 %v8395_v38  ;;  %v10176_v56 = vld [vmem:[#allocation28_spill] sm:$0xff] }
 0x5ba   :  { %2927 = vmatpush.msrb.mxu0 %v4203_v61  ;;  %3093 = vmatpush.msra.mxu1 %v7832_v1  ;;  %v4207_v1 = vld [vmem:[%s8674_s1 + $0x100] sm:$0xff]  ;;  %v10177_v61 = vld [vmem:[#allocation91_spill] sm:$0xff] }
 0x5bb   :  { %2967 = vmatpush.msrb.mxu2 %v4204_v34  ;;  %3133 = vmatpush.msra.mxu3 %v7836_v29  ;;  %v10125_v29 = vld [vmem:[#allocation44_spill] sm:$0xff]  ;;  %v10178_v34 = vld [vmem:[#allocation29_spill] sm:$0xff] }
 0x5bc   :  { %2928 = vmatpush.msrb.mxu0 %v4205_v6  ;;  %3094 = vmatpush.msra.mxu1 %v10123_v57  ;;  %v10179_v6 = vld [vmem:[#allocation30_spill] sm:$0xff]  ;;  %v10180_v57 = vld [vmem:[#allocation31_spill] sm:$0xff] }
 0x5bd   :  { %2968 = vmatpush.msrb.mxu2 %v4206_v8  ;;  %3134 = vmatpush.msra.mxu3 %v10124_v20  ;;  %v10181_v8 = vld [vmem:[#allocation32_spill] sm:$0xff]  ;;  %v10182_v20 = vld [vmem:[#allocation33_spill] sm:$0xff] }
 0x5be   :  { %2929 = vmatpush.msrb.mxu0 %v4207_v1  ;;  %3095 = vmatpush.msra.mxu1 %v10125_v29  ;;  %v10183_v1 = vld [vmem:[#allocation34_spill] sm:$0xff]  ;;  %v10184_v29 = vld [vmem:[#allocation36_spill] sm:$0xff] }
 0x5bf   :  { %2969 = vmatpush.msrb.mxu2 %v4208_v5  ;;  %3135 = vmatpush.msra.mxu3 %v10126_v51  ;;  %v10185_v5 = vld [vmem:[#allocation37_spill] sm:$0xff]  ;;  %v10186_v51 = vld [vmem:[#allocation39_spill] sm:$0xff] }
 0x5c0   :  { %2930 = vmatpush.msrb.mxu0 %v4209_v25  ;;  %3096 = vmatpush.msra.mxu1 %v10127_v39  ;;  %v10187_v25 = vld [vmem:[#allocation40_spill] sm:$0xff]  ;;  %v10188_v39 = vld [vmem:[#allocation42_spill] sm:$0xff] }
 0x5c1   :  { %2970 = vmatpush.msrb.mxu2 %v4210_v30  ;;  %3136 = vmatpush.msra.mxu3 %v10128_v13  ;;  %v10189_v30 = vld [vmem:[#allocation43_spill] sm:$0xff]  ;;  %v10190_v13 = vld [vmem:[#allocation68_spill] sm:$0xff] }
 0x5c2   :  { %2931 = vmatpush.msrb.mxu0 %v10129_v36  ;;  %3097 = vmatpush.msra.mxu1 %v10130_v22  ;;  %v10191_v36 = vld [vmem:[#allocation69_spill] sm:$0xff]  ;;  %v10192_v22 = vld [vmem:[#allocation72_spill] sm:$0xff] }
 0x5c3   :  { %2971 = vmatpush.msrb.mxu2 %v10131_v2  ;;  %3137 = vmatpush.msra.mxu3 %v10132_v54  ;;  %v10193_v2 = vld [vmem:[#allocation73_spill] sm:$0xff]  ;;  %v10194_v54 = vld [vmem:[#allocation76_spill] sm:$0xff] }
 0x5c4   :  { %2932 = vmatpush.msrb.mxu0 %v10133_v48  ;;  %3098 = vmatpush.msra.mxu1 %v10134_v37  ;;  %v10195_v48 = vld [vmem:[#allocation77_spill] sm:$0xff]  ;;  %v10196_v37 = vld [vmem:[#allocation80_spill] sm:$0xff] }
 0x5c5   :  { %2972 = vmatpush.msrb.mxu2 %v10135_v26  ;;  %3138 = vmatpush.msra.mxu3 %v10136_v28  ;;  %v10197_v26 = vld [vmem:[#allocation81_spill] sm:$0xff]  ;;  %v10198_v28 = vld [vmem:[#allocation84_spill] sm:$0xff] }
 0x5c6   :  { %2933 = vmatpush.msrb.mxu0 %v10137_v52  ;;  %3099 = vmatpush.msra.mxu1 %v10138_v43  ;;  %v10199_v52 = vld [vmem:[#allocation85_spill] sm:$0xff]  ;;  %v10200_v43 = vld [vmem:[#allocation88_spill] sm:$0xff] }
 0x5c7   :  { %2973 = vmatpush.msrb.mxu2 %v10139_v63  ;;  %3139 = vmatpush.msra.mxu3 %v10140_v46  ;;  %v10201_v63 = vld [vmem:[#allocation89_spill] sm:$0xff]  ;;  %v10202_v46 = vld [vmem:[#allocation92_spill] sm:$0xff] }
 0x5c8   :  { %2934 = vmatpush.msrb.mxu0 %v10141_v32  ;;  %3100 = vmatpush.msra.mxu1 %v10142_v15  ;;  %v10203_v32 = vld [vmem:[#allocation93_spill] sm:$0xff]  ;;  %v10204_v15 = vld [vmem:[#allocation94_spill] sm:$0xff] }
 0x5c9   :  { %2974 = vmatpush.msrb.mxu2 %v10143_v62  ;;  %3140 = vmatpush.msra.mxu3 %v10144_v58  ;;  %v10205_v62 = vld [vmem:[#allocation95_spill] sm:$0xff]  ;;  %v10206_v58 = vld [vmem:[#allocation96_spill] sm:$0xff] }
 0x5ca   :  { %2935 = vmatpush.msrb.mxu0 %v10145_v50  ;;  %3101 = vmatpush.msra.mxu1 %v10146_v12  ;;  %v10207_v50 = vld [vmem:[#allocation97_spill] sm:$0xff]  ;;  %v10208_v12 = vld [vmem:[#allocation98_spill] sm:$0xff] }
 0x5cb   :  { %2975 = vmatpush.msrb.mxu2 %v10147_v23  ;;  %3141 = vmatpush.msra.mxu3 %v10148_v3  ;;  %v10209_v23 = vld [vmem:[#allocation99_spill] sm:$0xff]  ;;  %v10210_v3 = vld [vmem:[#allocation100_spill] sm:$0xff] }
 0x5cc   :  { %2936 = vmatpush.msrb.mxu0 %v10149_v45  ;;  %3102 = vmatpush.msra.mxu1 %v10150_v19  ;;  %v10211_v45 = vld [vmem:[#allocation101_spill] sm:$0xff]  ;;  %v10212_v19 = vld [vmem:[#allocation102_spill] sm:$0xff] }
 0x5cd   :  { %2976 = vmatpush.msrb.mxu2 %v10151_v11  ;;  %3142 = vmatpush.msra.mxu3 %v10152_v24  ;;  %v10213_v11 = vld [vmem:[#allocation103_spill] sm:$0xff]  ;;  %v10214_v24 = vld [vmem:[#allocation104_spill] sm:$0xff] }
 0x5ce   :  { %2937 = vmatpush.msrb.mxu0 %v10153_v10  ;;  %3103 = vmatpush.msra.mxu1 %v10154_v27  ;;  %v10215_v10 = vld [vmem:[#allocation105_spill] sm:$0xff]  ;;  %v10216_v27 = vld [vmem:[#allocation106_spill] sm:$0xff] }
 0x5cf   :  { %2977 = vmatpush.msrb.mxu2 %v10155_v18  ;;  %2938 = vmatmul.f32.vlgmr.msrb.gmra.mxu0 %v8395_v38  ;;  %v10217_v18 = vld [vmem:[#allocation107_spill] sm:$0xff] }
 0x5d0   :  { %2978 = vmatmul.f32.vlgmr.msrb.gmra.mxu2 %v8395_v38  ;;  %3143 = vmatpush.msra.mxu3 %v10156_v0  ;;  %v10166_v38 = vld [vmem:[#allocation22_spill] sm:$0xff]  ;;  %v10218_v0 = vld [vmem:[#allocation108_spill] sm:$0xff] }
 0x5d1   :  { %3104 = vmatpush.msra.mxu1 %v10157_v4  ;;  %3073 = vmatpush.msra.mxu0 %v10158_v7  ;;  %v10219_v4 = vld [vmem:[#allocation109_spill] sm:$0xff]  ;;  %v10220_v7 = vld [vmem:[#allocation110_spill] sm:$0xff] }
 0x5d2   :  { %3144 = vmatpush.msra.mxu3 %v10159_v21  ;;  %3113 = vmatpush.msra.mxu2 %v10160_v41  ;;  %v10221_v21 = vld [vmem:[#allocation111_spill] sm:$0xff]  ;;  %v10222_v41 = vld [vmem:[#allocation112_spill] sm:$0xff] }
 0x5d3   :  { %3105 = vmatpush.msra.mxu1 %v10161_v44  ;;  %3074 = vmatpush.msra.mxu0 %v10162_v16  ;;  %v10223_v44 = vld [vmem:[#allocation113_spill] sm:$0xff]  ;;  %v10224_v16 = vld [vmem:[#allocation114_spill] sm:$0xff] }
 0x5d4   :  { %3145 = vmatpush.msra.mxu3 %v10163_v60  ;;  %3114 = vmatpush.msra.mxu2 %v10164_v59  ;;  %v10225_v60 = vld [vmem:[#allocation115_spill] sm:$0xff]  ;;  %v10226_v59 = vld [vmem:[#allocation116_spill] sm:$0xff] }
 0x5d5   :  { %3106 = vmatpush.msra.mxu1 %v10165_v14  ;;  %3075 = vmatpush.msra.mxu0 %v10166_v38  ;;  %v10227_v14 = vld [vmem:[#allocation117_spill] sm:$0xff]  ;;  %v10228_v38 = vld [vmem:[#allocation118_spill] sm:$0xff] }
 0x5d6   :  { %3146 = vmatpush.msra.mxu3 %v10167_v9  ;;  %3115 = vmatpush.msra.mxu2 %v10168_v47  ;;  %v10229_v9 = vld [vmem:[#allocation119_spill] sm:$0xff]  ;;  %v10230_v47 = vld [vmem:[#allocation120_spill] sm:$0xff] }
 0x5d7   :  { %3107 = vmatpush.msra.mxu1 %v10169_v31  ;;  %3076 = vmatpush.msra.mxu0 %v10170_v55  ;;  %v10231_v31 = vld [vmem:[#allocation121_spill] sm:$0xff]  ;;  %v10232_v55 = vld [vmem:[#allocation122_spill] sm:$0xff] }
 0x5d8   :  { %3147 = vmatpush.msra.mxu3 %v10171_v17  ;;  %3116 = vmatpush.msra.mxu2 %v10172_v53  ;;  %v10233_v17 = vld [vmem:[#allocation123_spill] sm:$0xff]  ;;  %v10234_v53 = vld [vmem:[#allocation124_spill] sm:$0xff] }
 0x5d9   :  { %3108 = vmatpush.msra.mxu1 %v10173_v42  ;;  %3077 = vmatpush.msra.mxu0 %v10174_v35  ;;  %v10235_v42 = vld [vmem:[#allocation125_spill] sm:$0xff]  ;;  %v10236_v35 = vld [vmem:[#allocation126_spill] sm:$0xff] }
 0x5da   :  { %3148 = vmatpush.msra.mxu3 %v10175_v33  ;;  %3117 = vmatpush.msra.mxu2 %v10176_v56  ;;  %v10237_v33 = vld [vmem:[#allocation127_spill] sm:$0xff]  ;;  %v10238_v56 = vld [vmem:[#allocation128_spill] sm:$0xff] }
 0x5db   :  { %3173 = vmatpush.msrb.mxu1 %v10177_v61  ;;  %3078 = vmatpush.msra.mxu0 %v10179_v6  ;;  %v10239_v61 = vld [vmem:[#allocation129_spill] sm:$0xff]  ;;  %v10241_v6 = vld [vmem:[#allocation131_spill] sm:$0xff] }
 0x5dc   :  { %3213 = vmatpush.msrb.mxu3 %v10178_v34  ;;  %3118 = vmatpush.msra.mxu2 %v10180_v57  ;;  %v10240_v34 = vld [vmem:[#allocation130_spill] sm:$0xff]  ;;  %v10242_v57 = vld [vmem:[#allocation132_spill] sm:$0xff] }
 0x5dd   :  { %3174 = vmatpush.msrb.mxu1 %v10181_v8  ;;  %3079 = vmatpush.msra.mxu0 %v10183_v1  ;;  %v10243_v8 = vld [vmem:[#allocation133_spill] sm:$0xff]  ;;  %v10245_v1 = vld [vmem:[#allocation135_spill] sm:$0xff] }
 0x5de   :  { %3214 = vmatpush.msrb.mxu3 %v10182_v20  ;;  %3119 = vmatpush.msra.mxu2 %v10184_v29  ;;  %v10244_v20 = vld [vmem:[#allocation134_spill] sm:$0xff]  ;;  %v10246_v29 = vld [vmem:[#allocation136_spill] sm:$0xff] }
 0x5df   :  { %3175 = vmatpush.msrb.mxu1 %v10185_v5  ;;  %3080 = vmatpush.msra.mxu0 %v10187_v25  ;;  %v10247_v5 = vld [vmem:[#allocation137_spill] sm:$0xff]  ;;  %v10249_v25 = vld [vmem:[#allocation139_spill] sm:$0xff] }
 0x5e0   :  { %3215 = vmatpush.msrb.mxu3 %v10186_v51  ;;  %3120 = vmatpush.msra.mxu2 %v10188_v39  ;;  %v10248_v51 = vld [vmem:[#allocation138_spill] sm:$0xff]  ;;  %v10250_v39 = vld [vmem:[#allocation140_spill] sm:$0xff] }
 0x5e1   :  { %3176 = vmatpush.msrb.mxu1 %v10189_v30  ;;  %3081 = vmatpush.msra.mxu0 %v10191_v36  ;;  %v10251_v30 = vld [vmem:[#allocation141_spill] sm:$0xff]  ;;  %v10253_v36 = vld [vmem:[#allocation143_spill] sm:$0xff] }
 0x5e2   :  { %3216 = vmatpush.msrb.mxu3 %v10190_v13  ;;  %3121 = vmatpush.msra.mxu2 %v10192_v22  ;;  %v10252_v13 = vld [vmem:[#allocation142_spill] sm:$0xff]  ;;  %v10254_v22 = vld [vmem:[#allocation144_spill] sm:$0xff] }
 0x5e3   :  { %3177 = vmatpush.msrb.mxu1 %v10193_v2  ;;  %3082 = vmatpush.msra.mxu0 %v10195_v48  ;;  %v10255_v2 = vld [vmem:[#allocation145_spill] sm:$0xff]  ;;  %v10257_v48 = vld [vmem:[#allocation147_spill] sm:$0xff] }
 0x5e4   :  { %3217 = vmatpush.msrb.mxu3 %v10194_v54  ;;  %3122 = vmatpush.msra.mxu2 %v10196_v37  ;;  %v10256_v54 = vld [vmem:[#allocation146_spill] sm:$0xff]  ;;  %v10258_v37 = vld [vmem:[#allocation148_spill] sm:$0xff] }
 0x5e5   :  { %3178 = vmatpush.msrb.mxu1 %v10197_v26  ;;  %3083 = vmatpush.msra.mxu0 %v10199_v52  ;;  %v10259_v26 = vld [vmem:[#allocation149_spill] sm:$0xff]  ;;  %v10261_v52 = vld [vmem:[#allocation151_spill] sm:$0xff] }
 0x5e6   :  { %3218 = vmatpush.msrb.mxu3 %v10198_v28  ;;  %3123 = vmatpush.msra.mxu2 %v10200_v43  ;;  %v10260_v28 = vld [vmem:[#allocation150_spill] sm:$0xff]  ;;  %v10262_v43 = vld [vmem:[#allocation152_spill] sm:$0xff] }
 0x5e7   :  { %3179 = vmatpush.msrb.mxu1 %v10201_v63  ;;  %3084 = vmatpush.msra.mxu0 %v10203_v32  ;;  %v10263_v32 = vld [vmem:[#allocation35_spill] sm:$0xff] }
 0x5e8   :  { %3219 = vmatpush.msrb.mxu3 %v10202_v46  ;;  %3124 = vmatpush.msra.mxu2 %v10204_v15 }
 0x5e9   :  { %3180 = vmatpush.msrb.mxu1 %v10205_v62  ;;  %3085 = vmatpush.msra.mxu0 %v10207_v50 }
 0x5ea   :  { %3220 = vmatpush.msrb.mxu3 %v10206_v58  ;;  %3125 = vmatpush.msra.mxu2 %v10208_v12 }
 0x5eb   :  { %3181 = vmatpush.msrb.mxu1 %v10209_v23  ;;  %3086 = vmatpush.msra.mxu0 %v10211_v45  ;;  %v10264_v23 = vld [vmem:[#allocation47_spill] sm:$0xff] }
 0x5ec   :  { %3221 = vmatpush.msrb.mxu3 %v10210_v3  ;;  %3126 = vmatpush.msra.mxu2 %v10212_v19  ;;  %v2918_v19 = vld [vmem:[%s8673_s0 + $0xe8] sm:$0xff] }
 0x5ed   :  { %3182 = vmatpush.msrb.mxu1 %v10213_v11  ;;  %3087 = vmatpush.msra.mxu0 %v10215_v10  ;;  %v10265_v10 = vld [vmem:[#allocation38_spill] sm:$0xff] }
 0x5ee   :  { %3222 = vmatpush.msrb.mxu3 %v10214_v24  ;;  %3127 = vmatpush.msra.mxu2 %v10216_v27 }
 0x5ef   :  { %3183 = vmatpush.msrb.mxu1 %v10217_v18  ;;  %3088 = vmatpush.msra.mxu0 %v10219_v4 }
 0x5f0   :  { %3223 = vmatpush.msrb.mxu3 %v10218_v0  ;;  %3128 = vmatpush.msra.mxu2 %v10220_v7 }
 0x5f1   :  { %3184 = vmatpush.msrb.mxu1 %v10221_v21  ;;  %3153 = vmatpush.msrb.mxu0 %v10223_v44 }
 0x5f2   :  { %3224 = vmatpush.msrb.mxu3 %v10222_v41  ;;  %3193 = vmatpush.msrb.mxu2 %v10224_v16 }
 0x5f3   :  { %3185 = vmatpush.msrb.mxu1 %v10225_v60  ;;  %3154 = vmatpush.msrb.mxu0 %v10227_v14 }
 0x5f4   :  { %3225 = vmatpush.msrb.mxu3 %v10226_v59  ;;  %3194 = vmatpush.msrb.mxu2 %v10228_v38 }
 0x5f5   :  { %3186 = vmatpush.msrb.mxu1 %v10229_v9  ;;  %3155 = vmatpush.msrb.mxu0 %v10231_v31  ;;  %v10266_v31 = vld [vmem:[#allocation49_spill] sm:$0xff] }
 0x5f6   :  { %3226 = vmatpush.msrb.mxu3 %v10230_v47  ;;  %3195 = vmatpush.msrb.mxu2 %v10232_v55 }
 0x5f7   :  { %3187 = vmatpush.msrb.mxu1 %v10233_v17  ;;  %3156 = vmatpush.msrb.mxu0 %v10235_v42 }
 0x5f8   :  { %3227 = vmatpush.msrb.mxu3 %v10234_v53  ;;  %3196 = vmatpush.msrb.mxu2 %v10236_v35 }
 0x5f9   :  { %3188 = vmatpush.msrb.mxu1 %v10237_v33  ;;  %3157 = vmatpush.msrb.mxu0 %v10239_v61 }
 0x5fa   :  { %3228 = vmatpush.msrb.mxu3 %v10238_v56  ;;  %3197 = vmatpush.msrb.mxu2 %v10240_v34 }
 0x5fb   :  { %3158 = vmatpush.msrb.mxu0 %v10241_v6 }
 0x5fc   :  { %3198 = vmatpush.msrb.mxu2 %v10242_v57 }
 0x5fd   :  { %3159 = vmatpush.msrb.mxu0 %v10243_v8 }
 0x5fe   :  { %3199 = vmatpush.msrb.mxu2 %v10244_v20 }
 0x5ff   :  { %3160 = vmatpush.msrb.mxu0 %v10245_v1 }
 0x600   :  { %3200 = vmatpush.msrb.mxu2 %v10246_v29  ;;  %v2917_v29 = vld [vmem:[%s8673_s0 + $0xe0] sm:$0xff] }
 0x601   :  { %3161 = vmatpush.msrb.mxu0 %v10247_v5 }
 0x602   :  { %3201 = vmatpush.msrb.mxu2 %v10248_v51 }
 0x603   :  { %3162 = vmatpush.msrb.mxu0 %v10249_v25 }
 0x604   :  { %3202 = vmatpush.msrb.mxu2 %v10250_v39 }
 0x605   :  { %3163 = vmatpush.msrb.mxu0 %v10251_v30 }
 0x606   :  { %3203 = vmatpush.msrb.mxu2 %v10252_v13 }
 0x607   :  { %3164 = vmatpush.msrb.mxu0 %v10253_v36 }
 0x608   :  { %3204 = vmatpush.msrb.mxu2 %v10254_v22 }
 0x609   :  { %3165 = vmatpush.msrb.mxu0 %v10255_v2 }
 0x60a   :  { %3205 = vmatpush.msrb.mxu2 %v10256_v54 }
 0x60b   :  { %3166 = vmatpush.msrb.mxu0 %v10257_v48 }
 0x60c   :  { %3206 = vmatpush.msrb.mxu2 %v10258_v37 }
 0x60d   :  { %3167 = vmatpush.msrb.mxu0 %v10259_v26 }
 0x60e   :  { %3207 = vmatpush.msrb.mxu2 %v10260_v28 }
 0x60f   :  { %3168 = vmatpush.msrb.mxu0 %v10261_v52 }
 0x610   :  { %3208 = vmatpush.msrb.mxu2 %v10262_v43 }
 0x613   :  { %v2728_v63 = vpop.f32.mrf.mxu1 }
 0x619   :  { %v2768_v45 = vpop.f32.mrf.mxu3 }
 0x61b   :  { %v2808_v62 = vpop.f32.mrf.mxu1 }
 0x621   :  { %v2848_v35 = vpop.f32.mrf.mxu3 }
 0x62b   :  { %v2708_v46 = vpop.f32.mrf.mxu0 }
 0x62c   :  { %v2709_v15 = vadd.f32 %v2708_v46, %v10263_v32 }
 0x62e   :  { %v2729_v58 = vadd.f32 %v2728_v63, %v2709_v15 }
 0x630   :  { %v3348_v50 = vmul.f32 -1.442695, %v2729_v58 }
 0x631   :  { %v2748_v12 = vpop.f32.mrf.mxu2 }
 0x632   :  { %3569 = vpow2.f32 %v3348_v50  ;;  %v2749_v3 = vadd.f32 %v2748_v12, %v10264_v23 }
 0x634   :  { %v2769_v11 = vadd.f32 %v2768_v45, %v2749_v3  ;;  %v2788_v24 = vpop.f32.mrf.mxu0 }
 0x635   :  { %v2789_v27 = vadd.f32 %v2788_v24, %v10265_v10  ;;  %v2959_v18 = vpop.f32.mrf.mxu1 }
 0x636   :  { %v3349_v0 = vmul.f32 -1.442695, %v2769_v11  ;;  %v3003_v4 = vadd.f32 %v2959_v18, %v2918_v19 }
 0x637   :  { %v2809_v7 = vadd.f32 %v2808_v62, %v2789_v27  ;;  %v2919_v62 = vld [vmem:[%s8673_s0 + $0xf0] sm:$0xff] }
 0x638   :  { %v3570_v21 = vpop.eup %3569  ;;  %3571 = vpow2.f32 %v3349_v0  ;;  %v3352_v16 = vmul.f32 -1.442695, %v3003_v4 }
 0x639   :  { %v2860_v41 = vadd.f32 1.0, %v3570_v21  ;;  %v3350_v44 = vmul.f32 -1.442695, %v2809_v7 }
 0x63a   :  { %v2828_v14 = vpop.f32.mrf.mxu2 }
 0x63b   :  { %3573 = vrcp.f32 %v2860_v41  ;;  %v2829_v55 = vadd.f32 %v2828_v14, %v10266_v31  ;;  %v2874_v8 = vand.u32 2147483648, %v2860_v41  ;;  %vm2868_vm13 = vweird.f32 %v2860_v41 }
 0x63c   :  { %3575 = vpow2.f32 %v3350_v44  ;;  %v2872_v1 = vand.u32 2147483647, %v2860_v41  ;;  %v2999_v14 = vpop.f32.mrf.mxu3 }
 0x63d   :  { %3577 = vpow2.f32 %v3352_v16  ;;  %v2849_v33 = vadd.f32 %v2848_v35, %v2829_v55  ;;  %v2875_v2 = vor.u32 1.1754944e-38, %v2874_v8 }
 0x63e   :  { %v3572_v60 = vpop.eup %3571  ;;  %vm2873_vm1 = vcmp.eq.f32.partialorder %v2872_v1, 8.507059e+37 }
 0x63f   :  { %v2861_v59 = vadd.f32 1.0, %v3572_v60 }
 0x641   :  { %v3574_v38 = vpop.eup %3573  ;;  %3579 = vrcp.f32 %v2861_v59  ;;  %v2889_v51 = vand.u32 2147483648, %v2861_v59  ;;  %v2887_v39 = vand.u32 2147483647, %v2861_v59  ;;  %vm2883_vm0 = vweird.f32 %v2861_v59 }
 0x642   :  { %v3576_v9 = vpop.eup %3575  ;;  %v2864_v47 = vmul.f32 %v3574_v38, %v2860_v41  ;;  %vm2869_vm12 = vweird.f32 %v3574_v38 }
 0x643   :  { %v8618_v17 = vadd.f32 1.0, %v3576_v9  ;;  %v3578_v53 = vpop.eup %3577  ;;  %vm8627_vm14 = vmor %vm2868_vm13, %vm2869_vm12  ;;  %v2890_v26 = vor.u32 1.1754944e-38, %v2889_v51  ;;  %vm2888_vm3 = vcmp.eq.f32.partialorder %v2887_v39, 8.507059e+37 }
 0x644   :  { %v2865_v42 = vsub.f32 1.0, %v2864_v47  ;;  %v8621_v34 = vadd.f32 1.0, %v3578_v53 }
 0x645   :  { %3581 = vrcp.f32 %v8618_v17  ;;  %v2904_v18 = vand.u32 2147483648, %v8618_v17  ;;  %vm2898_vm5 = vweird.f32 %v8618_v17 }
 0x646   :  { %v2866_v56 = vmul.f32 %v3574_v38, %v2865_v42  ;;  %3583 = vtanh.f32 %v2849_v33  ;;  %v3044_v35 = vand.u32 2147483648, %v8621_v34  ;;  %vm3038_vm9 = vweird.f32 %v8621_v34 }
 0x647   :  { %v3580_v61 = vpop.eup %3579  ;;  %3585 = vrcp.f32 %v8621_v34  ;;  %v2905_v41 = vor.u32 1.1754944e-38, %v2904_v18  ;;  %v3042_v33 = vand.u32 2147483647, %v8621_v34 }
 0x648   :  { %v2879_v6 = vmul.f32 %v3580_v61, %v2861_v59  ;;  %v2867_v57 = vadd.f32 %v3574_v38, %v2866_v56  ;;  %vm2884_vm15 = vweird.f32 %v3580_v61  ;;  %v2920_v59 = vld [vmem:[%s8673_s0 + $0xf8] sm:$0xff]  ;;  %v3045_v1 = vor.u32 1.1754944e-38, %v3044_v35 }
 0x649   :  { %vm2885_vm2 = vmor %vm2883_vm0, %vm2884_vm15  ;;  %vm3043_vm12 = vcmp.eq.f32.partialorder %v3042_v33, 8.507059e+37 }
 0x64a   :  { %v2880_v20 = vsub.f32 1.0, %v2879_v6  ;;  %v2871_v36 = vsel %vm8627_vm14, %v3574_v38, %v2867_v57 }
 0x64b   :  { %v3582_v5 = vpop.eup %3581  ;;  %v2876_v28 = vsel %vm2873_vm1, %v2875_v2, %v2871_v36 }
 0x64c   :  { %v2881_v30 = vmul.f32 %v3580_v61, %v2880_v20  ;;  %v2894_v13 = vmul.f32 %v3582_v5, %v8618_v17  ;;  %v2939_v22 = vpop.f32.mrf.mxu0  ;;  %v3584_v43 = vpop.eup %3583  ;;  %vm2899_vm4 = vweird.f32 %v3582_v5 }
 0x64d   :  { %v3002_v54 = vadd.f32 %v2939_v22, %v2917_v29  ;;  %v8634_v46 = vpop.eup %3585  ;;  %v2911_v12 = vmul.f32 %v3584_v43, %v2876_v28  ;;  %vm2900_vm6 = vmor %vm2898_vm5, %vm2899_vm4 }
 0x64e   :  { %v2895_v48 = vsub.f32 1.0, %v2894_v13  ;;  %v2882_v37 = vadd.f32 %v3580_v61, %v2881_v30  ;;  %v3034_v11 = vmul.f32 %v8634_v46, %v8621_v34  ;;  %vm3039_vm8 = vweird.f32 %v8634_v46 }
 0x64f   :  { %v3351_v52 = vmul.f32 -1.442695, %v3002_v54  ;;  %vm8657_vm10 = vmor %vm3038_vm9, %vm3039_vm8 }
 0x650   :  { %v2886_v63 = vsel %vm2885_vm2, %v3580_v61, %v2882_v37  ;;  %v2896_v58 = vmul.f32 %v3582_v5, %v2895_v48  ;;  %v3035_v7 = vsub.f32 1.0, %v3034_v11 }
 0x651   :  { %v2891_v15 = vsel %vm2888_vm3, %v2890_v26, %v2886_v63  ;;  %3587 = vpow2.f32 %v3351_v52 }
 0x652   :  { %v2910_v50 = vmul.f32 %v2891_v15, %v8338_v49  ;;  %v2897_v24 = vadd.f32 %v3582_v5, %v2896_v58  ;;  %v2902_v49 = vand.u32 2147483647, %v8618_v17  ;;  %v3036_v60 = vmul.f32 %v8634_v46, %v3035_v7 }
 0x653   :  { %v2979_v3 = vpop.f32.mrf.mxu2  ;;  %v3005_v17 = vadd.f32 %v2999_v14, %v2920_v59 }
 0x654   :  { %v8640_v45 = vadd.f32 %v2911_v12, %v2910_v50  ;;  %v3004_v19 = vadd.f32 %v2979_v3, %v2919_v62  ;;  %v2901_v21 = vsel %vm2900_vm6, %v3582_v5, %v2897_v24  ;;  %vm2903_vm7 = vcmp.eq.f32.partialorder %v2902_v49, 8.507059e+37 }
 0x655   :  { %v2906_v16 = vsel %vm2903_vm7, %v2905_v41, %v2901_v21  ;;  %v3037_v53 = vadd.f32 %v8634_v46, %v3036_v60 }
 0x656   :  { %3589 = vtanh.f32 %v8640_v45  ;;  %v3353_v27 = vmul.f32 -1.442695, %v3004_v19 }
 0x657   :  { %v3588_v0 = vpop.eup %3587  ;;  %v3041_v57 = vsel %vm8657_vm10, %v8634_v46, %v3037_v53 }
 0x658   :  { %v3015_v4 = vadd.f32 1.0, %v3588_v0  ;;  %3591 = vpow2.f32 %v3353_v27  ;;  %v3046_v25 = vsel %vm3043_vm12, %v3045_v1, %v3041_v57 }
 0x659   :  { %v3065_v22 = vmul.f32 %v3046_v25, %v8381_v40 }
 0x65a   :  { %3593 = vrcp.f32 %v3015_v4  ;;  %v3029_v6 = vand.u32 2147483648, %v3015_v4  ;;  %v3027_v20 = vand.u32 2147483647, %v3015_v4  ;;  %vm3023_vm13 = vweird.f32 %v3015_v4 }
 0x65c   :  { %v3590_v44 = vpop.eup %3589  ;;  %v3030_v34 = vor.u32 1.1754944e-38, %v3029_v6  ;;  %vm3028_vm15 = vcmp.eq.f32.partialorder %v3027_v20, 8.507059e+37 }
 0x65d   :  { %v2914_v38 = vmul.f32 %v3590_v44, %v2906_v16 }
 0x65e   :  { %v3592_v9 = vpop.eup %3591 }
 0x65f   :  { %v3017_v47 = vadd.f32 1.0, %v3592_v9  ;;  %3109 = vmatmul.f32.vlgmr.msra.gmra.mxu1 %v2914_v38  ;;  %3149 = vmatmul.f32.vlgmr.msra.gmra.mxu3 %v2914_v38 }
 0x660   :  { %v3594_v55 = vpop.eup %3593 }
 0x661   :  { %v3019_v42 = vmul.f32 %v3594_v55, %v3015_v4  ;;  %3595 = vrcp.f32 %v3017_v47  ;;  %vm3024_vm11 = vweird.f32 %v3594_v55  ;;  %v3059_v26 = vand.u32 2147483648, %v3017_v47 }
 0x662   :  { %3597 = vtanh.f32 %v3005_v17  ;;  %vm3025_vm14 = vmor %vm3023_vm13, %vm3024_vm11  ;;  %vm3053_vm1 = vweird.f32 %v3017_v47  ;;  %v3057_v28 = vand.u32 2147483647, %v3017_v47 }
 0x663   :  { %v3020_v56 = vsub.f32 1.0, %v3019_v42  ;;  %v3060_v43 = vor.u32 1.1754944e-38, %v3059_v26 }
 0x664   :  { %vm3058_vm3 = vcmp.eq.f32.partialorder %v3057_v28, 8.507059e+37 }
 0x665   :  { %v3021_v8 = vmul.f32 %v3594_v55, %v3020_v56 }
 0x667   :  { %v3596_v29 = vpop.eup %3595  ;;  %v3022_v5 = vadd.f32 %v3594_v55, %v3021_v8  ;;  %3189 = vmatmul.f32.vlgmr.msrb.gmra.mxu1 %v2914_v38  ;;  %3229 = vmatmul.f32.vlgmr.msrb.gmra.mxu3 %v2914_v38 }
 0x668   :  { %v3049_v51 = vmul.f32 %v3596_v29, %v3017_v47  ;;  %v3598_v30 = vpop.eup %3597  ;;  %vm3054_vm0 = vweird.f32 %v3596_v29 }
 0x669   :  { %v3026_v39 = vsel %vm3025_vm14, %v3594_v55, %v3022_v5  ;;  %vm3055_vm2 = vmor %vm3053_vm1, %vm3054_vm0 }
 0x66a   :  { %v3050_v13 = vsub.f32 1.0, %v3049_v51  ;;  %v3031_v36 = vsel %vm3028_vm15, %v3030_v34, %v3026_v39 }
 0x66b   :  { %v3066_v2 = vmul.f32 %v3598_v30, %v3031_v36 }
 0x66c   :  { %v3051_v54 = vmul.f32 %v3596_v29, %v3050_v13 }
 0x66d   :  { %v3067_v48 = vadd.f32 %v3066_v2, %v3065_v22 }
 0x66e   :  { %v3052_v37 = vadd.f32 %v3596_v29, %v3051_v54 }
 0x66f   :  { %3599 = vtanh.f32 %v3067_v48 }
 0x670   :  { %v3056_v52 = vsel %vm3055_vm2, %v3596_v29, %v3052_v37 }
 0x671   :  { %v3061_v46 = vsel %vm3058_vm3, %v3060_v43, %v3056_v52 }
 0x675   :  { %v3600_v63 = vpop.eup %3599 }
 0x676   :  { %v3069_v15 = vmul.f32 %v3600_v63, %v3061_v46 }
 0x678   :  { %3089 = vmatmul.f32.vlgmr.msra.gmra.mxu0 %v3069_v15  ;;  %3129 = vmatmul.f32.vlgmr.msra.gmra.mxu2 %v3069_v15 }
 0x680   :  { %3169 = vmatmul.f32.vlgmr.msrb.gmra.mxu0 %v3069_v15  ;;  %3209 = vmatmul.f32.vlgmr.msrb.gmra.mxu2 %v3069_v15 }
 0x6dc   :  { %v3110_v40 = vpop.f32.mrf.mxu1 }
 0x6e2   :  { %v3150_v11 = vpop.f32.mrf.mxu3 }
 0x6e4   :  { %v3190_v0 = vpop.f32.mrf.mxu1 }
 0x6ea   :  { %v3230_v9 = vpop.f32.mrf.mxu3 }
 0x6f5   :  { %v3090_v62 = vpop.f32.mrf.mxu0 }
 0x6f6   :  { %v3091_v58 = vadd.f32 %v3090_v62, %v10263_v32 }
 0x6f8   :  { %v3111_v50 = vadd.f32 %v3110_v40, %v3091_v58 }
 0x6fa   :  { %v3354_v12 = vmul.f32 -1.442695, %v3111_v50 }
 0x6fb   :  { %v3130_v3 = vpop.f32.mrf.mxu2 }
 0x6fc   :  { %3601 = vpow2.f32 %v3354_v12  ;;  %v3131_v19 = vadd.f32 %v3130_v3, %v10264_v23 }
 0x6fd   :  { %v3170_v24 = vpop.f32.mrf.mxu0 }
 0x6fe   :  { %v3151_v27 = vadd.f32 %v3150_v11, %v3131_v19  ;;  %v3171_v18 = vadd.f32 %v3170_v24, %v10265_v10 }
 0x700   :  { %v3355_v49 = vmul.f32 -1.442695, %v3151_v27  ;;  %v3191_v4 = vadd.f32 %v3190_v0, %v3171_v18 }
 0x702   :  { %v3602_v7 = vpop.eup %3601  ;;  %3603 = vpow2.f32 %v3355_v49  ;;  %v3356_v21 = vmul.f32 -1.442695, %v3191_v4 }
 0x703   :  { %v3242_v41 = vadd.f32 1.0, %v3602_v7  ;;  %v3210_v60 = vpop.f32.mrf.mxu2 }
 0x704   :  { %3605 = vpow2.f32 %v3356_v21  ;;  %v3211_v10 = vadd.f32 %v3210_v60, %v10266_v31 }
 0x705   :  { %3607 = vrcp.f32 %v3242_v41  ;;  %v3256_v33 = vand.u32 2147483648, %v3242_v41  ;;  %vm3250_vm5 = vweird.f32 %v3242_v41  ;;  %v3254_v6 = vand.u32 2147483647, %v3242_v41 }
 0x706   :  { %v3231_v17 = vadd.f32 %v3230_v9, %v3211_v10 }
 0x707   :  { %v3257_v29 = vor.u32 1.1754944e-38, %v3256_v33  ;;  %vm3255_vm9 = vcmp.eq.f32.partialorder %v3254_v6, 8.507059e+37 }
 0x708   :  { %v3604_v32 = vpop.eup %3603 }
 0x709   :  { %v3243_v44 = vadd.f32 1.0, %v3604_v32 }
 0x70a   :  { %v3606_v16 = vpop.eup %3605 }
 0x70b   :  { %v3608_v59 = vpop.eup %3607  ;;  %3609 = vrcp.f32 %v3243_v44  ;;  %v3244_v23 = vadd.f32 1.0, %v3606_v16  ;;  %v3271_v57 = vand.u32 2147483648, %v3243_v44  ;;  %v3269_v20 = vand.u32 2147483647, %v3243_v44 }
 0x70c   :  { %v3246_v14 = vmul.f32 %v3608_v59, %v3242_v41  ;;  %vm3251_vm4 = vweird.f32 %v3608_v59  ;;  %vm3265_vm8 = vweird.f32 %v3243_v44 }
 0x70d   :  { %3611 = vrcp.f32 %v3244_v23  ;;  %vm3252_vm6 = vmor %vm3250_vm5, %vm3251_vm4  ;;  %v3272_v34 = vor.u32 1.1754944e-38, %v3271_v57  ;;  %vm3270_vm11 = vcmp.eq.f32.partialorder %v3269_v20, 8.507059e+37  ;;  %v3286_v48 = vand.u32 2147483648, %v3244_v23 }
 0x70e   :  { %v3247_v38 = vsub.f32 1.0, %v3246_v14  ;;  %3613 = vtanh.f32 %v3231_v17  ;;  %vm3280_vm13 = vweird.f32 %v3244_v23  ;;  %v3284_v37 = vand.u32 2147483647, %v3244_v23 }
 0x70f   :  { %v3287_v28 = vor.u32 1.1754944e-38, %v3286_v48 }
 0x710   :  { %v3248_v47 = vmul.f32 %v3608_v59, %v3247_v38  ;;  %vm3285_vm15 = vcmp.eq.f32.partialorder %v3284_v37, 8.507059e+37 }
 0x711   :  { %v3610_v55 = vpop.eup %3609 }
 0x712   :  { %v3261_v53 = vmul.f32 %v3610_v55, %v3243_v44  ;;  %v3249_v42 = vadd.f32 %v3608_v59, %v3248_v47  ;;  %vm3266_vm7 = vweird.f32 %v3610_v55 }
 0x713   :  { %v3612_v35 = vpop.eup %3611  ;;  %vm3267_vm10 = vmor %vm3265_vm8, %vm3266_vm7 }
 0x714   :  { %v3262_v56 = vsub.f32 1.0, %v3261_v53  ;;  %v3276_v61 = vmul.f32 %v3612_v35, %v3244_v23  ;;  %v3253_v31 = vsel %vm3252_vm6, %v3608_v59, %v3249_v42  ;;  %v3614_v39 = vpop.eup %3613  ;;  %vm3281_vm12 = vweird.f32 %v3612_v35 }
 0x715   :  { %v3258_v51 = vsel %vm3255_vm9, %v3257_v29, %v3253_v31  ;;  %vm3282_vm14 = vmor %vm3280_vm13, %vm3281_vm12 }
 0x716   :  { %v3263_v8 = vmul.f32 %v3610_v55, %v3262_v56  ;;  %v3277_v1 = vsub.f32 1.0, %v3276_v61  ;;  %v3293_v22 = vmul.f32 %v3614_v39, %v3258_v51 }
 0x718   :  { %v3264_v5 = vadd.f32 %v3610_v55, %v3263_v8  ;;  %v3278_v30 = vmul.f32 %v3612_v35, %v3277_v1 }
 0x71a   :  { %v3268_v25 = vsel %vm3267_vm10, %v3610_v55, %v3264_v5  ;;  %v3279_v54 = vadd.f32 %v3612_v35, %v3278_v30 }
 0x71b   :  { %v3273_v13 = vsel %vm3270_vm11, %v3272_v34, %v3268_v25 }
 0x71c   :  { %v3292_v36 = vmul.f32 %v3273_v13, %v8640_v45  ;;  %v3283_v26 = vsel %vm3282_vm14, %v3612_v35, %v3279_v54 }
 0x71d   :  { %v3288_v43 = vsel %vm3285_vm15, %v3287_v28, %v3283_v26 }
 0x71e   :  { %v3294_v2 = vadd.f32 %v3293_v22, %v3292_v36 }
 0x720   :  { %3615 = vtanh.f32 %v3294_v2 }
 0x726   :  { %v3616_v52 = vpop.eup %3615 }
 0x727   :  { %v3296_v63 = vmul.f32 %v3616_v52, %v3288_v43 }
 0x729   :  { %3303 = vst [vmem:[%s8677_s4] sm:$0xff] %v3296_v63 }
 0x72a   :  { %3308 = vsyncpa [#allocation7], 1 }

</bundles_post_ra>
